<compile_context>
chip_gen: v5e
topology: v5e:2x2
jax: 0.10.0
libtpu: 0.0.40
codegen_flags: <defaults>
</compile_context>

<pallas_src>
import numpy as np
import jax
import jax.numpy as jnp
from jax.experimental import pallas as pl
from jax.experimental.pallas import tpu as pltpu

BN_EPS = 1e-5

# (c_in, c_out) of the 7 ConvTranspose1d layers.
_CONV_IO = ((1, 2), (2, 4), (4, 8), (8, 16), (16, 32), (32, 64), (64, 2))
# Row offset of each layer inside the packed weight slab (multiples of 8 -> aligned slices).
_ROW_OFF = (0, 8, 16, 24, 40, 72, 136)
_SLAB_SHAPE = (144, 128)


# ----------------------------- upsample matrices -----------------------------

def make_upsample_matrix(L):
    """(L, 2L) matrix matching nn.Upsample(scale_factor=2, mode='linear',
    align_corners=False): y[:, j] = sum_i x[:, i] * U[i, j].
    Entries are in {0, 0.25, 0.75, 1.0} -> exactly representable in bfloat16."""
    L2 = 2 * L
    j = np.arange(L2)
    src = np.maximum((j + 0.5) * 0.5 - 0.5, 0.0)
    i0 = np.floor(src).astype(np.int64)
    frac = (src - i0).astype(np.float32)
    i1 = np.minimum(i0 + 1, L - 1)
    U = np.zeros((L, L2), dtype=np.float32)
    np.add.at(U, (i0, j), 1.0 - frac)
    np.add.at(U, (i1, j), frac)
    return U


_UP_MATS = tuple(jnp.asarray(make_upsample_matrix(L), dtype=jnp.bfloat16)
                 for L in (128, 256, 512))


# ------------------------------- kernel helpers -------------------------------

def _edge_masks(N, L):
    """(1, N) float masks for positions with a valid left / right neighbour inside their
    own sample. Samples are lane-concatenated; L (per-sample length) is a power of two."""
    pos = jax.lax.broadcasted_iota(jnp.int32, (1, N), 1) & (L - 1)
    has_left = (pos != 0).astype(jnp.float32)
    has_right = (pos != (L - 1)).astype(jnp.float32)
    return has_left, has_right


def _shifted_taps(x, L):
    """Return (x[:, j-1], x[:, j+1]) with zeros at per-sample boundaries.
    pltpu.roll needs non-negative shifts, so the left-shift-by-1 is a roll by N-1."""
    _, N = x.shape
    has_left, has_right = _edge_masks(N, L)
    x_m1 = pltpu.roll(x, shift=1, axis=1) * has_left        # x[:, j-1]
    x_p1 = pltpu.roll(x, shift=N - 1, axis=1) * has_right   # x[:, j+1]
    return x_m1, x_p1


def _conv_bn_relu_vpu(x, slab_ref, layer, L):
    """Tiny conv (c_in <= 4): broadcast FMAs on the VPU; keeps the MXU free."""
    c_in, c_out = _CONV_IO[layer]
    r0 = _ROW_OFF[layer]
    N = x.shape[1]
    w = slab_ref[r0:r0 + c_out, 0:3 * c_in + 1]              # [tap0|tap1|tap2|shift]
    x_m1, x_p1 = _shifted_taps(x, L)
    taps = (x_p1, x, x_m1)                                   # tap order matches k=0,1,2
    acc = jnp.zeros((c_out, N), jnp.float32) + w[:, 3 * c_in:3 * c_in + 1]
    for k in range(3):
        for ci in range(c_in):
            col = w[:, k * c_in + ci:k * c_in + ci + 1]      # (c_out, 1)
            acc = acc + col * taps[k][ci:ci + 1, :]          # (c_out,1)*(1,N) -> (c_out,N)
    return jnp.maximum(acc, 0.0)


def _conv_bn_relu_mxu(x, slab_ref, layer, L):
    """ConvTranspose1d(k=3,p=1) + folded-BN + ReLU as ONE MXU matmul.

    Weight slice is (c_out, 3*c_in + 1): the three taps concatenated along K with the
    inference BN scale folded in, plus the BN shift as an augmented bias column that
    multiplies a ones row appended to the tap stack."""
    c_in, c_out = _CONV_IO[layer]
    r0 = _ROW_OFF[layer]
    N = x.shape[1]
    w = slab_ref[r0:r0 + c_out, 0:3 * c_in + 1]
    x_m1, x_p1 = _shifted_taps(x, L)
    xs = jnp.concatenate([x_p1, x, x_m1, jnp.ones((1, N), jnp.float32)], axis=0)
    y = jnp.dot(w, xs, preferred_element_type=jnp.float32)
    return jnp.maximum(y, 0.0)


def _upsample2x(y, u_ref, batch, L):
    """Per-sample 2x linear upsample of lane-concatenated y: (C, batch*L) -> (C, batch*2L).
    U is bf16 (lossless); activations cast to bf16, accumulation in f32 on the MXU."""
    u = u_ref[...]
    parts = [jnp.dot(y[:, b * L:(b + 1) * L].astype(jnp.bfloat16), u,
                     preferred_element_type=jnp.float32) for b in range(batch)]
    return parts[0] if batch == 1 else jnp.concatenate(parts, axis=1)


def _decoder_kernel(x_ref, slab_ref, u1_ref, u2_ref, u3_ref, o_ref):
    batch = o_ref.shape[0]
    y = x_ref[...]                                    # (1,  B*128)
    y = _conv_bn_relu_vpu(y, slab_ref, 0, 128)        # (2,  B*128)
    y = _conv_bn_relu_vpu(y, slab_ref, 1, 128)        # (4,  B*128)
    y = _upsample2x(y, u1_ref, batch, 128)            # (4,  B*256)
    y = _conv_bn_relu_vpu(y, slab_ref, 2, 256)        # (8,  B*256)
    y = _conv_bn_relu_mxu(y, slab_ref, 3, 256)        # (16, B*256)
    y = _upsample2x(y, u2_ref, batch, 256)            # (16, B*512)
    y = _conv_bn_relu_mxu(y, slab_ref, 4, 512)        # (32, B*512)
    y = _conv_bn_relu_mxu(y, slab_ref, 5, 512)        # (64, B*512)

    # Final stage: conv7's per-tap channel mix (64 -> 2) BEFORE the last 2x upsample
    # (both linear; ReLU comes after). w7 rows (2k + co) hold tap k of output channel co;
    # the BN shift sits in the bias column of the k=1 rows and rides through the upsample
    # unchanged because every upsample column sums to 1.
    r7 = _ROW_OFF[6]
    w7 = slab_ref[r7:r7 + 6, 0:65]                                        # (6, 65)
    N = y.shape[1]
    y1 = jnp.concatenate([y, jnp.ones((1, N), jnp.float32)], axis=0)      # (65, B*512)
    t = jnp.dot(w7, y1, preferred_element_type=jnp.float32)               # (6,  B*512)
    p = _upsample2x(t, u3_ref, batch, 512)                                # (6,  B*1024)

    N2 = p.shape[1]
    has_left, has_right = _edge_masks(N2, 1024)
    p0 = pltpu.roll(p[0:2], shift=N2 - 1, axis=1) * has_right             # tap k=0: z[:, j+1]
    p2 = pltpu.roll(p[4:6], shift=1, axis=1) * has_left                   # tap k=2: z[:, j-1]
    out = jnp.maximum(p0 + p[2:4] + p2, 0.0)                              # (2, B*1024)
    for b in range(batch):
        o_ref[b] = out[:, b * 1024:(b + 1) * 1024]


# ------------------------------ host-side glue -------------------------------

def _build_weight_slab(params):
    """Pack all 7 ConvTranspose weights (inference BN scale folded in) + BN shifts into one
    (144, 128) f32 slab. Layers 1..6: rows [r0:r0+c_out] = [tap0|tap1|tap2|shift].
    Layer 7: rows (2k+co) = tap k of output channel co; shift in the bias column (col 64)
    of the k=1 rows."""
    slab = jnp.zeros(_SLAB_SHAPE, jnp.float32)
    for layer in range(6):
        w, scale, shift = params[layer]                 # w: (C_in, C_out, 3)
        ci, co, _ = w.shape
        r0 = _ROW_OFF[layer]
        wstk = jnp.concatenate([w[:, :, k].T for k in range(3)], axis=1)   # (co, 3ci)
        slab = slab.at[r0:r0 + co, 0:3 * ci].set(scale[:, None] * wstk)
        slab = slab.at[r0:r0 + co, 3 * ci].set(shift)
    w, scale, shift = params[6]                          # (64, 2, 3)
    r0 = _ROW_OFF[6]
    for k in range(3):
        slab = slab.at[r0 + 2 * k:r0 + 2 * k + 2, 0:64].set(scale[:, None] * w[:, :, k].T)
    slab = slab.at[r0 + 2:r0 + 4, 64].set(shift)
    return slab


def _decoder_pallas(x2, slab, u_mats):
    batch = x2.shape[1] // 128
    operands = (x2, slab) + tuple(u_mats)                # 5 operands total (all 2-D)
    in_specs = [pl.BlockSpec(a.shape, lambda i: (0, 0)) for a in operands]
    return pl.pallas_call(
        _decoder_kernel,
        out_shape=jax.ShapeDtypeStruct((batch, 2, 1024), jnp.float32),
        grid=(1,),                                        # whole (lane-concatenated) batch at once
        in_specs=in_specs,
        out_specs=pl.BlockSpec((batch, 2, 1024), lambda i: (0, 0, 0)),
        compiler_params=pltpu.CompilerParams(dimension_semantics=("arbitrary",)),
    )(*operands)


@jax.jit
def xrd_decoder_forward(x, params):
    """Mirror of XRDDecoder.forward: (B, 1, 128) -> (B, 2, 1024)."""
    assert x.shape[1] == 1 and x.shape[2] == 128
    B = x.shape[0]
    x2 = x.astype(jnp.float32).reshape(1, B * 128)        # lane-concatenate the batch
    slab = _build_weight_slab(params)
    out = _decoder_pallas(x2, slab, _UP_MATS)
    assert out.shape == (B, 2, 1024)
    return out


def init_params(key):
    """Deterministic parameters for all 7 ConvTranspose1d + BatchNorm1d blocks."""
    params = []
    for (ci, co) in _CONV_IO:
        key, kw, kg, kb, km, kv = jax.random.split(key, 6)
        w = 0.2 * jax.random.normal(kw, (ci, co, 3), jnp.float32)        # (C_in, C_out, K)
        gamma = 1.0 + 0.1 * jax.random.normal(kg, (co,), jnp.float32)
        beta = 0.1 * jax.random.normal(kb, (co,), jnp.float32)
        running_mean = 0.1 * jax.random.normal(km, (co,), jnp.float32)
        running_var = jnp.abs(jax.random.normal(kv, (co,), jnp.float32)) + 0.5
        scale = gamma / jnp.sqrt(running_var + BN_EPS)
        shift = beta - running_mean * scale
        params.append((w, scale, shift))
    return params


# --------------------------- pure-JAX reference path --------------------------

def _ref_conv_bn_relu(x, w, scale, shift):
    hp = jax.lax.Precision.HIGHEST
    xp = jnp.pad(x, ((0, 0), (0, 0), (1, 1)))
    y = (jnp.einsum('bcl,cd->bdl', xp[:, :, 2:], w[:, :, 0], precision=hp)
         + jnp.einsum('bcl,cd->bdl', xp[:, :, 1:-1], w[:, :, 1], precision=hp)
         + jnp.einsum('bcl,cd->bdl', xp[:, :, :-2], w[:, :, 2], precision=hp))
    y = y * scale[None, :, None] + shift[None, :, None]
    return jnp.maximum(y, 0.0)


def _ref_upsample_linear2x(x):
    """Index-based nn.Upsample(scale_factor=2, mode='linear', align_corners=False)
    reference, independent of make_upsample_matrix."""
    L = x.shape[-1]
    j = jnp.arange(2 * L)
    src = jnp.maximum((j + 0.5) * 0.5 - 0.5, 0.0)
    i0 = jnp.floor(src).astype(jnp.int32)
    i1 = jnp.minimum(i0 + 1, L - 1)
    frac = (src - i0).astype(jnp.float32)
    return x[:, :, i0] * (1.0 - frac) + x[:, :, i1] * frac


def reference_forward(x, params):
    y = x.astype(jnp.float32)
    idx = 0
    for _ in range(3):
        for _ in range(2):
            w, s, b = params[idx]
            idx += 1
            y = _ref_conv_bn_relu(y, w, s, b)
        y = _ref_upsample_linear2x(y)
    w, s, b = params[idx]
    return _ref_conv_bn_relu(y, w, s, b)


if __name__ == "__main__":
    key = jax.random.PRNGKey(0)
    kx, kp = jax.random.split(key)
    x = jax.random.normal(kx, (2, 1, 128), jnp.float32)   # (batch=2, channels=1, length=128)
    params = init_params(kp)

    out = xrd_decoder_forward(x, params)
    out = jax.block_until_ready(out)
    assert out.shape == (2, 2, 1024)
    assert bool(jnp.all(jnp.isfinite(out)))

    ref = reference_forward(x, params)
    err = float(jnp.max(jnp.abs(out - ref)))
    tol = 5e-2 * (float(jnp.max(jnp.abs(ref))) + 1.0)     # loose: bf16 upsample + MXU default precision
    assert err <= tol, f"kernel/reference mismatch: max_abs_err={err} tol={tol}"

    print("KERNEL_OK")
</pallas_src>

<mosaic_0001>
module attributes {stable_mosaic.version = 11 : i64} {
  func.func @_decoder_kernel(%arg0: i32, %arg1: memref<1x256xf32, #tpu.memory_space<vmem>>, %arg2: memref<144x128xf32, #tpu.memory_space<vmem>>, %arg3: memref<128x256xbf16, #tpu.memory_space<vmem>>, %arg4: memref<256x512xbf16, #tpu.memory_space<vmem>>, %arg5: memref<512x1024xbf16, #tpu.memory_space<vmem>>, %arg6: memref<2x2x1024xf32, #tpu.memory_space<vmem>>) attributes {dimension_semantics = [#tpu.dimension_semantics<arbitrary>], iteration_bounds = array<i64: 1>, scalar_prefetch = 0 : i64, scratch_operands = 0 : i64, tpu.core_type = #tpu.core_type<tc>, window_params = [{pipeline_mode = #tpu.pipeline_mode<synchronous>, transform_indices = @transform_0, window_bounds = array<i64: 1, 256>}, {pipeline_mode = #tpu.pipeline_mode<synchronous>, transform_indices = @transform_1, window_bounds = array<i64: 144, 128>}, {pipeline_mode = #tpu.pipeline_mode<synchronous>, transform_indices = @transform_2, window_bounds = array<i64: 128, 256>}, {pipeline_mode = #tpu.pipeline_mode<synchronous>, transform_indices = @transform_3, window_bounds = array<i64: 256, 512>}, {pipeline_mode = #tpu.pipeline_mode<synchronous>, transform_indices = @transform_4, window_bounds = array<i64: 512, 1024>}, {pipeline_mode = #tpu.pipeline_mode<synchronous>, transform_indices = @transform_5, window_bounds = array<i64: 2, 2, 1024>}]} {
    %c0 = arith.constant 0 : index
    %c0_0 = arith.constant 0 : index
    %0 = vector.load %arg1[%c0, %c0_0] : memref<1x256xf32, #tpu.memory_space<vmem>>, vector<1x256xf32>
    %c0_1 = arith.constant 0 : index
    %c0_2 = arith.constant 0 : index
    %1 = vector.load %arg2[%c0_1, %c0_2] : memref<144x128xf32, #tpu.memory_space<vmem>>, vector<2x4xf32>
    %2 = tpu.iota {dimensions = array<i32: 1>} : vector<1x256xi32>
    %c127_i32 = arith.constant 127 : i32
    %3 = vector.broadcast %c127_i32 : i32 to vector<1x256xi32>
    %4 = arith.andi %2, %3 : vector<1x256xi32>
    %c0_i32 = arith.constant 0 : i32
    %5 = vector.broadcast %c0_i32 : i32 to vector<1x256xi32>
    %6 = arith.cmpi ne, %4, %5 : vector<1x256xi32>
    %7 = arith.extui %6 : vector<1x256xi1> to vector<1x256xi32>
    %8 = arith.sitofp %7 : vector<1x256xi32> to vector<1x256xf32>
    %c127_i32_3 = arith.constant 127 : i32
    %9 = vector.broadcast %c127_i32_3 : i32 to vector<1x256xi32>
    %10 = arith.cmpi ne, %4, %9 : vector<1x256xi32>
    %11 = arith.extui %10 : vector<1x256xi1> to vector<1x256xi32>
    %12 = arith.sitofp %11 : vector<1x256xi32> to vector<1x256xf32>
    %c1_i32 = arith.constant 1 : i32
    %13 = tpu.dynamic_rotate %0 by %c1_i32 dim 1 : vector<1x256xf32>, i32 -> vector<1x256xf32>
    %14 = arith.mulf %13, %8 : vector<1x256xf32>
    %c255_i32 = arith.constant 255 : i32
    %15 = tpu.dynamic_rotate %0 by %c255_i32 dim 1 : vector<1x256xf32>, i32 -> vector<1x256xf32>
    %16 = arith.mulf %15, %12 : vector<1x256xf32>
    %cst = arith.constant 0.000000e+00 : f32
    %17 = vector.broadcast %cst : f32 to vector<2x256xf32>
    %18 = vector.extract_strided_slice %1 {offsets = [0, 3], sizes = [2, 1], strides = [1, 1]} : vector<2x4xf32> to vector<2x1xf32>
    %19 = vector.broadcast %18 : vector<2x1xf32> to vector<2x256xf32>
    %20 = arith.addf %17, %19 : vector<2x256xf32>
    %21 = vector.extract_strided_slice %1 {offsets = [0, 0], sizes = [2, 1], strides = [1, 1]} : vector<2x4xf32> to vector<2x1xf32>
    %22 = vector.broadcast %21 : vector<2x1xf32> to vector<2x256xf32>
    %23 = vector.broadcast %16 : vector<1x256xf32> to vector<2x256xf32>
    %24 = arith.mulf %22, %23 : vector<2x256xf32>
    %25 = arith.addf %20, %24 : vector<2x256xf32>
    %26 = vector.extract_strided_slice %1 {offsets = [0, 1], sizes = [2, 1], strides = [1, 1]} : vector<2x4xf32> to vector<2x1xf32>
    %27 = vector.broadcast %26 : vector<2x1xf32> to vector<2x256xf32>
    %28 = vector.broadcast %0 : vector<1x256xf32> to vector<2x256xf32>
    %29 = arith.mulf %27, %28 : vector<2x256xf32>
    %30 = arith.addf %25, %29 : vector<2x256xf32>
    %31 = vector.extract_strided_slice %1 {offsets = [0, 2], sizes = [2, 1], strides = [1, 1]} : vector<2x4xf32> to vector<2x1xf32>
    %32 = vector.broadcast %31 : vector<2x1xf32> to vector<2x256xf32>
    %33 = vector.broadcast %14 : vector<1x256xf32> to vector<2x256xf32>
    %34 = arith.mulf %32, %33 : vector<2x256xf32>
    %35 = arith.addf %30, %34 : vector<2x256xf32>
    %cst_4 = arith.constant 0.000000e+00 : f32
    %36 = vector.broadcast %cst_4 : f32 to vector<2x256xf32>
    %37 = arith.maximumf %35, %36 : vector<2x256xf32>
    %c8 = arith.constant 8 : index
    %c0_5 = arith.constant 0 : index
    %38 = vector.load %arg2[%c8, %c0_5] : memref<144x128xf32, #tpu.memory_space<vmem>>, vector<4x7xf32>
    %39 = tpu.iota {dimensions = array<i32: 1>} : vector<1x256xi32>
    %c127_i32_6 = arith.constant 127 : i32
    %40 = vector.broadcast %c127_i32_6 : i32 to vector<1x256xi32>
    %41 = arith.andi %39, %40 : vector<1x256xi32>
    %c0_i32_7 = arith.constant 0 : i32
    %42 = vector.broadcast %c0_i32_7 : i32 to vector<1x256xi32>
    %43 = arith.cmpi ne, %41, %42 : vector<1x256xi32>
    %44 = arith.extui %43 : vector<1x256xi1> to vector<1x256xi32>
    %45 = arith.sitofp %44 : vector<1x256xi32> to vector<1x256xf32>
    %c127_i32_8 = arith.constant 127 : i32
    %46 = vector.broadcast %c127_i32_8 : i32 to vector<1x256xi32>
    %47 = arith.cmpi ne, %41, %46 : vector<1x256xi32>
    %48 = arith.extui %47 : vector<1x256xi1> to vector<1x256xi32>
    %49 = arith.sitofp %48 : vector<1x256xi32> to vector<1x256xf32>
    %c1_i32_9 = arith.constant 1 : i32
    %50 = tpu.dynamic_rotate %37 by %c1_i32_9 dim 1 : vector<2x256xf32>, i32 -> vector<2x256xf32>
    %51 = vector.broadcast %45 : vector<1x256xf32> to vector<2x256xf32>
    %52 = arith.mulf %50, %51 : vector<2x256xf32>
    %c255_i32_10 = arith.constant 255 : i32
    %53 = tpu.dynamic_rotate %37 by %c255_i32_10 dim 1 : vector<2x256xf32>, i32 -> vector<2x256xf32>
    %54 = vector.broadcast %49 : vector<1x256xf32> to vector<2x256xf32>
    %55 = arith.mulf %53, %54 : vector<2x256xf32>
    %cst_11 = arith.constant 0.000000e+00 : f32
    %56 = vector.broadcast %cst_11 : f32 to vector<4x256xf32>
    %57 = vector.extract_strided_slice %38 {offsets = [0, 6], sizes = [4, 1], strides = [1, 1]} : vector<4x7xf32> to vector<4x1xf32>
    %58 = vector.broadcast %57 : vector<4x1xf32> to vector<4x256xf32>
    %59 = arith.addf %56, %58 : vector<4x256xf32>
    %60 = vector.extract_strided_slice %38 {offsets = [0, 0], sizes = [4, 1], strides = [1, 1]} : vector<4x7xf32> to vector<4x1xf32>
    %61 = vector.extract_strided_slice %55 {offsets = [0, 0], sizes = [1, 256], strides = [1, 1]} : vector<2x256xf32> to vector<1x256xf32>
    %62 = vector.broadcast %60 : vector<4x1xf32> to vector<4x256xf32>
    %63 = vector.broadcast %61 : vector<1x256xf32> to vector<4x256xf32>
    %64 = arith.mulf %62, %63 : vector<4x256xf32>
    %65 = arith.addf %59, %64 : vector<4x256xf32>
    %66 = vector.extract_strided_slice %38 {offsets = [0, 1], sizes = [4, 1], strides = [1, 1]} : vector<4x7xf32> to vector<4x1xf32>
    %67 = vector.extract_strided_slice %55 {offsets = [1, 0], sizes = [1, 256], strides = [1, 1]} : vector<2x256xf32> to vector<1x256xf32>
    %68 = vector.broadcast %66 : vector<4x1xf32> to vector<4x256xf32>
    %69 = vector.broadcast %67 : vector<1x256xf32> to vector<4x256xf32>
    %70 = arith.mulf %68, %69 : vector<4x256xf32>
    %71 = arith.addf %65, %70 : vector<4x256xf32>
    %72 = vector.extract_strided_slice %38 {offsets = [0, 2], sizes = [4, 1], strides = [1, 1]} : vector<4x7xf32> to vector<4x1xf32>
    %73 = vector.extract_strided_slice %37 {offsets = [0, 0], sizes = [1, 256], strides = [1, 1]} : vector<2x256xf32> to vector<1x256xf32>
    %74 = vector.broadcast %72 : vector<4x1xf32> to vector<4x256xf32>
    %75 = vector.broadcast %73 : vector<1x256xf32> to vector<4x256xf32>
    %76 = arith.mulf %74, %75 : vector<4x256xf32>
    %77 = arith.addf %71, %76 : vector<4x256xf32>
    %78 = vector.extract_strided_slice %38 {offsets = [0, 3], sizes = [4, 1], strides = [1, 1]} : vector<4x7xf32> to vector<4x1xf32>
    %79 = vector.extract_strided_slice %37 {offsets = [1, 0], sizes = [1, 256], strides = [1, 1]} : vector<2x256xf32> to vector<1x256xf32>
    %80 = vector.broadcast %78 : vector<4x1xf32> to vector<4x256xf32>
    %81 = vector.broadcast %79 : vector<1x256xf32> to vector<4x256xf32>
    %82 = arith.mulf %80, %81 : vector<4x256xf32>
    %83 = arith.addf %77, %82 : vector<4x256xf32>
    %84 = vector.extract_strided_slice %38 {offsets = [0, 4], sizes = [4, 1], strides = [1, 1]} : vector<4x7xf32> to vector<4x1xf32>
    %85 = vector.extract_strided_slice %52 {offsets = [0, 0], sizes = [1, 256], strides = [1, 1]} : vector<2x256xf32> to vector<1x256xf32>
    %86 = vector.broadcast %84 : vector<4x1xf32> to vector<4x256xf32>
    %87 = vector.broadcast %85 : vector<1x256xf32> to vector<4x256xf32>
    %88 = arith.mulf %86, %87 : vector<4x256xf32>
    %89 = arith.addf %83, %88 : vector<4x256xf32>
    %90 = vector.extract_strided_slice %38 {offsets = [0, 5], sizes = [4, 1], strides = [1, 1]} : vector<4x7xf32> to vector<4x1xf32>
    %91 = vector.extract_strided_slice %52 {offsets = [1, 0], sizes = [1, 256], strides = [1, 1]} : vector<2x256xf32> to vector<1x256xf32>
    %92 = vector.broadcast %90 : vector<4x1xf32> to vector<4x256xf32>
    %93 = vector.broadcast %91 : vector<1x256xf32> to vector<4x256xf32>
    %94 = arith.mulf %92, %93 : vector<4x256xf32>
    %95 = arith.addf %89, %94 : vector<4x256xf32>
    %cst_12 = arith.constant 0.000000e+00 : f32
    %96 = vector.broadcast %cst_12 : f32 to vector<4x256xf32>
    %97 = arith.maximumf %95, %96 : vector<4x256xf32>
    %c0_13 = arith.constant 0 : index
    %c0_14 = arith.constant 0 : index
    %98 = vector.load %arg3[%c0_13, %c0_14] : memref<128x256xbf16, #tpu.memory_space<vmem>>, vector<128x256xbf16>
    %99 = vector.extract_strided_slice %97 {offsets = [0, 0], sizes = [4, 128], strides = [1, 1]} : vector<4x256xf32> to vector<4x128xf32>
    %100 = arith.truncf %99 : vector<4x128xf32> to vector<4x128xbf16>
    %cst_15 = arith.constant dense<0.000000e+00> : vector<4x256xf32>
    %101 = tpu.matmul %100, %98, %cst_15 {dimension_numbers = #tpu.dot_dimension_numbers<[1], [0], [0], [1], [0, 0, 1, 1], [], []>} : vector<4x128xbf16>, vector<128x256xbf16>, vector<4x256xf32> -> vector<4x256xf32>
    %102 = vector.extract_strided_slice %97 {offsets = [0, 128], sizes = [4, 128], strides = [1, 1]} : vector<4x256xf32> to vector<4x128xf32>
    %103 = arith.truncf %102 : vector<4x128xf32> to vector<4x128xbf16>
    %cst_16 = arith.constant dense<0.000000e+00> : vector<4x256xf32>
    %104 = tpu.matmul %103, %98, %cst_16 {dimension_numbers = #tpu.dot_dimension_numbers<[1], [0], [0], [1], [0, 0, 1, 1], [], []>} : vector<4x128xbf16>, vector<128x256xbf16>, vector<4x256xf32> -> vector<4x256xf32>
    %105 = tpu.concatenate %101, %104 in 1 : vector<4x256xf32>, vector<4x256xf32> -> vector<4x512xf32>
    %c16 = arith.constant 16 : index
    %c0_17 = arith.constant 0 : index
    %106 = vector.load %arg2[%c16, %c0_17] : memref<144x128xf32, #tpu.memory_space<vmem>>, vector<8x13xf32>
    %107 = tpu.iota {dimensions = array<i32: 1>} : vector<1x512xi32>
    %c255_i32_18 = arith.constant 255 : i32
    %108 = vector.broadcast %c255_i32_18 : i32 to vector<1x512xi32>
    %109 = arith.andi %107, %108 : vector<1x512xi32>
    %c0_i32_19 = arith.constant 0 : i32
    %110 = vector.broadcast %c0_i32_19 : i32 to vector<1x512xi32>
    %111 = arith.cmpi ne, %109, %110 : vector<1x512xi32>
    %112 = arith.extui %111 : vector<1x512xi1> to vector<1x512xi32>
    %113 = arith.sitofp %112 : vector<1x512xi32> to vector<1x512xf32>
    %c255_i32_20 = arith.constant 255 : i32
    %114 = vector.broadcast %c255_i32_20 : i32 to vector<1x512xi32>
    %115 = arith.cmpi ne, %109, %114 : vector<1x512xi32>
    %116 = arith.extui %115 : vector<1x512xi1> to vector<1x512xi32>
    %117 = arith.sitofp %116 : vector<1x512xi32> to vector<1x512xf32>
    %c1_i32_21 = arith.constant 1 : i32
    %118 = tpu.dynamic_rotate %105 by %c1_i32_21 dim 1 : vector<4x512xf32>, i32 -> vector<4x512xf32>
    %119 = vector.broadcast %113 : vector<1x512xf32> to vector<4x512xf32>
    %120 = arith.mulf %118, %119 : vector<4x512xf32>
    %c511_i32 = arith.constant 511 : i32
    %121 = tpu.dynamic_rotate %105 by %c511_i32 dim 1 : vector<4x512xf32>, i32 -> vector<4x512xf32>
    %122 = vector.broadcast %117 : vector<1x512xf32> to vector<4x512xf32>
    %123 = arith.mulf %121, %122 : vector<4x512xf32>
    %cst_22 = arith.constant 0.000000e+00 : f32
    %124 = vector.broadcast %cst_22 : f32 to vector<8x512xf32>
    %125 = vector.extract_strided_slice %106 {offsets = [0, 12], sizes = [8, 1], strides = [1, 1]} : vector<8x13xf32> to vector<8x1xf32>
    %126 = vector.broadcast %125 : vector<8x1xf32> to vector<8x512xf32>
    %127 = arith.addf %124, %126 : vector<8x512xf32>
    %128 = vector.extract_strided_slice %106 {offsets = [0, 0], sizes = [8, 1], strides = [1, 1]} : vector<8x13xf32> to vector<8x1xf32>
    %129 = vector.extract_strided_slice %123 {offsets = [0, 0], sizes = [1, 512], strides = [1, 1]} : vector<4x512xf32> to vector<1x512xf32>
    %130 = vector.broadcast %128 : vector<8x1xf32> to vector<8x512xf32>
    %131 = vector.broadcast %129 : vector<1x512xf32> to vector<8x512xf32>
    %132 = arith.mulf %130, %131 : vector<8x512xf32>
    %133 = arith.addf %127, %132 : vector<8x512xf32>
    %134 = vector.extract_strided_slice %106 {offsets = [0, 1], sizes = [8, 1], strides = [1, 1]} : vector<8x13xf32> to vector<8x1xf32>
    %135 = vector.extract_strided_slice %123 {offsets = [1, 0], sizes = [1, 512], strides = [1, 1]} : vector<4x512xf32> to vector<1x512xf32>
    %136 = vector.broadcast %134 : vector<8x1xf32> to vector<8x512xf32>
    %137 = vector.broadcast %135 : vector<1x512xf32> to vector<8x512xf32>
    %138 = arith.mulf %136, %137 : vector<8x512xf32>
    %139 = arith.addf %133, %138 : vector<8x512xf32>
    %140 = vector.extract_strided_slice %106 {offsets = [0, 2], sizes = [8, 1], strides = [1, 1]} : vector<8x13xf32> to vector<8x1xf32>
    %141 = vector.extract_strided_slice %123 {offsets = [2, 0], sizes = [1, 512], strides = [1, 1]} : vector<4x512xf32> to vector<1x512xf32>
    %142 = vector.broadcast %140 : vector<8x1xf32> to vector<8x512xf32>
    %143 = vector.broadcast %141 : vector<1x512xf32> to vector<8x512xf32>
    %144 = arith.mulf %142, %143 : vector<8x512xf32>
    %145 = arith.addf %139, %144 : vector<8x512xf32>
    %146 = vector.extract_strided_slice %106 {offsets = [0, 3], sizes = [8, 1], strides = [1, 1]} : vector<8x13xf32> to vector<8x1xf32>
    %147 = vector.extract_strided_slice %123 {offsets = [3, 0], sizes = [1, 512], strides = [1, 1]} : vector<4x512xf32> to vector<1x512xf32>
    %148 = vector.broadcast %146 : vector<8x1xf32> to vector<8x512xf32>
    %149 = vector.broadcast %147 : vector<1x512xf32> to vector<8x512xf32>
    %150 = arith.mulf %148, %149 : vector<8x512xf32>
    %151 = arith.addf %145, %150 : vector<8x512xf32>
    %152 = vector.extract_strided_slice %106 {offsets = [0, 4], sizes = [8, 1], strides = [1, 1]} : vector<8x13xf32> to vector<8x1xf32>
    %153 = vector.extract_strided_slice %105 {offsets = [0, 0], sizes = [1, 512], strides = [1, 1]} : vector<4x512xf32> to vector<1x512xf32>
    %154 = vector.broadcast %152 : vector<8x1xf32> to vector<8x512xf32>
    %155 = vector.broadcast %153 : vector<1x512xf32> to vector<8x512xf32>
    %156 = arith.mulf %154, %155 : vector<8x512xf32>
    %157 = arith.addf %151, %156 : vector<8x512xf32>
    %158 = vector.extract_strided_slice %106 {offsets = [0, 5], sizes = [8, 1], strides = [1, 1]} : vector<8x13xf32> to vector<8x1xf32>
    %159 = vector.extract_strided_slice %105 {offsets = [1, 0], sizes = [1, 512], strides = [1, 1]} : vector<4x512xf32> to vector<1x512xf32>
    %160 = vector.broadcast %158 : vector<8x1xf32> to vector<8x512xf32>
    %161 = vector.broadcast %159 : vector<1x512xf32> to vector<8x512xf32>
    %162 = arith.mulf %160, %161 : vector<8x512xf32>
    %163 = arith.addf %157, %162 : vector<8x512xf32>
    %164 = vector.extract_strided_slice %106 {offsets = [0, 6], sizes = [8, 1], strides = [1, 1]} : vector<8x13xf32> to vector<8x1xf32>
    %165 = vector.extract_strided_slice %105 {offsets = [2, 0], sizes = [1, 512], strides = [1, 1]} : vector<4x512xf32> to vector<1x512xf32>
    %166 = vector.broadcast %164 : vector<8x1xf32> to vector<8x512xf32>
    %167 = vector.broadcast %165 : vector<1x512xf32> to vector<8x512xf32>
    %168 = arith.mulf %166, %167 : vector<8x512xf32>
    %169 = arith.addf %163, %168 : vector<8x512xf32>
    %170 = vector.extract_strided_slice %106 {offsets = [0, 7], sizes = [8, 1], strides = [1, 1]} : vector<8x13xf32> to vector<8x1xf32>
    %171 = vector.extract_strided_slice %105 {offsets = [3, 0], sizes = [1, 512], strides = [1, 1]} : vector<4x512xf32> to vector<1x512xf32>
    %172 = vector.broadcast %170 : vector<8x1xf32> to vector<8x512xf32>
    %173 = vector.broadcast %171 : vector<1x512xf32> to vector<8x512xf32>
    %174 = arith.mulf %172, %173 : vector<8x512xf32>
    %175 = arith.addf %169, %174 : vector<8x512xf32>
    %176 = vector.extract_strided_slice %106 {offsets = [0, 8], sizes = [8, 1], strides = [1, 1]} : vector<8x13xf32> to vector<8x1xf32>
    %177 = vector.extract_strided_slice %120 {offsets = [0, 0], sizes = [1, 512], strides = [1, 1]} : vector<4x512xf32> to vector<1x512xf32>
    %178 = vector.broadcast %176 : vector<8x1xf32> to vector<8x512xf32>
    %179 = vector.broadcast %177 : vector<1x512xf32> to vector<8x512xf32>
    %180 = arith.mulf %178, %179 : vector<8x512xf32>
    %181 = arith.addf %175, %180 : vector<8x512xf32>
    %182 = vector.extract_strided_slice %106 {offsets = [0, 9], sizes = [8, 1], strides = [1, 1]} : vector<8x13xf32> to vector<8x1xf32>
    %183 = vector.extract_strided_slice %120 {offsets = [1, 0], sizes = [1, 512], strides = [1, 1]} : vector<4x512xf32> to vector<1x512xf32>
    %184 = vector.broadcast %182 : vector<8x1xf32> to vector<8x512xf32>
    %185 = vector.broadcast %183 : vector<1x512xf32> to vector<8x512xf32>
    %186 = arith.mulf %184, %185 : vector<8x512xf32>
    %187 = arith.addf %181, %186 : vector<8x512xf32>
    %188 = vector.extract_strided_slice %106 {offsets = [0, 10], sizes = [8, 1], strides = [1, 1]} : vector<8x13xf32> to vector<8x1xf32>
    %189 = vector.extract_strided_slice %120 {offsets = [2, 0], sizes = [1, 512], strides = [1, 1]} : vector<4x512xf32> to vector<1x512xf32>
    %190 = vector.broadcast %188 : vector<8x1xf32> to vector<8x512xf32>
    %191 = vector.broadcast %189 : vector<1x512xf32> to vector<8x512xf32>
    %192 = arith.mulf %190, %191 : vector<8x512xf32>
    %193 = arith.addf %187, %192 : vector<8x512xf32>
    %194 = vector.extract_strided_slice %106 {offsets = [0, 11], sizes = [8, 1], strides = [1, 1]} : vector<8x13xf32> to vector<8x1xf32>
    %195 = vector.extract_strided_slice %120 {offsets = [3, 0], sizes = [1, 512], strides = [1, 1]} : vector<4x512xf32> to vector<1x512xf32>
    %196 = vector.broadcast %194 : vector<8x1xf32> to vector<8x512xf32>
    %197 = vector.broadcast %195 : vector<1x512xf32> to vector<8x512xf32>
    %198 = arith.mulf %196, %197 : vector<8x512xf32>
    %199 = arith.addf %193, %198 : vector<8x512xf32>
    %cst_23 = arith.constant 0.000000e+00 : f32
    %200 = vector.broadcast %cst_23 : f32 to vector<8x512xf32>
    %201 = arith.maximumf %199, %200 : vector<8x512xf32>
    %c24 = arith.constant 24 : index
    %c0_24 = arith.constant 0 : index
    %202 = vector.load %arg2[%c24, %c0_24] : memref<144x128xf32, #tpu.memory_space<vmem>>, vector<16x25xf32>
    %203 = tpu.iota {dimensions = array<i32: 1>} : vector<1x512xi32>
    %c255_i32_25 = arith.constant 255 : i32
    %204 = vector.broadcast %c255_i32_25 : i32 to vector<1x512xi32>
    %205 = arith.andi %203, %204 : vector<1x512xi32>
    %c0_i32_26 = arith.constant 0 : i32
    %206 = vector.broadcast %c0_i32_26 : i32 to vector<1x512xi32>
    %207 = arith.cmpi ne, %205, %206 : vector<1x512xi32>
    %208 = arith.extui %207 : vector<1x512xi1> to vector<1x512xi32>
    %209 = arith.sitofp %208 : vector<1x512xi32> to vector<1x512xf32>
    %c255_i32_27 = arith.constant 255 : i32
    %210 = vector.broadcast %c255_i32_27 : i32 to vector<1x512xi32>
    %211 = arith.cmpi ne, %205, %210 : vector<1x512xi32>
    %212 = arith.extui %211 : vector<1x512xi1> to vector<1x512xi32>
    %213 = arith.sitofp %212 : vector<1x512xi32> to vector<1x512xf32>
    %c1_i32_28 = arith.constant 1 : i32
    %214 = tpu.dynamic_rotate %201 by %c1_i32_28 dim 1 : vector<8x512xf32>, i32 -> vector<8x512xf32>
    %215 = vector.broadcast %209 : vector<1x512xf32> to vector<8x512xf32>
    %216 = arith.mulf %214, %215 : vector<8x512xf32>
    %c511_i32_29 = arith.constant 511 : i32
    %217 = tpu.dynamic_rotate %201 by %c511_i32_29 dim 1 : vector<8x512xf32>, i32 -> vector<8x512xf32>
    %218 = vector.broadcast %213 : vector<1x512xf32> to vector<8x512xf32>
    %219 = arith.mulf %217, %218 : vector<8x512xf32>
    %cst_30 = arith.constant 1.000000e+00 : f32
    %220 = vector.broadcast %cst_30 : f32 to vector<1x512xf32>
    %221 = tpu.concatenate %219, %201, %216, %220 in 0 : vector<8x512xf32>, vector<8x512xf32>, vector<8x512xf32>, vector<1x512xf32> -> vector<25x512xf32>
    %cst_31 = arith.constant dense<0.000000e+00> : vector<16x512xf32>
    %222 = tpu.matmul %202, %221, %cst_31 {dimension_numbers = #tpu.dot_dimension_numbers<[1], [0], [0], [1], [0, 0, 1, 1], [], []>} : vector<16x25xf32>, vector<25x512xf32>, vector<16x512xf32> -> vector<16x512xf32>
    %cst_32 = arith.constant 0.000000e+00 : f32
    %223 = vector.broadcast %cst_32 : f32 to vector<16x512xf32>
    %224 = arith.maximumf %222, %223 : vector<16x512xf32>
    %c0_33 = arith.constant 0 : index
    %c0_34 = arith.constant 0 : index
    %225 = vector.load %arg4[%c0_33, %c0_34] : memref<256x512xbf16, #tpu.memory_space<vmem>>, vector<256x512xbf16>
    %226 = vector.extract_strided_slice %224 {offsets = [0, 0], sizes = [16, 256], strides = [1, 1]} : vector<16x512xf32> to vector<16x256xf32>
    %227 = arith.truncf %226 : vector<16x256xf32> to vector<16x256xbf16>
    %cst_35 = arith.constant dense<0.000000e+00> : vector<16x512xf32>
    %228 = tpu.matmul %227, %225, %cst_35 {dimension_numbers = #tpu.dot_dimension_numbers<[1], [0], [0], [1], [0, 0, 1, 1], [], []>} : vector<16x256xbf16>, vector<256x512xbf16>, vector<16x512xf32> -> vector<16x512xf32>
    %229 = vector.extract_strided_slice %224 {offsets = [0, 256], sizes = [16, 256], strides = [1, 1]} : vector<16x512xf32> to vector<16x256xf32>
    %230 = arith.truncf %229 : vector<16x256xf32> to vector<16x256xbf16>
    %cst_36 = arith.constant dense<0.000000e+00> : vector<16x512xf32>
    %231 = tpu.matmul %230, %225, %cst_36 {dimension_numbers = #tpu.dot_dimension_numbers<[1], [0], [0], [1], [0, 0, 1, 1], [], []>} : vector<16x256xbf16>, vector<256x512xbf16>, vector<16x512xf32> -> vector<16x512xf32>
    %232 = tpu.concatenate %228, %231 in 1 : vector<16x512xf32>, vector<16x512xf32> -> vector<16x1024xf32>
    %c40 = arith.constant 40 : index
    %c0_37 = arith.constant 0 : index
    %233 = vector.load %arg2[%c40, %c0_37] : memref<144x128xf32, #tpu.memory_space<vmem>>, vector<32x49xf32>
    %234 = tpu.iota {dimensions = array<i32: 1>} : vector<1x1024xi32>
    %c511_i32_38 = arith.constant 511 : i32
    %235 = vector.broadcast %c511_i32_38 : i32 to vector<1x1024xi32>
    %236 = arith.andi %234, %235 : vector<1x1024xi32>
    %c0_i32_39 = arith.constant 0 : i32
    %237 = vector.broadcast %c0_i32_39 : i32 to vector<1x1024xi32>
    %238 = arith.cmpi ne, %236, %237 : vector<1x1024xi32>
    %239 = arith.extui %238 : vector<1x1024xi1> to vector<1x1024xi32>
    %240 = arith.sitofp %239 : vector<1x1024xi32> to vector<1x1024xf32>
    %c511_i32_40 = arith.constant 511 : i32
    %241 = vector.broadcast %c511_i32_40 : i32 to vector<1x1024xi32>
    %242 = arith.cmpi ne, %236, %241 : vector<1x1024xi32>
    %243 = arith.extui %242 : vector<1x1024xi1> to vector<1x1024xi32>
    %244 = arith.sitofp %243 : vector<1x1024xi32> to vector<1x1024xf32>
    %c1_i32_41 = arith.constant 1 : i32
    %245 = tpu.dynamic_rotate %232 by %c1_i32_41 dim 1 : vector<16x1024xf32>, i32 -> vector<16x1024xf32>
    %246 = vector.broadcast %240 : vector<1x1024xf32> to vector<16x1024xf32>
    %247 = arith.mulf %245, %246 : vector<16x1024xf32>
    %c1023_i32 = arith.constant 1023 : i32
    %248 = tpu.dynamic_rotate %232 by %c1023_i32 dim 1 : vector<16x1024xf32>, i32 -> vector<16x1024xf32>
    %249 = vector.broadcast %244 : vector<1x1024xf32> to vector<16x1024xf32>
    %250 = arith.mulf %248, %249 : vector<16x1024xf32>
    %cst_42 = arith.constant 1.000000e+00 : f32
    %251 = vector.broadcast %cst_42 : f32 to vector<1x1024xf32>
    %252 = tpu.concatenate %250, %232, %247, %251 in 0 : vector<16x1024xf32>, vector<16x1024xf32>, vector<16x1024xf32>, vector<1x1024xf32> -> vector<49x1024xf32>
    %cst_43 = arith.constant dense<0.000000e+00> : vector<32x1024xf32>
    %253 = tpu.matmul %233, %252, %cst_43 {dimension_numbers = #tpu.dot_dimension_numbers<[1], [0], [0], [1], [0, 0, 1, 1], [], []>} : vector<32x49xf32>, vector<49x1024xf32>, vector<32x1024xf32> -> vector<32x1024xf32>
    %cst_44 = arith.constant 0.000000e+00 : f32
    %254 = vector.broadcast %cst_44 : f32 to vector<32x1024xf32>
    %255 = arith.maximumf %253, %254 : vector<32x1024xf32>
    %c72 = arith.constant 72 : index
    %c0_45 = arith.constant 0 : index
    %256 = vector.load %arg2[%c72, %c0_45] : memref<144x128xf32, #tpu.memory_space<vmem>>, vector<64x97xf32>
    %257 = tpu.iota {dimensions = array<i32: 1>} : vector<1x1024xi32>
    %c511_i32_46 = arith.constant 511 : i32
    %258 = vector.broadcast %c511_i32_46 : i32 to vector<1x1024xi32>
    %259 = arith.andi %257, %258 : vector<1x1024xi32>
    %c0_i32_47 = arith.constant 0 : i32
    %260 = vector.broadcast %c0_i32_47 : i32 to vector<1x1024xi32>
    %261 = arith.cmpi ne, %259, %260 : vector<1x1024xi32>
    %262 = arith.extui %261 : vector<1x1024xi1> to vector<1x1024xi32>
    %263 = arith.sitofp %262 : vector<1x1024xi32> to vector<1x1024xf32>
    %c511_i32_48 = arith.constant 511 : i32
    %264 = vector.broadcast %c511_i32_48 : i32 to vector<1x1024xi32>
    %265 = arith.cmpi ne, %259, %264 : vector<1x1024xi32>
    %266 = arith.extui %265 : vector<1x1024xi1> to vector<1x1024xi32>
    %267 = arith.sitofp %266 : vector<1x1024xi32> to vector<1x1024xf32>
    %c1_i32_49 = arith.constant 1 : i32
    %268 = tpu.dynamic_rotate %255 by %c1_i32_49 dim 1 : vector<32x1024xf32>, i32 -> vector<32x1024xf32>
    %269 = vector.broadcast %263 : vector<1x1024xf32> to vector<32x1024xf32>
    %270 = arith.mulf %268, %269 : vector<32x1024xf32>
    %c1023_i32_50 = arith.constant 1023 : i32
    %271 = tpu.dynamic_rotate %255 by %c1023_i32_50 dim 1 : vector<32x1024xf32>, i32 -> vector<32x1024xf32>
    %272 = vector.broadcast %267 : vector<1x1024xf32> to vector<32x1024xf32>
    %273 = arith.mulf %271, %272 : vector<32x1024xf32>
    %cst_51 = arith.constant 1.000000e+00 : f32
    %274 = vector.broadcast %cst_51 : f32 to vector<1x1024xf32>
    %275 = tpu.concatenate %273, %255, %270, %274 in 0 : vector<32x1024xf32>, vector<32x1024xf32>, vector<32x1024xf32>, vector<1x1024xf32> -> vector<97x1024xf32>
    %cst_52 = arith.constant dense<0.000000e+00> : vector<64x1024xf32>
    %276 = tpu.matmul %256, %275, %cst_52 {dimension_numbers = #tpu.dot_dimension_numbers<[1], [0], [0], [1], [0, 0, 1, 1], [], []>} : vector<64x97xf32>, vector<97x1024xf32>, vector<64x1024xf32> -> vector<64x1024xf32>
    %cst_53 = arith.constant 0.000000e+00 : f32
    %277 = vector.broadcast %cst_53 : f32 to vector<64x1024xf32>
    %278 = arith.maximumf %276, %277 : vector<64x1024xf32>
    %c136 = arith.constant 136 : index
    %c0_54 = arith.constant 0 : index
    %279 = vector.load %arg2[%c136, %c0_54] : memref<144x128xf32, #tpu.memory_space<vmem>>, vector<6x65xf32>
    %cst_55 = arith.constant 1.000000e+00 : f32
    %280 = vector.broadcast %cst_55 : f32 to vector<1x1024xf32>
    %281 = tpu.concatenate %278, %280 in 0 : vector<64x1024xf32>, vector<1x1024xf32> -> vector<65x1024xf32>
    %cst_56 = arith.constant dense<0.000000e+00> : vector<6x1024xf32>
    %282 = tpu.matmul %279, %281, %cst_56 {dimension_numbers = #tpu.dot_dimension_numbers<[1], [0], [0], [1], [0, 0, 1, 1], [], []>} : vector<6x65xf32>, vector<65x1024xf32>, vector<6x1024xf32> -> vector<6x1024xf32>
    %c0_57 = arith.constant 0 : index
    %c0_58 = arith.constant 0 : index
    %283 = vector.load %arg5[%c0_57, %c0_58] : memref<512x1024xbf16, #tpu.memory_space<vmem>>, vector<512x1024xbf16>
    %284 = vector.extract_strided_slice %282 {offsets = [0, 0], sizes = [6, 512], strides = [1, 1]} : vector<6x1024xf32> to vector<6x512xf32>
    %285 = arith.truncf %284 : vector<6x512xf32> to vector<6x512xbf16>
    %cst_59 = arith.constant dense<0.000000e+00> : vector<6x1024xf32>
    %286 = tpu.matmul %285, %283, %cst_59 {dimension_numbers = #tpu.dot_dimension_numbers<[1], [0], [0], [1], [0, 0, 1, 1], [], []>} : vector<6x512xbf16>, vector<512x1024xbf16>, vector<6x1024xf32> -> vector<6x1024xf32>
    %287 = vector.extract_strided_slice %282 {offsets = [0, 512], sizes = [6, 512], strides = [1, 1]} : vector<6x1024xf32> to vector<6x512xf32>
    %288 = arith.truncf %287 : vector<6x512xf32> to vector<6x512xbf16>
    %cst_60 = arith.constant dense<0.000000e+00> : vector<6x1024xf32>
    %289 = tpu.matmul %288, %283, %cst_60 {dimension_numbers = #tpu.dot_dimension_numbers<[1], [0], [0], [1], [0, 0, 1, 1], [], []>} : vector<6x512xbf16>, vector<512x1024xbf16>, vector<6x1024xf32> -> vector<6x1024xf32>
    %290 = tpu.concatenate %286, %289 in 1 : vector<6x1024xf32>, vector<6x1024xf32> -> vector<6x2048xf32>
    %291 = tpu.iota {dimensions = array<i32: 1>} : vector<1x2048xi32>
    %c1023_i32_61 = arith.constant 1023 : i32
    %292 = vector.broadcast %c1023_i32_61 : i32 to vector<1x2048xi32>
    %293 = arith.andi %291, %292 : vector<1x2048xi32>
    %c0_i32_62 = arith.constant 0 : i32
    %294 = vector.broadcast %c0_i32_62 : i32 to vector<1x2048xi32>
    %295 = arith.cmpi ne, %293, %294 : vector<1x2048xi32>
    %296 = arith.extui %295 : vector<1x2048xi1> to vector<1x2048xi32>
    %297 = arith.sitofp %296 : vector<1x2048xi32> to vector<1x2048xf32>
    %c1023_i32_63 = arith.constant 1023 : i32
    %298 = vector.broadcast %c1023_i32_63 : i32 to vector<1x2048xi32>
    %299 = arith.cmpi ne, %293, %298 : vector<1x2048xi32>
    %300 = arith.extui %299 : vector<1x2048xi1> to vector<1x2048xi32>
    %301 = arith.sitofp %300 : vector<1x2048xi32> to vector<1x2048xf32>
    %302 = vector.extract_strided_slice %290 {offsets = [0, 0], sizes = [2, 2048], strides = [1, 1]} : vector<6x2048xf32> to vector<2x2048xf32>
    %c2047_i32 = arith.constant 2047 : i32
    %303 = tpu.dynamic_rotate %302 by %c2047_i32 dim 1 : vector<2x2048xf32>, i32 -> vector<2x2048xf32>
    %304 = vector.broadcast %301 : vector<1x2048xf32> to vector<2x2048xf32>
    %305 = arith.mulf %303, %304 : vector<2x2048xf32>
    %306 = vector.extract_strided_slice %290 {offsets = [4, 0], sizes = [2, 2048], strides = [1, 1]} : vector<6x2048xf32> to vector<2x2048xf32>
    %c1_i32_64 = arith.constant 1 : i32
    %307 = tpu.dynamic_rotate %306 by %c1_i32_64 dim 1 : vector<2x2048xf32>, i32 -> vector<2x2048xf32>
    %308 = vector.broadcast %297 : vector<1x2048xf32> to vector<2x2048xf32>
    %309 = arith.mulf %307, %308 : vector<2x2048xf32>
    %310 = vector.extract_strided_slice %290 {offsets = [2, 0], sizes = [2, 2048], strides = [1, 1]} : vector<6x2048xf32> to vector<2x2048xf32>
    %311 = arith.addf %305, %310 : vector<2x2048xf32>
    %312 = arith.addf %311, %309 : vector<2x2048xf32>
    %cst_65 = arith.constant 0.000000e+00 : f32
    %313 = vector.broadcast %cst_65 : f32 to vector<2x2048xf32>
    %314 = arith.maximumf %312, %313 : vector<2x2048xf32>
    %315 = vector.extract_strided_slice %314 {offsets = [0, 0], sizes = [2, 1024], strides = [1, 1]} : vector<2x2048xf32> to vector<2x1024xf32>
    %c0_66 = arith.constant 0 : index
    %c0_67 = arith.constant 0 : index
    %c0_68 = arith.constant 0 : index
    %316 = vector.load %arg6[%c0_66, %c0_67, %c0_68] : memref<2x2x1024xf32, #tpu.memory_space<vmem>>, vector<1x2x1024xf32>
    %317 = vector.shape_cast %316 : vector<1x2x1024xf32> to vector<2x1024xf32>
    %318 = vector.shape_cast %315 : vector<2x1024xf32> to vector<1x2x1024xf32>
    tpu.vector_store %arg6[%c0_66, %c0_67, %c0_68], %318 {strides = array<i32>} : memref<2x2x1024xf32, #tpu.memory_space<vmem>>, vector<1x2x1024xf32>,
    %319 = vector.extract_strided_slice %314 {offsets = [0, 1024], sizes = [2, 1024], strides = [1, 1]} : vector<2x2048xf32> to vector<2x1024xf32>
    %c1 = arith.constant 1 : index
    %c0_69 = arith.constant 0 : index
    %c0_70 = arith.constant 0 : index
    %320 = vector.load %arg6[%c1, %c0_69, %c0_70] : memref<2x2x1024xf32, #tpu.memory_space<vmem>>, vector<1x2x1024xf32>
    %321 = vector.shape_cast %320 : vector<1x2x1024xf32> to vector<2x1024xf32>
    %322 = vector.shape_cast %319 : vector<2x1024xf32> to vector<1x2x1024xf32>
    tpu.vector_store %arg6[%c1, %c0_69, %c0_70], %322 {strides = array<i32>} : memref<2x2x1024xf32, #tpu.memory_space<vmem>>, vector<1x2x1024xf32>,
    return
  }
  func.func @transform_0(%arg0: i32) -> (i32, i32) {
    %c0_i32 = arith.constant 0 : i32
    %c0_i32_0 = arith.constant 0 : i32
    %c0_i32_1 = arith.constant 0 : i32
    return %c0_i32, %c0_i32_0 : i32, i32
  }
  func.func @transform_1(%arg0: i32) -> (i32, i32) {
    %c0_i32 = arith.constant 0 : i32
    %c0_i32_0 = arith.constant 0 : i32
    %c0_i32_1 = arith.constant 0 : i32
    return %c0_i32, %c0_i32_0 : i32, i32
  }
  func.func @transform_2(%arg0: i32) -> (i32, i32) {
    %c0_i32 = arith.constant 0 : i32
    %c0_i32_0 = arith.constant 0 : i32
    %c0_i32_1 = arith.constant 0 : i32
    return %c0_i32, %c0_i32_0 : i32, i32
  }
  func.func @transform_3(%arg0: i32) -> (i32, i32) {
    %c0_i32 = arith.constant 0 : i32
    %c0_i32_0 = arith.constant 0 : i32
    %c0_i32_1 = arith.constant 0 : i32
    return %c0_i32, %c0_i32_0 : i32, i32
  }
  func.func @transform_4(%arg0: i32) -> (i32, i32) {
    %c0_i32 = arith.constant 0 : i32
    %c0_i32_0 = arith.constant 0 : i32
    %c0_i32_1 = arith.constant 0 : i32
    return %c0_i32, %c0_i32_0 : i32, i32
  }
  func.func @transform_5(%arg0: i32) -> (i32, i32, i32) {
    %c0_i32 = arith.constant 0 : i32
    %c0_i32_0 = arith.constant 0 : i32
    %c0_i32_1 = arith.constant 0 : i32
    %c0_i32_2 = arith.constant 0 : i32
    return %c0_i32, %c0_i32_0, %c0_i32_1 : i32, i32, i32
  }
}

</mosaic_0001>

<bundles_post_ra>
// kernel: xrd_decoder_forward.1
= control target key start
LH: loop header
LB: loop body
LE: loop exit
PB: predicated region body
PF: predicated region fallthrough
CT: control target
= control target key end

     0   :  { %10 = vsyncpa [#allocation3], 0  ;;  %s11198_s0 = inlined_call_operand.vmem [shape: f32[1,256], index: 0, kind: input, shape index: {}]   ;;  %s11199_s1 = inlined_call_operand.vmem [shape: f32[144,128], index: 1, kind: input, shape index: {}]   ;;  %s11200_s2 = inlined_call_operand.vmem [shape: bf16[128,256], index: 2, kind: input, shape index: {}]   ;;  %s11201_s3 = inlined_call_operand.vmem [shape: bf16[256,512], index: 3, kind: input, shape index: {}]   ;;  %s11202_s4 = inlined_call_operand.hbm [shape: bf16[512,1024], index: 4, kind: input, shape index: {}]   ;;  %s11203_s5 = inlined_call_operand.hbm [shape: f32[2,2,1024], index: 5, kind: output, shape index: {}]  }
   0x1   :  { %11 = vsyncpa [#allocation4], 0  ;;  %s24_s20 = sshll.u32 %s11202_s4, 4  ;;  %s7565_s21 = smov [#allocation2]   ;;  %s25_s20 = int_to_ptr.hbm [resolvable:$true] %s24_s20 }
   0x2   :  { %s26_s22 = sshll.u32 %s7565_s21, 4  ;;  %s7566_s23 = smov 512   ;;  %s27_s22 = int_to_ptr.vmem [resolvable:$true] %s26_s22 }
   0x3   :  { %s7567_s24 = smov 32  }
   0x4   :  { %32 = dma.hbm_to_vmem [thread:$0]  %s25_s20, 32768, %s27_s22, [#allocation3], %s7566_s23, %s7566_s23, %s7567_s24  }
   0x5   :  { %7561 = dma.done.wait [#allocation3], 32768  }
   0x6   :  { %7562 = vsyncadd [#allocation3], 4294934528  ;;  %v7568_v0 = vmov 2   ;;  %v7569_v1 = vmov 1   ;;  %v7570_v2 = vmov 0   ;;  %s7571_s28 = smov 1   ;;  %v39_v10 = vlaneseq }
   0x7   :  { %7372 = vset.pattern.permute.xlu1 %v7568_v0  ;;  %7371 = vset.pattern.permute.xlu0 %v7569_v1  ;;  %v37_v3 = vld [vmem:[%s11198_s0] sm:$0x3]  ;;  %s7572_s29 = smov 127   ;;  %v7573_v7 = vmov 3   ;;  %v7647_v8 = vld [vmem:[%s11199_s1 + $0x8] sm:$0xf] }
   0x8   :  { %7369 = vset.pattern.permute.xlu2 %v7570_v2  ;;  %v38_v4 = vld [vmem:[%s11199_s1] sm:$0x3]  ;;  %v7630_v5 = vperm.slane %v37_v3, 0  ;;  %v7636_v6 = vperm.slane %v37_v3, 1  ;;  %v7574_v9 = vmov 6   ;;  %v7658_v11 = vand.u32 127, %v39_v10 }
   0x9   :  { %86 = vperm.xlu2 %7369, %v38_v4   ;;  %v7575_v16 = vmov 4   ;;  %v11204_v18 = vmov 0.0   ;;  %v7577_v33 = vmov 5   ;;  %v5572_v55 = vld [vmem:[%s11200_s2 + $0x70] sm:$0xf]  ;;  %vm656_vm10 = vcmask 1040384  }
   0xa   :  { %61 = vrot.lane.b32.xlu1 %v7630_v5, %s7571_s28  ;;  %70 = vrot.lane.b32.xlu0 %v7630_v5, %s7572_s29  ;;  %11438 = vst [vmem:[#allocation8_spill] sm:$0xff] %v7658_v11  ;;  %v7661_v12 = vadd.s32 128, %v7658_v11  ;;  %vm50_vm0 = vcmp.ne.s32.totalorder %v7658_v11, 127  ;;  %vm44_vm2 = vcmp.ne.s32.totalorder %v7658_v11, 0  ;;  %vm74_vm4 = vcmp.lt.s32.totalorder %v7658_v11, 127  ;;  %s7587_s22 = smov 16  }
   0xb   :  { %vm65_vm5 = vcmp.lt.s32.totalorder %v7658_v11, 1  ;;  %v7670_v19 = vsel %vm50_vm0, 1.0, %v11204_v18  ;;  %v7676_v23 = vsel %vm44_vm2, 1.0, %v11204_v18  ;;  %v7025_v56 = vld [vmem:[%s11200_s2 + $0x74] sm:$0xf0]  ;;  %vm649_vm11 = vcmask 203776  }
   0xc   :  { %v43_v15 = vand.u32 127, %v7661_v12  ;;  %v7024_v57 = vld [vmem:[%s11200_s2 + $0x74] sm:$0xf]  ;;  %v5573_v58 = vor.u32 %v7025_v56, %v5572_v55  ;;  %v5574_v59 = vld [vmem:[%s11200_s2 + $0x78] sm:$0xf0]  ;;  %vm1564_vm14 = vcmask 400384  }
   0xd   :  { %v5564_v60 = vld [vmem:[%s11200_s2 + $0x60] sm:$0xf]  ;;  %v7023_v61 = vld [vmem:[%s11200_s2 + $0x64] sm:$0xf0]  ;;  %v5577_v62 = vor.u32 %v7024_v57, %v5574_v59  ;;  %v7022_v63 = vld [vmem:[%s11200_s2 + $0x64] sm:$0xf] }
   0xe   :  { %vm51_vm1 = vcmp.ne.s32.totalorder %v43_v15, 127  ;;  %vm45_vm3 = vcmp.ne.s32.totalorder %v43_v15, 0  ;;  %297 = vmatpush.bf16.msra.mxu0 %v5573_v58  ;;  %324 = vmatpush.bf16.msra.mxu2 %v5573_v58  ;;  %v5558_v10 = vld [vmem:[%s11200_s2 + $0x58] sm:$0xf0]  ;;  %v7019_v15 = vld [vmem:[%s11200_s2 + $0x44] sm:$0xf0] }
   0xf   :  { %v7673_v20 = vsel %vm51_vm1, 1.0, %v11204_v18  ;;  %v7679_v24 = vsel %vm45_vm3, 1.0, %v11204_v18  ;;  %310 = vmatpush.bf16.msra.mxu1 %v5577_v62  ;;  %337 = vmatpush.bf16.msra.mxu3 %v5577_v62  ;;  %v7811_v56 = vld [vmem:[%s11199_s1 + $0x10] sm:$0xff]  ;;  %vm2105_vm1 = vcmask 793600   ;;  %vm2523_vm2 = vcmask 531456  }
  0x10   :  { %vm5455_vm3 = vcmask 1045508  }
  0x11   :  { %7370 = vset.pattern.permute.xlu2 %v7573_v7 }
  0x12   :  { %81 = vperm.xlu2 %7370, %v38_v4   ;;  %63 = vrot.lane.b32.xlu1 %v7636_v6, %s7571_s28 }
  0x13   :  { %72 = vrot.lane.b32.xlu0 %v7636_v6, %s7572_s29 }
  0x1a   :  { %7373 = vset.pattern.permute.xlu2 %v7570_v2  ;;  %104 = vperm.xlu1 %7372, %v38_v4  }
  0x1b   :  { %96 = vperm.xlu0 %7371, %v38_v4   ;;  %139 = vperm.xlu2 %7373, %v7647_v8   ;;  %v5556_v4 = vld [vmem:[%s11200_s2 + $0x50] sm:$0xf] }
  0x22   :  { %7375 = vset.pattern.permute.xlu1 %v7569_v1 }
  0x23   :  { %7374 = vset.pattern.permute.xlu0 %v7574_v9  ;;  %7376 = vset.pattern.permute.xlu2 %v7568_v0 }
  0x24   :  { %134 = vperm.xlu0 %7374, %v7647_v8   ;;  %159 = vperm.xlu2 %7376, %v7647_v8  }
  0x25   :  { %149 = vperm.xlu1 %7375, %v7647_v8  }
  0x2c   :  { %7377 = vset.pattern.permute.xlu0 %v7573_v7  ;;  %7379 = vset.pattern.permute.xlu2 %v7577_v33 }
  0x2d   :  { %169 = vperm.xlu0 %7377, %v7647_v8   ;;  %7378 = vset.pattern.permute.xlu1 %v7575_v16 }
  0x63   :  { %v87_v17 = vpop.permute.xlu2 %86 }
  0x6c   :  { %v82_v38 = vpop.permute.xlu2 %81 }
  0x7c   :  { %v62_v13 = vpop.permute.xlu1 %61  ;;  %v71_v14 = vpop.permute.xlu0 %70 }
  0x84   :  { %v64_v21 = vpop.permute.xlu1 %63 }
  0x85   :  { %v73_v22 = vpop.permute.xlu0 %72  ;;  %v66_v27 = vsel %vm65_vm5, %v62_v13, %v64_v21  ;;  %v67_v28 = vsel %vm65_vm5, %v64_v21, %v62_v13 }
  0x86   :  { %v75_v25 = vsel %vm74_vm4, %v71_v14, %v73_v22  ;;  %v76_v26 = vsel %vm74_vm4, %v73_v22, %v71_v14  ;;  %v68_v34 = vmul.f32 %v7676_v23, %v67_v28  ;;  %v69_v35 = vmul.f32 %v7679_v24, %v66_v27  ;;  %v5548_v14 = vld [vmem:[%s11200_s2 + $0x40] sm:$0xf]  ;;  %v5550_v22 = vld [vmem:[%s11200_s2 + $0x48] sm:$0xf0]  ;;  %v7017_v27 = vld [vmem:[%s11200_s2 + $0x34] sm:$0xf0] }
  0x87   :  { %v77_v29 = vmul.f32 %v7670_v19, %v75_v25  ;;  %v78_v30 = vmul.f32 %v7673_v20, %v76_v26  ;;  %v5549_v21 = vor.u32 %v7019_v15, %v5548_v14  ;;  %v5540_v26 = vld [vmem:[%s11200_s2 + $0x30] sm:$0xf]  ;;  %v7016_v28 = vld [vmem:[%s11200_s2 + $0x34] sm:$0xf] }
  0x88   :  { %v107_v43 = vperm.slane %v68_v34, 0  ;;  %v108_v44 = vperm.slane %v69_v35, 0  ;;  %v5532_v34 = vld [vmem:[%s11200_s2 + $0x20] sm:$0xf]  ;;  %v7015_v35 = vld [vmem:[%s11200_s2 + $0x24] sm:$0xf0] }
  0x89   :  { %v89_v31 = vperm.slane %v77_v29, 0  ;;  %v90_v32 = vperm.slane %v78_v30, 0  ;;  %v5541_v29 = vor.u32 %v7017_v27, %v5540_v26  ;;  %v5542_v30 = vld [vmem:[%s11200_s2 + $0x38] sm:$0xf0] }
  0x8b   :  { %v91_v36 = vmul.f32 %v89_v31, %v87_v17  ;;  %v92_v37 = vmul.f32 %v90_v32, %v87_v17  ;;  %v7018_v17 = vld [vmem:[%s11200_s2 + $0x44] sm:$0xf]  ;;  %v5545_v31 = vor.u32 %v7016_v28, %v5542_v30  ;;  %v140_v32 = vpop.permute.xlu2 %139 }
  0x8c   :  { %v105_v41 = vpop.permute.xlu1 %104  ;;  %v5553_v25 = vor.u32 %v7018_v17, %v5550_v22 }
  0x8d   :  { %v93_v39 = vadd.f32 %v91_v36, %v82_v38  ;;  %v94_v40 = vadd.f32 %v92_v37, %v82_v38  ;;  %v97_v42 = vpop.permute.xlu0 %96  ;;  %v109_v47 = vmul.f32 %v107_v43, %v105_v41  ;;  %v110_v48 = vmul.f32 %v108_v44, %v105_v41  ;;  %v7014_v36 = vld [vmem:[%s11200_s2 + $0x24] sm:$0xf]  ;;  %v5534_v38 = vld [vmem:[%s11200_s2 + $0x28] sm:$0xf0]  ;;  %v7013_v41 = vld [vmem:[%s11200_s2 + $0x14] sm:$0xf0] }
  0x8e   :  { %v99_v45 = vmul.f32 %v97_v42, %v7630_v5  ;;  %v100_v46 = vmul.f32 %v97_v42, %v7636_v6  ;;  %v7021_v5 = vld [vmem:[%s11200_s2 + $0x54] sm:$0xf0]  ;;  %v7020_v6 = vld [vmem:[%s11200_s2 + $0x54] sm:$0xf]  ;;  %v5533_v37 = vor.u32 %v7015_v35, %v5532_v34  ;;  %v5526_v44 = vld [vmem:[%s11200_s2 + $0x18] sm:$0xf0] }
  0x8f   :  { %v5561_v13 = vor.u32 %v7020_v6, %v5558_v10  ;;  %v7012_v42 = vld [vmem:[%s11200_s2 + $0x14] sm:$0xf] }
  0x90   :  { %v101_v49 = vadd.f32 %v99_v45, %v93_v39  ;;  %v102_v50 = vadd.f32 %v100_v46, %v94_v40  ;;  %v5537_v39 = vor.u32 %v7014_v36, %v5534_v38  ;;  %v5524_v40 = vld [vmem:[%s11200_s2 + $0x10] sm:$0xf]  ;;  %v5516_v45 = vld [vmem:[%s11200_s2] sm:$0xf]  ;;  %v7011_v46 = vld [vmem:[%s11200_s2 + $0x4] sm:$0xf0] }
  0x91   :  { %v5525_v43 = vor.u32 %v7013_v41, %v5524_v40 }
  0x92   :  { %v111_v51 = vadd.f32 %v109_v47, %v101_v49  ;;  %v112_v52 = vadd.f32 %v110_v48, %v102_v50  ;;  %v5529_v47 = vor.u32 %v7012_v42, %v5526_v44  ;;  %v7010_v48 = vld [vmem:[%s11200_s2 + $0x4] sm:$0xf]  ;;  %v5518_v49 = vld [vmem:[%s11200_s2 + $0x8] sm:$0xf0]  ;;  %v5517_v50 = vor.u32 %v7011_v46, %v5516_v45 }
  0x93   :  { %v5521_v55 = vor.u32 %v7010_v48, %v5518_v49 }
  0x94   :  { %v7696_v53 = vmax.f32 %v111_v51, 0.0  ;;  %v7698_v54 = vmax.f32 %v112_v52, 0.0  ;;  %v160_v51 = vpop.permute.xlu2 %159 }
  0x96   :  { %126 = vrot.lane.b32.xlu1 %v7698_v54, %s7572_s29  ;;  %124 = vrot.lane.b32.xlu2 %v7696_v53, %s7572_s29  ;;  %v135_v59 = vpop.permute.xlu0 %134  ;;  %v163_v10 = vperm.slane %v7698_v54, 0  ;;  %v172_v30 = vperm.slane %v7696_v53, 1 }
  0x97   :  { %v150_v52 = vpop.permute.xlu1 %149 }
  0x98   :  { %v165_v26 = vmul.f32 %v163_v10, %v160_v51  ;;  %v7880_v10 = vadd.s32 384, %v7658_v11 }
  0x9a   :  { %11439 = vst [vmem:[#allocation9_spill] sm:$0xff] %v7880_v10 }
  0x9e   :  { %118 = vrot.lane.b32.xlu1 %v7698_v54, %s7571_s28  ;;  %116 = vrot.lane.b32.xlu2 %v7696_v53, %s7571_s28 }
  0x9f   :  { %v170_v27 = vpop.permute.xlu0 %169 }
  0xa0   :  { %v174_v35 = vmul.f32 %v172_v30, %v170_v27 }
  0xa6   :  { %179 = vperm.xlu1 %7378, %v7647_v8   ;;  %189 = vperm.xlu2 %7379, %v7647_v8   ;;  %v5557_v8 = vor.u32 %v7021_v5, %v5556_v4 }
  0xae   :  { %7380 = vset.pattern.permute.xlu2 %v7570_v2  ;;  %7382 = vset.pattern.permute.xlu1 %v7569_v1  ;;  %v5566_v1 = vld [vmem:[%s11200_s2 + $0x68] sm:$0xf0]  ;;  %v5565_v2 = vor.u32 %v7023_v61, %v5564_v60  ;;  %s7586_s2 = smov 256  }
  0xaf   :  { %v5569_v3 = vor.u32 %v7022_v63, %v5566_v1  ;;  %420 = vperm.xlu2 %7380, %v7811_v56   ;;  %436 = vperm.xlu1 %7382, %v7811_v56  }
  0xb0   :  { %298 = vmatpush.bf16.msra.mxu0 %v5565_v2  ;;  %325 = vmatpush.bf16.msra.mxu2 %v5565_v2 }
  0xb1   :  { %311 = vmatpush.bf16.msra.mxu1 %v5569_v3  ;;  %338 = vmatpush.bf16.msra.mxu3 %v5569_v3 }
  0xb4   :  { %299 = vmatpush.bf16.msra.mxu0 %v5557_v8  ;;  %326 = vmatpush.bf16.msra.mxu2 %v5557_v8  ;;  %v162_v8 = vperm.slane %v7696_v53, 0 }
  0xb5   :  { %312 = vmatpush.bf16.msra.mxu1 %v5561_v13  ;;  %339 = vmatpush.bf16.msra.mxu3 %v5561_v13 }
  0xb7   :  { %7383 = vset.pattern.permute.xlu2 %v7568_v0  ;;  %7384 = vset.pattern.permute.xlu1 %v7573_v7 }
  0xb8   :  { %300 = vmatpush.bf16.msra.mxu0 %v5549_v21  ;;  %327 = vmatpush.bf16.msra.mxu2 %v5549_v21 }
  0xb9   :  { %313 = vmatpush.bf16.msra.mxu1 %v5553_v25  ;;  %340 = vmatpush.bf16.msra.mxu3 %v5553_v25  ;;  %v164_v25 = vmul.f32 %v162_v8, %v160_v51 }
  0xba   :  { %452 = vperm.xlu2 %7383, %v7811_v56   ;;  %468 = vperm.xlu1 %7384, %v7811_v56  }
  0xbc   :  { %301 = vmatpush.bf16.msra.mxu0 %v5541_v29  ;;  %328 = vmatpush.bf16.msra.mxu2 %v5541_v29 }
  0xbd   :  { %314 = vmatpush.bf16.msra.mxu1 %v5545_v31  ;;  %341 = vmatpush.bf16.msra.mxu3 %v5545_v31  ;;  %v173_v31 = vperm.slane %v7698_v54, 1 }
  0xbf   :  { %v175_v36 = vmul.f32 %v173_v31, %v170_v27 }
  0xc0   :  { %302 = vmatpush.bf16.msra.mxu0 %v5533_v37  ;;  %329 = vmatpush.bf16.msra.mxu2 %v5533_v37 }
  0xc1   :  { %315 = vmatpush.bf16.msra.mxu1 %v5537_v39  ;;  %342 = vmatpush.bf16.msra.mxu3 %v5537_v39 }
  0xc2   :  { %7385 = vset.pattern.permute.xlu2 %v7575_v16  ;;  %7387 = vset.pattern.permute.xlu1 %v7574_v9  ;;  %v7578_v9 = vmov 12  }
  0xc3   :  { %484 = vperm.xlu2 %7385, %v7811_v56   ;;  %7381 = vset.pattern.permute.xlu0 %v7578_v9 }
  0xc4   :  { %303 = vmatpush.bf16.msra.mxu0 %v5525_v43  ;;  %330 = vmatpush.bf16.msra.mxu2 %v5525_v43 }
  0xc5   :  { %316 = vmatpush.bf16.msra.mxu1 %v5529_v47  ;;  %343 = vmatpush.bf16.msra.mxu3 %v5529_v47 }
  0xc6   :  { %415 = vperm.xlu0 %7381, %v7811_v56  }
  0xc8   :  { %304 = vmatpush.bf16.msra.mxu0 %v5517_v50  ;;  %331 = vmatpush.bf16.msra.mxu2 %v5517_v50 }
  0xc9   :  { %317 = vmatpush.bf16.msra.mxu1 %v5521_v55  ;;  %344 = vmatpush.bf16.msra.mxu3 %v5521_v55 }
  0xce   :  { %7386 = vset.pattern.permute.xlu0 %v7577_v33 }
  0xf0   :  { %v125_v57 = vpop.permute.xlu2 %124 }
 0x108   :  { %v127_v58 = vpop.permute.xlu1 %126 }
 0x109   :  { %v128_v60 = vsel %vm74_vm4, %v125_v57, %v127_v58  ;;  %v129_v61 = vsel %vm74_vm4, %v127_v58, %v125_v57 }
 0x10a   :  { %v130_v62 = vmul.f32 %v7670_v19, %v128_v60  ;;  %v131_v63 = vmul.f32 %v7673_v20, %v129_v61  ;;  %v117_v19 = vpop.permute.xlu2 %116 }
 0x10c   :  { %v142_v1 = vperm.slane %v130_v62, 0  ;;  %v143_v2 = vperm.slane %v131_v63, 0  ;;  %v152_v3 = vperm.slane %v130_v62, 1  ;;  %v153_v4 = vperm.slane %v131_v63, 1 }
 0x10d   :  { %v7580_v63 = vmov 7  }
 0x10e   :  { %v144_v5 = vmul.f32 %v142_v1, %v140_v32  ;;  %v145_v6 = vmul.f32 %v143_v2, %v140_v32  ;;  %v154_v14 = vmul.f32 %v152_v3, %v150_v52  ;;  %v155_v15 = vmul.f32 %v153_v4, %v150_v52 }
 0x10f   :  { %v7579_v52 = vmov 8   ;;  %v7581_v1 = vmov 10   ;;  %v7582_v2 = vmov 11   ;;  %v7583_v3 = vmov 9  }
 0x110   :  { %v146_v20 = vadd.f32 %v144_v5, %v135_v59  ;;  %v147_v13 = vadd.f32 %v145_v6, %v135_v59  ;;  %v119_v17 = vpop.permute.xlu1 %118  ;;  %7389 = vset.pattern.permute.xlu2 %v7579_v52 }
 0x111   :  { %v120_v0 = vsel %vm65_vm5, %v117_v19, %v119_v17  ;;  %v121_v7 = vsel %vm65_vm5, %v119_v17, %v117_v19 }
 0x112   :  { %v156_v21 = vadd.f32 %v154_v14, %v146_v20  ;;  %v157_v22 = vadd.f32 %v155_v15, %v147_v13  ;;  %v122_v28 = vmul.f32 %v7676_v23, %v121_v7  ;;  %v123_v29 = vmul.f32 %v7679_v24, %v120_v0  ;;  %v190_v23 = vpop.permute.xlu2 %189 }
 0x113   :  { %v356_v14 = vand.u32 255, %v7880_v10 }
 0x114   :  { %v166_v32 = vadd.f32 %v164_v25, %v156_v21  ;;  %v167_v34 = vadd.f32 %v165_v26, %v157_v22  ;;  %v192_v37 = vperm.slane %v122_v28, 1  ;;  %v193_v38 = vperm.slane %v123_v29, 1 }
 0x115   :  { %v182_v39 = vperm.slane %v122_v28, 0  ;;  %v183_v40 = vperm.slane %v123_v29, 0  ;;  %vm372_vm6 = vcmp.ne.s32.totalorder %v356_v14, 255  ;;  %v354_v29 = vand.u32 255, %v7661_v12 }
 0x116   :  { %v176_v41 = vadd.f32 %v174_v35, %v166_v32  ;;  %v177_v53 = vadd.f32 %v175_v36, %v167_v34  ;;  %v194_v43 = vmul.f32 %v192_v37, %v190_v23  ;;  %v195_v44 = vmul.f32 %v193_v38, %v190_v23 }
 0x117   :  { %vm7908_vm7 = vcmp.ne.s32.totalorder %v354_v29, 255  ;;  %v351_v14 = vadd.s32 256, %v7658_v11 }
 0x118   :  { %v180_v24 = vpop.permute.xlu1 %179  ;;  %v7929_v9 = vsel %vm7908_vm7, 1.0, %v11204_v18 }
 0x119   :  { %v184_v42 = vmul.f32 %v182_v39, %v180_v24  ;;  %v185_v54 = vmul.f32 %v183_v40, %v180_v24 }
 0x11a   :  { %v7871_v4 = vpop.permute.xlu2 %420 }
 0x11b   :  { %v186_v45 = vadd.f32 %v184_v42, %v176_v41  ;;  %v187_v46 = vadd.f32 %v185_v54, %v177_v53 }
 0x11d   :  { %v196_v47 = vadd.f32 %v194_v43, %v186_v45  ;;  %v197_v16 = vadd.f32 %v195_v44, %v187_v46 }
 0x11f   :  { %v198_v48 = vmax.f32 %v196_v47, 0.0  ;;  %v199_v49 = vmax.f32 %v197_v16, 0.0 }
 0x121   :  { %v216_v50 = vpack.c.bf16 %v198_v48, %v198_v48  ;;  %v323_v51 = vpack.c.bf16 %v199_v49, %v199_v49  ;;  %v7875_v6 = vpop.permute.xlu1 %436 }
 0x122   :  { %v7873_v5 = vpop.permute.xlu2 %452 }
 0x123   :  { %305 = vmatmul.bf16.vlgmr.msra.gmra.mxu0 %v216_v50  ;;  %318 = vmatmul.bf16.vlgmr.msra.gmra.mxu1 %v216_v50 }
 0x124   :  { %332 = vmatmul.bf16.vlgmr.msra.gmra.mxu2 %v323_v51  ;;  %345 = vmatmul.bf16.vlgmr.msra.gmra.mxu3 %v323_v51 }
 0x12a   :  { %v7877_v8 = vpop.permute.xlu2 %484 }
 0x12c   :  { %v7882_v19 = vpop.permute.xlu1 %468 }
 0x138   :  { %v7884_v20 = vpop.permute.xlu0 %415 }
 0x1a0   :  { %v7840_v55 = vpop.f32.mrf.mxu0  ;;  %v7842_v57 = vpop.f32.mrf.mxu1 }
 0x1a1   :  { %399 = vrot.lane.b32.xlu0 %v7842_v57, %s7572_s29  ;;  %397 = vrot.lane.b32.xlu1 %v7840_v55, %s7572_s29  ;;  %v487_v32 = vperm.slane %v7840_v55, 0  ;;  %v488_v34 = vperm.slane %v7842_v57, 0  ;;  %v503_v38 = vperm.slane %v7840_v55, 1  ;;  %v504_v39 = vperm.slane %v7842_v57, 1 }
 0x1a2   :  { %v535_v12 = vperm.slane %v7840_v55, 3  ;;  %v536_v23 = vperm.slane %v7842_v57, 3  ;;  %v520_v45 = vperm.slane %v7842_v57, 2  ;;  %v519_v46 = vperm.slane %v7840_v55, 2 }
 0x1a3   :  { %v491_v54 = vmul.f32 %v487_v32, %v7877_v8  ;;  %v7918_v43 = vmul.f32 %v488_v34, %v7877_v8 }
 0x1a7   :  { %v7848_v58 = vpop.f32.mrf.mxu2  ;;  %v7850_v59 = vpop.f32.mrf.mxu3 }
 0x1a8   :  { %403 = vrot.lane.b32.xlu2 %v7850_v59, %s7572_s29  ;;  %v308_v33 = vpop.f32.mrf.mxu0  ;;  %v321_v60 = vpop.f32.mrf.mxu1  ;;  %v489_v47 = vperm.slane %v7848_v58, 0  ;;  %v490_v49 = vperm.slane %v7850_v59, 0  ;;  %v505_v50 = vperm.slane %v7848_v58, 1  ;;  %v506_v51 = vperm.slane %v7850_v59, 1 }
 0x1a9   :  { %500 = vperm.xlu0 %7386, %v7811_v56   ;;  %381 = vrot.lane.b32.xlu1 %v7840_v55, %s7571_s28  ;;  %v537_v52 = vperm.slane %v7848_v58, 3 }
 0x1aa   :  { %v493_v34 = vmul.f32 %v489_v47, %v7877_v8 }
 0x1af   :  { %v335_v61 = vpop.f32.mrf.mxu2  ;;  %v348_v62 = vpop.f32.mrf.mxu3 }
 0x1b0   :  { %548 = vperm.xlu2 %7389, %v7811_v56  }
 0x1b1   :  { %7388 = vset.pattern.permute.xlu0 %v7580_v63  ;;  %401 = vrot.lane.b32.xlu1 %v7848_v58, %s7572_s29  ;;  %v353_v63 = vand.u32 255, %v7658_v11 }
 0x1b2   :  { %532 = vperm.xlu0 %7388, %v7811_v56  }
 0x1b3   :  { %vm357_vm8 = vcmp.ne.s32.totalorder %v353_v63, 0 }
 0x1b8   :  { %387 = vrot.lane.b32.xlu2 %v7850_v59, %s7571_s28 }
 0x1b9   :  { %516 = vperm.xlu1 %7387, %v7811_v56   ;;  %7391 = vset.pattern.permute.xlu2 %v7581_v1 }
 0x1ba   :  { %7392 = vset.pattern.permute.xlu0 %v7582_v2  ;;  %v538_v2 = vperm.slane %v7850_v59, 3 }
 0x1bb   :  { %596 = vperm.xlu0 %7392, %v7811_v56  }
 0x1c0   :  { %385 = vrot.lane.b32.xlu2 %v7848_v58, %s7571_s28 }
 0x1c1   :  { %383 = vrot.lane.b32.xlu1 %v7842_v57, %s7571_s28 }
 0x1c2   :  { %7390 = vset.pattern.permute.xlu1 %v7583_v3  ;;  %v521_v3 = vperm.slane %v7848_v58, 2 }
 0x1c8   :  { %580 = vperm.xlu2 %7391, %v7811_v56  }
 0x1c9   :  { %564 = vperm.xlu1 %7390, %v7811_v56   ;;  %v7888_v56 = vsel %vm372_vm6, 1.0, %v11204_v18  ;;  %vm5453_vm6 = vcmask 1041408  }
 0x202   :  { %v404_v13 = vpop.permute.xlu2 %403 }
 0x20a   :  { %v7894_v21 = vpop.permute.xlu2 %548 }
 0x212   :  { %v388_v44 = vpop.permute.xlu2 %387 }
 0x213   :  { %v398_v15 = vpop.permute.xlu1 %397  ;;  %v400_v17 = vpop.permute.xlu0 %399 }
 0x214   :  { %v408_v0 = vsel %vm74_vm4, %v404_v13, %v398_v15  ;;  %v407_v7 = vsel %vm74_vm4, %v398_v15, %v400_v17 }
 0x215   :  { %v412_v22 = vmul.f32 %v7888_v56, %v408_v0  ;;  %v423_v25 = vperm.slane %v407_v7, 0  ;;  %v439_v31 = vperm.slane %v407_v7, 1  ;;  %v455_v42 = vperm.slane %v407_v7, 2 }
 0x216   :  { %v471_v62 = vperm.slane %v407_v7, 3 }
 0x217   :  { %v426_v26 = vperm.slane %v412_v22, 0  ;;  %v427_v27 = vmul.f32 %v423_v25, %v7871_v4  ;;  %v442_v30 = vperm.slane %v412_v22, 1  ;;  %v458_v41 = vperm.slane %v412_v22, 2 }
 0x218   :  { %v443_v53 = vmul.f32 %v439_v31, %v7875_v6  ;;  %v474_v60 = vperm.slane %v412_v22, 3  ;;  %v459_v61 = vmul.f32 %v455_v42, %v7873_v5  ;;  %v475_v31 = vmul.f32 %v471_v62, %v7882_v19 }
 0x219   :  { %v430_v28 = vmul.f32 %v426_v26, %v7871_v4  ;;  %v431_v37 = vadd.f32 %v427_v27, %v7884_v20  ;;  %v446_v24 = vmul.f32 %v442_v30, %v7875_v6  ;;  %v462_v33 = vmul.f32 %v458_v41, %v7873_v5 }
 0x21a   :  { %v494_v26 = vmul.f32 %v490_v49, %v7877_v8  ;;  %v478_v30 = vmul.f32 %v474_v60, %v7882_v19  ;;  %v355_v41 = vand.u32 255, %v351_v14  ;;  %v522_v60 = vperm.slane %v7850_v59, 2 }
 0x21b   :  { %v7902_v35 = vpop.permute.xlu1 %381  ;;  %v434_v36 = vadd.f32 %v430_v28, %v7884_v20  ;;  %v447_v48 = vadd.f32 %v443_v53, %v431_v37  ;;  %v501_v7 = vpop.permute.xlu0 %500 }
 0x21c   :  { %v386_v53 = vpop.permute.xlu2 %385  ;;  %v392_v8 = vsel %vm65_vm5, %v388_v44, %v7902_v35  ;;  %vm7965_vm9 = vcmp.ne.s32.totalorder %v355_v41, 0 }
 0x21d   :  { %v450_v16 = vadd.f32 %v446_v24, %v434_v36  ;;  %v463_v15 = vadd.f32 %v459_v61, %v447_v48  ;;  %v7963_v14 = vsel %vm65_vm5, %v386_v53, %v388_v44  ;;  %v510_v44 = vmul.f32 %v506_v51, %v501_v7 }
 0x21e   :  { %v586_v59 = vperm.slane %v7963_v14, 2 }
 0x21f   :  { %v466_v0 = vadd.f32 %v462_v33, %v450_v16  ;;  %v7952_v33 = vsel %vm357_vm8, 1.0, %v11204_v18  ;;  %vm5457_vm8 = vcmask 1043456  }
 0x221   :  { %v482_v40 = vadd.f32 %v478_v30, %v466_v0 }
 0x223   :  { %v402_v1 = vpop.permute.xlu1 %401  ;;  %v498_v0 = vadd.f32 %v494_v26, %v482_v40 }
 0x224   :  { %v405_v25 = vsel %vm74_vm4, %v402_v1, %v404_v13  ;;  %v406_v22 = vsel %vm74_vm4, %v400_v17, %v402_v1  ;;  %v479_v17 = vadd.f32 %v475_v31, %v463_v15 }
 0x225   :  { %v410_v27 = vmul.f32 %v7929_v9, %v406_v22  ;;  %v425_v28 = vperm.slane %v405_v25, 0  ;;  %v441_v29 = vperm.slane %v405_v25, 1  ;;  %v457_v32 = vperm.slane %v405_v25, 2 }
 0x226   :  { %v473_v24 = vperm.slane %v405_v25, 3  ;;  %v495_v15 = vadd.f32 %v491_v54, %v479_v17  ;;  %v7984_v17 = vsel %vm7965_vm9, 1.0, %v11204_v18  ;;  %v581_v25 = vpop.permute.xlu2 %580  ;;  %v5638_v18 = vld [vmem:[%s11201_s3 + $0x58] sm:$0xf0] }
 0x227   :  { %v424_v36 = vperm.slane %v410_v27, 0  ;;  %v429_v13 = vmul.f32 %v425_v28, %v7871_v4  ;;  %v440_v37 = vperm.slane %v410_v27, 1  ;;  %v445_v48 = vmul.f32 %v441_v29, %v7875_v6 }
 0x228   :  { %v456_v49 = vperm.slane %v410_v27, 2  ;;  %v461_v47 = vmul.f32 %v457_v32, %v7873_v5  ;;  %v472_v63 = vperm.slane %v410_v27, 3  ;;  %v507_v27 = vmul.f32 %v503_v38, %v501_v7  ;;  %v533_v32 = vpop.permute.xlu0 %532 }
 0x229   :  { %v428_v42 = vmul.f32 %v424_v36, %v7871_v4  ;;  %v433_v16 = vadd.f32 %v429_v13, %v7884_v20  ;;  %v444_v4 = vmul.f32 %v440_v37, %v7875_v6  ;;  %v7972_v6 = vmul.f32 %v7952_v33, %v392_v8 }
 0x22a   :  { %v460_v28 = vmul.f32 %v456_v49, %v7873_v5  ;;  %v476_v30 = vmul.f32 %v472_v63, %v7882_v19  ;;  %v554_v5 = vperm.slane %v7963_v14, 0  ;;  %v570_v13 = vperm.slane %v7963_v14, 1 }
 0x22b   :  { %v432_v61 = vadd.f32 %v428_v42, %v7884_v20  ;;  %v449_v62 = vadd.f32 %v445_v48, %v433_v16  ;;  %v517_v1 = vpop.permute.xlu1 %516  ;;  %v477_v20 = vmul.f32 %v473_v24, %v7882_v19  ;;  %v511_v37 = vadd.f32 %v507_v27, %v495_v15 }
 0x22c   :  { %v523_v54 = vmul.f32 %v519_v46, %v517_v1  ;;  %v526_v36 = vmul.f32 %v522_v60, %v517_v1  ;;  %v509_v38 = vmul.f32 %v505_v50, %v501_v7  ;;  %v514_v46 = vadd.f32 %v510_v44, %v498_v0 }
 0x22d   :  { %v448_v22 = vadd.f32 %v444_v4, %v432_v61  ;;  %v465_v29 = vadd.f32 %v461_v47, %v449_v62  ;;  %v551_v19 = vperm.slane %v7972_v6, 0  ;;  %v508_v24 = vmul.f32 %v504_v39, %v501_v7 }
 0x22e   :  { %v539_v41 = vmul.f32 %v535_v12, %v533_v32  ;;  %v527_v42 = vadd.f32 %v523_v54, %v511_v37  ;;  %v525_v49 = vmul.f32 %v521_v3, %v517_v1  ;;  %v530_v8 = vadd.f32 %v526_v36, %v514_v46 }
 0x22f   :  { %v464_v26 = vadd.f32 %v460_v28, %v448_v22  ;;  %v481_v31 = vadd.f32 %v477_v20, %v465_v29  ;;  %v524_v47 = vmul.f32 %v520_v45, %v517_v1  ;;  %v540_v45 = vmul.f32 %v536_v23, %v533_v32 }
 0x230   :  { %v543_v60 = vadd.f32 %v539_v41, %v527_v42  ;;  %v558_v62 = vmul.f32 %v554_v5, %v7894_v21  ;;  %v583_v63 = vperm.slane %v7972_v6, 2  ;;  %v555_v1 = vmul.f32 %v551_v19, %v7894_v21 }
 0x231   :  { %v480_v51 = vadd.f32 %v476_v30, %v464_v26  ;;  %v497_v40 = vadd.f32 %v493_v34, %v481_v31  ;;  %v542_v34 = vmul.f32 %v538_v2, %v533_v32  ;;  %v602_v2 = vperm.slane %v7963_v14, 3  ;;  %v597_v26 = vpop.permute.xlu0 %596 }
 0x232   :  { %v567_v15 = vperm.slane %v7972_v6, 1  ;;  %v559_v22 = vadd.f32 %v555_v1, %v543_v60  ;;  %v587_v5 = vmul.f32 %v583_v63, %v581_v25  ;;  %v590_v37 = vmul.f32 %v586_v59, %v581_v25 }
 0x233   :  { %v496_v16 = vadd.f32 %v7918_v43, %v480_v51  ;;  %v513_v48 = vadd.f32 %v509_v38, %v497_v40  ;;  %v384_v50 = vpop.permute.xlu1 %383  ;;  %v606_v41 = vmul.f32 %v602_v2, %v597_v26 }
 0x234   :  { %v390_v39 = vsel %vm65_vm5, %v384_v50, %v386_v53  ;;  %v8005_v55 = vsel %vm65_vm5, %v7902_v35, %v384_v50  ;;  %v541_v53 = vmul.f32 %v537_v52, %v533_v32  ;;  %v546_v35 = vadd.f32 %v542_v34, %v530_v8 }
 0x235   :  { %v512_v12 = vadd.f32 %v508_v24, %v496_v16  ;;  %v529_v43 = vadd.f32 %v525_v49, %v513_v48  ;;  %v395_v3 = vmul.f32 %v7984_v17, %v390_v39  ;;  %v552_v7 = vperm.slane %v8005_v55, 0 }
 0x236   :  { %v568_v58 = vperm.slane %v8005_v55, 1  ;;  %v562_v44 = vadd.f32 %v558_v62, %v546_v35  ;;  %v584_v38 = vperm.slane %v8005_v55, 2  ;;  %v600_v50 = vperm.slane %v8005_v55, 3 }
 0x237   :  { %v528_v61 = vadd.f32 %v524_v47, %v512_v12  ;;  %v553_v4 = vperm.slane %v395_v3, 0  ;;  %v545_v14 = vadd.f32 %v541_v53, %v529_v43  ;;  %v556_v57 = vmul.f32 %v552_v7, %v7894_v21 }
 0x238   :  { %v569_v52 = vperm.slane %v395_v3, 1  ;;  %v585_v28 = vperm.slane %v395_v3, 2  ;;  %v601_v54 = vperm.slane %v395_v3, 3  ;;  %v604_v7 = vmul.f32 %v600_v50, %v597_v26 }
 0x239   :  { %v544_v0 = vadd.f32 %v540_v45, %v528_v61  ;;  %v557_v23 = vmul.f32 %v553_v4, %v7894_v21  ;;  %v599_v21 = vperm.slane %v7972_v6, 3  ;;  %v11206_v55 = vmov 1.0  }
 0x23a   :  { %v589_v19 = vmul.f32 %v585_v28, %v581_v25  ;;  %v605_v42 = vmul.f32 %v601_v54, %v597_v26  ;;  %5591 = vmatpush.msk.msrb.mxu3 %vm656_vm10, %v11206_v55  ;;  %5582 = vmatpush.msk.msrb.mxu0 %vm656_vm10, %v11206_v55  ;;  %v615_v28 = vld [vmem:[%s11199_s1 + $0x18] sm:$0xff] }
 0x23b   :  { %v565_v29 = vpop.permute.xlu1 %564  ;;  %v560_v20 = vadd.f32 %v556_v57, %v544_v0  ;;  %v561_v27 = vadd.f32 %v557_v23, %v545_v14  ;;  %v603_v24 = vmul.f32 %v599_v21, %v597_v26  ;;  %5585 = vmatpush.msk.msrb.mxu1 %vm656_vm10, %v11206_v55  ;;  %5588 = vmatpush.msk.msrb.mxu2 %vm656_vm10, %v11206_v55  ;;  %v5836_v57 = vld [vmem:[%s11201_s3 + $0x1e0] sm:$0xf] }
 0x23c   :  { %v571_v30 = vmul.f32 %v567_v15, %v565_v29  ;;  %v572_v31 = vmul.f32 %v568_v58, %v565_v29  ;;  %v573_v32 = vmul.f32 %v569_v52, %v565_v29  ;;  %v574_v36 = vmul.f32 %v570_v13, %v565_v29  ;;  %v5710_v58 = vld [vmem:[%s11201_s3 + $0xf0] sm:$0xf0] }
 0x23d   :  { %v588_v13 = vmul.f32 %v584_v38, %v581_v25  ;;  %v7054_v25 = vld [vmem:[%s11201_s3 + $0xe4] sm:$0xf] }
 0x23e   :  { %v575_v46 = vadd.f32 %v571_v30, %v559_v22  ;;  %v577_v51 = vadd.f32 %v573_v32, %v561_v27  ;;  %v578_v40 = vadd.f32 %v574_v36, %v562_v44  ;;  %v576_v16 = vadd.f32 %v572_v31, %v560_v20  ;;  %v7056_v20 = vld [vmem:[%s11201_s3 + $0xec] sm:$0xf0]  ;;  %v5820_v27 = vld [vmem:[%s11201_s3 + $0x1c0] sm:$0xf]  ;;  %v5838_v30 = vld [vmem:[%s11201_s3 + $0x1f0] sm:$0xf0] }
 0x23f   :  { %v7084_v44 = vld [vmem:[%s11201_s3 + $0x1cc] sm:$0xf0]  ;;  %v8086_v54 = vor.u32 %v7054_v25, %v5710_v58  ;;  %v7050_v31 = vld [vmem:[%s11201_s3 + $0xc4] sm:$0xf]  ;;  %v5694_v32 = vld [vmem:[%s11201_s3 + $0xd0] sm:$0xf0] }
 0x240   :  { %v594_v48 = vadd.f32 %v590_v37, %v578_v40  ;;  %v593_v49 = vadd.f32 %v589_v19, %v577_v51  ;;  %v591_v8 = vadd.f32 %v587_v5, %v575_v46  ;;  %v592_v3 = vadd.f32 %v588_v13, %v576_v16  ;;  %v5692_v46 = vld [vmem:[%s11201_s3 + $0xc0] sm:$0xf]  ;;  %v7052_v51 = vld [vmem:[%s11201_s3 + $0xcc] sm:$0xf0] }
 0x241   :  { %v8108_v38 = vor.u32 %v7084_v44, %v5820_v27  ;;  %v8129_v16 = vor.u32 %v7050_v31, %v5694_v32  ;;  %v8145_v50 = vor.u32 %v7052_v51, %v5692_v46  ;;  %v7040_v25 = vld [vmem:[%s11201_s3 + $0x6c] sm:$0xf0]  ;;  %v5630_v27 = vld [vmem:[%s11201_s3 + $0x50] sm:$0xf0] }
 0x242   :  { %v610_v34 = vadd.f32 %v606_v41, %v594_v48  ;;  %v609_v47 = vadd.f32 %v605_v42, %v593_v49  ;;  %v607_v39 = vadd.f32 %v603_v24, %v591_v8  ;;  %v608_v59 = vadd.f32 %v604_v7, %v592_v3  ;;  %v7082_v24 = vld [vmem:[%s11201_s3 + $0x1c4] sm:$0xf]  ;;  %v5804_v41 = vld [vmem:[%s11201_s3 + $0x1a0] sm:$0xf]  ;;  %v7080_v42 = vld [vmem:[%s11201_s3 + $0x1ac] sm:$0xf0] }
 0x243   :  { %v7046_v48 = vld [vmem:[%s11201_s3 + $0xa4] sm:$0xf]  ;;  %v5678_v49 = vld [vmem:[%s11201_s3 + $0xb0] sm:$0xf0]  ;;  %v8149_v13 = vor.u32 %v7080_v42, %v5804_v41  ;;  %v7036_v31 = vld [vmem:[%s11201_s3 + $0x4c] sm:$0xf0] }
 0x244   :  { %v614_v6 = vmax.f32 %v610_v34, 0.0  ;;  %v613_v12 = vmax.f32 %v609_v47, 0.0  ;;  %v611_v43 = vmax.f32 %v607_v39, 0.0  ;;  %v612_v2 = vmax.f32 %v608_v59, 0.0  ;;  %v616_v8 = vld [vmem:[%s11199_s1 + $0x20] sm:$0xff] }
 0x245   :  { %v5676_v34 = vld [vmem:[%s11201_s3 + $0xa0] sm:$0xf]  ;;  %v7048_v47 = vld [vmem:[%s11201_s3 + $0xac] sm:$0xf0]  ;;  %v8170_v3 = vor.u32 %v7046_v48, %v5678_v49  ;;  %v5806_v7 = vld [vmem:[%s11201_s3 + $0x1b0] sm:$0xf0] }
 0x246   :  { %623 = vrot.lane.b32.xlu2 %v614_v6, %s7571_s28  ;;  %637 = vrot.lane.b32.xlu0 %v613_v12, %s7572_s29  ;;  %v7042_v59 = vld [vmem:[%s11201_s3 + $0x84] sm:$0xf]  ;;  %v5758_v51 = vld [vmem:[%s11201_s3 + $0x150] sm:$0xf0] }
 0x247   :  { %617 = vrot.lane.b32.xlu1 %v611_v43, %s7571_s28  ;;  %v7032_v48 = vld [vmem:[%s11201_s3 + $0x2c] sm:$0xf0] }
 0x24e   :  { %639 = vrot.lane.b32.xlu0 %v614_v6, %s7572_s29  ;;  %635 = vrot.lane.b32.xlu2 %v612_v2, %s7572_s29 }
 0x24f   :  { %619 = vrot.lane.b32.xlu1 %v612_v2, %s7571_s28 }
 0x256   :  { %621 = vrot.lane.b32.xlu2 %v613_v12, %s7571_s28 }
 0x257   :  { %633 = vrot.lane.b32.xlu1 %v611_v43, %s7572_s29 }
 0x2a0   :  { %v624_v45 = vpop.permute.xlu2 %623 }
 0x2a8   :  { %v636_v60 = vpop.permute.xlu2 %635 }
 0x2b0   :  { %v622_v53 = vpop.permute.xlu2 %621 }
 0x2b1   :  { %v625_v61 = vsel %vm65_vm5, %v622_v53, %v624_v45 }
 0x2b2   :  { %742 = vmatpush.msrb.mxu3 %v625_v61  ;;  %v7044_v61 = vld [vmem:[%s11201_s3 + $0x8c] sm:$0xf0] }
 0x2b4   :  { %743 = vmatpush.msrb.mxu3 %v614_v6  ;;  %v7078_v6 = vld [vmem:[%s11201_s3 + $0x1a4] sm:$0xf] }
 0x2b8   :  { %v638_v62 = vpop.permute.xlu0 %637 }
 0x2b9   :  { %v618_v35 = vpop.permute.xlu1 %617  ;;  %v642_v15 = vsel %vm74_vm4, %v636_v60, %v638_v62 }
 0x2ba   :  { %v628_v4 = vsel %vm65_vm5, %v624_v45, %v618_v35  ;;  %v646_v22 = vmul.f32 %v7929_v9, %v642_v15  ;;  %v7086_v9 = vld [vmem:[%s11201_s3 + $0x1e4] sm:$0xf]  ;;  %v8183_v45 = vor.u32 %v7048_v47, %v5676_v34  ;;  %v5790_v15 = vld [vmem:[%s11201_s3 + $0x190] sm:$0xf0]  ;;  %v5724_v34 = vld [vmem:[%s11201_s3 + $0x100] sm:$0xf] }
 0x2bb   :  { %v629_v63 = vmul.f32 %v7952_v33, %v628_v4  ;;  %v7088_v33 = vld [vmem:[%s11201_s3 + $0x1ec] sm:$0xf0]  ;;  %v8117_v19 = vor.u32 %v7086_v9, %v5838_v30  ;;  %v7074_v4 = vld [vmem:[%s11201_s3 + $0x184] sm:$0xf]  ;;  %v5628_v30 = vld [vmem:[%s11201_s3 + $0x40] sm:$0xf] }
 0x2bc   :  { %v8069_v29 = vor.u32 %v7088_v33, %v5836_v57  ;;  %v8234_v58 = vor.u32 %v7074_v4, %v5790_v15  ;;  %v7034_v9 = vld [vmem:[%s11201_s3 + $0x44] sm:$0xf]  ;;  %v8294_v41 = vor.u32 %v7036_v31, %v5628_v30  ;;  %v7060_v47 = vld [vmem:[%s11201_s3 + $0x10c] sm:$0xf0]  ;;  %v5718_v15 = vld [vmem:[%s11201_s3 + $0xf8] sm:$0xf0] }
 0x2bd   :  { %673 = vmatpush.msrb.mxu0 %v629_v63  ;;  %v7072_v63 = vld [vmem:[%s11201_s3 + $0x16c] sm:$0xf0]  ;;  %v8282_v46 = vor.u32 %v7034_v9, %v5630_v27  ;;  %v8342_v4 = vor.u32 %v7060_v47, %v5724_v34  ;;  %v7085_v9 = vld [vmem:[%s11201_s3 + $0x1d4] sm:$0xf0]  ;;  %v7087_v27 = vld [vmem:[%s11201_s3 + $0x1ec] sm:$0xf] }
 0x2be   :  { %v5846_v30 = vld [vmem:[%s11201_s3 + $0x1f8] sm:$0xf0]  ;;  %v5812_v34 = vld [vmem:[%s11201_s3 + $0x1a8] sm:$0xf]  ;;  %v7081_v47 = vld [vmem:[%s11201_s3 + $0x1b4] sm:$0xf0] }
 0x2bf   :  { %674 = vmatpush.msrb.mxu0 %v611_v43  ;;  %v7076_v43 = vld [vmem:[%s11201_s3 + $0x18c] sm:$0xf0] }
 0x2c0   :  { %v640_v52 = vpop.permute.xlu0 %639 }
 0x2c1   :  { %v620_v1 = vpop.permute.xlu1 %619  ;;  %v641_v26 = vsel %vm74_vm4, %v638_v62, %v640_v52  ;;  %v5772_v62 = vld [vmem:[%s11201_s3 + $0x160] sm:$0xf] }
 0x2c2   :  { %v626_v0 = vsel %vm65_vm5, %v620_v1, %v622_v53  ;;  %v627_v14 = vsel %vm65_vm5, %v618_v35, %v620_v1  ;;  %v5660_v53 = vld [vmem:[%s11201_s3 + $0x80] sm:$0xf]  ;;  %v8196_v35 = vor.u32 %v7078_v6, %v5806_v7  ;;  %v8225_v33 = vor.u32 %v7072_v63, %v5772_v62  ;;  %v7089_v7 = vld [vmem:[%s11201_s3 + $0x1f4] sm:$0xf0]  ;;  %v7028_v62 = vld [vmem:[%s11201_s3 + $0xc] sm:$0xf0] }
 0x2c3   :  { %696 = vmatpush.msrb.mxu1 %v627_v14  ;;  %v631_v23 = vmul.f32 %v7984_v17, %v626_v0  ;;  %v5708_v17 = vld [vmem:[%s11201_s3 + $0xe0] sm:$0xf]  ;;  %v7038_v0 = vld [vmem:[%s11201_s3 + $0x64] sm:$0xf]  ;;  %v5646_v14 = vld [vmem:[%s11201_s3 + $0x70] sm:$0xf0]  ;;  %v8221_v57 = vor.u32 %v7044_v61, %v5660_v53 }
 0x2c4   :  { %v8101_v5 = vor.u32 %v7056_v20, %v5708_v17  ;;  %v8246_v17 = vor.u32 %v7038_v0, %v5646_v14  ;;  %v5774_v20 = vld [vmem:[%s11201_s3 + $0x170] sm:$0xf0]  ;;  %v7026_v53 = vld [vmem:[%s11201_s3 + $0x4] sm:$0xf]  ;;  %v7055_v63 = vld [vmem:[%s11201_s3 + $0xec] sm:$0xf] }
 0x2c5   :  { %697 = vmatpush.msrb.mxu1 %v612_v2  ;;  %719 = vmatpush.msrb.mxu2 %v631_v23  ;;  %v5662_v2 = vld [vmem:[%s11201_s3 + $0x90] sm:$0xf0]  ;;  %v5644_v23 = vld [vmem:[%s11201_s3 + $0x60] sm:$0xf]  ;;  %v7058_v14 = vld [vmem:[%s11201_s3 + $0x104] sm:$0xf] }
 0x2c6   :  { %v8208_v1 = vor.u32 %v7042_v59, %v5662_v2  ;;  %v8258_v44 = vor.u32 %v7040_v25, %v5644_v23  ;;  %v5596_v2 = vld [vmem:[%s11201_s3] sm:$0xf]  ;;  %v5598_v61 = vld [vmem:[%s11201_s3 + $0x10] sm:$0xf0]  ;;  %v5716_v25 = vld [vmem:[%s11201_s3 + $0xe8] sm:$0xf] }
 0x2c7   :  { %698 = vmatpush.msrb.mxu1 %v646_v22  ;;  %720 = vmatpush.msrb.mxu2 %v613_v12  ;;  %v5788_v12 = vld [vmem:[%s11201_s3 + $0x180] sm:$0xf]  ;;  %v8386_v31 = vor.u32 %v7028_v62, %v5596_v2  ;;  %v8441_v62 = vor.u32 %v7081_v47, %v5812_v34  ;;  %v5668_v34 = vld [vmem:[%s11201_s3 + $0x88] sm:$0xf]  ;;  %v7045_v47 = vld [vmem:[%s11201_s3 + $0x94] sm:$0xf0] }
 0x2c8   :  { %5586 = vmatmul.msk.f32.vlgmr.msrb.gmra.mxu1 %vm649_vm11, %v615_v28  ;;  %v5756_v22 = vld [vmem:[%s11201_s3 + $0x140] sm:$0xf] }
 0x2c9   :  { %721 = vmatpush.msrb.mxu2 %v641_v26  ;;  %v634_v36 = vpop.permute.xlu1 %633  ;;  %1160 = vmatpush.bf16.msra.mxu1 %v8069_v29 }
 0x2ca   :  { %v644_v37 = vsel %vm74_vm4, %v640_v52, %v634_v36  ;;  %v643_v21 = vsel %vm74_vm4, %v634_v36, %v636_v60  ;;  %5589 = vmatmul.msk.f32.vlgmr.msrb.gmra.mxu2 %vm649_vm11, %v615_v28  ;;  %v8187_v60 = vor.u32 %v7076_v43, %v5788_v12  ;;  %v7070_v52 = vld [vmem:[%s11201_s3 + $0x164] sm:$0xf]  ;;  %v5742_v12 = vld [vmem:[%s11201_s3 + $0x130] sm:$0xf0]  ;;  %v5844_v43 = vld [vmem:[%s11201_s3 + $0x1e8] sm:$0xf] }
 0x2cb   :  { %675 = vmatpush.msrb.mxu0 %v643_v21  ;;  %v648_v40 = vmul.f32 %v7888_v56, %v644_v37  ;;  %1174 = vmatpush.bf16.msra.mxu2 %v8086_v54  ;;  %v5822_v56 = vld [vmem:[%s11201_s3 + $0x1d0] sm:$0xf0]  ;;  %v8270_v32 = vor.u32 %v7070_v52, %v5774_v20  ;;  %v7066_v36 = vld [vmem:[%s11201_s3 + $0x144] sm:$0xf]  ;;  %v5740_v37 = vld [vmem:[%s11201_s3 + $0x120] sm:$0xf]  ;;  %v8360_v23 = vor.u32 %v7089_v7, %v5844_v43 }
 0x2cc   :  { %5583 = vmatmul.msk.f32.vlgmr.msrb.gmra.mxu0 %vm649_vm11, %v615_v28  ;;  %v8158_v39 = vor.u32 %v7082_v24, %v5822_v56  ;;  %v7064_v21 = vld [vmem:[%s11201_s3 + $0x12c] sm:$0xf0]  ;;  %v5614_v24 = vld [vmem:[%s11201_s3 + $0x30] sm:$0xf0]  ;;  %v5612_v56 = vld [vmem:[%s11201_s3 + $0x20] sm:$0xf]  ;;  %v8306_v49 = vor.u32 %v7066_v36, %v5758_v51  ;;  %v8388_v36 = vor.u32 %v7055_v63, %v5718_v15 }
 0x2cd   :  { %744 = vmatpush.msrb.mxu3 %v648_v40  ;;  %1146 = vmatpush.bf16.msra.mxu0 %v8101_v5  ;;  %v7030_v40 = vld [vmem:[%s11201_s3 + $0x24] sm:$0xf]  ;;  %v8297_v42 = vor.u32 %v7064_v21, %v5740_v37  ;;  %v8330_v59 = vor.u32 %v7032_v48, %v5612_v56  ;;  %v7057_v52 = vld [vmem:[%s11201_s3 + $0xf4] sm:$0xf0]  ;;  %v5828_v20 = vld [vmem:[%s11201_s3 + $0x1c8] sm:$0xf] }
 0x2ce   :  { %5592 = vmatmul.msk.f32.vlgmr.msrb.gmra.mxu3 %vm649_vm11, %v615_v28  ;;  %1161 = vmatpush.bf16.msra.mxu1 %v8108_v38  ;;  %v7068_v28 = vld [vmem:[%s11201_s3 + $0x14c] sm:$0xf0]  ;;  %v8318_v6 = vor.u32 %v7030_v40, %v5614_v24  ;;  %v8391_v37 = vor.u32 %v7057_v52, %v5716_v25  ;;  %v7051_v21 = vld [vmem:[%s11201_s3 + $0xcc] sm:$0xf]  ;;  %v5702_v51 = vld [vmem:[%s11201_s3 + $0xd8] sm:$0xf0]  ;;  %v8403_v24 = vor.u32 %v7085_v9, %v5828_v20 }
 0x2cf   :  { %1188 = vmatpush.bf16.msra.mxu3 %v8117_v19  ;;  %1175 = vmatpush.bf16.msra.mxu2 %v8129_v16  ;;  %v8261_v26 = vor.u32 %v7068_v28, %v5756_v22  ;;  %v5726_v22 = vld [vmem:[%s11201_s3 + $0x110] sm:$0xf0]  ;;  %v8371_v28 = vor.u32 %v7026_v53, %v5598_v61  ;;  %v5700_v56 = vld [vmem:[%s11201_s3 + $0xc8] sm:$0xf]  ;;  %v7053_v48 = vld [vmem:[%s11201_s3 + $0xd4] sm:$0xf0]  ;;  %v8428_v7 = vor.u32 %v7051_v21, %v5702_v51 }
 0x2d0   :  { %5587 = vmatmul.msk.f32.gmra.mxu1 %vm649_vm11, %v616_v8  ;;  %v8400_v40 = vor.u32 %v7058_v14, %v5726_v22  ;;  %v5830_v43 = vld [vmem:[%s11201_s3 + $0x1d8] sm:$0xf0]  ;;  %v8431_v2 = vor.u32 %v7053_v48, %v5700_v56  ;;  %v7047_v53 = vld [vmem:[%s11201_s3 + $0xac] sm:$0xf]  ;;  %v5684_v63 = vld [vmem:[%s11201_s3 + $0xa8] sm:$0xf] }
 0x2d1   :  { %1147 = vmatpush.bf16.msra.mxu0 %v8145_v50  ;;  %v5686_v61 = vld [vmem:[%s11201_s3 + $0xb8] sm:$0xf0]  ;;  %v7049_v15 = vld [vmem:[%s11201_s3 + $0xb4] sm:$0xf0]  ;;  %v5796_v25 = vld [vmem:[%s11201_s3 + $0x188] sm:$0xf] }
 0x2d2   :  { %5590 = vmatmul.msk.f32.gmra.mxu2 %vm649_vm11, %v616_v8  ;;  %1162 = vmatpush.bf16.msra.mxu1 %v8149_v13  ;;  %v7077_v52 = vld [vmem:[%s11201_s3 + $0x194] sm:$0xf0]  ;;  %v7079_v22 = vld [vmem:[%s11201_s3 + $0x1ac] sm:$0xf]  ;;  %v5814_v20 = vld [vmem:[%s11201_s3 + $0x1b8] sm:$0xf0]  ;;  %v8465_v9 = vor.u32 %v7047_v53, %v5686_v61 }
 0x2d3   :  { %1189 = vmatpush.bf16.msra.mxu3 %v8158_v39  ;;  %1176 = vmatpush.bf16.msra.mxu2 %v8170_v3  ;;  %v8474_v21 = vor.u32 %v7079_v22, %v5814_v20  ;;  %v7075_v51 = vld [vmem:[%s11201_s3 + $0x18c] sm:$0xf]  ;;  %v5798_v56 = vld [vmem:[%s11201_s3 + $0x198] sm:$0xf0]  ;;  %v7073_v53 = vld [vmem:[%s11201_s3 + $0x174] sm:$0xf0] }
 0x2d4   :  { %5584 = vmatmul.msk.f32.gmra.mxu0 %vm649_vm11, %v616_v8  ;;  %v8486_v48 = vor.u32 %v7075_v51, %v5798_v56  ;;  %v7043_v61 = vld [vmem:[%s11201_s3 + $0x8c] sm:$0xf]  ;;  %v5782_v22 = vld [vmem:[%s11201_s3 + $0x178] sm:$0xf0]  ;;  %v5652_v51 = vld [vmem:[%s11201_s3 + $0x68] sm:$0xf] }
 0x2d5   :  { %1148 = vmatpush.bf16.msra.mxu0 %v8183_v45  ;;  %v7041_v56 = vld [vmem:[%s11201_s3 + $0x74] sm:$0xf0] }
 0x2d6   :  { %5593 = vmatmul.msk.f32.gmra.mxu3 %vm649_vm11, %v616_v8  ;;  %1163 = vmatpush.bf16.msra.mxu1 %v8187_v60  ;;  %v7062_v8 = vld [vmem:[%s11201_s3 + $0x124] sm:$0xf] }
 0x2d7   :  { %1190 = vmatpush.bf16.msra.mxu3 %v8196_v35  ;;  %1177 = vmatpush.bf16.msra.mxu2 %v8208_v1  ;;  %v8354_v0 = vor.u32 %v7062_v8, %v5742_v12  ;;  %v8411_v8 = vor.u32 %v7087_v27, %v5846_v30  ;;  %v7083_v12 = vld [vmem:[%s11201_s3 + $0x1cc] sm:$0xf]  ;;  %v8468_v27 = vor.u32 %v7049_v15, %v5684_v63  ;;  %v5670_v63 = vld [vmem:[%s11201_s3 + $0x98] sm:$0xf0] }
 0x2d8   :  { %v8450_v14 = vor.u32 %v7083_v12, %v5830_v43  ;;  %v8471_v30 = vor.u32 %v7077_v52, %v5796_v25  ;;  %v5780_v12 = vld [vmem:[%s11201_s3 + $0x168] sm:$0xf]  ;;  %v8498_v43 = vor.u32 %v7045_v47, %v5668_v34  ;;  %v8511_v25 = vor.u32 %v7043_v61, %v5670_v63  ;;  %v7071_v52 = vld [vmem:[%s11201_s3 + $0x16c] sm:$0xf]  ;;  %v5654_v61 = vld [vmem:[%s11201_s3 + $0x78] sm:$0xf0] }
 0x2d9   :  { %1149 = vmatpush.bf16.msra.mxu0 %v8221_v57  ;;  %v8509_v15 = vor.u32 %v7073_v53, %v5780_v12  ;;  %v8520_v20 = vor.u32 %v7071_v52, %v5782_v22  ;;  %v5764_v34 = vld [vmem:[%s11201_s3 + $0x148] sm:$0xf]  ;;  %v8534_v47 = vor.u32 %v7041_v56, %v5652_v51  ;;  %v7069_v12 = vld [vmem:[%s11201_s3 + $0x154] sm:$0xf0]  ;;  %v7039_v53 = vld [vmem:[%s11201_s3 + $0x6c] sm:$0xf] }
 0x2da   :  { %1164 = vmatpush.bf16.msra.mxu1 %v8225_v33  ;;  %11445 = vst [vmem:[#allocation11_spill] sm:$0xff] %v8511_v25  ;;  %v8545_v63 = vor.u32 %v7069_v12, %v5764_v34  ;;  %v8547_v52 = vor.u32 %v7039_v53, %v5654_v61  ;;  %v7067_v22 = vld [vmem:[%s11201_s3 + $0x14c] sm:$0xf]  ;;  %v5766_v51 = vld [vmem:[%s11201_s3 + $0x158] sm:$0xf0] }
 0x2db   :  { %1191 = vmatpush.bf16.msra.mxu3 %v8234_v58  ;;  %1178 = vmatpush.bf16.msra.mxu2 %v8246_v17  ;;  %11444 = vst [vmem:[#allocation10_spill] sm:$0xff] %v8509_v15  ;;  %v8556_v56 = vor.u32 %v7067_v22, %v5766_v51  ;;  %v5636_v34 = vld [vmem:[%s11201_s3 + $0x48] sm:$0xf]  ;;  %v7037_v12 = vld [vmem:[%s11201_s3 + $0x54] sm:$0xf0] }
 0x2dc   :  { %11446 = vst [vmem:[#allocation12_spill] sm:$0xff] %v8520_v20  ;;  %v5748_v53 = vld [vmem:[%s11201_s3 + $0x128] sm:$0xf]  ;;  %v8570_v61 = vor.u32 %v7037_v12, %v5636_v34  ;;  %v7065_v22 = vld [vmem:[%s11201_s3 + $0x134] sm:$0xf0] }
 0x2dd   :  { %1150 = vmatpush.bf16.msra.mxu0 %v8258_v44  ;;  %11447 = vst [vmem:[#allocation13_spill] sm:$0xff] %v8534_v47  ;;  %v7035_v51 = vld [vmem:[%s11201_s3 + $0x4c] sm:$0xf]  ;;  %v8581_v55 = vor.u32 %v7065_v22, %v5748_v53  ;;  %v5750_v12 = vld [vmem:[%s11201_s3 + $0x138] sm:$0xf0] }
 0x2de   :  { %1165 = vmatpush.bf16.msra.mxu1 %v8261_v26  ;;  %11448 = vst [vmem:[#allocation14_spill] sm:$0xff] %v8545_v63  ;;  %v8583_v10 = vor.u32 %v7035_v51, %v5638_v18  ;;  %v7063_v34 = vld [vmem:[%s11201_s3 + $0x12c] sm:$0xf]  ;;  %v5620_v18 = vld [vmem:[%s11201_s3 + $0x28] sm:$0xf] }
 0x2df   :  { %1192 = vmatpush.bf16.msra.mxu3 %v8270_v32  ;;  %1179 = vmatpush.bf16.msra.mxu2 %v8282_v46  ;;  %11449 = vst [vmem:[#allocation15_spill] sm:$0xff] %v8547_v52  ;;  %v8592_v11 = vor.u32 %v7063_v34, %v5750_v12  ;;  %v7033_v53 = vld [vmem:[%s11201_s3 + $0x34] sm:$0xf0]  ;;  %v5732_v22 = vld [vmem:[%s11201_s3 + $0x108] sm:$0xf] }
 0x2e0   :  { %11450 = vst [vmem:[#allocation16_spill] sm:$0xff] %v8556_v56  ;;  %v8606_v51 = vor.u32 %v7033_v53, %v5620_v18  ;;  %v7061_v34 = vld [vmem:[%s11201_s3 + $0x114] sm:$0xf0]  ;;  %v7031_v12 = vld [vmem:[%s11201_s3 + $0x2c] sm:$0xf] }
 0x2e1   :  { %1151 = vmatpush.bf16.msra.mxu0 %v8294_v41  ;;  %11451 = vst [vmem:[#allocation17_spill] sm:$0xff] %v8570_v61  ;;  %v7059_v18 = vld [vmem:[%s11201_s3 + $0x10c] sm:$0xf]  ;;  %v5734_v53 = vld [vmem:[%s11201_s3 + $0x118] sm:$0xf0] }
 0x2e2   :  { %1166 = vmatpush.bf16.msra.mxu1 %v8297_v42  ;;  %11452 = vst [vmem:[#allocation18_spill] sm:$0xff] %v8581_v55 }
 0x2e3   :  { %1193 = vmatpush.bf16.msra.mxu3 %v8306_v49  ;;  %1180 = vmatpush.bf16.msra.mxu2 %v8318_v6  ;;  %11453 = vst [vmem:[#allocation19_spill] sm:$0xff] %v8583_v10 }
 0x2e4   :  { %11454 = vst [vmem:[#allocation20_spill] sm:$0xff] %v8592_v11 }
 0x2e5   :  { %1152 = vmatpush.bf16.msra.mxu0 %v8330_v59  ;;  %11455 = vst [vmem:[#allocation21_spill] sm:$0xff] %v8606_v51 }
 0x2e6   :  { %1167 = vmatpush.bf16.msra.mxu1 %v8342_v4 }
 0x2e7   :  { %1194 = vmatpush.bf16.msra.mxu3 %v8354_v0  ;;  %1181 = vmatpush.bf16.msra.mxu2 %v8371_v28 }
 0x2e9   :  { %1153 = vmatpush.bf16.msra.mxu0 %v8386_v31 }
 0x2ea   :  { %1216 = vmatpush.bf16.msrb.mxu1 %v8360_v23 }
 0x2eb   :  { %1230 = vmatpush.bf16.msrb.mxu2 %v8388_v36  ;;  %1195 = vmatpush.bf16.msra.mxu3 %v8400_v40 }
 0x2ed   :  { %1202 = vmatpush.bf16.msrb.mxu0 %v8391_v37 }
 0x2ee   :  { %1217 = vmatpush.bf16.msrb.mxu1 %v8403_v24 }
 0x2ef   :  { %1244 = vmatpush.bf16.msrb.mxu3 %v8411_v8  ;;  %1231 = vmatpush.bf16.msrb.mxu2 %v8428_v7 }
 0x2f1   :  { %1203 = vmatpush.bf16.msrb.mxu0 %v8431_v2 }
 0x2f2   :  { %1218 = vmatpush.bf16.msrb.mxu1 %v8441_v62 }
 0x2f3   :  { %1245 = vmatpush.bf16.msrb.mxu3 %v8450_v14  ;;  %1232 = vmatpush.bf16.msrb.mxu2 %v8465_v9 }
 0x2f5   :  { %1204 = vmatpush.bf16.msrb.mxu0 %v8468_v27 }
 0x2f6   :  { %1219 = vmatpush.bf16.msrb.mxu1 %v8471_v30 }
 0x2f7   :  { %1246 = vmatpush.bf16.msrb.mxu3 %v8474_v21  ;;  %1233 = vmatpush.bf16.msrb.mxu2 %v8511_v25 }
 0x2f9   :  { %1205 = vmatpush.bf16.msrb.mxu0 %v8498_v43 }
 0x2fa   :  { %1220 = vmatpush.bf16.msrb.mxu1 %v8509_v15 }
 0x2fb   :  { %1247 = vmatpush.bf16.msrb.mxu3 %v8486_v48  ;;  %1234 = vmatpush.bf16.msrb.mxu2 %v8547_v52 }
 0x2fd   :  { %1206 = vmatpush.bf16.msrb.mxu0 %v8534_v47 }
 0x2fe   :  { %1221 = vmatpush.bf16.msrb.mxu1 %v8545_v63 }
 0x2ff   :  { %1248 = vmatpush.bf16.msrb.mxu3 %v8520_v20  ;;  %1235 = vmatpush.bf16.msrb.mxu2 %v8583_v10  ;;  %v5622_v10 = vld [vmem:[%s11201_s3 + $0x38] sm:$0xf0] }
 0x301   :  { %1207 = vmatpush.bf16.msrb.mxu0 %v8570_v61  ;;  %v8619_v61 = vor.u32 %v7031_v12, %v5622_v10  ;;  %v7029_v10 = vld [vmem:[%s11201_s3 + $0x14] sm:$0xf0] }
 0x302   :  { %1222 = vmatpush.bf16.msrb.mxu1 %v8581_v55  ;;  %v8617_v55 = vor.u32 %v7061_v34, %v5732_v22  ;;  %v7027_v22 = vld [vmem:[%s11201_s3 + $0xc] sm:$0xf]  ;;  %v5606_v34 = vld [vmem:[%s11201_s3 + $0x18] sm:$0xf0] }
 0x303   :  { %1249 = vmatpush.bf16.msrb.mxu3 %v8556_v56  ;;  %v8631_v56 = vor.u32 %v7059_v18, %v5734_v53  ;;  %1236 = vmatpush.bf16.msrb.mxu2 %v8619_v61  ;;  %v8646_v18 = vor.u32 %v7027_v22, %v5606_v34 }
 0x304   :  { %11456 = vst [vmem:[#allocation22_spill] sm:$0xff] %v8617_v55 }
 0x305   :  { %1208 = vmatpush.bf16.msrb.mxu0 %v8606_v51 }
 0x306   :  { %1223 = vmatpush.bf16.msrb.mxu1 %v8617_v55 }
 0x307   :  { %1250 = vmatpush.bf16.msrb.mxu3 %v8592_v11  ;;  %v5604_v11 = vld [vmem:[%s11201_s3 + $0x8] sm:$0xf]  ;;  %1237 = vmatpush.bf16.msrb.mxu2 %v8646_v18  ;;  %s5497_s3 = sshll.u32 %s11203_s5, 4  ;;  %s5498_s3 = int_to_ptr.hbm [resolvable:$true] %s5497_s3 }
 0x308   :  { %v8644_v12 = vor.u32 %v7029_v10, %v5604_v11 }
 0x30a   :  { %1209 = vmatpush.bf16.msrb.mxu0 %v8644_v12 }
 0x30b   :  { %1251 = vmatpush.bf16.msrb.mxu3 %v8631_v56 }
 0x345   :  { %v700_v53 = vpop.f32.mrf.mxu1 }
 0x346   :  { %v753_v63 = vmax.f32 %v700_v53, 0.0 }
 0x349   :  { %v677_v51 = vpop.f32.mrf.mxu0 }
 0x34a   :  { %v752_v55 = vmax.f32 %v677_v51, 0.0 }
 0x34d   :  { %v703_v52 = vpop.f32.mrf.mxu1 }
 0x34e   :  { %v757_v47 = vmax.f32 %v703_v52, 0.0 }
 0x350   :  { %v825_v20 = vpack.c.bf16 %v757_v47, %v753_v63 }
 0x351   :  { %v680_v25 = vpop.f32.mrf.mxu0 }
 0x352   :  { %v756_v15 = vmax.f32 %v680_v25, 0.0  ;;  %1168 = vmatmul.bf16.vlgmr.msra.gmra.mxu1 %v825_v20  ;;  %1196 = vmatmul.bf16.vlgmr.msra.gmra.mxu3 %v825_v20 }
 0x353   :  { %1274 = vmatpush.bf16.msra.mxu1 %v8069_v29  ;;  %1302 = vmatpush.bf16.msra.mxu3 %v8117_v19  ;;  %v746_v29 = vpop.f32.mrf.mxu3 }
 0x354   :  { %v824_v11 = vpack.c.bf16 %v756_v15, %v752_v55  ;;  %v723_v55 = vpop.f32.mrf.mxu2 }
 0x356   :  { %1154 = vmatmul.bf16.vlgmr.msra.gmra.mxu0 %v824_v11  ;;  %1182 = vmatmul.bf16.vlgmr.msra.gmra.mxu2 %v824_v11 }
 0x357   :  { %1260 = vmatpush.bf16.msra.mxu0 %v8101_v5  ;;  %1275 = vmatpush.bf16.msra.mxu1 %v8108_v38  ;;  %v755_v5 = vmax.f32 %v746_v29, 0.0 }
 0x358   :  { %1288 = vmatpush.bf16.msra.mxu2 %v8086_v54  ;;  %1303 = vmatpush.bf16.msra.mxu3 %v8158_v39 }
 0x35b   :  { %1261 = vmatpush.bf16.msra.mxu0 %v8145_v50  ;;  %1276 = vmatpush.bf16.msra.mxu1 %v8149_v13  ;;  %v749_v54 = vpop.f32.mrf.mxu3 }
 0x35c   :  { %1289 = vmatpush.bf16.msra.mxu2 %v8129_v16  ;;  %1304 = vmatpush.bf16.msra.mxu3 %v8196_v35  ;;  %v759_v38 = vmax.f32 %v749_v54, 0.0  ;;  %v726_v19 = vpop.f32.mrf.mxu2  ;;  %v754_v16 = vmax.f32 %v723_v55, 0.0  ;;  %v11460_v35 = vld [vmem:[#allocation13_spill] sm:$0xff] }
 0x35d   :  { %v758_v13 = vmax.f32 %v726_v19, 0.0 }
 0x35e   :  { %v1259_v50 = vpack.c.bf16 %v759_v38, %v755_v5 }
 0x35f   :  { %1262 = vmatpush.bf16.msra.mxu0 %v8183_v45  ;;  %1277 = vmatpush.bf16.msra.mxu1 %v8187_v60  ;;  %v1258_v39 = vpack.c.bf16 %v758_v13, %v754_v16  ;;  %v11458_v45 = vld [vmem:[#allocation11_spill] sm:$0xff]  ;;  %v11459_v60 = vld [vmem:[#allocation12_spill] sm:$0xff] }
 0x360   :  { %1290 = vmatpush.bf16.msra.mxu2 %v8170_v3  ;;  %1305 = vmatpush.bf16.msra.mxu3 %v8234_v58  ;;  %v11457_v3 = vld [vmem:[#allocation10_spill] sm:$0xff]  ;;  %v11464_v58 = vld [vmem:[#allocation17_spill] sm:$0xff] }
 0x362   :  { %1224 = vmatmul.bf16.vlgmr.msrb.gmra.mxu1 %v825_v20  ;;  %1252 = vmatmul.bf16.vlgmr.msrb.gmra.mxu3 %v825_v20 }
 0x363   :  { %1263 = vmatpush.bf16.msra.mxu0 %v8221_v57  ;;  %1278 = vmatpush.bf16.msra.mxu1 %v8225_v33  ;;  %v11462_v57 = vld [vmem:[#allocation15_spill] sm:$0xff]  ;;  %v11463_v33 = vld [vmem:[#allocation16_spill] sm:$0xff] }
 0x364   :  { %1291 = vmatpush.bf16.msra.mxu2 %v8208_v1  ;;  %1306 = vmatpush.bf16.msra.mxu3 %v8270_v32  ;;  %v11461_v1 = vld [vmem:[#allocation14_spill] sm:$0xff]  ;;  %v11468_v32 = vld [vmem:[#allocation21_spill] sm:$0xff] }
 0x366   :  { %1210 = vmatmul.bf16.vlgmr.msrb.gmra.mxu0 %v824_v11  ;;  %1238 = vmatmul.bf16.vlgmr.msrb.gmra.mxu2 %v824_v11 }
 0x367   :  { %1264 = vmatpush.bf16.msra.mxu0 %v8258_v44  ;;  %1279 = vmatpush.bf16.msra.mxu1 %v8261_v26  ;;  %v11466_v44 = vld [vmem:[#allocation19_spill] sm:$0xff]  ;;  %v11467_v26 = vld [vmem:[#allocation20_spill] sm:$0xff] }
 0x368   :  { %1292 = vmatpush.bf16.msra.mxu2 %v8246_v17  ;;  %1307 = vmatpush.bf16.msra.mxu3 %v8306_v49  ;;  %v11465_v17 = vld [vmem:[#allocation18_spill] sm:$0xff] }
 0x36b   :  { %1265 = vmatpush.bf16.msra.mxu0 %v8294_v41  ;;  %1280 = vmatpush.bf16.msra.mxu1 %v8297_v42  ;;  %v11470_v41 = vmov 1.0  }
 0x36c   :  { %1293 = vmatpush.bf16.msra.mxu2 %v8282_v46  ;;  %1308 = vmatpush.bf16.msra.mxu3 %v8354_v0  ;;  %v11469_v46 = vld [vmem:[#allocation22_spill] sm:$0xff] }
 0x36f   :  { %1266 = vmatpush.bf16.msra.mxu0 %v8330_v59  ;;  %1281 = vmatpush.bf16.msra.mxu1 %v8342_v4 }
 0x370   :  { %1294 = vmatpush.bf16.msra.mxu2 %v8318_v6  ;;  %1309 = vmatpush.bf16.msra.mxu3 %v8400_v40 }
 0x372   :  { %1282 = vmatmul.bf16.vlgmr.msra.gmra.mxu1 %v1259_v50 }
 0x373   :  { %1330 = vmatpush.bf16.msrb.mxu1 %v8360_v23  ;;  %1267 = vmatpush.bf16.msra.mxu0 %v8386_v31 }
 0x374   :  { %1358 = vmatpush.bf16.msrb.mxu3 %v8411_v8  ;;  %1295 = vmatpush.bf16.msra.mxu2 %v8371_v28 }
 0x375   :  { %1310 = vmatmul.bf16.vlgmr.msra.gmra.mxu3 %v1259_v50 }
 0x376   :  { %1268 = vmatmul.bf16.vlgmr.msra.gmra.mxu0 %v1258_v39 }
 0x377   :  { %1316 = vmatpush.bf16.msrb.mxu0 %v8391_v37  ;;  %1331 = vmatpush.bf16.msrb.mxu1 %v8403_v24 }
 0x378   :  { %1344 = vmatpush.bf16.msrb.mxu2 %v8388_v36  ;;  %1359 = vmatpush.bf16.msrb.mxu3 %v8450_v14 }
 0x379   :  { %1296 = vmatmul.bf16.vlgmr.msra.gmra.mxu2 %v1258_v39 }
 0x37b   :  { %1317 = vmatpush.bf16.msrb.mxu0 %v8431_v2  ;;  %1332 = vmatpush.bf16.msrb.mxu1 %v8441_v62 }
 0x37c   :  { %1345 = vmatpush.bf16.msrb.mxu2 %v8428_v7  ;;  %1360 = vmatpush.bf16.msrb.mxu3 %v8474_v21 }
 0x37f   :  { %1318 = vmatpush.bf16.msrb.mxu0 %v8468_v27  ;;  %1333 = vmatpush.bf16.msrb.mxu1 %v8471_v30 }
 0x380   :  { %1346 = vmatpush.bf16.msrb.mxu2 %v8465_v9  ;;  %1361 = vmatpush.bf16.msrb.mxu3 %v8486_v48 }
 0x383   :  { %1319 = vmatpush.bf16.msrb.mxu0 %v8498_v43  ;;  %1334 = vmatpush.bf16.msrb.mxu1 %v11457_v3 }
 0x384   :  { %1347 = vmatpush.bf16.msrb.mxu2 %v11458_v45  ;;  %1362 = vmatpush.bf16.msrb.mxu3 %v11459_v60 }
 0x387   :  { %1320 = vmatpush.bf16.msrb.mxu0 %v11460_v35  ;;  %1335 = vmatpush.bf16.msrb.mxu1 %v11461_v1 }
 0x388   :  { %1348 = vmatpush.bf16.msrb.mxu2 %v11462_v57  ;;  %1363 = vmatpush.bf16.msrb.mxu3 %v11463_v33 }
 0x38b   :  { %1321 = vmatpush.bf16.msrb.mxu0 %v11464_v58  ;;  %1336 = vmatpush.bf16.msrb.mxu1 %v11465_v17  ;;  %v11471_v17 = vld [vmem:[#allocation8_spill] sm:$0xff] }
 0x38c   :  { %1349 = vmatpush.bf16.msrb.mxu2 %v11466_v44  ;;  %1364 = vmatpush.bf16.msrb.mxu3 %v11467_v26 }
 0x38f   :  { %1322 = vmatpush.bf16.msrb.mxu0 %v11468_v32  ;;  %1337 = vmatpush.bf16.msrb.mxu1 %v11469_v46  ;;  %v11472_v46 = vld [vmem:[#allocation9_spill] sm:$0xff] }
 0x390   :  { %1350 = vmatpush.bf16.msrb.mxu2 %v8619_v61  ;;  %1365 = vmatpush.bf16.msrb.mxu3 %v8631_v56 }
 0x392   :  { %1338 = vmatmul.bf16.vlgmr.msrb.gmra.mxu1 %v1259_v50 }
 0x393   :  { %5859 = vmatpush.msk.msra.mxu1 %vm656_vm10, %v11470_v41  ;;  %1323 = vmatpush.bf16.msrb.mxu0 %v8644_v12 }
 0x394   :  { %5869 = vmatpush.msk.msra.mxu3 %vm656_vm10, %v11470_v41  ;;  %1351 = vmatpush.bf16.msrb.mxu2 %v8646_v18 }
 0x395   :  { %1366 = vmatmul.bf16.vlgmr.msrb.gmra.mxu3 %v1259_v50 }
 0x396   :  { %1324 = vmatmul.bf16.vlgmr.msrb.gmra.mxu0 %v1258_v39 }
 0x397   :  { %5854 = vmatpush.msk.msra.mxu0 %vm656_vm10, %v11470_v41  ;;  %1352 = vmatmul.bf16.vlgmr.msrb.gmra.mxu2 %v1258_v39 }
 0x398   :  { %5864 = vmatpush.msk.msra.mxu2 %vm656_vm10, %v11470_v41 }
 0x3cf   :  { %v1169_v42 = vpop.f32.mrf.mxu1 }
 0x3d3   :  { %v1155_v49 = vpop.f32.mrf.mxu0 }
 0x3d4   :  { %v8723_v6 = vadd.f32 %v1169_v42, %v1155_v49  ;;  %v1383_v42 = vand.u32 511, %v11472_v46  ;;  %v11473_v49 = vmov 0.0  }
 0x3d5   :  { %v1197_v59 = vpop.f32.mrf.mxu3 }
 0x3d6   :  { %1436 = vrot.lane.b32.xlu2 %v8723_v6, %s7571_s28  ;;  %vm1415_vm12 = vcmp.ne.s32.totalorder %v1383_v42, 511 }
 0x3d7   :  { %v1171_v4 = vpop.f32.mrf.mxu1 }
 0x3d9   :  { %v1183_v0 = vpop.f32.mrf.mxu2 }
 0x3da   :  { %v8752_v61 = vadd.f32 %v1197_v59, %v1183_v0  ;;  %v8812_v59 = vsel %vm1415_vm12, 1.0, %v11473_v49 }
 0x3db   :  { %v1157_v23 = vpop.f32.mrf.mxu0 }
 0x3dc   :  { %v8727_v28 = vadd.f32 %v1171_v4, %v1157_v23 }
 0x3dd   :  { %v1199_v31 = vpop.f32.mrf.mxu3 }
 0x3de   :  { %1438 = vrot.lane.b32.xlu1 %v8727_v28, %s7571_s28 }
 0x3df   :  { %v1225_v36 = vpop.f32.mrf.mxu1 }
 0x3e1   :  { %v1185_v37 = vpop.f32.mrf.mxu2 }
 0x3e2   :  { %v8750_v56 = vadd.f32 %v1199_v31, %v1185_v37 }
 0x3e3   :  { %v1211_v40 = vpop.f32.mrf.mxu0 }
 0x3e4   :  { %v8733_v14 = vadd.f32 %v1225_v36, %v1211_v40  ;;  %v7398_v51 = vpack.i.bf16 %v8752_v61, %v8750_v56  ;;  %v1380_v36 = vand.u32 511, %v11471_v17 }
 0x3e5   :  { %v1253_v24 = vpop.f32.mrf.mxu3 }
 0x3e6   :  { %vm1388_vm13 = vcmp.ne.s32.totalorder %v1380_v36, 0 }
 0x3e7   :  { %v1227_v8 = vpop.f32.mrf.mxu1  ;;  %v8825_v37 = vsel %vm1388_vm13, 1.0, %v11473_v49 }
 0x3e9   :  { %v1239_v7 = vpop.f32.mrf.mxu2 }
 0x3ea   :  { %v8731_v2 = vadd.f32 %v1253_v24, %v1239_v7 }
 0x3eb   :  { %v1213_v62 = vpop.f32.mrf.mxu0 }
 0x3ec   :  { %v8735_v9 = vadd.f32 %v1227_v8, %v1213_v62  ;;  %1448 = vrot.lane.b32.xlu0 %v8731_v2, %s7571_s28 }
 0x3ed   :  { %v1255_v30 = vpop.f32.mrf.mxu3 }
 0x3ee   :  { %v7393_v27 = vpack.i.bf16 %v8733_v14, %v8735_v9 }
 0x3ef   :  { %v1283_v21 = vpop.f32.mrf.mxu1 }
 0x3f0   :  { %7394 = vrot.lane.b32.xlu1 %v7393_v27, %s7571_s28 }
 0x3f1   :  { %v1241_v48 = vpop.f32.mrf.mxu2 }
 0x3f2   :  { %v1256_v43 = vadd.f32 %v1255_v30, %v1241_v48 }
 0x3f3   :  { %v1269_v15 = vpop.f32.mrf.mxu0 }
 0x3f4   :  { %1514 = vrot.lane.b32.xlu0 %v1256_v43, %s7572_s29  ;;  %1450 = vrot.lane.b32.xlu2 %v1256_v43, %s7571_s28  ;;  %v8774_v38 = vadd.f32 %v1283_v21, %v1269_v15  ;;  %v8844_v21 = vld [vmem:[%s11199_s1 + $0x28] sm:$0xff] }
 0x3f7   :  { %v1285_v25 = vpop.f32.mrf.mxu1 }
 0x3f8   :  { %v1311_v63 = vpop.f32.mrf.mxu3 }
 0x3fb   :  { %v1271_v20 = vpop.f32.mrf.mxu0 }
 0x3fc   :  { %v8744_v47 = vadd.f32 %v1285_v25, %v1271_v20  ;;  %v1297_v52 = vpop.f32.mrf.mxu2 }
 0x3fd   :  { %v8772_v54 = vadd.f32 %v1311_v63, %v1297_v52  ;;  %v8856_v52 = vld [vmem:[%s11199_s1 + $0x30] sm:$0xff] }
 0x3fe   :  { %1518 = vrot.lane.b32.xlu1 %v8744_v47, %s7572_s29 }
 0x400   :  { %v1313_v10 = vpop.f32.mrf.mxu3 }
 0x404   :  { %v1299_v22 = vpop.f32.mrf.mxu2 }
 0x405   :  { %v8770_v55 = vadd.f32 %v1313_v10, %v1299_v22 }
 0x406   :  { %1512 = vrot.lane.b32.xlu1 %v8731_v2, %s7572_s29 }
 0x407   :  { %v7418_v16 = vpack.i.bf16 %v8772_v54, %v8770_v55 }
 0x40e   :  { %7399 = vrot.lane.b32.xlu1 %v7398_v51, %s7572_s29 }
 0x40f   :  { %v1339_v19 = vpop.f32.mrf.mxu1 }
 0x413   :  { %v1325_v5 = vpop.f32.mrf.mxu0 }
 0x414   :  { %v8788_v3 = vadd.f32 %v1339_v19, %v1325_v5 }
 0x416   :  { %7409 = vrot.lane.b32.xlu1 %v7393_v27, %s7572_s29 }
 0x417   :  { %v1341_v13 = vpop.f32.mrf.mxu1 }
 0x418   :  { %v1367_v34 = vpop.f32.mrf.mxu3 }
 0x41a   :  { %v1353_v12 = vpop.f32.mrf.mxu2 }
 0x41b   :  { %v8758_v18 = vadd.f32 %v1367_v34, %v1353_v12  ;;  %v1327_v50 = vpop.f32.mrf.mxu0  ;;  %v8863_v34 = vadd.s32 896, %v11471_v17 }
 0x41c   :  { %v8786_v39 = vadd.f32 %v1341_v13, %v1327_v50 }
 0x41d   :  { %1464 = vrot.lane.b32.xlu0 %v8758_v18, %s7571_s28  ;;  %11474 = vst [vmem:[#allocation10_spill] sm:$0xff] %v8863_v34  ;;  %v1387_v50 = vand.u32 511, %v8863_v34 }
 0x41e   :  { %v7413_v45 = vpack.i.bf16 %v8788_v3, %v8786_v39 }
 0x41f   :  { %vm1419_vm15 = vcmp.ne.s32.totalorder %v1387_v50, 511 }
 0x420   :  { %v1369_v53 = vpop.f32.mrf.mxu3 }
 0x422   :  { %v1355_v11 = vpop.f32.mrf.mxu2 }
 0x423   :  { %v8762_v29 = vadd.f32 %v1369_v53, %v1355_v11 }
 0x425   :  { %1466 = vrot.lane.b32.xlu2 %v8762_v29, %s7571_s28  ;;  %1502 = vrot.lane.b32.xlu0 %v8727_v28, %s7572_s29 }
 0x426   :  { %1530 = vrot.lane.b32.xlu1 %v8762_v29, %s7572_s29 }
 0x42d   :  { %1516 = vrot.lane.b32.xlu2 %v8774_v38, %s7572_s29  ;;  %1500 = vrot.lane.b32.xlu0 %v8723_v6, %s7572_s29 }
 0x42e   :  { %7419 = vrot.lane.b32.xlu1 %v7418_v16, %s7572_s29 }
 0x430   :  { %v1437_v35 = vpop.permute.xlu2 %1436 }
 0x435   :  { %7404 = vrot.lane.b32.xlu2 %v7398_v51, %s7571_s28  ;;  %1454 = vrot.lane.b32.xlu0 %v8744_v47, %s7571_s28 }
 0x43d   :  { %7414 = vrot.lane.b32.xlu2 %v7413_v45, %s7571_s28  ;;  %1528 = vrot.lane.b32.xlu0 %v8758_v18, %s7572_s29 }
 0x445   :  { %1452 = vrot.lane.b32.xlu2 %v8774_v38, %s7571_s28  ;;  %7429 = vrot.lane.b32.xlu0 %v7413_v45, %s7572_s29 }
 0x44d   :  { %7424 = vrot.lane.b32.xlu2 %v7418_v16, %s7571_s28 }
 0x44e   :  { %v8799_v58 = vpop.permute.xlu2 %1450 }
 0x450   :  { %v1439_v60 = vpop.permute.xlu1 %1438 }
 0x45e   :  { %v8804_v26 = vpop.permute.xlu0 %1448 }
 0x462   :  { %v7395_v1 = vpop.permute.xlu1 %7394 }
 0x463   :  { %v7397_v57 = vunpack.i.h.bf16 %v7395_v1  ;;  %v7396_v33 = vunpack.i.l.bf16 %v7395_v1 }
 0x465   :  { %v1477_v44 = vsel %vm65_vm5, %v7396_v33, %v8799_v58  ;;  %v1476_v32 = vsel %vm65_vm5, %v7397_v57, %v8804_v26 }
 0x466   :  { %1674 = vmatpush.msra.mxu3 %v1477_v44  ;;  %v8814_v4 = vpop.permute.xlu0 %1514 }
 0x468   :  { %1675 = vmatpush.msra.mxu3 %v1476_v32  ;;  %v8913_v32 = vsel %vm1419_vm15, 1.0, %v11473_v49 }
 0x46a   :  { %1676 = vmatpush.msra.mxu3 %v1256_v43 }
 0x46c   :  { %1677 = vmatpush.msra.mxu3 %v8731_v2 }
 0x470   :  { %v8816_v0 = vpop.permute.xlu1 %1518 }
 0x471   :  { %v1539_v23 = vsel %vm74_vm4, %v8814_v4, %v8816_v0 }
 0x472   :  { %v1559_v31 = vmul.f32 %v8812_v59, %v1539_v23 }
 0x474   :  { %1678 = vmatpush.msra.mxu3 %v1559_v31 }
 0x478   :  { %v8827_v40 = vpop.permute.xlu1 %1512 }
 0x47f   :  { %v1467_v24 = vpop.permute.xlu2 %1466 }
 0x480   :  { %v1483_v8 = vsel %vm65_vm5, %v1467_v24, %v1439_v60  ;;  %v8838_v27 = vpop.permute.xlu1 %7399 }
 0x481   :  { %v1492_v7 = vmul.f32 %v8825_v37, %v1483_v8  ;;  %v7401_v11 = vunpack.i.l.bf16 %v8838_v27 }
 0x483   :  { %1587 = vmatpush.msra.mxu0 %v1492_v7 }
 0x487   :  { %v8832_v2 = vpop.permute.xlu2 %1516 }
 0x488   :  { %v1538_v62 = vsel %vm74_vm4, %v8827_v40, %v8832_v2  ;;  %v7410_v22 = vpop.permute.xlu1 %7409 }
 0x489   :  { %v1551_v30 = vmul.f32 %v8812_v59, %v1538_v62  ;;  %v7411_v5 = vunpack.i.l.bf16 %v7410_v22  ;;  %v7412_v13 = vunpack.i.h.bf16 %v7410_v22 }
 0x48b   :  { %1679 = vmatpush.msra.mxu3 %v1551_v30  ;;  %v1540_v44 = vsel %vm74_vm4, %v7412_v13, %v8827_v40  ;;  %v8934_v40 = vld [vmem:[%s11199_s1 + $0x40] sm:$0xff] }
 0x48c   :  { %5870 = vmatmul.msk.f32.vlgmr.msra.gmra.mxu3 %vm1564_vm14, %v8844_v21 }
 0x48d   :  { %5889 = vmatpush.msk.msrb.mxu3 %vm656_vm10, %v11470_v41 }
 0x48f   :  { %v1465_v48 = vpop.permute.xlu0 %1464  ;;  %v7405_v43 = vpop.permute.xlu2 %7404 }
 0x490   :  { %v1482_v15 = vsel %vm65_vm5, %v1465_v48, %v1437_v35  ;;  %v7407_v25 = vunpack.i.h.bf16 %v7405_v43  ;;  %v7406_v20 = vunpack.i.l.bf16 %v7405_v43 }
 0x491   :  { %v1484_v63 = vmul.f32 %v8825_v37, %v1482_v15 }
 0x492   :  { %v1481_v51 = vsel %vm65_vm5, %v1439_v60, %v7406_v20  ;;  %v1479_v10 = vsel %vm65_vm5, %v7406_v20, %v7396_v33  ;;  %v1480_v12 = vsel %vm65_vm5, %v1437_v35, %v7407_v25  ;;  %v1478_v53 = vsel %vm65_vm5, %v7407_v25, %v7397_v57 }
 0x493   :  { %1588 = vmatpush.msra.mxu0 %v1484_v63  ;;  %1616 = vmatpush.msra.mxu1 %v1481_v51  ;;  %v1543_v35 = vsel %vm74_vm4, %v7401_v11, %v7411_v5  ;;  %v1376_v33 = vadd.s32 512, %v11471_v17  ;;  %v6370_v17 = vld [vmem:[#allocation2 + $0x320] sm:$0xf0] }
 0x494   :  { %1645 = vmatpush.msra.mxu2 %v1479_v10  ;;  %5871 = vmatmul.msk.f32.gmra.mxu3 %vm1564_vm14, %v8856_v52 }
 0x495   :  { %1589 = vmatpush.msra.mxu0 %v8727_v28  ;;  %1617 = vmatpush.msra.mxu1 %v1480_v12  ;;  %v1384_v23 = vand.u32 511, %v1376_v33 }
 0x496   :  { %1646 = vmatpush.msra.mxu2 %v1478_v53 }
 0x497   :  { %v8873_v19 = vpop.permute.xlu2 %7414  ;;  %v1503_v16 = vpop.permute.xlu0 %1502  ;;  %1590 = vmatpush.msra.mxu0 %v8723_v6  ;;  %1618 = vmatpush.msra.mxu1 %v8750_v56  ;;  %v8887_v6 = vld [vmem:[%s11199_s1 + $0x38] sm:$0xff]  ;;  %v7402_v56 = vunpack.i.h.bf16 %v8838_v27  ;;  %vm1392_vm0 = vcmp.ne.s32.totalorder %v1384_v23, 0 }
 0x498   :  { %v7417_v28 = vunpack.i.h.bf16 %v8873_v19  ;;  %v7416_v45 = vunpack.i.l.bf16 %v8873_v19  ;;  %1647 = vmatpush.msra.mxu2 %v8735_v9  ;;  %v1545_v60 = vsel %vm74_vm4, %v1503_v16, %v7401_v11  ;;  %v8895_v1 = vpop.permute.xlu1 %1530 }
 0x499   :  { %1591 = vmatpush.msra.mxu0 %v1545_v60  ;;  %1619 = vmatpush.msra.mxu1 %v8752_v61  ;;  %v1541_v61 = vsel %vm74_vm4, %v7411_v5, %v8814_v4  ;;  %v1542_v57 = vsel %vm74_vm4, %v7402_v56, %v7412_v13  ;;  %v1547_v46 = vsel %vm74_vm4, %v8895_v1, %v1503_v16 }
 0x49a   :  { %1648 = vmatpush.msra.mxu2 %v8733_v14  ;;  %v1469_v9 = vsel %vm65_vm5, %v7416_v45, %v1467_v24  ;;  %v1468_v14 = vsel %vm65_vm5, %v7417_v28, %v1465_v48  ;;  %v1563_v36 = vmul.f32 %v8913_v32, %v1547_v46 }
 0x49b   :  { %1620 = vmatpush.msra.mxu1 %v1543_v35  ;;  %1790 = vmatpush.msrb.mxu3 %v1469_v9 }
 0x49c   :  { %1649 = vmatpush.msra.mxu2 %v1541_v61  ;;  %5872 = vmatmul.msk.f32.gmra.mxu3 %vm1564_vm14, %v8887_v6 }
 0x49d   :  { %1621 = vmatpush.msra.mxu1 %v1542_v57  ;;  %1791 = vmatpush.msrb.mxu3 %v1468_v14 }
 0x49e   :  { %1650 = vmatpush.msra.mxu2 %v1540_v44  ;;  %5860 = vmatmul.msk.f32.vlgmr.msra.gmra.mxu1 %vm1564_vm14, %v8844_v21 }
 0x49f   :  { %5865 = vmatmul.msk.f32.vlgmr.msra.gmra.mxu2 %vm1564_vm14, %v8844_v21  ;;  %v1453_v42 = vpop.permute.xlu2 %1452  ;;  %v1501_v4 = vpop.permute.xlu0 %1500  ;;  %1792 = vmatpush.msrb.mxu3 %v8762_v29 }
 0x4a0   :  { %v1544_v31 = vsel %vm74_vm4, %v1501_v4, %v7402_v56  ;;  %5879 = vmatpush.msk.msrb.mxu1 %vm656_vm10, %v11470_v41  ;;  %5884 = vmatpush.msk.msrb.mxu2 %vm656_vm10, %v11470_v41  ;;  %v1474_v8 = vsel %vm65_vm5, %v8804_v26, %v1453_v42  ;;  %v7420_v26 = vpop.permute.xlu1 %7419 }
 0x4a1   :  { %1592 = vmatpush.msra.mxu0 %v1544_v31  ;;  %1793 = vmatpush.msrb.mxu3 %v8758_v18  ;;  %v8945_v18 = vsel %vm1392_vm0, 1.0, %v11473_v49  ;;  %v7421_v20 = vunpack.i.l.bf16 %v7420_v26  ;;  %v7422_v10 = vunpack.i.h.bf16 %v7420_v26 }
 0x4a2   :  { %5855 = vmatmul.msk.f32.vlgmr.msra.gmra.mxu0 %vm1564_vm14, %v8844_v21  ;;  %v1488_v15 = vmul.f32 %v8945_v18, %v1474_v8 }
 0x4a3   :  { %1794 = vmatpush.msrb.mxu3 %v1563_v36  ;;  %5874 = vmatpush.msk.msrb.mxu0 %vm656_vm10, %v11470_v41 }
 0x4a4   :  { %5873 = vmatmul.msk.f32.gmra.mxu3 %vm1564_vm14, %v8934_v40 }
 0x4a6   :  { %5861 = vmatmul.msk.f32.gmra.mxu1 %vm1564_vm14, %v8856_v52 }
 0x4a7   :  { %5866 = vmatmul.msk.f32.gmra.mxu2 %vm1564_vm14, %v8856_v52  ;;  %v7425_v29 = vpop.permute.xlu2 %7424  ;;  %v1455_v24 = vpop.permute.xlu0 %1454 }
 0x4a8   :  { %v7427_v7 = vunpack.i.h.bf16 %v7425_v29  ;;  %v7426_v62 = vunpack.i.l.bf16 %v7425_v29  ;;  %v1475_v27 = vsel %vm65_vm5, %v8799_v58, %v1455_v24 }
 0x4a9   :  { %v1496_v30 = vmul.f32 %v8945_v18, %v1475_v27 }
 0x4aa   :  { %5856 = vmatmul.msk.f32.gmra.mxu0 %vm1564_vm14, %v8856_v52  ;;  %v1473_v48 = vsel %vm65_vm5, %v1455_v24, %v7426_v62  ;;  %v1471_v43 = vsel %vm65_vm5, %v7426_v62, %v7416_v45  ;;  %v1472_v58 = vsel %vm65_vm5, %v1453_v42, %v7427_v7  ;;  %v1470_v25 = vsel %vm65_vm5, %v7427_v7, %v7417_v28 }
 0x4ab   :  { %1703 = vmatpush.msrb.mxu0 %v1496_v30  ;;  %1732 = vmatpush.msrb.mxu1 %v1473_v48 }
 0x4ac   :  { %1761 = vmatpush.msrb.mxu2 %v1471_v43 }
 0x4ad   :  { %1704 = vmatpush.msrb.mxu0 %v1488_v15  ;;  %1733 = vmatpush.msrb.mxu1 %v1472_v58 }
 0x4ae   :  { %1762 = vmatpush.msrb.mxu2 %v1470_v25  ;;  %5862 = vmatmul.msk.f32.gmra.mxu1 %vm1564_vm14, %v8887_v6 }
 0x4af   :  { %5867 = vmatmul.msk.f32.gmra.mxu2 %vm1564_vm14, %v8887_v6  ;;  %v1529_v63 = vpop.permute.xlu0 %1528  ;;  %1705 = vmatpush.msrb.mxu0 %v8744_v47  ;;  %v1537_v47 = vsel %vm74_vm4, %v8816_v0, %v7421_v20 }
 0x4b0   :  { %v1546_v51 = vsel %vm74_vm4, %v1529_v63, %v1501_v4  ;;  %1734 = vmatpush.msrb.mxu1 %v8770_v55  ;;  %1763 = vmatpush.msrb.mxu2 %v8786_v39  ;;  %v1536_v55 = vsel %vm74_vm4, %v8832_v2, %v7422_v10 }
 0x4b1   :  { %v1555_v22 = vmul.f32 %v8913_v32, %v1546_v51  ;;  %1706 = vmatpush.msrb.mxu0 %v8774_v38 }
 0x4b2   :  { %1735 = vmatpush.msrb.mxu1 %v8772_v54  ;;  %1764 = vmatpush.msrb.mxu2 %v8788_v3 }
 0x4b3   :  { %5857 = vmatmul.msk.f32.gmra.mxu0 %vm1564_vm14, %v8887_v6  ;;  %1795 = vmatpush.msrb.mxu3 %v1555_v22 }
 0x4b4   :  { %1707 = vmatpush.msrb.mxu0 %v1537_v47  ;;  %5890 = vmatmul.msk.f32.vlgmr.msrb.gmra.mxu3 %vm1564_vm14, %v8844_v21 }
 0x4b5   :  { %5921 = vmatpush.msk.msra.mxu3 %vm656_vm10, %v11470_v41 }
 0x4b6   :  { %1708 = vmatpush.msrb.mxu0 %v1536_v55  ;;  %5863 = vmatmul.msk.f32.gmra.mxu1 %vm1564_vm14, %v8934_v40 }
 0x4b7   :  { %5868 = vmatmul.msk.f32.gmra.mxu2 %vm1564_vm14, %v8934_v40  ;;  %v7430_v54 = vpop.permute.xlu0 %7429 }
 0x4b8   :  { %5894 = vmatpush.msk.msra.mxu0 %vm656_vm10, %v11470_v41  ;;  %v7432_v38 = vunpack.i.h.bf16 %v7430_v54  ;;  %v7431_v39 = vunpack.i.l.bf16 %v7430_v54 }
 0x4ba   :  { %v1535_v3 = vsel %vm74_vm4, %v7421_v20, %v7431_v39  ;;  %v1533_v0 = vsel %vm74_vm4, %v7431_v39, %v8895_v1  ;;  %v1534_v2 = vsel %vm74_vm4, %v7422_v10, %v7432_v38  ;;  %v1532_v12 = vsel %vm74_vm4, %v7432_v38, %v1529_v63 }
 0x4bb   :  { %5858 = vmatmul.msk.f32.gmra.mxu0 %vm1564_vm14, %v8934_v40  ;;  %1736 = vmatpush.msrb.mxu1 %v1535_v3 }
 0x4bc   :  { %1765 = vmatpush.msrb.mxu2 %v1533_v0  ;;  %5891 = vmatmul.msk.f32.gmra.mxu3 %vm1564_vm14, %v8856_v52 }
 0x4bd   :  { %1737 = vmatpush.msrb.mxu1 %v1534_v2 }
 0x4be   :  { %1766 = vmatpush.msrb.mxu2 %v1532_v12  ;;  %5880 = vmatmul.msk.f32.vlgmr.msrb.gmra.mxu1 %vm1564_vm14, %v8844_v21 }
 0x4bf   :  { %5885 = vmatmul.msk.f32.vlgmr.msrb.gmra.mxu2 %vm1564_vm14, %v8844_v21  ;;  %5903 = vmatpush.msk.msra.mxu1 %vm656_vm10, %v11470_v41 }
 0x4c0   :  { %5912 = vmatpush.msk.msra.mxu2 %vm656_vm10, %v11470_v41 }
 0x4c3   :  { %5875 = vmatmul.msk.f32.vlgmr.msrb.gmra.mxu0 %vm1564_vm14, %v8844_v21 }
 0x4c4   :  { %5892 = vmatmul.msk.f32.gmra.mxu3 %vm1564_vm14, %v8887_v6 }
 0x4c6   :  { %5881 = vmatmul.msk.f32.gmra.mxu1 %vm1564_vm14, %v8856_v52 }
 0x4c7   :  { %5886 = vmatmul.msk.f32.gmra.mxu2 %vm1564_vm14, %v8856_v52 }
 0x4cb   :  { %5876 = vmatmul.msk.f32.gmra.mxu0 %vm1564_vm14, %v8856_v52 }
 0x4cc   :  { %5893 = vmatmul.msk.f32.gmra.mxu3 %vm1564_vm14, %v8934_v40 }
 0x4ce   :  { %5882 = vmatmul.msk.f32.gmra.mxu1 %vm1564_vm14, %v8887_v6 }
 0x4cf   :  { %5887 = vmatmul.msk.f32.gmra.mxu2 %vm1564_vm14, %v8887_v6 }
 0x4d3   :  { %5877 = vmatmul.msk.f32.gmra.mxu0 %vm1564_vm14, %v8887_v6 }
 0x4d6   :  { %5883 = vmatmul.msk.f32.gmra.mxu1 %vm1564_vm14, %v8934_v40 }
 0x4d7   :  { %5888 = vmatmul.msk.f32.gmra.mxu2 %vm1564_vm14, %v8934_v40 }
 0x4db   :  { %5878 = vmatmul.msk.f32.gmra.mxu0 %vm1564_vm14, %v8934_v40 }
 0x50f   :  { %v1681_v21 = vpop.f32.mrf.mxu3 }
 0x510   :  { %v9045_v52 = vmax.f32 %v1681_v21, 0.0 }
 0x512   :  { %1873 = vrot.lane.b32.xlu2 %v9045_v52, %s7571_s28 }
 0x517   :  { %v1684_v53 = vpop.f32.mrf.mxu3 }
 0x518   :  { %v9083_v29 = vmax.f32 %v1684_v53, 0.0 }
 0x51b   :  { %v1623_v11 = vpop.f32.mrf.mxu1 }
 0x51c   :  { %v9049_v19 = vmax.f32 %v1623_v11, 0.0 }
 0x51f   :  { %v1594_v5 = vpop.f32.mrf.mxu0  ;;  %v1687_v13 = vpop.f32.mrf.mxu3 }
 0x520   :  { %v9060_v9 = vmax.f32 %v1687_v13, 0.0  ;;  %v9113_v10 = vmax.f32 %v1594_v5, 0.0 }
 0x522   :  { %v1652_v16 = vpop.f32.mrf.mxu2 }
 0x523   :  { %v9051_v50 = vmax.f32 %v1652_v16, 0.0  ;;  %v1626_v45 = vpop.f32.mrf.mxu1 }
 0x524   :  { %v9056_v56 = vmax.f32 %v1626_v45, 0.0 }
 0x525   :  { %v7433_v28 = vpack.i.bf16 %v9051_v50, %v9049_v19 }
 0x527   :  { %7434 = vrot.lane.b32.xlu0 %v7433_v28, %s7571_s28  ;;  %v1597_v60 = vpop.f32.mrf.mxu0  ;;  %v1690_v61 = vpop.f32.mrf.mxu3 }
 0x528   :  { %v9071_v42 = vmax.f32 %v1690_v61, 0.0  ;;  %v9115_v22 = vmax.f32 %v1597_v60, 0.0 }
 0x52a   :  { %v1655_v6 = vpop.f32.mrf.mxu2 }
 0x52b   :  { %v9058_v35 = vmax.f32 %v1655_v6, 0.0  ;;  %v1629_v57 = vpop.f32.mrf.mxu1 }
 0x52c   :  { %v9067_v33 = vmax.f32 %v1629_v57, 0.0  ;;  %v7468_v57 = vpack.i.bf16 %v9049_v19, %v9056_v56 }
 0x52d   :  { %v7438_v1 = vpack.i.bf16 %v9058_v35, %v9056_v56  ;;  %v7443_v4 = vpack.i.bf16 %v9051_v50, %v9058_v35 }
 0x52f   :  { %7439 = vrot.lane.b32.xlu1 %v7438_v1, %s7571_s28  ;;  %2005 = vrot.lane.b32.xlu0 %v9060_v9, %s7572_s29 }
 0x530   :  { %v1600_v14 = vpop.f32.mrf.mxu0 }
 0x531   :  { %v9127_v0 = vmax.f32 %v1600_v14, 0.0 }
 0x532   :  { %v1658_v44 = vpop.f32.mrf.mxu2 }
 0x533   :  { %v9069_v46 = vmax.f32 %v1658_v44, 0.0  ;;  %v1632_v24 = vpop.f32.mrf.mxu1 }
 0x534   :  { %v9091_v27 = vmax.f32 %v1632_v24, 0.0 }
 0x535   :  { %v7448_v23 = vpack.i.bf16 %v9069_v46, %v9067_v33 }
 0x536   :  { %v7463_v60 = vpack.i.bf16 %v9067_v33, %v9091_v27 }
 0x537   :  { %7444 = vrot.lane.b32.xlu1 %v7443_v4, %s7572_s29  ;;  %7449 = vrot.lane.b32.xlu2 %v7448_v23, %s7571_s28  ;;  %v1797_v31 = vpop.f32.mrf.mxu3 }
 0x538   :  { %1879 = vrot.lane.b32.xlu0 %v9071_v42, %s7571_s28  ;;  %v1603_v36 = vpop.f32.mrf.mxu0  ;;  %v9081_v40 = vmax.f32 %v1797_v31, 0.0 }
 0x539   :  { %v9097_v43 = vmax.f32 %v1603_v36, 0.0 }
 0x53a   :  { %v1661_v8 = vpop.f32.mrf.mxu2 }
 0x53b   :  { %v9093_v30 = vmax.f32 %v1661_v8, 0.0  ;;  %v1739_v63 = vpop.f32.mrf.mxu1 }
 0x53c   :  { %v9166_v1 = vmax.f32 %v1739_v63, 0.0 }
 0x53d   :  { %v7453_v48 = vpack.i.bf16 %v9093_v30, %v9091_v27  ;;  %v7458_v25 = vpack.i.bf16 %v9069_v46, %v9093_v30 }
 0x53f   :  { %2003 = vrot.lane.b32.xlu2 %v9083_v29, %s7572_s29  ;;  %1875 = vrot.lane.b32.xlu1 %v9083_v29, %s7571_s28  ;;  %v1800_v7 = vpop.f32.mrf.mxu3 }
 0x540   :  { %1905 = vrot.lane.b32.xlu0 %v9081_v40, %s7571_s28  ;;  %v1710_v62 = vpop.f32.mrf.mxu0  ;;  %v9137_v12 = vmax.f32 %v1800_v7, 0.0 }
 0x541   :  { %v9147_v5 = vmax.f32 %v1710_v62, 0.0 }
 0x542   :  { %v1768_v51 = vpop.f32.mrf.mxu2 }
 0x543   :  { %v1742_v39 = vpop.f32.mrf.mxu1  ;;  %v9168_v61 = vmax.f32 %v1768_v51, 0.0 }
 0x544   :  { %v9182_v23 = vmax.f32 %v1742_v39, 0.0 }
 0x545   :  { %v7488_v4 = vpack.i.bf16 %v9168_v61, %v9166_v1 }
 0x546   :  { %v7508_v63 = vpack.i.bf16 %v9166_v1, %v9182_v23 }
 0x547   :  { %7454 = vrot.lane.b32.xlu1 %v7453_v48, %s7571_s28  ;;  %1877 = vrot.lane.b32.xlu2 %v9060_v9, %s7571_s28  ;;  %v1803_v26 = vpop.f32.mrf.mxu3 }
 0x548   :  { %1855 = vrot.lane.b32.xlu0 %v9097_v43, %s7571_s28  ;;  %v1713_v15 = vpop.f32.mrf.mxu0  ;;  %v9104_v58 = vmax.f32 %v1803_v26, 0.0 }
 0x549   :  { %v9133_v2 = vmax.f32 %v1713_v15, 0.0 }
 0x54a   :  { %v1771_v3 = vpop.f32.mrf.mxu2 }
 0x54b   :  { %v1745_v53 = vpop.f32.mrf.mxu1  ;;  %v9184_v31 = vmax.f32 %v1771_v3, 0.0 }
 0x54c   :  { %v9173_v14 = vmax.f32 %v1745_v53, 0.0 }
 0x54d   :  { %v7483_v36 = vpack.i.bf16 %v9184_v31, %v9182_v23  ;;  %v7498_v26 = vpack.i.bf16 %v9168_v61, %v9184_v31 }
 0x54f   :  { %7459 = vrot.lane.b32.xlu1 %v7458_v25, %s7572_s29  ;;  %2007 = vrot.lane.b32.xlu2 %v9071_v42, %s7572_s29  ;;  %v1806_v55 = vpop.f32.mrf.mxu3 }
 0x550   :  { %1909 = vrot.lane.b32.xlu0 %v9104_v58, %s7571_s28  ;;  %v1716_v20 = vpop.f32.mrf.mxu0  ;;  %v9125_v38 = vmax.f32 %v1806_v55, 0.0 }
 0x551   :  { %v9139_v21 = vmax.f32 %v1716_v20, 0.0 }
 0x552   :  { %v1774_v11 = vpop.f32.mrf.mxu2 }
 0x553   :  { %v1748_v16 = vpop.f32.mrf.mxu1  ;;  %v9175_v44 = vmax.f32 %v1774_v11, 0.0 }
 0x554   :  { %v9155_v28 = vmax.f32 %v1748_v16, 0.0 }
 0x555   :  { %v7478_v24 = vpack.i.bf16 %v9175_v44, %v9173_v14 }
 0x557   :  { %1851 = vrot.lane.b32.xlu1 %v9115_v22, %s7571_s28  ;;  %1849 = vrot.lane.b32.xlu2 %v9113_v10, %s7571_s28 }
 0x558   :  { %v1719_v47 = vpop.f32.mrf.mxu0 }
 0x559   :  { %v9121_v54 = vmax.f32 %v1719_v47, 0.0  ;;  %v7503_v47 = vpack.i.bf16 %v9173_v14, %v9155_v28 }
 0x55a   :  { %v1777_v13 = vpop.f32.mrf.mxu2 }
 0x55b   :  { %2015 = vrot.lane.b32.xlu0 %v9121_v54, %s7572_s29  ;;  %v9157_v45 = vmax.f32 %v1777_v13, 0.0 }
 0x55d   :  { %v7473_v6 = vpack.i.bf16 %v9157_v45, %v9155_v28  ;;  %v7493_v62 = vpack.i.bf16 %v9175_v44, %v9157_v45 }
 0x55f   :  { %1853 = vrot.lane.b32.xlu2 %v9127_v0, %s7571_s28  ;;  %1911 = vrot.lane.b32.xlu1 %v9125_v38, %s7571_s28 }
 0x563   :  { %2011 = vrot.lane.b32.xlu0 %v9133_v2, %s7572_s29 }
 0x567   :  { %1907 = vrot.lane.b32.xlu2 %v9137_v12, %s7571_s28  ;;  %2013 = vrot.lane.b32.xlu1 %v9139_v21, %s7572_s29 }
 0x56b   :  { %1983 = vrot.lane.b32.xlu0 %v9097_v43, %s7572_s29 }
 0x56c   :  { %v9193_v8 = vpop.permute.xlu2 %1873 }
 0x56f   :  { %2009 = vrot.lane.b32.xlu2 %v9147_v5, %s7572_s29  ;;  %2001 = vrot.lane.b32.xlu1 %v9045_v52, %s7572_s29 }
 0x573   :  { %1979 = vrot.lane.b32.xlu0 %v9115_v22, %s7572_s29 }
 0x577   :  { %1981 = vrot.lane.b32.xlu2 %v9127_v0, %s7572_s29  ;;  %7464 = vrot.lane.b32.xlu1 %v7463_v60, %s7572_s29 }
 0x57b   :  { %7474 = vrot.lane.b32.xlu0 %v7473_v6, %s7571_s28 }
 0x57f   :  { %1977 = vrot.lane.b32.xlu2 %v9113_v10, %s7572_s29  ;;  %7469 = vrot.lane.b32.xlu1 %v7468_v57, %s7572_s29 }
 0x583   :  { %7489 = vrot.lane.b32.xlu0 %v7488_v4, %s7571_s28 }
 0x587   :  { %7484 = vrot.lane.b32.xlu2 %v7483_v36, %s7571_s28  ;;  %7479 = vrot.lane.b32.xlu1 %v7478_v24, %s7571_s28 }
 0x58b   :  { %1883 = vrot.lane.b32.xlu0 %v9133_v2, %s7571_s28 }
 0x58f   :  { %1885 = vrot.lane.b32.xlu2 %v9139_v21, %s7571_s28  ;;  %1881 = vrot.lane.b32.xlu1 %v9147_v5, %s7571_s28 }
 0x591   :  { %v7450_v7 = vpop.permute.xlu2 %7449 }
 0x592   :  { %v7452_v60 = vunpack.i.h.bf16 %v7450_v7  ;;  %v7451_v6 = vunpack.i.l.bf16 %v7450_v7 }
 0x593   :  { %2039 = vrot.lane.b32.xlu0 %v9125_v38, %s7572_s29 }
 0x594   :  { %v1935_v34 = vsel %vm65_vm5, %v7451_v6, %v7452_v60 }
 0x597   :  { %7494 = vrot.lane.b32.xlu2 %v7493_v62, %s7572_s29  ;;  %1887 = vrot.lane.b32.xlu1 %v9121_v54, %s7571_s28 }
 0x599   :  { %v9208_v48 = vpop.permute.xlu0 %7434  ;;  %v9210_v15 = vpop.permute.xlu2 %2003 }
 0x59a   :  { %v7437_v7 = vunpack.i.h.bf16 %v9208_v48 }
 0x59b   :  { %2035 = vrot.lane.b32.xlu0 %v9137_v12, %s7572_s29 }
 0x59f   :  { %7499 = vrot.lane.b32.xlu2 %v7498_v26, %s7572_s29  ;;  %2037 = vrot.lane.b32.xlu1 %v9104_v58, %s7572_s29 }
 0x5a1   :  { %v7440_v25 = vpop.permute.xlu1 %7439  ;;  %v9219_v20 = vpop.permute.xlu0 %2005 }
 0x5a2   :  { %v9223_v51 = vpop.permute.xlu2 %1877  ;;  %v7442_v36 = vunpack.i.h.bf16 %v7440_v25  ;;  %v7441_v26 = vunpack.i.l.bf16 %v7440_v25 }
 0x5a3   :  { %7509 = vrot.lane.b32.xlu0 %v7508_v63, %s7572_s29 }
 0x5a7   :  { %7504 = vrot.lane.b32.xlu2 %v7503_v47, %s7572_s29  ;;  %2033 = vrot.lane.b32.xlu1 %v9081_v40, %s7572_s29 }
 0x5a9   :  { %v9231_v55 = vpop.permute.xlu1 %7444 }
 0x5aa   :  { %v2008_v39 = vpop.permute.xlu2 %2007  ;;  %v9233_v3 = vpop.permute.xlu0 %1879 }
 0x5b1   :  { %v9235_v53 = vpop.permute.xlu1 %1875 }
 0x5b2   :  { %v9237_v11 = vpop.permute.xlu2 %1849  ;;  %v9239_v16 = vpop.permute.xlu0 %1905 }
 0x5b9   :  { %v7455_v13 = vpop.permute.xlu1 %7454 }
 0x5ba   :  { %v7457_v57 = vunpack.i.h.bf16 %v7455_v13  ;;  %v7456_v4 = vunpack.i.l.bf16 %v7455_v13  ;;  %v1854_v24 = vpop.permute.xlu2 %1853  ;;  %v1856_v62 = vpop.permute.xlu0 %1855  ;;  %v7436_v13 = vunpack.i.l.bf16 %v9208_v48 }
 0x5bb   :  { %v1939_v25 = vsel %vm65_vm5, %v1854_v24, %v7451_v6 }
 0x5bc   :  { %v1940_v63 = vsel %vm65_vm5, %v1856_v62, %v7456_v4  ;;  %v1936_v47 = vsel %vm65_vm5, %v7456_v4, %v7457_v57  ;;  %v1932_v49 = vsel %vm65_vm5, %v7457_v57, %v9233_v3  ;;  %v1931_v4 = vsel %vm65_vm5, %v7452_v60, %v9223_v51 }
 0x5bd   :  { %2175 = vmatpush.msra.mxu1 %v1940_v63  ;;  %2216 = vmatpush.msra.mxu2 %v1936_v47  ;;  %v1934_v57 = vsel %vm65_vm5, %v7441_v26, %v7442_v36  ;;  %v1933_v48 = vsel %vm65_vm5, %v7436_v13, %v7437_v7 }
 0x5be   :  { %2257 = vmatpush.msra.mxu3 %v1932_v49  ;;  %v1930_v49 = vsel %vm65_vm5, %v7442_v36, %v9235_v53 }
 0x5bf   :  { %2176 = vmatpush.msra.mxu1 %v1939_v25  ;;  %2217 = vmatpush.msra.mxu2 %v1935_v34  ;;  %v1929_v34 = vsel %vm65_vm5, %v7437_v7, %v9193_v8 }
 0x5c0   :  { %2258 = vmatpush.msra.mxu3 %v1931_v4 }
 0x5c1   :  { %v9259_v63 = vpop.permute.xlu1 %7459  ;;  %2218 = vmatpush.msra.mxu2 %v1934_v57 }
 0x5c2   :  { %2259 = vmatpush.msra.mxu3 %v1930_v49  ;;  %v9269_v60 = vpop.permute.xlu2 %1907  ;;  %v9271_v6 = vpop.permute.xlu0 %1909  ;;  %v7461_v36 = vunpack.i.l.bf16 %v9259_v63  ;;  %v7462_v7 = vunpack.i.h.bf16 %v9259_v63  ;;  %v9419_v63 = vld [vmem:[%s11199_s1 + $0x58] sm:$0xff] }
 0x5c3   :  { %2219 = vmatpush.msra.mxu2 %v1933_v48 }
 0x5c4   :  { %2260 = vmatpush.msra.mxu3 %v1929_v34 }
 0x5c5   :  { %2220 = vmatpush.msra.mxu2 %v9093_v30 }
 0x5c6   :  { %2261 = vmatpush.msra.mxu3 %v9071_v42  ;;  %v7446_v42 = vunpack.i.l.bf16 %v9231_v55 }
 0x5c7   :  { %2221 = vmatpush.msra.mxu2 %v9069_v46 }
 0x5c8   :  { %2262 = vmatpush.msra.mxu3 %v9060_v9  ;;  %v1937_v9 = vsel %vm65_vm5, %v9237_v11, %v7436_v13  ;;  %v1943_v13 = vsel %vm65_vm5, %v9271_v6, %v1854_v24  ;;  %v1941_v24 = vsel %vm65_vm5, %v9239_v16, %v9237_v11 }
 0x5c9   :  { %v1852_v47 = vpop.permute.xlu1 %1851  ;;  %2222 = vmatpush.msra.mxu2 %v9058_v35  ;;  %v2060_v35 = vsel %vm74_vm4, %v7461_v36, %v2008_v39  ;;  %v1961_v57 = vmul.f32 %v8825_v37, %v1943_v13 }
 0x5ca   :  { %2263 = vmatpush.msra.mxu3 %v9083_v29  ;;  %v1938_v25 = vsel %vm65_vm5, %v1852_v47, %v7441_v26  ;;  %v9303_v29 = vpop.permute.xlu2 %2009  ;;  %v2058_v26 = vsel %vm74_vm4, %v7446_v42, %v9210_v15 }
 0x5cb   :  { %2177 = vmatpush.msra.mxu1 %v1938_v25  ;;  %2223 = vmatpush.msra.mxu2 %v9051_v50 }
 0x5cc   :  { %2264 = vmatpush.msra.mxu3 %v9045_v52  ;;  %v2059_v52 = vsel %vm74_vm4, %v7462_v7, %v9219_v20 }
 0x5cd   :  { %2178 = vmatpush.msra.mxu1 %v1937_v9  ;;  %2224 = vmatpush.msra.mxu2 %v2060_v35  ;;  %v9293_v46 = vpop.permute.xlu0 %2015 }
 0x5ce   :  { %v2056_v50 = vsel %vm74_vm4, %v2008_v39, %v9293_v46 }
 0x5cf   :  { %v2100_v30 = vmul.f32 %v8812_v59, %v2056_v50  ;;  %2179 = vmatpush.msra.mxu1 %v9091_v27  ;;  %2225 = vmatpush.msra.mxu2 %v2059_v52 }
 0x5d1   :  { %2180 = vmatpush.msra.mxu1 %v9067_v33  ;;  %2226 = vmatpush.msra.mxu2 %v2058_v26  ;;  %v9313_v39 = vpop.permute.xlu1 %1911  ;;  %v1942_v33 = vsel %vm65_vm5, %v9269_v60, %v1852_v47 }
 0x5d2   :  { %2265 = vmatpush.msra.mxu3 %v2100_v30  ;;  %v1944_v27 = vsel %vm65_vm5, %v9313_v39, %v1856_v62  ;;  %v1953_v62 = vmul.f32 %v8825_v37, %v1942_v33  ;;  %v9336_v48 = vpop.permute.xlu2 %1981 }
 0x5d3   :  { %v1969_v4 = vmul.f32 %v8825_v37, %v1944_v27  ;;  %2181 = vmatpush.msra.mxu1 %v9056_v56  ;;  %v1945_v56 = vmul.f32 %v8825_v37, %v1941_v24 }
 0x5d5   :  { %2182 = vmatpush.msra.mxu1 %v9049_v19  ;;  %v9328_v49 = vpop.permute.xlu0 %2011  ;;  %2134 = vmatpush.msra.mxu0 %v1969_v4 }
 0x5d6   :  { %v2054_v19 = vsel %vm74_vm4, %v9210_v15, %v9328_v49  ;;  %v7447_v15 = vunpack.i.h.bf16 %v9231_v55 }
 0x5d7   :  { %2135 = vmatpush.msra.mxu0 %v1961_v57  ;;  %v2084_v37 = vmul.f32 %v8812_v59, %v2054_v19 }
 0x5d9   :  { %2136 = vmatpush.msra.mxu0 %v1953_v62  ;;  %v9338_v34 = vpop.permute.xlu1 %2013 }
 0x5da   :  { %v2055_v11 = vsel %vm74_vm4, %v9219_v20, %v9338_v34  ;;  %v9359_v20 = vld [vmem:[%s11199_s1 + $0x48] sm:$0xff] }
 0x5db   :  { %v2092_v47 = vmul.f32 %v8812_v59, %v2055_v11  ;;  %2137 = vmatpush.msra.mxu0 %v1945_v56 }
 0x5dd   :  { %v9350_v25 = vpop.permute.xlu0 %1983  ;;  %2138 = vmatpush.msra.mxu0 %v9097_v43  ;;  %2266 = vmatpush.msra.mxu3 %v2092_v47 }
 0x5df   :  { %2139 = vmatpush.msra.mxu0 %v9127_v0  ;;  %2267 = vmatpush.msra.mxu3 %v2084_v37  ;;  %v9366_v0 = vpop.permute.xlu2 %1977 }
 0x5e1   :  { %2140 = vmatpush.msra.mxu0 %v9115_v22  ;;  %v2002_v9 = vpop.permute.xlu1 %2001 }
 0x5e2   :  { %v2053_v35 = vsel %vm74_vm4, %v2002_v9, %v9303_v29  ;;  %v2057_v43 = vsel %vm74_vm4, %v7447_v15, %v2002_v9 }
 0x5e3   :  { %v2076_v50 = vmul.f32 %v8812_v59, %v2053_v35  ;;  %2141 = vmatpush.msra.mxu0 %v9113_v10  ;;  %2227 = vmatpush.msra.mxu2 %v2057_v43  ;;  %v9383_v59 = vld [vmem:[%s11199_s1 + $0x50] sm:$0xff] }
 0x5e4   :  { %5913 = vmatmul.msk.f32.vlgmr.msra.gmra.mxu2 %vm2105_vm1, %v9359_v20 }
 0x5e5   :  { %v9372_v22 = vpop.permute.xlu0 %1979  ;;  %2268 = vmatpush.msra.mxu3 %v2076_v50  ;;  %5948 = vmatpush.msk.msrb.mxu2 %vm656_vm10, %v11470_v41 }
 0x5e6   :  { %5922 = vmatmul.msk.f32.vlgmr.msra.gmra.mxu3 %vm2105_vm1, %v9359_v20 }
 0x5e7   :  { %5957 = vmatpush.msk.msrb.mxu3 %vm656_vm10, %v11470_v41  ;;  %v9394_v27 = vpop.permute.xlu2 %7484 }
 0x5e8   :  { %v7486_v50 = vunpack.i.l.bf16 %v9394_v27 }
 0x5e9   :  { %v7465_v52 = vpop.permute.xlu1 %7464 }
 0x5ea   :  { %v7467_v10 = vunpack.i.h.bf16 %v7465_v52  ;;  %v7466_v30 = vunpack.i.l.bf16 %v7465_v52 }
 0x5ec   :  { %5914 = vmatmul.msk.f32.gmra.mxu2 %vm2105_vm1, %v9383_v59  ;;  %v2068_v26 = vsel %vm74_vm4, %v9350_v25, %v7466_v30  ;;  %v2064_v13 = vsel %vm74_vm4, %v7466_v30, %v7461_v36  ;;  %v2067_v24 = vsel %vm74_vm4, %v9336_v48, %v7467_v10  ;;  %v2063_v36 = vsel %vm74_vm4, %v7467_v10, %v7462_v7 }
 0x5ed   :  { %v9396_v4 = vpop.permute.xlu0 %7474  ;;  %2142 = vmatpush.msra.mxu0 %v2068_v26  ;;  %2183 = vmatpush.msra.mxu1 %v2064_v13 }
 0x5ee   :  { %v7477_v33 = vunpack.i.h.bf16 %v9396_v4  ;;  %v7476_v57 = vunpack.i.l.bf16 %v9396_v4  ;;  %5923 = vmatmul.msk.f32.gmra.mxu3 %vm2105_vm1, %v9383_v59 }
 0x5ef   :  { %2143 = vmatpush.msra.mxu0 %v2067_v24  ;;  %2184 = vmatpush.msra.mxu1 %v2063_v36  ;;  %v9439_v43 = vpop.permute.xlu2 %1885 }
 0x5f0   :  { %v1916_v62 = vsel %vm65_vm5, %v7477_v33, %v9313_v39  ;;  %v1920_v56 = vsel %vm65_vm5, %v7476_v57, %v7477_v33 }
 0x5f1   :  { %2421 = vmatpush.msrb.mxu3 %v1916_v62  ;;  %v7470_v19 = vpop.permute.xlu1 %7469  ;;  %2380 = vmatpush.msrb.mxu2 %v1920_v56 }
 0x5f2   :  { %v7472_v7 = vunpack.i.h.bf16 %v7470_v19  ;;  %v7471_v11 = vunpack.i.l.bf16 %v7470_v19  ;;  %v9488_v19 = vld [vmem:[%s11199_s1 + $0x68] sm:$0xff] }
 0x5f4   :  { %5915 = vmatmul.msk.f32.gmra.mxu2 %vm2105_vm1, %v9419_v63  ;;  %v2066_v39 = vsel %vm74_vm4, %v9372_v22, %v7471_v11  ;;  %v2062_v47 = vsel %vm74_vm4, %v7471_v11, %v7446_v42  ;;  %v2065_v9 = vsel %vm74_vm4, %v9366_v0, %v7472_v7  ;;  %v2061_v35 = vsel %vm74_vm4, %v7472_v7, %v7447_v15  ;;  %v9448_v42 = vld [vmem:[%s11199_s1 + $0x60] sm:$0xff] }
 0x5f5   :  { %v9430_v37 = vpop.permute.xlu0 %7489  ;;  %2144 = vmatpush.msra.mxu0 %v2066_v39  ;;  %2185 = vmatpush.msra.mxu1 %v2062_v47  ;;  %v7487_v15 = vunpack.i.h.bf16 %v9394_v27 }
 0x5f6   :  { %5924 = vmatmul.msk.f32.gmra.mxu3 %vm2105_vm1, %v9419_v63  ;;  %v7492_v30 = vunpack.i.h.bf16 %v9430_v37  ;;  %v7491_v26 = vunpack.i.l.bf16 %v9430_v37 }
 0x5f7   :  { %2145 = vmatpush.msra.mxu0 %v2065_v9  ;;  %2186 = vmatpush.msra.mxu1 %v2061_v35  ;;  %v1918_v27 = vsel %vm65_vm5, %v7486_v50, %v7487_v15  ;;  %v1914_v36 = vsel %vm65_vm5, %v7487_v15, %v9269_v60  ;;  %v9483_v56 = vpop.permute.xlu2 %7494 }
 0x5f8   :  { %5895 = vmatmul.msk.f32.vlgmr.msra.gmra.mxu0 %vm2105_vm1, %v9359_v20  ;;  %5904 = vmatmul.msk.f32.vlgmr.msra.gmra.mxu1 %vm2105_vm1, %v9359_v20  ;;  %v1913_v62 = vsel %vm65_vm5, %v7492_v30, %v9239_v16  ;;  %v7497_v9 = vunpack.i.h.bf16 %v9483_v56 }
 0x5f9   :  { %v7480_v55 = vpop.permute.xlu1 %7479  ;;  %5939 = vmatpush.msk.msrb.mxu1 %vm656_vm10, %v11470_v41  ;;  %5930 = vmatpush.msk.msrb.mxu0 %vm656_vm10, %v11470_v41 }
 0x5fa   :  { %v7482_v52 = vunpack.i.h.bf16 %v7480_v55  ;;  %v7481_v10 = vunpack.i.l.bf16 %v7480_v55 }
 0x5fc   :  { %5916 = vmatmul.msk.f32.gmra.mxu2 %vm2105_vm1, %v9448_v42  ;;  %v1919_v13 = vsel %vm65_vm5, %v7481_v10, %v7482_v52  ;;  %v1915_v33 = vsel %vm65_vm5, %v7482_v52, %v9271_v6  ;;  %v1917_v6 = vsel %vm65_vm5, %v7491_v26, %v7492_v30  ;;  %v1923_v4 = vsel %vm65_vm5, %v9439_v43, %v7481_v10 }
 0x5fd   :  { %v1884_v24 = vpop.permute.xlu0 %1883  ;;  %2381 = vmatpush.msrb.mxu2 %v1919_v13  ;;  %2422 = vmatpush.msrb.mxu3 %v1915_v33 }
 0x5fe   :  { %5925 = vmatmul.msk.f32.gmra.mxu3 %vm2105_vm1, %v9448_v42 }
 0x5ff   :  { %2382 = vmatpush.msrb.mxu2 %v1918_v27  ;;  %2423 = vmatpush.msrb.mxu3 %v1914_v36 }
 0x600   :  { %5896 = vmatmul.msk.f32.gmra.mxu0 %vm2105_vm1, %v9383_v59  ;;  %5905 = vmatmul.msk.f32.gmra.mxu1 %vm2105_vm1, %v9383_v59 }
 0x601   :  { %v1882_v60 = vpop.permute.xlu1 %1881  ;;  %2383 = vmatpush.msrb.mxu2 %v1917_v6  ;;  %2424 = vmatpush.msrb.mxu3 %v1913_v62 }
 0x602   :  { %v1925_v11 = vsel %vm65_vm5, %v9193_v8, %v1882_v60  ;;  %v1921_v8 = vsel %vm65_vm5, %v1882_v60, %v7491_v26 }
 0x603   :  { %2384 = vmatpush.msrb.mxu2 %v9157_v45  ;;  %2425 = vmatpush.msrb.mxu3 %v9125_v38  ;;  %v7496_v38 = vunpack.i.l.bf16 %v9483_v56  ;;  %v1949_v35 = vmul.f32 %v8945_v18, %v1925_v11 }
 0x604   :  { %5917 = vmatmul.msk.f32.gmra.mxu2 %vm2105_vm1, %v9488_v19 }
 0x605   :  { %v2040_v7 = vpop.permute.xlu0 %2039  ;;  %2385 = vmatpush.msrb.mxu2 %v9175_v44  ;;  %2426 = vmatpush.msrb.mxu3 %v9104_v58  ;;  %v1927_v58 = vsel %vm65_vm5, %v9223_v51, %v9439_v43 }
 0x606   :  { %5926 = vmatmul.msk.f32.gmra.mxu3 %vm2105_vm1, %v9488_v19  ;;  %v2072_v16 = vsel %vm74_vm4, %v2040_v7, %v9350_v25 }
 0x607   :  { %2386 = vmatpush.msrb.mxu2 %v9184_v31  ;;  %2427 = vmatpush.msrb.mxu3 %v9137_v12  ;;  %v9517_v12 = vld [vmem:[%s11199_s1 + $0x70] sm:$0xff]  ;;  %v2104_v44 = vmul.f32 %v8913_v32, %v2072_v16 }
 0x608   :  { %5897 = vmatmul.msk.f32.gmra.mxu0 %vm2105_vm1, %v9419_v63  ;;  %5906 = vmatmul.msk.f32.gmra.mxu1 %vm2105_vm1, %v9419_v63 }
 0x609   :  { %v1888_v45 = vpop.permute.xlu1 %1887  ;;  %2387 = vmatpush.msrb.mxu2 %v9168_v61  ;;  %2428 = vmatpush.msrb.mxu3 %v9081_v40  ;;  %v2044_v40 = vsel %vm74_vm4, %v7496_v38, %v2040_v7  ;;  %v9531_v61 = vpop.permute.xlu2 %7499 }
 0x60a   :  { %v1928_v31 = vsel %vm65_vm5, %v9233_v3, %v1888_v45  ;;  %v1924_v51 = vsel %vm65_vm5, %v1888_v45, %v7476_v57  ;;  %v1926_v3 = vsel %vm65_vm5, %v9235_v53, %v1884_v24  ;;  %v1965_v57 = vmul.f32 %v8945_v18, %v1927_v58 }
 0x60b   :  { %v1973_v25 = vmul.f32 %v8945_v18, %v1928_v31  ;;  %2339 = vmatpush.msrb.mxu1 %v1924_v51  ;;  %2388 = vmatpush.msrb.mxu2 %v2044_v40  ;;  %v1922_v53 = vsel %vm65_vm5, %v1884_v24, %v7486_v50  ;;  %v1957_v39 = vmul.f32 %v8945_v18, %v1926_v3  ;;  %v9569_v50 = vld [vmem:[%s11199_s1 + $0x78] sm:$0xff]  ;;  %v7501_v37 = vunpack.i.l.bf16 %v9531_v61 }
 0x60c   :  { %2429 = vmatpush.msrb.mxu3 %v2104_v44  ;;  %5918 = vmatmul.msk.f32.gmra.mxu2 %vm2105_vm1, %v9517_v12 }
 0x60d   :  { %2298 = vmatpush.msrb.mxu0 %v1973_v25  ;;  %2340 = vmatpush.msrb.mxu1 %v1923_v4  ;;  %v2036_v47 = vpop.permute.xlu0 %2035 }
 0x60e   :  { %5927 = vmatmul.msk.f32.gmra.mxu3 %vm2105_vm1, %v9517_v12  ;;  %v2070_v18 = vsel %vm74_vm4, %v2036_v47, %v9372_v22  ;;  %v2042_v10 = vsel %vm74_vm4, %v7501_v37, %v2036_v47 }
 0x60f   :  { %2299 = vmatpush.msrb.mxu0 %v1965_v57  ;;  %2341 = vmatpush.msrb.mxu1 %v1922_v53  ;;  %v2088_v30 = vmul.f32 %v8913_v32, %v2070_v18 }
 0x610   :  { %5898 = vmatmul.msk.f32.gmra.mxu0 %vm2105_vm1, %v9448_v42  ;;  %5907 = vmatmul.msk.f32.gmra.mxu1 %vm2105_vm1, %v9448_v42 }
 0x611   :  { %v2038_v43 = vpop.permute.xlu1 %2037  ;;  %2300 = vmatpush.msrb.mxu0 %v1957_v39  ;;  %2342 = vmatpush.msrb.mxu1 %v1921_v8 }
 0x612   :  { %v2071_v55 = vsel %vm74_vm4, %v2038_v43, %v9336_v48  ;;  %v2043_v15 = vsel %vm74_vm4, %v7497_v9, %v2038_v43  ;;  %v7505_v48 = vpop.permute.xlu2 %7504 }
 0x613   :  { %v2096_v52 = vmul.f32 %v8913_v32, %v2071_v55  ;;  %2301 = vmatpush.msrb.mxu0 %v1949_v35  ;;  %2343 = vmatpush.msrb.mxu1 %v9155_v28  ;;  %v7502_v28 = vunpack.i.h.bf16 %v9531_v61  ;;  %v7506_v22 = vunpack.i.l.bf16 %v7505_v48  ;;  %v7507_v26 = vunpack.i.h.bf16 %v7505_v48 }
 0x614   :  { %2389 = vmatpush.msrb.mxu2 %v2043_v15 }
 0x615   :  { %5919 = vmatmul.msk.f32.gmra.mxu2 %vm2105_vm1, %v9569_v50  ;;  %2302 = vmatpush.msrb.mxu0 %v9121_v54  ;;  %v7510_v54 = vpop.permute.xlu0 %7509 }
 0x616   :  { %2344 = vmatpush.msrb.mxu1 %v9173_v14  ;;  %2390 = vmatpush.msrb.mxu2 %v2042_v10  ;;  %v7511_v24 = vunpack.i.l.bf16 %v7510_v54 }
 0x617   :  { %2430 = vmatpush.msrb.mxu3 %v2096_v52  ;;  %2303 = vmatpush.msrb.mxu0 %v9139_v21 }
 0x618   :  { %5928 = vmatmul.msk.f32.gmra.mxu3 %vm2105_vm1, %v9569_v50  ;;  %2345 = vmatpush.msrb.mxu1 %v9182_v23  ;;  %v9602_v23 = vld [vmem:[%s11199_s1 + $0x80] sm:$0xff]  ;;  %v2050_v27 = vsel %vm74_vm4, %v9328_v49, %v7511_v24 }
 0x619   :  { %2431 = vmatpush.msrb.mxu3 %v2088_v30  ;;  %5899 = vmatmul.msk.f32.gmra.mxu0 %vm2105_vm1, %v9488_v19  ;;  %v2034_v14 = vpop.permute.xlu1 %2033 }
 0x61a   :  { %5908 = vmatmul.msk.f32.gmra.mxu1 %vm2105_vm1, %v9488_v19  ;;  %v2069_v21 = vsel %vm74_vm4, %v2034_v14, %v9366_v0  ;;  %2304 = vmatpush.msrb.mxu0 %v9133_v2  ;;  %v2041_v13 = vsel %vm74_vm4, %v7502_v28, %v2034_v14  ;;  %v2048_v2 = vsel %vm74_vm4, %v7506_v22, %v7496_v38 }
 0x61b   :  { %v2080_v33 = vmul.f32 %v8913_v32, %v2069_v21  ;;  %2346 = vmatpush.msrb.mxu1 %v9166_v1  ;;  %2391 = vmatpush.msrb.mxu2 %v2041_v13  ;;  %v2052_v32 = vsel %vm74_vm4, %v9293_v46, %v7506_v22  ;;  %v7512_v1 = vunpack.i.h.bf16 %v7510_v54  ;;  %v2051_v0 = vsel %vm74_vm4, %v9338_v34, %v7507_v26 }
 0x61c   :  { %2305 = vmatpush.msrb.mxu0 %v9147_v5  ;;  %v2047_v5 = vsel %vm74_vm4, %v7507_v26, %v7497_v9  ;;  %v2046_v46 = vsel %vm74_vm4, %v7511_v24, %v7501_v37  ;;  %v9754_v24 = vld [vmem:[%s11199_s1 + $0x88] sm:$0x3f]  ;;  %s7585_s1 = smov [#allocation5]  }
 0x61d   :  { %5970 = vmatpush.msk.msra.mxu2 %vm656_vm10, %v11470_v41  ;;  %2347 = vmatpush.msrb.mxu1 %v2048_v2  ;;  %v2045_v34 = vsel %vm74_vm4, %v7512_v1, %v7502_v28  ;;  %v2049_v36 = vsel %vm74_vm4, %v9303_v29, %v7512_v1 }
 0x61e   :  { %5920 = vmatmul.msk.f32.gmra.mxu2 %vm2105_vm1, %v9602_v23  ;;  %2306 = vmatpush.msrb.mxu0 %v2052_v32 }
 0x61f   :  { %2432 = vmatpush.msrb.mxu3 %v2080_v33  ;;  %2348 = vmatpush.msrb.mxu1 %v2047_v5 }
 0x620   :  { %5929 = vmatmul.msk.f32.gmra.mxu3 %vm2105_vm1, %v9602_v23  ;;  %2307 = vmatpush.msrb.mxu0 %v2051_v0 }
 0x621   :  { %5972 = vmatpush.msk.msra.mxu3 %vm656_vm10, %v11470_v41  ;;  %2349 = vmatpush.msrb.mxu1 %v2046_v46 }
 0x622   :  { %5900 = vmatmul.msk.f32.gmra.mxu0 %vm2105_vm1, %v9517_v12  ;;  %5909 = vmatmul.msk.f32.gmra.mxu1 %vm2105_vm1, %v9517_v12 }
 0x623   :  { %2308 = vmatpush.msrb.mxu0 %v2050_v27  ;;  %2350 = vmatpush.msrb.mxu1 %v2045_v34 }
 0x625   :  { %2309 = vmatpush.msrb.mxu0 %v2049_v36  ;;  %5968 = vmatpush.msk.msra.mxu1 %vm656_vm10, %v11470_v41 }
 0x626   :  { %5949 = vmatmul.msk.f32.vlgmr.msrb.gmra.mxu2 %vm2105_vm1, %v9359_v20 }
 0x627   :  { %5966 = vmatpush.msk.msra.mxu0 %vm656_vm10, %v11470_v41 }
 0x628   :  { %5958 = vmatmul.msk.f32.vlgmr.msrb.gmra.mxu3 %vm2105_vm1, %v9359_v20 }
 0x62a   :  { %5901 = vmatmul.msk.f32.gmra.mxu0 %vm2105_vm1, %v9569_v50  ;;  %5910 = vmatmul.msk.f32.gmra.mxu1 %vm2105_vm1, %v9569_v50 }
 0x62e   :  { %5950 = vmatmul.msk.f32.gmra.mxu2 %vm2105_vm1, %v9383_v59 }
 0x630   :  { %5959 = vmatmul.msk.f32.gmra.mxu3 %vm2105_vm1, %v9383_v59 }
 0x632   :  { %5902 = vmatmul.msk.f32.gmra.mxu0 %vm2105_vm1, %v9602_v23  ;;  %5911 = vmatmul.msk.f32.gmra.mxu1 %vm2105_vm1, %v9602_v23 }
 0x636   :  { %5951 = vmatmul.msk.f32.gmra.mxu2 %vm2105_vm1, %v9419_v63 }
 0x638   :  { %5960 = vmatmul.msk.f32.gmra.mxu3 %vm2105_vm1, %v9419_v63 }
 0x63a   :  { %5931 = vmatmul.msk.f32.vlgmr.msrb.gmra.mxu0 %vm2105_vm1, %v9359_v20  ;;  %5940 = vmatmul.msk.f32.vlgmr.msrb.gmra.mxu1 %vm2105_vm1, %v9359_v20 }
 0x63e   :  { %5952 = vmatmul.msk.f32.gmra.mxu2 %vm2105_vm1, %v9448_v42 }
 0x640   :  { %5961 = vmatmul.msk.f32.gmra.mxu3 %vm2105_vm1, %v9448_v42 }
 0x642   :  { %5932 = vmatmul.msk.f32.gmra.mxu0 %vm2105_vm1, %v9383_v59  ;;  %5941 = vmatmul.msk.f32.gmra.mxu1 %vm2105_vm1, %v9383_v59 }
 0x646   :  { %5953 = vmatmul.msk.f32.gmra.mxu2 %vm2105_vm1, %v9488_v19 }
 0x648   :  { %5962 = vmatmul.msk.f32.gmra.mxu3 %vm2105_vm1, %v9488_v19 }
 0x64a   :  { %5933 = vmatmul.msk.f32.gmra.mxu0 %vm2105_vm1, %v9419_v63  ;;  %5942 = vmatmul.msk.f32.gmra.mxu1 %vm2105_vm1, %v9419_v63 }
 0x64e   :  { %5954 = vmatmul.msk.f32.gmra.mxu2 %vm2105_vm1, %v9517_v12 }
 0x650   :  { %5963 = vmatmul.msk.f32.gmra.mxu3 %vm2105_vm1, %v9517_v12 }
 0x652   :  { %5934 = vmatmul.msk.f32.gmra.mxu0 %vm2105_vm1, %v9448_v42  ;;  %5943 = vmatmul.msk.f32.gmra.mxu1 %vm2105_vm1, %v9448_v42 }
 0x656   :  { %5955 = vmatmul.msk.f32.gmra.mxu2 %vm2105_vm1, %v9569_v50 }
 0x658   :  { %5964 = vmatmul.msk.f32.gmra.mxu3 %vm2105_vm1, %v9569_v50 }
 0x65a   :  { %5935 = vmatmul.msk.f32.gmra.mxu0 %vm2105_vm1, %v9488_v19  ;;  %5944 = vmatmul.msk.f32.gmra.mxu1 %vm2105_vm1, %v9488_v19 }
 0x65e   :  { %5956 = vmatmul.msk.f32.gmra.mxu2 %vm2105_vm1, %v9602_v23 }
 0x660   :  { %5965 = vmatmul.msk.f32.gmra.mxu3 %vm2105_vm1, %v9602_v23 }
 0x662   :  { %5936 = vmatmul.msk.f32.gmra.mxu0 %vm2105_vm1, %v9517_v12  ;;  %5945 = vmatmul.msk.f32.gmra.mxu1 %vm2105_vm1, %v9517_v12 }
 0x667   :  { %v9709_v29 = vpop.f32.mrf.mxu2 }
 0x668   :  { %v2460_v14 = vmax.f32 %v9709_v29, 0.0 }
 0x669   :  { %v9713_v49 = vpop.f32.mrf.mxu3 }
 0x66a   :  { %5937 = vmatmul.msk.f32.gmra.mxu0 %vm2105_vm1, %v9569_v50  ;;  %5946 = vmatmul.msk.f32.gmra.mxu1 %vm2105_vm1, %v9569_v50  ;;  %v2461_v32 = vmax.f32 %v9713_v49, 0.0 }
 0x66f   :  { %v2232_v20 = vpop.f32.mrf.mxu2 }
 0x670   :  { %v2468_v28 = vmax.f32 %v2232_v20, 0.0 }
 0x671   :  { %v9719_v59 = vpop.f32.mrf.mxu3 }
 0x672   :  { %5938 = vmatmul.msk.f32.gmra.mxu0 %vm2105_vm1, %v9602_v23  ;;  %5947 = vmatmul.msk.f32.gmra.mxu1 %vm2105_vm1, %v9602_v23  ;;  %v2469_v13 = vmax.f32 %v9719_v59, 0.0 }
 0x675   :  { %v9723_v63 = vpop.f32.mrf.mxu0  ;;  %v9725_v42 = vpop.f32.mrf.mxu1 }
 0x677   :  { %v2235_v6 = vpop.f32.mrf.mxu2 }
 0x678   :  { %v2476_v48 = vmax.f32 %v2235_v6, 0.0 }
 0x679   :  { %v2276_v62 = vpop.f32.mrf.mxu3 }
 0x67a   :  { %v2477_v22 = vmax.f32 %v2276_v62, 0.0 }
 0x67d   :  { %v9727_v56 = vpop.f32.mrf.mxu0  ;;  %v9729_v60 = vpop.f32.mrf.mxu1 }
 0x67f   :  { %v2238_v19 = vpop.f32.mrf.mxu2 }
 0x680   :  { %v2484_v52 = vmax.f32 %v2238_v19, 0.0  ;;  %v2466_v19 = vmax.f32 %v9727_v56, 0.0 }
 0x681   :  { %v2279_v7 = vpop.f32.mrf.mxu3 }
 0x682   :  { %v2485_v30 = vmax.f32 %v2279_v7, 0.0 }
 0x685   :  { %v9731_v16 = vpop.f32.mrf.mxu0  ;;  %v9733_v38 = vpop.f32.mrf.mxu1 }
 0x686   :  { %v2474_v6 = vmax.f32 %v9731_v16, 0.0  ;;  %v2475_v62 = vmax.f32 %v9733_v38, 0.0 }
 0x687   :  { %v2241_v58 = vpop.f32.mrf.mxu2 }
 0x688   :  { %v2492_v55 = vmax.f32 %v2241_v58, 0.0  ;;  %v2467_v58 = vmax.f32 %v9729_v60, 0.0 }
 0x689   :  { %v2282_v45 = vpop.f32.mrf.mxu3 }
 0x68a   :  { %v2493_v18 = vmax.f32 %v2282_v45, 0.0  ;;  %v2458_v45 = vmax.f32 %v9723_v63, 0.0 }
 0x68d   :  { %v9735_v12 = vpop.f32.mrf.mxu0  ;;  %v9737_v44 = vpop.f32.mrf.mxu1 }
 0x68e   :  { %v2482_v29 = vmax.f32 %v9735_v12, 0.0  ;;  %v2483_v20 = vmax.f32 %v9737_v44, 0.0  ;;  %v2459_v12 = vmax.f32 %v9725_v42, 0.0 }
 0x68f   :  { %v2244_v31 = vpop.f32.mrf.mxu2 }
 0x690   :  { %v2500_v8 = vmax.f32 %v2244_v31, 0.0 }
 0x691   :  { %v2285_v51 = vpop.f32.mrf.mxu3 }
 0x692   :  { %v2501_v50 = vmax.f32 %v2285_v51, 0.0 }
 0x696   :  { %v9739_v40 = vpop.f32.mrf.mxu0 }
 0x697   :  { %v9741_v61 = vpop.f32.mrf.mxu1  ;;  %v2490_v27 = vmax.f32 %v9739_v40, 0.0 }
 0x698   :  { %v2247_v25 = vpop.f32.mrf.mxu2  ;;  %v2491_v34 = vmax.f32 %v9741_v61, 0.0 }
 0x699   :  { %v2508_v39 = vmax.f32 %v2247_v25, 0.0 }
 0x69b   :  { %v2288_v3 = vpop.f32.mrf.mxu3 }
 0x69c   :  { %v2509_v35 = vmax.f32 %v2288_v3, 0.0 }
 0x69f   :  { %v2162_v4 = vpop.f32.mrf.mxu0  ;;  %v2203_v57 = vpop.f32.mrf.mxu1 }
 0x6a0   :  { %v2498_v5 = vmax.f32 %v2162_v4, 0.0  ;;  %v2499_v46 = vmax.f32 %v2203_v57, 0.0 }
 0x6a1   :  { %v2250_v11 = vpop.f32.mrf.mxu2 }
 0x6a2   :  { %v2516_v53 = vmax.f32 %v2250_v11, 0.0 }
 0x6a3   :  { %v2291_v47 = vpop.f32.mrf.mxu3 }
 0x6a4   :  { %2575 = vmatpush.msra.mxu2 %v2516_v53  ;;  %v2517_v9 = vmax.f32 %v2291_v47, 0.0 }
 0x6a6   :  { %2576 = vmatpush.msra.mxu2 %v2508_v39  ;;  %2595 = vmatpush.msra.mxu3 %v2517_v9 }
 0x6a7   :  { %v2165_v43 = vpop.f32.mrf.mxu0  ;;  %v2206_v15 = vpop.f32.mrf.mxu1 }
 0x6a8   :  { %2577 = vmatpush.msra.mxu2 %v2500_v8  ;;  %2596 = vmatpush.msra.mxu3 %v2509_v35  ;;  %v2506_v2 = vmax.f32 %v2165_v43, 0.0  ;;  %v2507_v1 = vmax.f32 %v2206_v15, 0.0 }
 0x6a9   :  { %v9743_v37 = vpop.f32.mrf.mxu2 }
 0x6aa   :  { %2578 = vmatpush.msra.mxu2 %v2492_v55  ;;  %2597 = vmatpush.msra.mxu3 %v2501_v50 }
 0x6ab   :  { %v9745_v10 = vpop.f32.mrf.mxu3 }
 0x6ac   :  { %2579 = vmatpush.msra.mxu2 %v2484_v52  ;;  %2598 = vmatpush.msra.mxu3 %v2493_v18 }
 0x6ae   :  { %2580 = vmatpush.msra.mxu2 %v2476_v48  ;;  %2599 = vmatpush.msra.mxu3 %v2485_v30 }
 0x6af   :  { %v2168_v54 = vpop.f32.mrf.mxu0  ;;  %v2209_v21 = vpop.f32.mrf.mxu1 }
 0x6b0   :  { %v2514_v26 = vmax.f32 %v2168_v54, 0.0  ;;  %2581 = vmatpush.msra.mxu2 %v2468_v28  ;;  %v2515_v23 = vmax.f32 %v2209_v21, 0.0  ;;  %2600 = vmatpush.msra.mxu3 %v2477_v22  ;;  %v6720_v54 = vld [vmem:[#allocation2 + $0x5c0] sm:$0xf] }
 0x6b1   :  { %v9749_v33 = vpop.f32.mrf.mxu2 }
 0x6b2   :  { %2535 = vmatpush.msra.mxu0 %v2514_v26  ;;  %2582 = vmatpush.msra.mxu2 %v2460_v14  ;;  %v7278_v14 = vld [vmem:[#allocation2 + $0x5dc] sm:$0xf0]  ;;  %v2472_v26 = vmax.f32 %v9749_v33, 0.0 }
 0x6b3   :  { %2555 = vmatpush.msra.mxu1 %v2515_v23  ;;  %2601 = vmatpush.msra.mxu3 %v2469_v13  ;;  %v9757_v0 = vpop.f32.mrf.mxu3  ;;  %v6976_v23 = vld [vmem:[#allocation2 + $0x7c0] sm:$0xf] }
 0x6b4   :  { %5971 = vmatmul.msk.f32.vlgmr.msra.gmra.mxu2 %vm2523_vm2, %v9754_v24  ;;  %2536 = vmatpush.msra.mxu0 %v2506_v2  ;;  %v7342_v2 = vld [vmem:[#allocation2 + $0x7dc] sm:$0xf0] }
 0x6b5   :  { %2556 = vmatpush.msra.mxu1 %v2507_v1  ;;  %2602 = vmatpush.msra.mxu3 %v2461_v32  ;;  %v2464_v32 = vmax.f32 %v9743_v37, 0.0  ;;  %v7270_v33 = vld [vmem:[#allocation2 + $0x59c] sm:$0xf0] }
 0x6b6   :  { %5973 = vmatmul.msk.f32.vlgmr.msra.gmra.mxu3 %vm2523_vm2, %v9754_v24  ;;  %2537 = vmatpush.msra.mxu0 %v2498_v5  ;;  %v6944_v37 = vld [vmem:[#allocation2 + $0x780] sm:$0xf] }
 0x6b7   :  { %2557 = vmatpush.msra.mxu1 %v2499_v46  ;;  %v9765_v36 = vpop.f32.mrf.mxu0  ;;  %5978 = vmatpush.msk.msrb.mxu2 %vm656_vm10, %v11470_v41  ;;  %v9770_v49 = vpop.f32.mrf.mxu1  ;;  %v9817_v46 = vor.u32 %v7278_v14, %v6720_v54  ;;  %v6560_v14 = vld [vmem:[#allocation2 + $0x480] sm:$0xf] }
 0x6b8   :  { %2538 = vmatpush.msra.mxu0 %v2490_v27  ;;  %5980 = vmatpush.msk.msrb.mxu3 %vm656_vm10, %v11470_v41  ;;  %v2473_v27 = vmax.f32 %v9757_v0, 0.0 }
 0x6b9   :  { %2558 = vmatpush.msra.mxu1 %v2491_v34  ;;  %v9775_v59 = vpop.f32.mrf.mxu2 }
 0x6ba   :  { %2539 = vmatpush.msra.mxu0 %v2482_v29  ;;  %v2480_v28 = vmax.f32 %v9775_v59, 0.0  ;;  %v6688_v29 = vld [vmem:[#allocation2 + $0x580] sm:$0xf]  ;;  %v9820_v59 = vor.u32 %v7342_v2, %v6976_v23 }
 0x6bb   :  { %2559 = vmatpush.msra.mxu1 %v2483_v20  ;;  %v9780_v7 = vpop.f32.mrf.mxu3  ;;  %v9825_v0 = vor.u32 %v7270_v33, %v6688_v29  ;;  %v7134_v23 = vld [vmem:[#allocation2 + $0x15c] sm:$0xf0] }
 0x6bc   :  { %2540 = vmatpush.msra.mxu0 %v2474_v6  ;;  %v2481_v21 = vmax.f32 %v9780_v7, 0.0  ;;  %v2465_v6 = vmax.f32 %v9745_v10, 0.0  ;;  %v6400_v2 = vld [vmem:[#allocation2 + $0x340] sm:$0xf] }
 0x6bd   :  { %2560 = vmatpush.msra.mxu1 %v2475_v62  ;;  %v6528_v33 = vld [vmem:[#allocation2 + $0x440] sm:$0xf] }
 0x6be   :  { %2541 = vmatpush.msra.mxu0 %v2466_v19  ;;  %v7334_v19 = vld [vmem:[#allocation2 + $0x79c] sm:$0xf0] }
 0x6bf   :  { %2561 = vmatpush.msra.mxu1 %v2467_v58  ;;  %v9785_v44 = vpop.f32.mrf.mxu0  ;;  %v9787_v16 = vpop.f32.mrf.mxu1 }
 0x6c0   :  { %2542 = vmatpush.msra.mxu0 %v2458_v45  ;;  %v6656_v45 = vld [vmem:[#allocation2 + $0x540] sm:$0xf] }
 0x6c1   :  { %2562 = vmatpush.msra.mxu1 %v2459_v12  ;;  %v2402_v38 = vpop.f32.mrf.mxu2  ;;  %5967 = vmatmul.msk.f32.vlgmr.msra.gmra.mxu0 %vm2523_vm2, %v9754_v24  ;;  %v7262_v12 = vld [vmem:[#allocation2 + $0x55c] sm:$0xf0] }
 0x6c2   :  { %5969 = vmatmul.msk.f32.vlgmr.msra.gmra.mxu1 %vm2523_vm2, %v9754_v24  ;;  %5974 = vmatpush.msk.msrb.mxu0 %vm656_vm10, %v11470_v41  ;;  %v2488_v48 = vmax.f32 %v2402_v38, 0.0  ;;  %v9830_v38 = vor.u32 %v7334_v19, %v6944_v37  ;;  %v7126_v37 = vld [vmem:[#allocation2 + $0x11c] sm:$0xf0] }
 0x6c3   :  { %5976 = vmatpush.msk.msrb.mxu1 %vm656_vm10, %v11470_v41  ;;  %v2443_v63 = vpop.f32.mrf.mxu3  ;;  %v6368_v19 = vld [vmem:[#allocation2 + $0x300] sm:$0xf] }
 0x6c4   :  { %v2489_v22 = vmax.f32 %v2443_v63, 0.0 }
 0x6c7   :  { %v9797_v42 = vpop.f32.mrf.mxu0  ;;  %v9799_v56 = vpop.f32.mrf.mxu1 }
 0x6c9   :  { %v2405_v60 = vpop.f32.mrf.mxu2 }
 0x6ca   :  { %v2496_v50 = vmax.f32 %v2405_v60, 0.0  ;;  %v6912_v60 = vld [vmem:[#allocation2 + $0x740] sm:$0xf] }
 0x6cb   :  { %v2446_v31 = vpop.f32.mrf.mxu3 }
 0x6cc   :  { %v2497_v30 = vmax.f32 %v2446_v31, 0.0  ;;  %v7326_v31 = vld [vmem:[#allocation2 + $0x75c] sm:$0xf0] }
 0x6cf   :  { %v9801_v51 = vpop.f32.mrf.mxu0  ;;  %v9803_v40 = vpop.f32.mrf.mxu1 }
 0x6d1   :  { %v2408_v61 = vpop.f32.mrf.mxu2 }
 0x6d2   :  { %v2504_v55 = vmax.f32 %v2408_v61, 0.0  ;;  %v2478_v61 = vmax.f32 %v9797_v42, 0.0  ;;  %v6208_v42 = vld [vmem:[#allocation2 + $0x1c0] sm:$0xf] }
 0x6d3   :  { %v2449_v25 = vpop.f32.mrf.mxu3 }
 0x6d4   :  { %v2505_v18 = vmax.f32 %v2449_v25, 0.0  ;;  %v2486_v25 = vmax.f32 %v9801_v51, 0.0  ;;  %v7150_v51 = vld [vmem:[#allocation2 + $0x1dc] sm:$0xf0] }
 0x6d7   :  { %v9805_v3 = vpop.f32.mrf.mxu0  ;;  %v9807_v4 = vpop.f32.mrf.mxu1 }
 0x6d8   :  { %v2494_v10 = vmax.f32 %v9805_v3, 0.0  ;;  %v2495_v63 = vmax.f32 %v9807_v4, 0.0  ;;  %v9838_v3 = vor.u32 %v7262_v12, %v6656_v45  ;;  %v6624_v4 = vld [vmem:[#allocation2 + $0x500] sm:$0xf] }
 0x6d9   :  { %v2411_v57 = vpop.f32.mrf.mxu2  ;;  %v7294_v45 = vld [vmem:[#allocation2 + $0x65c] sm:$0xf0] }
 0x6da   :  { %v2512_v47 = vmax.f32 %v2411_v57, 0.0  ;;  %v2479_v57 = vmax.f32 %v9799_v56, 0.0  ;;  %v7318_v56 = vld [vmem:[#allocation2 + $0x71c] sm:$0xf0] }
 0x6db   :  { %v2452_v11 = vpop.f32.mrf.mxu3  ;;  %v6080_v12 = vld [vmem:[#allocation2 + $0xc0] sm:$0xf] }
 0x6dc   :  { %v2513_v35 = vmax.f32 %v2452_v11, 0.0  ;;  %v2487_v11 = vmax.f32 %v9803_v40, 0.0  ;;  %v2462_v40 = vmax.f32 %v9765_v36, 0.0  ;;  %v6176_v36 = vld [vmem:[#allocation2 + $0x180] sm:$0xf] }
 0x6df   :  { %v9809_v41 = vpop.f32.mrf.mxu0  ;;  %v9811_v53 = vpop.f32.mrf.mxu1 }
 0x6e0   :  { %v2502_v7 = vmax.f32 %v9809_v41, 0.0  ;;  %v2503_v58 = vmax.f32 %v9811_v53, 0.0  ;;  %v7254_v41 = vld [vmem:[#allocation2 + $0x51c] sm:$0xf0] }
 0x6e1   :  { %v2414_v39 = vpop.f32.mrf.mxu2  ;;  %v6464_v53 = vld [vmem:[#allocation2 + $0x3c0] sm:$0xf] }
 0x6e2   :  { %v2520_v9 = vmax.f32 %v2414_v39, 0.0  ;;  %v9845_v39 = vor.u32 %v7326_v31, %v6912_v60  ;;  %v7118_v60 = vld [vmem:[#allocation2 + $0xdc] sm:$0xf0] }
 0x6e3   :  { %v2455_v8 = vpop.f32.mrf.mxu3  ;;  %v6496_v31 = vld [vmem:[#allocation2 + $0x400] sm:$0xf] }
 0x6e4   :  { %2655 = vmatpush.msrb.mxu2 %v2520_v9  ;;  %v2521_v43 = vmax.f32 %v2455_v8, 0.0  ;;  %v6880_v9 = vld [vmem:[#allocation2 + $0x700] sm:$0xf]  ;;  %v2470_v8 = vmax.f32 %v9785_v44, 0.0 }
 0x6e5   :  { %v7142_v44 = vld [vmem:[#allocation2 + $0x19c] sm:$0xf0] }
 0x6e6   :  { %2656 = vmatpush.msrb.mxu2 %v2512_v47  ;;  %2675 = vmatpush.msrb.mxu3 %v2521_v43  ;;  %v7214_v47 = vld [vmem:[#allocation2 + $0x3dc] sm:$0xf0]  ;;  %v2463_v43 = vmax.f32 %v9770_v49, 0.0  ;;  %v9865_v54 = vor.u32 %v7142_v44, %v6176_v36  ;;  %v7266_v36 = vld [vmem:[#allocation2 + $0x584] sm:$0xf] }
 0x6e7   :  { %v2329_v15 = vpop.f32.mrf.mxu0  ;;  %v2370_v52 = vpop.f32.mrf.mxu1  ;;  %v6848_v49 = vld [vmem:[#allocation2 + $0x6c0] sm:$0xf]  ;;  %v6690_v44 = vld [vmem:[#allocation2 + $0x5a0] sm:$0xf0] }
 0x6e8   :  { %2657 = vmatpush.msrb.mxu2 %v2504_v55  ;;  %2676 = vmatpush.msrb.mxu3 %v2513_v35  ;;  %v2510_v20 = vmax.f32 %v2329_v15, 0.0  ;;  %v2511_v62 = vmax.f32 %v2370_v52, 0.0  ;;  %v9850_v35 = vor.u32 %v7254_v41, %v6624_v4  ;;  %v2471_v55 = vmax.f32 %v9787_v16, 0.0  ;;  %v7246_v52 = vld [vmem:[#allocation2 + $0x4dc] sm:$0xf0] }
 0x6e9   :  { %v9854_v15 = vor.u32 %v7150_v51, %v6208_v42  ;;  %v7274_v4 = vld [vmem:[#allocation2 + $0x5c4] sm:$0xf]  ;;  %v7182_v42 = vld [vmem:[#allocation2 + $0x2dc] sm:$0xf0] }
 0x6ea   :  { %2658 = vmatpush.msrb.mxu2 %v2496_v50  ;;  %2677 = vmatpush.msrb.mxu3 %v2505_v18  ;;  %v6592_v50 = vld [vmem:[#allocation2 + $0x4c0] sm:$0xf]  ;;  %v9856_v18 = vor.u32 %v7214_v47, %v6464_v53  ;;  %v6722_v41 = vld [vmem:[#allocation2 + $0x5e0] sm:$0xf0] }
 0x6eb   :  { %v9862_v16 = vor.u32 %v7246_v52, %v6592_v50  ;;  %v6752_v51 = vld [vmem:[#allocation2 + $0x600] sm:$0xf] }
 0x6ec   :  { %2659 = vmatpush.msrb.mxu2 %v2488_v48  ;;  %2678 = vmatpush.msrb.mxu3 %v2497_v30  ;;  %v6432_v48 = vld [vmem:[#allocation2 + $0x380] sm:$0xf]  ;;  %v9859_v30 = vor.u32 %v7318_v56, %v6880_v9  ;;  %v7338_v9 = vld [vmem:[#allocation2 + $0x7c4] sm:$0xf] }
 0x6ed   :  { %v7286_v53 = vld [vmem:[#allocation2 + $0x61c] sm:$0xf0]  ;;  %v6978_v56 = vld [vmem:[#allocation2 + $0x7e0] sm:$0xf0] }
 0x6ee   :  { %2660 = vmatpush.msrb.mxu2 %v2480_v28  ;;  %2679 = vmatpush.msrb.mxu3 %v2489_v22  ;;  %v7206_v28 = vld [vmem:[#allocation2 + $0x39c] sm:$0xf0]  ;;  %v9913_v52 = vor.u32 %v7286_v53, %v6752_v51  ;;  %v7210_v51 = vld [vmem:[#allocation2 + $0x3c4] sm:$0xf] }
 0x6ef   :  { %v2332_v13 = vpop.f32.mrf.mxu0  ;;  %v2373_v5 = vpop.f32.mrf.mxu1  ;;  %v7310_v22 = vld [vmem:[#allocation2 + $0x6dc] sm:$0xf0] }
 0x6f0   :  { %v2518_v1 = vmax.f32 %v2332_v13, 0.0  ;;  %2661 = vmatpush.msrb.mxu2 %v2472_v26  ;;  %v2519_v34 = vmax.f32 %v2373_v5, 0.0  ;;  %2680 = vmatpush.msrb.mxu3 %v2481_v21  ;;  %v7238_v26 = vld [vmem:[#allocation2 + $0x49c] sm:$0xf0]  ;;  %v9868_v21 = vor.u32 %v7206_v28, %v6432_v48 }
 0x6f1   :  { %v6144_v13 = vld [vmem:[#allocation2 + $0x140] sm:$0xf] }
 0x6f2   :  { %2615 = vmatpush.msrb.mxu0 %v2518_v1  ;;  %2662 = vmatpush.msrb.mxu2 %v2464_v32  ;;  %v9871_v32 = vor.u32 %v7310_v22, %v6848_v49  ;;  %v7198_v1 = vld [vmem:[#allocation2 + $0x35c] sm:$0xf0]  ;;  %v9881_v29 = vor.u32 %v7134_v23, %v6144_v13  ;;  %v9915_v49 = vor.u32 %v7338_v9, %v6978_v56  ;;  %v7330_v22 = vld [vmem:[#allocation2 + $0x784] sm:$0xf] }
 0x6f3   :  { %2635 = vmatpush.msrb.mxu1 %v2519_v34  ;;  %2681 = vmatpush.msrb.mxu3 %v2473_v27  ;;  %v6816_v5 = vld [vmem:[#allocation2 + $0x680] sm:$0xf]  ;;  %v9878_v34 = vor.u32 %v7238_v26, %v6560_v14  ;;  %v6946_v14 = vld [vmem:[#allocation2 + $0x7a0] sm:$0xf0]  ;;  %v9922_v23 = vor.u32 %v7266_v36, %v6690_v44 }
 0x6f4   :  { %2616 = vmatpush.msrb.mxu0 %v2510_v20  ;;  %4253 = vmatpush.bf16.msra.mxu2 %v9817_v46  ;;  %v7302_v27 = vld [vmem:[#allocation2 + $0x69c] sm:$0xf0]  ;;  %v6466_v9 = vld [vmem:[#allocation2 + $0x3e0] sm:$0xf0] }
 0x6f5   :  { %2636 = vmatpush.msrb.mxu1 %v2511_v62  ;;  %2682 = vmatpush.msrb.mxu3 %v2465_v6  ;;  %v7230_v20 = vld [vmem:[#allocation2 + $0x45c] sm:$0xf0]  ;;  %v9884_v6 = vor.u32 %v7198_v1, %v6400_v2  ;;  %11475 = vst [vmem:[#allocation11_spill] sm:$0xff] %v9922_v23  ;;  %v7314_v56 = vld [vmem:[#allocation2 + $0x704] sm:$0xf] }
 0x6f6   :  { %2617 = vmatpush.msrb.mxu0 %v2502_v7  ;;  %5979 = vmatmul.msk.f32.vlgmr.msrb.gmra.mxu2 %vm2523_vm2, %v9754_v24  ;;  %v6112_v62 = vld [vmem:[#allocation2 + $0x100] sm:$0xf] }
 0x6f7   :  { %4266 = vmatpush.bf16.msra.mxu3 %v9820_v59  ;;  %2637 = vmatpush.msrb.mxu1 %v2503_v58  ;;  %v7190_v7 = vld [vmem:[#allocation2 + $0x31c] sm:$0xf0] }
 0x6f8   :  { %2618 = vmatpush.msrb.mxu0 %v2494_v10  ;;  %4254 = vmatpush.bf16.msra.mxu2 %v9825_v0  ;;  %v6784_v58 = vld [vmem:[#allocation2 + $0x640] sm:$0xf]  ;;  %v9890_v10 = vor.u32 %v7230_v20, %v6528_v33 }
 0x6f9   :  { %2638 = vmatpush.msrb.mxu1 %v2495_v63  ;;  %5981 = vmatmul.msk.f32.vlgmr.msrb.gmra.mxu3 %vm2523_vm2, %v9754_v24  ;;  %v9893_v63 = vor.u32 %v7126_v37, %v6112_v62  ;;  %v7110_v50 = vld [vmem:[#allocation2 + $0x9c] sm:$0xf0]  ;;  %v9929_v62 = vor.u32 %v7330_v22, %v6946_v14  ;;  %v7322_v37 = vld [vmem:[#allocation2 + $0x744] sm:$0xf]  ;;  %v9954_v14 = vor.u32 %v7210_v51, %v6466_v9 }
 0x6fa   :  { %2619 = vmatpush.msrb.mxu0 %v2486_v25  ;;  %v9896_v25 = vor.u32 %v7190_v7, %v6368_v19  ;;  %v6304_v48 = vld [vmem:[#allocation2 + $0x280] sm:$0xf]  ;;  %v6914_v19 = vld [vmem:[#allocation2 + $0x760] sm:$0xf0] }
 0x6fb   :  { %4267 = vmatpush.bf16.msra.mxu3 %v9830_v38  ;;  %2639 = vmatpush.msrb.mxu1 %v2487_v11  ;;  %v9899_v11 = vor.u32 %v7294_v45, %v6784_v58  ;;  %v7174_v28 = vld [vmem:[#allocation2 + $0x29c] sm:$0xf0]  ;;  %11476 = vst [vmem:[#allocation12_spill] sm:$0xff] %v9929_v62  ;;  %v9941_v53 = vor.u32 %v7322_v37, %v6914_v19  ;;  %v6594_v22 = vld [vmem:[#allocation2 + $0x4e0] sm:$0xf0] }
 0x6fc   :  { %2620 = vmatpush.msrb.mxu0 %v2478_v61  ;;  %4255 = vmatpush.bf16.msra.mxu2 %v9838_v3  ;;  %v7222_v61 = vld [vmem:[#allocation2 + $0x41c] sm:$0xf0]  ;;  %v9925_v2 = vor.u32 %v7174_v28, %v6304_v48  ;;  %v7242_v28 = vld [vmem:[#allocation2 + $0x4c4] sm:$0xf]  ;;  %11483 = vst [vmem:[#allocation19_spill] sm:$0xff] %v9954_v14 }
 0x6fd   :  { %2640 = vmatpush.msrb.mxu1 %v2479_v57  ;;  %v6336_v57 = vld [vmem:[#allocation2 + $0x2c0] sm:$0xf]  ;;  %v9902_v47 = vor.u32 %v7222_v61, %v6496_v31  ;;  %11478 = vst [vmem:[#allocation14_spill] sm:$0xff] %v9941_v53  ;;  %v6850_v37 = vld [vmem:[#allocation2 + $0x6e0] sm:$0xf0]  ;;  %v9961_v19 = vor.u32 %v7242_v28, %v6594_v22 }
 0x6fe   :  { %2621 = vmatpush.msrb.mxu0 %v2470_v8  ;;  %v6048_v8 = vld [vmem:[#allocation2 + $0x80] sm:$0xf]  ;;  %v6402_v51 = vld [vmem:[#allocation2 + $0x360] sm:$0xf0] }
 0x6ff   :  { %4268 = vmatpush.bf16.msra.mxu3 %v9845_v39  ;;  %2641 = vmatpush.msrb.mxu1 %v2471_v55  ;;  %v9910_v55 = vor.u32 %v7182_v42, %v6336_v57  ;;  %v9919_v26 = vor.u32 %v7110_v50, %v6048_v8  ;;  %v6016_v13 = vld [vmem:[#allocation2 + $0x40] sm:$0xf]  ;;  %v7250_v57 = vld [vmem:[#allocation2 + $0x504] sm:$0xf]  ;;  %11485 = vst [vmem:[#allocation21_spill] sm:$0xff] %v9961_v19 }
 0x700   :  { %2622 = vmatpush.msrb.mxu0 %v2462_v40  ;;  %4256 = vmatpush.bf16.msra.mxu2 %v9850_v35  ;;  %v9905_v40 = vor.u32 %v7118_v60, %v6080_v12  ;;  %v7102_v1 = vld [vmem:[#allocation2 + $0x5c] sm:$0xf0]  ;;  %v6210_v42 = vld [vmem:[#allocation2 + $0x1e0] sm:$0xf0] }
 0x701   :  { %2642 = vmatpush.msrb.mxu1 %v2463_v43  ;;  %5975 = vmatmul.msk.f32.vlgmr.msrb.gmra.mxu0 %vm2523_vm2, %v9754_v24  ;;  %v9907_v43 = vor.u32 %v7274_v4, %v6722_v41  ;;  %v6272_v33 = vld [vmem:[#allocation2 + $0x240] sm:$0xf]  ;;  %v9932_v7 = vor.u32 %v7102_v1, %v6016_v13  ;;  %v6626_v4 = vld [vmem:[#allocation2 + $0x520] sm:$0xf0] }
 0x702   :  { %4227 = vmatpush.bf16.msra.mxu0 %v9854_v15  ;;  %5977 = vmatmul.msk.f32.vlgmr.msrb.gmra.mxu1 %vm2523_vm2, %v9754_v24  ;;  %v9887_v24 = vor.u32 %v7302_v27, %v6816_v5  ;;  %v7258_v5 = vld [vmem:[#allocation2 + $0x544] sm:$0xf]  ;;  %v7166_v20 = vld [vmem:[#allocation2 + $0x25c] sm:$0xf0]  ;;  %v9947_v36 = vor.u32 %v7250_v57, %v6626_v4 }
 0x703   :  { %4240 = vmatpush.bf16.msra.mxu1 %v9856_v18  ;;  %4269 = vmatpush.bf16.msra.mxu3 %v9859_v30  ;;  %v6658_v27 = vld [vmem:[#allocation2 + $0x560] sm:$0xf0]  ;;  %v5984_v58 = vld [vmem:[#allocation2] sm:$0xf]  ;;  %v9938_v31 = vor.u32 %v7166_v20, %v6272_v33 }
 0x704   :  { %4257 = vmatpush.bf16.msra.mxu2 %v9862_v16  ;;  %v7094_v45 = vld [vmem:[#allocation2 + $0x1c] sm:$0xf0]  ;;  %v9935_v60 = vor.u32 %v7258_v5, %v6658_v27  ;;  %v7146_v41 = vld [vmem:[#allocation2 + $0x1c4] sm:$0xf]  ;;  %11480 = vst [vmem:[#allocation16_spill] sm:$0xff] %v9947_v36 }
 0x705   :  { %v6240_v12 = vld [vmem:[#allocation2 + $0x200] sm:$0xf]  ;;  %v6882_v8 = vld [vmem:[#allocation2 + $0x720] sm:$0xf0]  ;;  %v9944_v50 = vor.u32 %v7094_v45, %v5984_v58  ;;  %v9952_v48 = vor.u32 %v7146_v41, %v6210_v42 }
 0x706   :  { %4228 = vmatpush.bf16.msra.mxu0 %v9865_v54  ;;  %11477 = vst [vmem:[#allocation13_spill] sm:$0xff] %v9935_v60  ;;  %v7158_v61 = vld [vmem:[#allocation2 + $0x21c] sm:$0xf0]  ;;  %v7138_v13 = vld [vmem:[#allocation2 + $0x184] sm:$0xf]  ;;  %v9957_v27 = vor.u32 %v7314_v56, %v6882_v8 }
 0x707   :  { %4241 = vmatpush.bf16.msra.mxu1 %v9868_v21  ;;  %4270 = vmatpush.bf16.msra.mxu3 %v9871_v32  ;;  %11479 = vst [vmem:[#allocation15_spill] sm:$0xff] %v9944_v50  ;;  %v9950_v44 = vor.u32 %v7158_v61, %v6240_v12  ;;  %v6178_v1 = vld [vmem:[#allocation2 + $0x1a0] sm:$0xf0] }
 0x708   :  { %4258 = vmatpush.bf16.msra.mxu2 %v9878_v34  ;;  %11482 = vst [vmem:[#allocation18_spill] sm:$0xff] %v9952_v48  ;;  %v7202_v5 = vld [vmem:[#allocation2 + $0x384] sm:$0xf]  ;;  %v9965_v58 = vor.u32 %v7138_v13, %v6178_v1 }
 0x709   :  { %11481 = vst [vmem:[#allocation17_spill] sm:$0xff] %v9950_v44  ;;  %v6434_v33 = vld [vmem:[#allocation2 + $0x3a0] sm:$0xf0] }
 0x70a   :  { %4229 = vmatpush.bf16.msra.mxu0 %v9881_v29  ;;  %11484 = vst [vmem:[#allocation20_spill] sm:$0xff] %v9957_v27  ;;  %v7306_v20 = vld [vmem:[#allocation2 + $0x6c4] sm:$0xf]  ;;  %v9968_v61 = vor.u32 %v7202_v5, %v6434_v33 }
 0x70b   :  { %4242 = vmatpush.bf16.msra.mxu1 %v9884_v6  ;;  %4271 = vmatpush.bf16.msra.mxu3 %v9887_v24  ;;  %11486 = vst [vmem:[#allocation22_spill] sm:$0xff] %v9965_v58  ;;  %v7234_v45 = vld [vmem:[#allocation2 + $0x484] sm:$0xf]  ;;  %v9971_v42 = vor.u32 %v7306_v20, %v6850_v37 }
 0x70c   :  { %4259 = vmatpush.bf16.msra.mxu2 %v9890_v10  ;;  %v6562_v12 = vld [vmem:[#allocation2 + $0x4a0] sm:$0xf0]  ;;  %11487 = vst [vmem:[#allocation9_spill] sm:$0xff] %v9968_v61 }
 0x70d   :  { %v7130_v57 = vld [vmem:[#allocation2 + $0x144] sm:$0xf]  ;;  %11488 = vst [vmem:[#allocation23_spill] sm:$0xff] %v9971_v42  ;;  %v9974_v8 = vor.u32 %v7234_v45, %v6562_v12 }
 0x70e   :  { %4230 = vmatpush.bf16.msra.mxu0 %v9893_v63  ;;  %v6146_v4 = vld [vmem:[#allocation2 + $0x160] sm:$0xf0] }
 0x70f   :  { %4243 = vmatpush.bf16.msra.mxu1 %v9896_v25  ;;  %4272 = vmatpush.bf16.msra.mxu3 %v9899_v11  ;;  %v7194_v41 = vld [vmem:[#allocation2 + $0x344] sm:$0xf]  ;;  %11489 = vst [vmem:[#allocation24_spill] sm:$0xff] %v9974_v8  ;;  %v9977_v28 = vor.u32 %v7130_v57, %v6146_v4 }
 0x710   :  { %4260 = vmatpush.bf16.msra.mxu2 %v9902_v47  ;;  %v7298_v9 = vld [vmem:[#allocation2 + $0x684] sm:$0xf]  ;;  %v9980_v1 = vor.u32 %v7194_v41, %v6402_v51 }
 0x711   :  { %v6818_v56 = vld [vmem:[#allocation2 + $0x6a0] sm:$0xf0]  ;;  %11490 = vst [vmem:[#allocation25_spill] sm:$0xff] %v9977_v28 }
 0x712   :  { %4231 = vmatpush.bf16.msra.mxu0 %v9905_v40  ;;  %v7226_v22 = vld [vmem:[#allocation2 + $0x444] sm:$0xf]  ;;  %11491 = vst [vmem:[#allocation26_spill] sm:$0xff] %v9980_v1  ;;  %v9983_v37 = vor.u32 %v7298_v9, %v6818_v56 }
 0x713   :  { %4244 = vmatpush.bf16.msra.mxu1 %v9910_v55  ;;  %4273 = vmatpush.bf16.msra.mxu3 %v9913_v52  ;;  %v6530_v13 = vld [vmem:[#allocation2 + $0x460] sm:$0xf0] }
 0x714   :  { %4305 = vmatpush.bf16.msrb.mxu2 %v9907_v43  ;;  %v7122_v5 = vld [vmem:[#allocation2 + $0x104] sm:$0xf]  ;;  %11492 = vst [vmem:[#allocation27_spill] sm:$0xff] %v9983_v37  ;;  %v9986_v57 = vor.u32 %v7226_v22, %v6530_v13 }
 0x715   :  { %v6114_v33 = vld [vmem:[#allocation2 + $0x120] sm:$0xf0] }
 0x716   :  { %4232 = vmatpush.bf16.msra.mxu0 %v9919_v26  ;;  %v7186_v20 = vld [vmem:[#allocation2 + $0x304] sm:$0xf]  ;;  %11493 = vst [vmem:[#allocation28_spill] sm:$0xff] %v9986_v57  ;;  %v9989_v4 = vor.u32 %v7122_v5, %v6114_v33 }
 0x717   :  { %4318 = vmatpush.bf16.msrb.mxu3 %v9915_v49  ;;  %4245 = vmatpush.bf16.msra.mxu1 %v9925_v2  ;;  %v7290_v45 = vld [vmem:[#allocation2 + $0x644] sm:$0xf] }
 0x718   :  { %4306 = vmatpush.bf16.msrb.mxu2 %v9922_v23  ;;  %v6786_v12 = vld [vmem:[#allocation2 + $0x660] sm:$0xf0]  ;;  %11494 = vst [vmem:[#allocation29_spill] sm:$0xff] %v9989_v4 }
 0x719   :  { %v7218_v41 = vld [vmem:[#allocation2 + $0x404] sm:$0xf] }
 0x71a   :  { %4233 = vmatpush.bf16.msra.mxu0 %v9932_v7  ;;  %v6498_v51 = vld [vmem:[#allocation2 + $0x420] sm:$0xf0] }
 0x71b   :  { %4319 = vmatpush.bf16.msrb.mxu3 %v9929_v62  ;;  %4246 = vmatpush.bf16.msra.mxu1 %v9938_v31  ;;  %v7114_v9 = vld [vmem:[#allocation2 + $0xc4] sm:$0xf]  ;;  %v9998_v5 = vor.u32 %v7218_v41, %v6498_v51 }
 0x71c   :  { %4307 = vmatpush.bf16.msrb.mxu2 %v9935_v60  ;;  %v6082_v56 = vld [vmem:[#allocation2 + $0xe0] sm:$0xf0] }
 0x71d   :  { %v7282_v22 = vld [vmem:[#allocation2 + $0x604] sm:$0xf]  ;;  %11497 = vst [vmem:[#allocation32_spill] sm:$0xff] %v9998_v5  ;;  %v10001_v33 = vor.u32 %v7114_v9, %v6082_v56 }
 0x71e   :  { %4234 = vmatpush.bf16.msra.mxu0 %v9944_v50  ;;  %v6754_v13 = vld [vmem:[#allocation2 + $0x620] sm:$0xf0] }
 0x71f   :  { %4320 = vmatpush.bf16.msrb.mxu3 %v9941_v53  ;;  %4247 = vmatpush.bf16.msra.mxu1 %v9950_v44  ;;  %11498 = vst [vmem:[#allocation33_spill] sm:$0xff] %v10001_v33  ;;  %v7162_v9 = vld [vmem:[#allocation2 + $0x244] sm:$0xf]  ;;  %v7247_v53 = vld [vmem:[#allocation2 + $0x4e4] sm:$0xf0] }
 0x720   :  { %4308 = vmatpush.bf16.msrb.mxu2 %v9947_v36  ;;  %v6274_v56 = vld [vmem:[#allocation2 + $0x260] sm:$0xf0]  ;;  %v6184_v36 = vld [vmem:[#allocation2 + $0x188] sm:$0xf]  ;;  %v6584_v44 = vld [vmem:[#allocation2 + $0x498] sm:$0xf] }
 0x722   :  { %4279 = vmatpush.bf16.msrb.mxu0 %v9952_v48  ;;  %v6698_v48 = vld [vmem:[#allocation2 + $0x5a8] sm:$0xf0] }
 0x723   :  { %4292 = vmatpush.bf16.msrb.mxu1 %v9954_v14  ;;  %4321 = vmatpush.bf16.msrb.mxu3 %v9957_v27  ;;  %v9995_v27 = vor.u32 %v7290_v45, %v6786_v12  ;;  %v6050_v45 = vld [vmem:[#allocation2 + $0xa0] sm:$0xf0]  ;;  %v10007_v12 = vor.u32 %v7282_v22, %v6754_v13  ;;  %v6728_v13 = vld [vmem:[#allocation2 + $0x5c8] sm:$0xf] }
 0x724   :  { %4309 = vmatpush.bf16.msrb.mxu2 %v9961_v19  ;;  %v7178_v19 = vld [vmem:[#allocation2 + $0x2c4] sm:$0xf]  ;;  %v6280_v14 = vld [vmem:[#allocation2 + $0x248] sm:$0xf] }
 0x725   :  { %11496 = vst [vmem:[#allocation31_spill] sm:$0xff] %v9995_v27 }
 0x726   :  { %4280 = vmatpush.bf16.msrb.mxu0 %v9965_v58  ;;  %11500 = vst [vmem:[#allocation35_spill] sm:$0xff] %v10007_v12  ;;  %v6440_v58 = vld [vmem:[#allocation2 + $0x388] sm:$0xf] }
 0x727   :  { %4293 = vmatpush.bf16.msrb.mxu1 %v9968_v61  ;;  %4322 = vmatpush.bf16.msrb.mxu3 %v9971_v42  ;;  %v9992_v42 = vor.u32 %v7186_v20, %v6370_v17  ;;  %v7106_v20 = vld [vmem:[#allocation2 + $0x84] sm:$0xf]  ;;  %v7143_v61 = vld [vmem:[#allocation2 + $0x1a4] sm:$0xf0] }
 0x728   :  { %4310 = vmatpush.bf16.msrb.mxu2 %v9974_v8  ;;  %v6338_v8 = vld [vmem:[#allocation2 + $0x2e0] sm:$0xf0]  ;;  %v10011_v41 = vor.u32 %v7106_v20, %v6050_v45 }
 0x729   :  { %11495 = vst [vmem:[#allocation30_spill] sm:$0xff] %v9992_v42  ;;  %v10004_v17 = vor.u32 %v7178_v19, %v6338_v8  ;;  %v7098_v19 = vld [vmem:[#allocation2 + $0x44] sm:$0xf] }
 0x72a   :  { %4281 = vmatpush.bf16.msrb.mxu0 %v9977_v28  ;;  %11501 = vst [vmem:[#allocation36_spill] sm:$0xff] %v10011_v41  ;;  %v6018_v8 = vld [vmem:[#allocation2 + $0x60] sm:$0xf0] }
 0x72b   :  { %4294 = vmatpush.bf16.msrb.mxu1 %v9980_v1  ;;  %4323 = vmatpush.bf16.msrb.mxu3 %v9983_v37  ;;  %11499 = vst [vmem:[#allocation34_spill] sm:$0xff] %v10004_v17  ;;  %v7170_v37 = vld [vmem:[#allocation2 + $0x284] sm:$0xf]  ;;  %v10018_v22 = vor.u32 %v7098_v19, %v6018_v8 }
 0x72c   :  { %4311 = vmatpush.bf16.msrb.mxu2 %v9986_v57  ;;  %v6306_v1 = vld [vmem:[#allocation2 + $0x2a0] sm:$0xf0]  ;;  %v6984_v57 = vld [vmem:[#allocation2 + $0x7c8] sm:$0xf] }
 0x72d   :  { %v10014_v51 = vor.u32 %v7170_v37, %v6306_v1  ;;  %11503 = vst [vmem:[#allocation38_spill] sm:$0xff] %v10018_v22  ;;  %v7090_v20 = vld [vmem:[#allocation2 + $0x4] sm:$0xf] }
 0x72e   :  { %4282 = vmatpush.bf16.msrb.mxu0 %v9989_v4  ;;  %v5986_v45 = vld [vmem:[#allocation2 + $0x20] sm:$0xf0] }
 0x72f   :  { %4295 = vmatpush.bf16.msrb.mxu1 %v9992_v42  ;;  %4324 = vmatpush.bf16.msrb.mxu3 %v9995_v27  ;;  %11502 = vst [vmem:[#allocation37_spill] sm:$0xff] %v10014_v51  ;;  %v7279_v27 = vld [vmem:[#allocation2 + $0x5e4] sm:$0xf0]  ;;  %v7154_v1 = vld [vmem:[#allocation2 + $0x204] sm:$0xf] }
 0x730   :  { %4312 = vmatpush.bf16.msrb.mxu2 %v9998_v5  ;;  %v10021_v5 = vor.u32 %v7162_v9, %v6274_v56  ;;  %v6242_v37 = vld [vmem:[#allocation2 + $0x220] sm:$0xf0]  ;;  %v6696_v9 = vld [vmem:[#allocation2 + $0x588] sm:$0xf] }
 0x731   :  { %v10029_v19 = vor.u32 %v7154_v1, %v6242_v37  ;;  %v7271_v56 = vld [vmem:[#allocation2 + $0x5a4] sm:$0xf0] }
 0x732   :  { %4283 = vmatpush.bf16.msrb.mxu0 %v10001_v33  ;;  %11504 = vst [vmem:[#allocation39_spill] sm:$0xff] %v10021_v5  ;;  %v6472_v1 = vld [vmem:[#allocation2 + $0x3c8] sm:$0xf] }
 0x733   :  { %4296 = vmatpush.bf16.msrb.mxu1 %v10004_v17  ;;  %4325 = vmatpush.bf16.msrb.mxu3 %v10007_v12  ;;  %v7343_v12 = vld [vmem:[#allocation2 + $0x7e4] sm:$0xf0]  ;;  %v10024_v17 = vor.u32 %v7090_v20, %v5986_v45  ;;  %11507 = vst [vmem:[#allocation42_spill] sm:$0xff] %v10029_v19 }
 0x734   :  { %v10033_v42 = vor.u32 %v7343_v12, %v6984_v57  ;;  %v6952_v20 = vld [vmem:[#allocation2 + $0x788] sm:$0xf] }
 0x735   :  { %11505 = vst [vmem:[#allocation40_spill] sm:$0xff] %v10024_v17  ;;  %v7335_v45 = vld [vmem:[#allocation2 + $0x7a4] sm:$0xf0] }
 0x736   :  { %4284 = vmatpush.bf16.msrb.mxu0 %v10011_v41  ;;  %v10026_v41 = vor.u32 %v7279_v27, %v6728_v13  ;;  %11508 = vst [vmem:[#allocation43_spill] sm:$0xff] %v10033_v42  ;;  %v10040_v27 = vor.u32 %v7271_v56, %v6696_v9  ;;  %v7151_v13 = vld [vmem:[#allocation2 + $0x1e4] sm:$0xf0]  ;;  %v10045_v37 = vor.u32 %v7335_v45, %v6952_v20 }
 0x737   :  { %4297 = vmatpush.bf16.msrb.mxu1 %v10014_v51  ;;  %v2584_v33 = vpop.f32.mrf.mxu2  ;;  %v7215_v57 = vld [vmem:[#allocation2 + $0x3e4] sm:$0xf0] }
 0x738   :  { %11506 = vst [vmem:[#allocation41_spill] sm:$0xff] %v10026_v41  ;;  %v10031_v8 = vpack.c.bf16 %v2584_v33, %v2584_v33  ;;  %v6216_v33 = vld [vmem:[#allocation2 + $0x1c8] sm:$0xf] }
 0x739   :  { %v2604_v51 = vpop.f32.mrf.mxu3  ;;  %11509 = vst [vmem:[#allocation44_spill] sm:$0xff] %v10040_v27  ;;  %v6664_v12 = vld [vmem:[#allocation2 + $0x548] sm:$0xf] }
 0x73a   :  { %4285 = vmatpush.bf16.msrb.mxu0 %v10018_v22  ;;  %v10035_v4 = vpack.c.bf16 %v2604_v51, %v2604_v51  ;;  %4261 = vmatmul.bf16.vlgmr.msra.gmra.mxu2 %v10031_v8  ;;  %v7263_v51 = vld [vmem:[#allocation2 + $0x564] sm:$0xf0]  ;;  %11510 = vst [vmem:[#allocation45_spill] sm:$0xff] %v10045_v37 }
 0x73b   :  { %4298 = vmatpush.bf16.msrb.mxu1 %v10021_v5  ;;  %4357 = vmatpush.bf16.msra.mxu2 %v10026_v41  ;;  %v6920_v22 = vld [vmem:[#allocation2 + $0x748] sm:$0xf]  ;;  %v10052_v41 = vor.u32 %v7215_v57, %v6472_v1  ;;  %v10054_v28 = vor.u32 %v7263_v51, %v6664_v12 }
 0x73c   :  { %4274 = vmatmul.bf16.vlgmr.msra.gmra.mxu3 %v10035_v4  ;;  %v7327_v9 = vld [vmem:[#allocation2 + $0x764] sm:$0xf0] }
 0x73d   :  { %4370 = vmatpush.bf16.msra.mxu3 %v10033_v42  ;;  %11512 = vst [vmem:[#allocation47_spill] sm:$0xff] %v10052_v41  ;;  %v7207_v20 = vld [vmem:[#allocation2 + $0x3a4] sm:$0xf0] }
 0x73e   :  { %4286 = vmatpush.bf16.msrb.mxu0 %v10024_v17  ;;  %v2544_v5 = vpop.f32.mrf.mxu0  ;;  %v10047_v17 = vor.u32 %v7151_v13, %v6216_v33  ;;  %11513 = vst [vmem:[#allocation48_spill] sm:$0xff] %v10054_v28  ;;  %v6632_v45 = vld [vmem:[#allocation2 + $0x508] sm:$0xf]  ;;  %v10060_v13 = vor.u32 %v7327_v9, %v6920_v22 }
 0x73f   :  { %4299 = vmatpush.bf16.msrb.mxu1 %v10029_v19  ;;  %4358 = vmatpush.bf16.msra.mxu2 %v10040_v27  ;;  %v10050_v56 = vpack.c.bf16 %v2544_v5, %v2544_v5  ;;  %v2564_v19 = vpop.f32.mrf.mxu1  ;;  %v7255_v33 = vld [vmem:[#allocation2 + $0x524] sm:$0xf0]  ;;  %v10064_v5 = vor.u32 %v7143_v61, %v6184_v36 }
 0x740   :  { %11511 = vst [vmem:[#allocation46_spill] sm:$0xff] %v10047_v17  ;;  %v10056_v42 = vpack.c.bf16 %v2564_v19, %v2564_v19  ;;  %v6888_v1 = vld [vmem:[#allocation2 + $0x708] sm:$0xf]  ;;  %v10068_v19 = vor.u32 %v7207_v20, %v6440_v58  ;;  %v10070_v12 = vor.u32 %v7255_v33, %v6632_v45 }
 0x741   :  { %4371 = vmatpush.bf16.msra.mxu3 %v10045_v37  ;;  %4235 = vmatmul.bf16.vlgmr.msra.gmra.mxu0 %v10050_v56  ;;  %11514 = vst [vmem:[#allocation49_spill] sm:$0xff] %v10060_v13  ;;  %v7319_v57 = vld [vmem:[#allocation2 + $0x724] sm:$0xf0] }
 0x742   :  { %4248 = vmatmul.bf16.vlgmr.msra.gmra.mxu1 %v10056_v42  ;;  %4331 = vmatpush.bf16.msra.mxu0 %v10047_v17  ;;  %11515 = vst [vmem:[#allocation50_spill] sm:$0xff] %v10064_v5  ;;  %v6152_v51 = vld [vmem:[#allocation2 + $0x148] sm:$0xf]  ;;  %v10073_v36 = vor.u32 %v7319_v57, %v6888_v1 }
 0x743   :  { %4344 = vmatpush.bf16.msra.mxu1 %v10052_v41  ;;  %4359 = vmatpush.bf16.msra.mxu2 %v10054_v28  ;;  %11516 = vst [vmem:[#allocation51_spill] sm:$0xff] %v10068_v19  ;;  %v7135_v37 = vld [vmem:[#allocation2 + $0x164] sm:$0xf0] }
 0x744   :  { %11517 = vst [vmem:[#allocation52_spill] sm:$0xff] %v10070_v12  ;;  %v6408_v22 = vld [vmem:[#allocation2 + $0x348] sm:$0xf]  ;;  %v10076_v61 = vor.u32 %v7135_v37, %v6152_v51 }
 0x745   :  { %v7199_v9 = vld [vmem:[#allocation2 + $0x364] sm:$0xf0]  ;;  %4372 = vmatpush.bf16.msra.mxu3 %v10060_v13  ;;  %11518 = vst [vmem:[#allocation53_spill] sm:$0xff] %v10073_v36 }
 0x746   :  { %v6600_v27 = vld [vmem:[#allocation2 + $0x4c8] sm:$0xf]  ;;  %4332 = vmatpush.bf16.msra.mxu0 %v10064_v5  ;;  %11519 = vst [vmem:[#allocation54_spill] sm:$0xff] %v10076_v61  ;;  %v10080_v58 = vor.u32 %v7199_v9, %v6408_v22 }
 0x747   :  { %v6856_v41 = vld [vmem:[#allocation2 + $0x6c8] sm:$0xf]  ;;  %4345 = vmatpush.bf16.msra.mxu1 %v10068_v19  ;;  %4360 = vmatpush.bf16.msra.mxu2 %v10070_v12  ;;  %v10082_v20 = vor.u32 %v7247_v53, %v6600_v27 }
 0x748   :  { %v7311_v28 = vld [vmem:[#allocation2 + $0x6e4] sm:$0xf0]  ;;  %11520 = vst [vmem:[#allocation55_spill] sm:$0xff] %v10080_v58 }
 0x749   :  { %11521 = vst [vmem:[#allocation56_spill] sm:$0xff] %v10082_v20  ;;  %v6120_v45 = vld [vmem:[#allocation2 + $0x108] sm:$0xf]  ;;  %4373 = vmatpush.bf16.msra.mxu3 %v10073_v36  ;;  %v10085_v37 = vor.u32 %v7311_v28, %v6856_v41 }
 0x74a   :  { %v7127_v33 = vld [vmem:[#allocation2 + $0x124] sm:$0xf0]  ;;  %4313 = vmatmul.bf16.vlgmr.msrb.gmra.mxu2 %v10031_v8  ;;  %4333 = vmatpush.bf16.msra.mxu0 %v10076_v61 }
 0x74b   :  { %v6376_v17 = vld [vmem:[#allocation2 + $0x308] sm:$0xf]  ;;  %11522 = vst [vmem:[#allocation57_spill] sm:$0xff] %v10085_v37  ;;  %v10089_v51 = vor.u32 %v7127_v33, %v6120_v45  ;;  %4346 = vmatpush.bf16.msra.mxu1 %v10080_v58  ;;  %4361 = vmatpush.bf16.msra.mxu2 %v10082_v20 }
 0x74c   :  { %v7191_v13 = vld [vmem:[#allocation2 + $0x324] sm:$0xf0]  ;;  %4326 = vmatmul.bf16.vlgmr.msrb.gmra.mxu3 %v10035_v4 }
 0x74d   :  { %v6568_v1 = vld [vmem:[#allocation2 + $0x488] sm:$0xf]  ;;  %11523 = vst [vmem:[#allocation58_spill] sm:$0xff] %v10089_v51  ;;  %v10093_v53 = vor.u32 %v7191_v13, %v6376_v17  ;;  %4374 = vmatpush.bf16.msra.mxu3 %v10085_v37 }
 0x74e   :  { %v7239_v57 = vld [vmem:[#allocation2 + $0x4a4] sm:$0xf0]  ;;  %4334 = vmatpush.bf16.msra.mxu0 %v10089_v51 }
 0x74f   :  { %v6824_v22 = vld [vmem:[#allocation2 + $0x688] sm:$0xf]  ;;  %11524 = vst [vmem:[#allocation59_spill] sm:$0xff] %v10093_v53  ;;  %v10095_v27 = vor.u32 %v7239_v57, %v6568_v1  ;;  %4347 = vmatpush.bf16.msra.mxu1 %v10093_v53  ;;  %v6730_v53 = vld [vmem:[#allocation2 + $0x5e8] sm:$0xf0] }
 0x750   :  { %v7303_v9 = vld [vmem:[#allocation2 + $0x6a4] sm:$0xf0] }
 0x751   :  { %11525 = vst [vmem:[#allocation60_spill] sm:$0xff] %v10095_v27  ;;  %v6088_v12 = vld [vmem:[#allocation2 + $0xc8] sm:$0xf]  ;;  %v10099_v45 = vor.u32 %v7303_v9, %v6824_v22  ;;  %4362 = vmatpush.bf16.msra.mxu2 %v10095_v27  ;;  %4287 = vmatmul.bf16.vlgmr.msrb.gmra.mxu0 %v10050_v56 }
 0x752   :  { %v7119_v36 = vld [vmem:[#allocation2 + $0xe4] sm:$0xf0]  ;;  %4300 = vmatmul.bf16.vlgmr.msrb.gmra.mxu1 %v10056_v42 }
 0x753   :  { %v6344_v28 = vld [vmem:[#allocation2 + $0x2c8] sm:$0xf]  ;;  %11526 = vst [vmem:[#allocation61_spill] sm:$0xff] %v10099_v45  ;;  %v10102_v33 = vor.u32 %v7119_v36, %v6088_v12  ;;  %4375 = vmatpush.bf16.msra.mxu3 %v10099_v45  ;;  %v7275_v36 = vld [vmem:[#allocation2 + $0x5cc] sm:$0xf] }
 0x754   :  { %v7183_v41 = vld [vmem:[#allocation2 + $0x2e4] sm:$0xf0]  ;;  %v10124_v60 = vor.u32 %v7275_v36, %v6730_v53 }
 0x755   :  { %v6536_v19 = vld [vmem:[#allocation2 + $0x448] sm:$0xf]  ;;  %11527 = vst [vmem:[#allocation62_spill] sm:$0xff] %v10102_v33  ;;  %v10106_v1 = vor.u32 %v7183_v41, %v6344_v28  ;;  %4335 = vmatpush.bf16.msra.mxu0 %v10102_v33  ;;  %v7339_v41 = vld [vmem:[#allocation2 + $0x7cc] sm:$0xf] }
 0x756   :  { %v7231_v61 = vld [vmem:[#allocation2 + $0x464] sm:$0xf0]  ;;  %11534 = vst [vmem:[#allocation69_spill] sm:$0xff] %v10124_v60 }
 0x757   :  { %v6792_v17 = vld [vmem:[#allocation2 + $0x648] sm:$0xf]  ;;  %11528 = vst [vmem:[#allocation63_spill] sm:$0xff] %v10106_v1  ;;  %v10108_v57 = vor.u32 %v7231_v61, %v6536_v19  ;;  %4348 = vmatpush.bf16.msra.mxu1 %v10106_v1  ;;  %v6666_v1 = vld [vmem:[#allocation2 + $0x568] sm:$0xf0] }
 0x758   :  { %v7295_v13 = vld [vmem:[#allocation2 + $0x664] sm:$0xf0] }
 0x759   :  { %11529 = vst [vmem:[#allocation64_spill] sm:$0xff] %v10108_v57  ;;  %v6056_v20 = vld [vmem:[#allocation2 + $0x88] sm:$0xf]  ;;  %v10112_v12 = vor.u32 %v7295_v13, %v6792_v17  ;;  %4363 = vmatpush.bf16.msra.mxu2 %v10108_v57  ;;  %v6986_v17 = vld [vmem:[#allocation2 + $0x7e8] sm:$0xf0] }
 0x75a   :  { %v7111_v58 = vld [vmem:[#allocation2 + $0xa4] sm:$0xf0]  ;;  %v10130_v57 = vor.u32 %v7339_v41, %v6986_v17  ;;  %v7147_v41 = vld [vmem:[#allocation2 + $0x1cc] sm:$0xf] }
 0x75b   :  { %v6312_v5 = vld [vmem:[#allocation2 + $0x288] sm:$0xf]  ;;  %11530 = vst [vmem:[#allocation65_spill] sm:$0xff] %v10112_v12  ;;  %v10116_v19 = vor.u32 %v7111_v58, %v6056_v20  ;;  %4376 = vmatpush.bf16.msra.mxu3 %v10112_v12  ;;  %v7267_v20 = vld [vmem:[#allocation2 + $0x58c] sm:$0xf] }
 0x75c   :  { %v7175_v37 = vld [vmem:[#allocation2 + $0x2a4] sm:$0xf0]  ;;  %11536 = vst [vmem:[#allocation71_spill] sm:$0xff] %v10130_v57  ;;  %v10139_v12 = vor.u32 %v7267_v20, %v6698_v48  ;;  %v6218_v17 = vld [vmem:[#allocation2 + $0x1e8] sm:$0xf0] }
 0x75d   :  { %v6504_v22 = vld [vmem:[#allocation2 + $0x408] sm:$0xf]  ;;  %11531 = vst [vmem:[#allocation66_spill] sm:$0xff] %v10116_v19  ;;  %v10120_v45 = vor.u32 %v7175_v37, %v6312_v5  ;;  %4336 = vmatpush.bf16.msra.mxu0 %v10116_v19  ;;  %v7331_v37 = vld [vmem:[#allocation2 + $0x78c] sm:$0xf]  ;;  %v10152_v20 = vor.u32 %v7147_v41, %v6218_v17 }
 0x75e   :  { %v7223_v9 = vld [vmem:[#allocation2 + $0x424] sm:$0xf0]  ;;  %11539 = vst [vmem:[#allocation74_spill] sm:$0xff] %v10139_v12  ;;  %v7259_v19 = vld [vmem:[#allocation2 + $0x54c] sm:$0xf] }
 0x75f   :  { %v6760_v61 = vld [vmem:[#allocation2 + $0x608] sm:$0xf]  ;;  %11532 = vst [vmem:[#allocation67_spill] sm:$0xff] %v10120_v45  ;;  %v10122_v27 = vor.u32 %v7223_v9, %v6504_v22  ;;  %v6954_v22 = vld [vmem:[#allocation2 + $0x7a8] sm:$0xf0]  ;;  %4349 = vmatpush.bf16.msra.mxu1 %v10120_v45 }
 0x760   :  { %v7287_v28 = vld [vmem:[#allocation2 + $0x624] sm:$0xf0]  ;;  %11543 = vst [vmem:[#allocation78_spill] sm:$0xff] %v10152_v20  ;;  %v6168_v45 = vld [vmem:[#allocation2 + $0x158] sm:$0xf] }
 0x761   :  { %11533 = vst [vmem:[#allocation68_spill] sm:$0xff] %v10122_v27  ;;  %v6024_v13 = vld [vmem:[#allocation2 + $0x48] sm:$0xf]  ;;  %v10127_v58 = vor.u32 %v7287_v28, %v6760_v61  ;;  %4364 = vmatpush.bf16.msra.mxu2 %v10122_v27  ;;  %v6634_v27 = vld [vmem:[#allocation2 + $0x528] sm:$0xf0] }
 0x762   :  { %v7103_v51 = vld [vmem:[#allocation2 + $0x64] sm:$0xf0] }
 0x763   :  { %v7167_v33 = vld [vmem:[#allocation2 + $0x264] sm:$0xf0]  ;;  %11535 = vst [vmem:[#allocation70_spill] sm:$0xff] %v10127_v58  ;;  %v10132_v5 = vor.u32 %v7103_v51, %v6024_v13  ;;  %v7211_v51 = vld [vmem:[#allocation2 + $0x3cc] sm:$0xf]  ;;  %4377 = vmatpush.bf16.msra.mxu3 %v10127_v58 }
 0x764   :  { %v5992_v9 = vld [vmem:[#allocation2 + $0x8] sm:$0xf]  ;;  %v10136_v53 = vor.u32 %v7167_v33, %v6280_v14  ;;  %v6474_v13 = vld [vmem:[#allocation2 + $0x3e8] sm:$0xf0]  ;;  %v10144_v14 = vor.u32 %v7331_v37, %v6954_v22  ;;  %4365 = vmatmul.bf16.vlgmr.msra.gmra.mxu2 %v10031_v8  ;;  %v10158_v37 = vor.u32 %v7259_v19, %v6666_v1 }
 0x765   :  { %11537 = vst [vmem:[#allocation72_spill] sm:$0xff] %v10132_v5  ;;  %v7095_v36 = vld [vmem:[#allocation2 + $0x24] sm:$0xf0]  ;;  %4409 = vmatpush.bf16.msrb.mxu2 %v10124_v60  ;;  %4337 = vmatpush.bf16.msra.mxu0 %v10132_v5  ;;  %v7323_v58 = vld [vmem:[#allocation2 + $0x74c] sm:$0xf] }
 0x766   :  { %11538 = vst [vmem:[#allocation73_spill] sm:$0xff] %v10136_v53  ;;  %v6248_v61 = vld [vmem:[#allocation2 + $0x208] sm:$0xf]  ;;  %v10146_v33 = vor.u32 %v7095_v36, %v5992_v9  ;;  %4350 = vmatpush.bf16.msra.mxu1 %v10136_v53  ;;  %v6922_v60 = vld [vmem:[#allocation2 + $0x768] sm:$0xf0]  ;;  %4378 = vmatmul.bf16.vlgmr.msra.gmra.mxu3 %v10035_v4 }
 0x767   :  { %v7159_v28 = vld [vmem:[#allocation2 + $0x224] sm:$0xf0]  ;;  %4422 = vmatpush.bf16.msrb.mxu3 %v10130_v57  ;;  %11540 = vst [vmem:[#allocation75_spill] sm:$0xff] %v10144_v14  ;;  %v10156_v57 = vor.u32 %v7211_v51, %v6474_v13  ;;  %v7139_v22 = vld [vmem:[#allocation2 + $0x18c] sm:$0xf] }
 0x768   :  { %11541 = vst [vmem:[#allocation76_spill] sm:$0xff] %v10146_v33  ;;  %v10150_v48 = vor.u32 %v7159_v28, %v6248_v61  ;;  %v6186_v9 = vld [vmem:[#allocation2 + $0x1a8] sm:$0xf0]  ;;  %v10162_v61 = vor.u32 %v7323_v58, %v6922_v60 }
 0x769   :  { %4410 = vmatpush.bf16.msrb.mxu2 %v10139_v12  ;;  %11544 = vst [vmem:[#allocation79_spill] sm:$0xff] %v10156_v57  ;;  %v7203_v36 = vld [vmem:[#allocation2 + $0x38c] sm:$0xf]  ;;  %4338 = vmatpush.bf16.msra.mxu0 %v10146_v33  ;;  %v10166_v28 = vor.u32 %v7139_v22, %v6186_v9 }
 0x76a   :  { %11542 = vst [vmem:[#allocation77_spill] sm:$0xff] %v10150_v48  ;;  %v6442_v53 = vld [vmem:[#allocation2 + $0x3a8] sm:$0xf0]  ;;  %4351 = vmatpush.bf16.msra.mxu1 %v10150_v48 }
 0x76b   :  { %11545 = vst [vmem:[#allocation80_spill] sm:$0xff] %v10158_v37  ;;  %v7251_v5 = vld [vmem:[#allocation2 + $0x50c] sm:$0xf]  ;;  %4423 = vmatpush.bf16.msrb.mxu3 %v10144_v14  ;;  %v10170_v41 = vor.u32 %v7203_v36, %v6442_v53 }
 0x76c   :  { %11546 = vst [vmem:[#allocation81_spill] sm:$0xff] %v10162_v61  ;;  %v7315_v1 = vld [vmem:[#allocation2 + $0x70c] sm:$0xf]  ;;  %v10172_v17 = vor.u32 %v7251_v5, %v6634_v27  ;;  %4339 = vmatmul.bf16.vlgmr.msra.gmra.mxu0 %v10050_v56 }
 0x76d   :  { %4383 = vmatpush.bf16.msrb.mxu0 %v10152_v20  ;;  %11547 = vst [vmem:[#allocation82_spill] sm:$0xff] %v10166_v28  ;;  %v6890_v19 = vld [vmem:[#allocation2 + $0x728] sm:$0xf0]  ;;  %4411 = vmatpush.bf16.msrb.mxu2 %v10158_v37 }
 0x76e   :  { %4396 = vmatpush.bf16.msrb.mxu1 %v10156_v57  ;;  %11548 = vst [vmem:[#allocation83_spill] sm:$0xff] %v10170_v41  ;;  %v7131_v51 = vld [vmem:[#allocation2 + $0x14c] sm:$0xf]  ;;  %v10177_v22 = vor.u32 %v7315_v1, %v6890_v19 }
 0x76f   :  { %11549 = vst [vmem:[#allocation84_spill] sm:$0xff] %v10172_v17  ;;  %v6154_v13 = vld [vmem:[#allocation2 + $0x168] sm:$0xf0]  ;;  %4424 = vmatpush.bf16.msrb.mxu3 %v10162_v61  ;;  %4352 = vmatmul.bf16.vlgmr.msra.gmra.mxu1 %v10056_v42 }
 0x770   :  { %v7195_v60 = vld [vmem:[#allocation2 + $0x34c] sm:$0xf]  ;;  %11550 = vst [vmem:[#allocation85_spill] sm:$0xff] %v10177_v22  ;;  %v10180_v53 = vor.u32 %v7131_v51, %v6154_v13 }
 0x771   :  { %v6410_v58 = vld [vmem:[#allocation2 + $0x368] sm:$0xf0]  ;;  %4384 = vmatpush.bf16.msrb.mxu0 %v10166_v28  ;;  %4412 = vmatpush.bf16.msrb.mxu2 %v10172_v17 }
 0x772   :  { %v7243_v48 = vld [vmem:[#allocation2 + $0x4cc] sm:$0xf]  ;;  %11551 = vst [vmem:[#allocation86_spill] sm:$0xff] %v10180_v53  ;;  %4397 = vmatpush.bf16.msrb.mxu1 %v10170_v41  ;;  %v10184_v9 = vor.u32 %v7195_v60, %v6410_v58 }
 0x773   :  { %v6602_v20 = vld [vmem:[#allocation2 + $0x4e8] sm:$0xf0]  ;;  %4425 = vmatpush.bf16.msrb.mxu3 %v10177_v22 }
 0x774   :  { %v7307_v27 = vld [vmem:[#allocation2 + $0x6cc] sm:$0xf]  ;;  %11552 = vst [vmem:[#allocation87_spill] sm:$0xff] %v10184_v9  ;;  %v10186_v36 = vor.u32 %v7243_v48, %v6602_v20 }
 0x775   :  { %v6858_v5 = vld [vmem:[#allocation2 + $0x6e8] sm:$0xf0]  ;;  %4385 = vmatpush.bf16.msrb.mxu0 %v10180_v53 }
 0x776   :  { %11553 = vst [vmem:[#allocation88_spill] sm:$0xff] %v10186_v36  ;;  %v7123_v37 = vld [vmem:[#allocation2 + $0x10c] sm:$0xf]  ;;  %v10189_v51 = vor.u32 %v7307_v27, %v6858_v5  ;;  %4398 = vmatpush.bf16.msrb.mxu1 %v10184_v9  ;;  %4413 = vmatpush.bf16.msrb.mxu2 %v10186_v36 }
 0x777   :  { %v6122_v61 = vld [vmem:[#allocation2 + $0x128] sm:$0xf0] }
 0x778   :  { %v7187_v57 = vld [vmem:[#allocation2 + $0x30c] sm:$0xf]  ;;  %11554 = vst [vmem:[#allocation89_spill] sm:$0xff] %v10189_v51  ;;  %v10192_v13 = vor.u32 %v7123_v37, %v6122_v61  ;;  %4426 = vmatpush.bf16.msrb.mxu3 %v10189_v51 }
 0x779   :  { %v6378_v33 = vld [vmem:[#allocation2 + $0x328] sm:$0xf0] }
 0x77a   :  { %v7235_v1 = vld [vmem:[#allocation2 + $0x48c] sm:$0xf]  ;;  %11555 = vst [vmem:[#allocation90_spill] sm:$0xff] %v10192_v13  ;;  %v10196_v48 = vor.u32 %v7187_v57, %v6378_v33  ;;  %4386 = vmatpush.bf16.msrb.mxu0 %v10192_v13  ;;  %v7280_v13 = vld [vmem:[#allocation2 + $0x5ec] sm:$0xf0] }
 0x77b   :  { %v6570_v19 = vld [vmem:[#allocation2 + $0x4a8] sm:$0xf0] }
 0x77c   :  { %v7299_v41 = vld [vmem:[#allocation2 + $0x68c] sm:$0xf]  ;;  %11556 = vst [vmem:[#allocation91_spill] sm:$0xff] %v10196_v48  ;;  %v10198_v20 = vor.u32 %v7235_v1, %v6570_v19  ;;  %4399 = vmatpush.bf16.msrb.mxu1 %v10196_v48 }
 0x77d   :  { %v6826_v17 = vld [vmem:[#allocation2 + $0x6a8] sm:$0xf0] }
 0x77e   :  { %11557 = vst [vmem:[#allocation92_spill] sm:$0xff] %v10198_v20  ;;  %v7115_v60 = vld [vmem:[#allocation2 + $0xcc] sm:$0xf]  ;;  %v10201_v37 = vor.u32 %v7299_v41, %v6826_v17  ;;  %4414 = vmatpush.bf16.msrb.mxu2 %v10198_v20  ;;  %v6992_v20 = vld [vmem:[#allocation2 + $0x7d0] sm:$0xf] }
 0x77f   :  { %v6090_v58 = vld [vmem:[#allocation2 + $0xe8] sm:$0xf0] }
 0x780   :  { %v7179_v28 = vld [vmem:[#allocation2 + $0x2cc] sm:$0xf]  ;;  %11558 = vst [vmem:[#allocation93_spill] sm:$0xff] %v10201_v37  ;;  %v10204_v61 = vor.u32 %v7115_v60, %v6090_v58  ;;  %4427 = vmatpush.bf16.msrb.mxu3 %v10201_v37  ;;  %v6736_v58 = vld [vmem:[#allocation2 + $0x5d0] sm:$0xf] }
 0x781   :  { %v6346_v22 = vld [vmem:[#allocation2 + $0x2e8] sm:$0xf0]  ;;  %v7344_v37 = vld [vmem:[#allocation2 + $0x7ec] sm:$0xf0] }
 0x782   :  { %v7227_v27 = vld [vmem:[#allocation2 + $0x44c] sm:$0xf]  ;;  %11559 = vst [vmem:[#allocation94_spill] sm:$0xff] %v10204_v61  ;;  %v10208_v57 = vor.u32 %v7179_v28, %v6346_v22  ;;  %4387 = vmatpush.bf16.msrb.mxu0 %v10204_v61 }
 0x783   :  { %v6538_v5 = vld [vmem:[#allocation2 + $0x468] sm:$0xf0] }
 0x784   :  { %v7291_v9 = vld [vmem:[#allocation2 + $0x64c] sm:$0xf]  ;;  %11560 = vst [vmem:[#allocation95_spill] sm:$0xff] %v10208_v57  ;;  %v10210_v33 = vor.u32 %v7227_v27, %v6538_v5  ;;  %4400 = vmatpush.bf16.msrb.mxu1 %v10208_v57  ;;  %v7272_v57 = vld [vmem:[#allocation2 + $0x5ac] sm:$0xf0] }
 0x785   :  { %v6794_v36 = vld [vmem:[#allocation2 + $0x668] sm:$0xf0] }
 0x786   :  { %11561 = vst [vmem:[#allocation96_spill] sm:$0xff] %v10210_v33  ;;  %v7107_v1 = vld [vmem:[#allocation2 + $0x8c] sm:$0xf]  ;;  %v10213_v60 = vor.u32 %v7291_v9, %v6794_v36  ;;  %4415 = vmatpush.bf16.msrb.mxu2 %v10210_v33  ;;  %v10224_v36 = vor.u32 %v7280_v13, %v6736_v58  ;;  %v7216_v33 = vld [vmem:[#allocation2 + $0x3ec] sm:$0xf0] }
 0x787   :  { %v6058_v19 = vld [vmem:[#allocation2 + $0xa8] sm:$0xf0] }
 0x788   :  { %v7171_v53 = vld [vmem:[#allocation2 + $0x28c] sm:$0xf]  ;;  %11562 = vst [vmem:[#allocation97_spill] sm:$0xff] %v10213_v60  ;;  %v10216_v48 = vor.u32 %v7107_v1, %v6058_v19  ;;  %4428 = vmatpush.bf16.msrb.mxu3 %v10213_v60  ;;  %v6704_v19 = vld [vmem:[#allocation2 + $0x590] sm:$0xf] }
 0x789   :  { %v6314_v51 = vld [vmem:[#allocation2 + $0x2a8] sm:$0xf0]  ;;  %11566 = vst [vmem:[#allocation101_spill] sm:$0xff] %v10224_v36 }
 0x78a   :  { %v7219_v41 = vld [vmem:[#allocation2 + $0x40c] sm:$0xf]  ;;  %11563 = vst [vmem:[#allocation98_spill] sm:$0xff] %v10216_v48  ;;  %v10220_v27 = vor.u32 %v7171_v53, %v6314_v51  ;;  %4388 = vmatpush.bf16.msrb.mxu0 %v10216_v48  ;;  %v10230_v53 = vor.u32 %v7344_v37, %v6992_v20  ;;  %v6960_v51 = vld [vmem:[#allocation2 + $0x790] sm:$0xf] }
 0x78b   :  { %v6506_v17 = vld [vmem:[#allocation2 + $0x428] sm:$0xf0]  ;;  %v6224_v20 = vld [vmem:[#allocation2 + $0x1d0] sm:$0xf] }
 0x78c   :  { %v7283_v28 = vld [vmem:[#allocation2 + $0x60c] sm:$0xf]  ;;  %11564 = vst [vmem:[#allocation99_spill] sm:$0xff] %v10220_v27  ;;  %v10222_v5 = vor.u32 %v7219_v41, %v6506_v17  ;;  %4401 = vmatpush.bf16.msrb.mxu1 %v10220_v27  ;;  %v7336_v17 = vld [vmem:[#allocation2 + $0x7ac] sm:$0xf0] }
 0x78d   :  { %v6762_v22 = vld [vmem:[#allocation2 + $0x628] sm:$0xf0]  ;;  %11568 = vst [vmem:[#allocation103_spill] sm:$0xff] %v10230_v53  ;;  %v7152_v37 = vld [vmem:[#allocation2 + $0x1ec] sm:$0xf0] }
 0x78e   :  { %11565 = vst [vmem:[#allocation100_spill] sm:$0xff] %v10222_v5  ;;  %v7099_v9 = vld [vmem:[#allocation2 + $0x4c] sm:$0xf]  ;;  %v10227_v1 = vor.u32 %v7283_v28, %v6762_v22  ;;  %4416 = vmatpush.bf16.msrb.mxu2 %v10222_v5  ;;  %v10239_v28 = vor.u32 %v7272_v57, %v6704_v19  ;;  %v6480_v27 = vld [vmem:[#allocation2 + $0x3d0] sm:$0xf]  ;;  %v10254_v19 = vor.u32 %v7152_v37, %v6224_v20 }
 0x78f   :  { %v6026_v14 = vld [vmem:[#allocation2 + $0x68] sm:$0xf0]  ;;  %v6448_v5 = vld [vmem:[#allocation2 + $0x390] sm:$0xf] }
 0x790   :  { %v7163_v12 = vld [vmem:[#allocation2 + $0x24c] sm:$0xf]  ;;  %11567 = vst [vmem:[#allocation102_spill] sm:$0xff] %v10227_v1  ;;  %v10234_v13 = vor.u32 %v7099_v9, %v6026_v14  ;;  %4429 = vmatpush.bf16.msrb.mxu3 %v10227_v1  ;;  %v6672_v14 = vld [vmem:[#allocation2 + $0x550] sm:$0xf]  ;;  %v10256_v1 = vor.u32 %v7216_v33, %v6480_v27 }
 0x791   :  { %v6282_v61 = vld [vmem:[#allocation2 + $0x268] sm:$0xf0]  ;;  %11571 = vst [vmem:[#allocation106_spill] sm:$0xff] %v10239_v28  ;;  %4417 = vmatmul.bf16.vlgmr.msrb.gmra.mxu2 %v10031_v8  ;;  %v7320_v20 = vld [vmem:[#allocation2 + $0x72c] sm:$0xf0] }
 0x792   :  { %11569 = vst [vmem:[#allocation104_spill] sm:$0xff] %v10234_v13  ;;  %v10236_v41 = vor.u32 %v7163_v12, %v6282_v61  ;;  %v7091_v58 = vld [vmem:[#allocation2 + $0xc] sm:$0xf]  ;;  %4461 = vmatpush.bf16.msra.mxu2 %v10224_v36  ;;  %v10244_v12 = vor.u32 %v7336_v17, %v6960_v51  ;;  %v7264_v61 = vld [vmem:[#allocation2 + $0x56c] sm:$0xf0]  ;;  %4389 = vmatpush.bf16.msrb.mxu0 %v10234_v13 }
 0x793   :  { %v5994_v60 = vld [vmem:[#allocation2 + $0x28] sm:$0xf0]  ;;  %4430 = vmatmul.bf16.vlgmr.msrb.gmra.mxu3 %v10035_v4  ;;  %11575 = vst [vmem:[#allocation110_spill] sm:$0xff] %v10254_v19  ;;  %v6928_v51 = vld [vmem:[#allocation2 + $0x750] sm:$0xf]  ;;  %v10258_v36 = vor.u32 %v7264_v61, %v6672_v14 }
 0x794   :  { %11570 = vst [vmem:[#allocation105_spill] sm:$0xff] %v10236_v41  ;;  %v7155_v22 = vld [vmem:[#allocation2 + $0x20c] sm:$0xf]  ;;  %4474 = vmatpush.bf16.msra.mxu3 %v10230_v53  ;;  %4402 = vmatpush.bf16.msrb.mxu1 %v10236_v41  ;;  %v10248_v57 = vor.u32 %v7091_v58, %v5994_v60  ;;  %v7328_v17 = vld [vmem:[#allocation2 + $0x76c] sm:$0xf0] }
 0x795   :  { %v6250_v48 = vld [vmem:[#allocation2 + $0x228] sm:$0xf0]  ;;  %11572 = vst [vmem:[#allocation107_spill] sm:$0xff] %v10244_v12  ;;  %v6192_v53 = vld [vmem:[#allocation2 + $0x190] sm:$0xf]  ;;  %v10263_v58 = vor.u32 %v7328_v17, %v6928_v51 }
 0x796   :  { %11573 = vst [vmem:[#allocation108_spill] sm:$0xff] %v10248_v57  ;;  %v10250_v9 = vor.u32 %v7155_v22, %v6250_v48  ;;  %4462 = vmatpush.bf16.msra.mxu2 %v10239_v28  ;;  %v7144_v13 = vld [vmem:[#allocation2 + $0x1ac] sm:$0xf0]  ;;  %4390 = vmatpush.bf16.msrb.mxu0 %v10248_v57 }
 0x797   :  { %11576 = vst [vmem:[#allocation111_spill] sm:$0xff] %v10256_v1  ;;  %v7208_v41 = vld [vmem:[#allocation2 + $0x3ac] sm:$0xf0]  ;;  %v10267_v33 = vor.u32 %v7144_v13, %v6192_v53 }
 0x798   :  { %11574 = vst [vmem:[#allocation109_spill] sm:$0xff] %v10250_v9  ;;  %4475 = vmatpush.bf16.msra.mxu3 %v10244_v12  ;;  %v6640_v48 = vld [vmem:[#allocation2 + $0x510] sm:$0xf]  ;;  %4403 = vmatpush.bf16.msrb.mxu1 %v10250_v9  ;;  %v10269_v27 = vor.u32 %v7208_v41, %v6448_v5 }
 0x799   :  { %11577 = vst [vmem:[#allocation112_spill] sm:$0xff] %v10258_v36  ;;  %v7256_v60 = vld [vmem:[#allocation2 + $0x52c] sm:$0xf0]  ;;  %4391 = vmatmul.bf16.vlgmr.msrb.gmra.mxu0 %v10050_v56 }
 0x79a   :  { %11578 = vst [vmem:[#allocation113_spill] sm:$0xff] %v10263_v58  ;;  %4435 = vmatpush.bf16.msra.mxu0 %v10254_v19  ;;  %v6896_v22 = vld [vmem:[#allocation2 + $0x710] sm:$0xf]  ;;  %4463 = vmatpush.bf16.msra.mxu2 %v10258_v36  ;;  %v10272_v14 = vor.u32 %v7256_v60, %v6640_v48 }
 0x79b   :  { %11579 = vst [vmem:[#allocation114_spill] sm:$0xff] %v10267_v33  ;;  %v6160_v37 = vld [vmem:[#allocation2 + $0x150] sm:$0xf]  ;;  %4404 = vmatmul.bf16.vlgmr.msrb.gmra.mxu1 %v10056_v42  ;;  %v10277_v5 = vor.u32 %v7320_v20, %v6896_v22 }
 0x79c   :  { %4448 = vmatpush.bf16.msra.mxu1 %v10256_v1  ;;  %11580 = vst [vmem:[#allocation115_spill] sm:$0xff] %v10269_v27  ;;  %v7136_v61 = vld [vmem:[#allocation2 + $0x16c] sm:$0xf0]  ;;  %4476 = vmatpush.bf16.msra.mxu3 %v10263_v58 }
 0x79d   :  { %11581 = vst [vmem:[#allocation116_spill] sm:$0xff] %v10272_v14  ;;  %v6416_v57 = vld [vmem:[#allocation2 + $0x350] sm:$0xf]  ;;  %v10281_v53 = vor.u32 %v7136_v61, %v6160_v37 }
 0x79e   :  { %v7200_v9 = vld [vmem:[#allocation2 + $0x36c] sm:$0xf0]  ;;  %11582 = vst [vmem:[#allocation117_spill] sm:$0xff] %v10277_v5  ;;  %4436 = vmatpush.bf16.msra.mxu0 %v10267_v33  ;;  %4464 = vmatpush.bf16.msra.mxu2 %v10272_v14 }
 0x79f   :  { %v6608_v51 = vld [vmem:[#allocation2 + $0x4d0] sm:$0xf]  ;;  %11583 = vst [vmem:[#allocation118_spill] sm:$0xff] %v10281_v53  ;;  %v10283_v13 = vor.u32 %v7200_v9, %v6416_v57 }
 0x7a0   :  { %v7248_v17 = vld [vmem:[#allocation2 + $0x4ec] sm:$0xf0]  ;;  %4449 = vmatpush.bf16.msra.mxu1 %v10269_v27  ;;  %4477 = vmatpush.bf16.msra.mxu3 %v10277_v5 }
 0x7a1   :  { %11584 = vst [vmem:[#allocation119_spill] sm:$0xff] %v10283_v13  ;;  %v6864_v41 = vld [vmem:[#allocation2 + $0x6d0] sm:$0xf]  ;;  %v10286_v36 = vor.u32 %v7248_v17, %v6608_v51 }
 0x7a2   :  { %v7312_v48 = vld [vmem:[#allocation2 + $0x6ec] sm:$0xf0]  ;;  %4437 = vmatpush.bf16.msra.mxu0 %v10281_v53 }
 0x7a3   :  { %v6128_v60 = vld [vmem:[#allocation2 + $0x110] sm:$0xf]  ;;  %11585 = vst [vmem:[#allocation120_spill] sm:$0xff] %v10286_v36  ;;  %v10289_v33 = vor.u32 %v7312_v48, %v6864_v41  ;;  %4465 = vmatpush.bf16.msra.mxu2 %v10286_v36 }
 0x7a4   :  { %v7128_v1 = vld [vmem:[#allocation2 + $0x12c] sm:$0xf0]  ;;  %4450 = vmatpush.bf16.msra.mxu1 %v10283_v13 }
 0x7a5   :  { %v6384_v19 = vld [vmem:[#allocation2 + $0x310] sm:$0xf]  ;;  %11586 = vst [vmem:[#allocation121_spill] sm:$0xff] %v10289_v33  ;;  %v10293_v57 = vor.u32 %v7128_v1, %v6128_v60  ;;  %4478 = vmatpush.bf16.msra.mxu3 %v10289_v33 }
 0x7a6   :  { %v7192_v58 = vld [vmem:[#allocation2 + $0x32c] sm:$0xf0] }
 0x7a7   :  { %v6576_v22 = vld [vmem:[#allocation2 + $0x490] sm:$0xf]  ;;  %11587 = vst [vmem:[#allocation122_spill] sm:$0xff] %v10293_v57  ;;  %v10295_v9 = vor.u32 %v7192_v58, %v6384_v19  ;;  %4438 = vmatpush.bf16.msra.mxu0 %v10293_v57 }
 0x7a8   :  { %v7240_v20 = vld [vmem:[#allocation2 + $0x4ac] sm:$0xf0] }
 0x7a9   :  { %11588 = vst [vmem:[#allocation123_spill] sm:$0xff] %v10295_v9  ;;  %v6832_v37 = vld [vmem:[#allocation2 + $0x690] sm:$0xf]  ;;  %v10298_v17 = vor.u32 %v7240_v20, %v6576_v22  ;;  %4451 = vmatpush.bf16.msra.mxu1 %v10295_v9  ;;  %v7340_v9 = vld [vmem:[#allocation2 + $0x7d4] sm:$0xf] }
 0x7aa   :  { %v7304_v61 = vld [vmem:[#allocation2 + $0x6ac] sm:$0xf0] }
 0x7ab   :  { %v6096_v51 = vld [vmem:[#allocation2 + $0xd0] sm:$0xf]  ;;  %11589 = vst [vmem:[#allocation124_spill] sm:$0xff] %v10298_v17  ;;  %v10301_v53 = vor.u32 %v7304_v61, %v6832_v37  ;;  %4466 = vmatpush.bf16.msra.mxu2 %v10298_v17 }
 0x7ac   :  { %v7120_v14 = vld [vmem:[#allocation2 + $0xec] sm:$0xf0] }
 0x7ad   :  { %v6352_v27 = vld [vmem:[#allocation2 + $0x2d0] sm:$0xf]  ;;  %11590 = vst [vmem:[#allocation125_spill] sm:$0xff] %v10301_v53  ;;  %v10305_v1 = vor.u32 %v7120_v14, %v6096_v51  ;;  %4479 = vmatpush.bf16.msra.mxu3 %v10301_v53  ;;  %v7276_v14 = vld [vmem:[#allocation2 + $0x5d4] sm:$0xf] }
 0x7ae   :  { %v7184_v5 = vld [vmem:[#allocation2 + $0x2ec] sm:$0xf0]  ;;  %v6738_v51 = vld [vmem:[#allocation2 + $0x5f0] sm:$0xf0] }
 0x7af   :  { %v6544_v41 = vld [vmem:[#allocation2 + $0x450] sm:$0xf]  ;;  %11591 = vst [vmem:[#allocation126_spill] sm:$0xff] %v10305_v1  ;;  %v10307_v19 = vor.u32 %v7184_v5, %v6352_v27  ;;  %4439 = vmatpush.bf16.msra.mxu0 %v10305_v1  ;;  %v6994_v53 = vld [vmem:[#allocation2 + $0x7f0] sm:$0xf0] }
 0x7b0   :  { %v7232_v48 = vld [vmem:[#allocation2 + $0x46c] sm:$0xf0] }
 0x7b1   :  { %11592 = vst [vmem:[#allocation127_spill] sm:$0xff] %v10307_v19  ;;  %v6800_v58 = vld [vmem:[#allocation2 + $0x650] sm:$0xf]  ;;  %v10310_v20 = vor.u32 %v7232_v48, %v6544_v41  ;;  %4452 = vmatpush.bf16.msra.mxu1 %v10307_v19  ;;  %v7148_v19 = vld [vmem:[#allocation2 + $0x1d4] sm:$0xf] }
 0x7b2   :  { %v7296_v60 = vld [vmem:[#allocation2 + $0x66c] sm:$0xf0] }
 0x7b3   :  { %v6064_v22 = vld [vmem:[#allocation2 + $0x90] sm:$0xf]  ;;  %11593 = vst [vmem:[#allocation128_spill] sm:$0xff] %v10310_v20  ;;  %v10313_v57 = vor.u32 %v7296_v60, %v6800_v58  ;;  %4467 = vmatpush.bf16.msra.mxu2 %v10310_v20  ;;  %v10324_v60 = vor.u32 %v7276_v14, %v6738_v51  ;;  %v6962_v51 = vld [vmem:[#allocation2 + $0x7b0] sm:$0xf0] }
 0x7b4   :  { %v7112_v36 = vld [vmem:[#allocation2 + $0xac] sm:$0xf0] }
 0x7b5   :  { %v6320_v13 = vld [vmem:[#allocation2 + $0x290] sm:$0xf]  ;;  %11594 = vst [vmem:[#allocation129_spill] sm:$0xff] %v10313_v57  ;;  %v10317_v27 = vor.u32 %v7112_v36, %v6064_v22  ;;  %4480 = vmatpush.bf16.msra.mxu3 %v10313_v57  ;;  %v10331_v22 = vor.u32 %v7340_v9, %v6994_v53  ;;  %v6226_v53 = vld [vmem:[#allocation2 + $0x1f0] sm:$0xf0] }
 0x7b6   :  { %v7176_v33 = vld [vmem:[#allocation2 + $0x2ac] sm:$0xf0]  ;;  %11598 = vst [vmem:[#allocation133_spill] sm:$0xff] %v10324_v60  ;;  %v7212_v9 = vld [vmem:[#allocation2 + $0x3d4] sm:$0xf] }
 0x7b7   :  { %v6512_v37 = vld [vmem:[#allocation2 + $0x410] sm:$0xf]  ;;  %11595 = vst [vmem:[#allocation130_spill] sm:$0xff] %v10317_v27  ;;  %v10319_v5 = vor.u32 %v7176_v33, %v6320_v13  ;;  %v7268_v33 = vld [vmem:[#allocation2 + $0x594] sm:$0xf]  ;;  %4440 = vmatpush.bf16.msra.mxu0 %v10317_v27 }
 0x7b8   :  { %v7224_v61 = vld [vmem:[#allocation2 + $0x42c] sm:$0xf0]  ;;  %v6706_v13 = vld [vmem:[#allocation2 + $0x5b0] sm:$0xf0]  ;;  %11600 = vst [vmem:[#allocation135_spill] sm:$0xff] %v10331_v22 }
 0x7b9   :  { %11596 = vst [vmem:[#allocation131_spill] sm:$0xff] %v10319_v5  ;;  %v6768_v41 = vld [vmem:[#allocation2 + $0x610] sm:$0xf]  ;;  %v10322_v17 = vor.u32 %v7224_v61, %v6512_v37  ;;  %4453 = vmatpush.bf16.msra.mxu1 %v10319_v5  ;;  %v7332_v37 = vld [vmem:[#allocation2 + $0x794] sm:$0xf] }
 0x7ba   :  { %v7288_v48 = vld [vmem:[#allocation2 + $0x62c] sm:$0xf0]  ;;  %v6482_v5 = vld [vmem:[#allocation2 + $0x3f0] sm:$0xf0] }
 0x7bb   :  { %11597 = vst [vmem:[#allocation132_spill] sm:$0xff] %v10322_v17  ;;  %v6032_v58 = vld [vmem:[#allocation2 + $0x50] sm:$0xf]  ;;  %v10327_v36 = vor.u32 %v7288_v48, %v6768_v41  ;;  %4468 = vmatpush.bf16.msra.mxu2 %v10322_v17  ;;  %v10339_v41 = vor.u32 %v7268_v33, %v6706_v13  ;;  %v10354_v13 = vor.u32 %v7148_v19, %v6226_v53  ;;  %v7204_v17 = vld [vmem:[#allocation2 + $0x394] sm:$0xf] }
 0x7bc   :  { %v7104_v12 = vld [vmem:[#allocation2 + $0x6c] sm:$0xf0]  ;;  %v6898_v53 = vld [vmem:[#allocation2 + $0x730] sm:$0xf0] }
 0x7bd   :  { %v6288_v28 = vld [vmem:[#allocation2 + $0x250] sm:$0xf]  ;;  %11599 = vst [vmem:[#allocation134_spill] sm:$0xff] %v10327_v36  ;;  %v10334_v61 = vor.u32 %v7104_v12, %v6032_v58  ;;  %4481 = vmatpush.bf16.msra.mxu3 %v10327_v36  ;;  %v7260_v12 = vld [vmem:[#allocation2 + $0x554] sm:$0xf]  ;;  %v10356_v36 = vor.u32 %v7212_v9, %v6482_v5 }
 0x7be   :  { %v7168_v1 = vld [vmem:[#allocation2 + $0x26c] sm:$0xf0]  ;;  %11603 = vst [vmem:[#allocation138_spill] sm:$0xff] %v10339_v41  ;;  %4469 = vmatmul.bf16.vlgmr.msra.gmra.mxu2 %v10031_v8  ;;  %v7132_v9 = vld [vmem:[#allocation2 + $0x154] sm:$0xf] }
 0x7bf   :  { %11601 = vst [vmem:[#allocation136_spill] sm:$0xff] %v10334_v61  ;;  %v10336_v14 = vor.u32 %v7168_v1, %v6288_v28  ;;  %v6000_v20 = vld [vmem:[#allocation2 + $0x10] sm:$0xf]  ;;  %4513 = vmatpush.bf16.msrb.mxu2 %v10324_v60  ;;  %v10344_v28 = vor.u32 %v7332_v37, %v6962_v51  ;;  %v6674_v1 = vld [vmem:[#allocation2 + $0x570] sm:$0xf0]  ;;  %4441 = vmatpush.bf16.msra.mxu0 %v10334_v61 }
 0x7c0   :  { %v7096_v57 = vld [vmem:[#allocation2 + $0x2c] sm:$0xf0]  ;;  %4482 = vmatmul.bf16.vlgmr.msra.gmra.mxu3 %v10035_v4  ;;  %11607 = vst [vmem:[#allocation142_spill] sm:$0xff] %v10354_v13  ;;  %v7324_v37 = vld [vmem:[#allocation2 + $0x754] sm:$0xf]  ;;  %v10358_v60 = vor.u32 %v7260_v12, %v6674_v1 }
 0x7c1   :  { %11602 = vst [vmem:[#allocation137_spill] sm:$0xff] %v10336_v14  ;;  %v6256_v48 = vld [vmem:[#allocation2 + $0x210] sm:$0xf]  ;;  %4526 = vmatpush.bf16.msrb.mxu3 %v10331_v22  ;;  %4454 = vmatpush.bf16.msra.mxu1 %v10336_v14  ;;  %v10348_v58 = vor.u32 %v7096_v57, %v6000_v20  ;;  %v6930_v51 = vld [vmem:[#allocation2 + $0x770] sm:$0xf0] }
 0x7c2   :  { %v7160_v27 = vld [vmem:[#allocation2 + $0x22c] sm:$0xf0]  ;;  %11604 = vst [vmem:[#allocation139_spill] sm:$0xff] %v10344_v28  ;;  %v7140_v22 = vld [vmem:[#allocation2 + $0x194] sm:$0xf]  ;;  %v10363_v19 = vor.u32 %v7324_v37, %v6930_v51 }
 0x7c3   :  { %11605 = vst [vmem:[#allocation140_spill] sm:$0xff] %v10348_v58  ;;  %v10350_v33 = vor.u32 %v7160_v27, %v6256_v48  ;;  %4514 = vmatpush.bf16.msrb.mxu2 %v10339_v41  ;;  %v6194_v61 = vld [vmem:[#allocation2 + $0x1b0] sm:$0xf0]  ;;  %4442 = vmatpush.bf16.msra.mxu0 %v10348_v58 }
 0x7c4   :  { %11608 = vst [vmem:[#allocation143_spill] sm:$0xff] %v10356_v36  ;;  %v6450_v14 = vld [vmem:[#allocation2 + $0x3b0] sm:$0xf0]  ;;  %v10367_v27 = vor.u32 %v7140_v22, %v6194_v61 }
 0x7c5   :  { %11606 = vst [vmem:[#allocation141_spill] sm:$0xff] %v10350_v33  ;;  %4527 = vmatpush.bf16.msrb.mxu3 %v10344_v28  ;;  %v7252_v57 = vld [vmem:[#allocation2 + $0x514] sm:$0xf]  ;;  %4455 = vmatpush.bf16.msra.mxu1 %v10350_v33  ;;  %v10369_v5 = vor.u32 %v7204_v17, %v6450_v14 }
 0x7c6   :  { %11609 = vst [vmem:[#allocation144_spill] sm:$0xff] %v10358_v60  ;;  %v6642_v20 = vld [vmem:[#allocation2 + $0x530] sm:$0xf0]  ;;  %4443 = vmatmul.bf16.vlgmr.msra.gmra.mxu0 %v10050_v56 }
 0x7c7   :  { %11610 = vst [vmem:[#allocation145_spill] sm:$0xff] %v10363_v19  ;;  %4487 = vmatpush.bf16.msrb.mxu0 %v10354_v13  ;;  %v7316_v48 = vld [vmem:[#allocation2 + $0x714] sm:$0xf]  ;;  %4515 = vmatpush.bf16.msrb.mxu2 %v10358_v60  ;;  %v10372_v12 = vor.u32 %v7252_v57, %v6642_v20 }
 0x7c8   :  { %11611 = vst [vmem:[#allocation146_spill] sm:$0xff] %v10367_v27  ;;  %v6162_v1 = vld [vmem:[#allocation2 + $0x170] sm:$0xf0]  ;;  %4456 = vmatmul.bf16.vlgmr.msra.gmra.mxu1 %v10056_v42  ;;  %v10377_v17 = vor.u32 %v7316_v48, %v6898_v53 }
 0x7c9   :  { %4500 = vmatpush.bf16.msrb.mxu1 %v10356_v36  ;;  %11612 = vst [vmem:[#allocation147_spill] sm:$0xff] %v10369_v5  ;;  %v7196_v58 = vld [vmem:[#allocation2 + $0x354] sm:$0xf]  ;;  %4528 = vmatpush.bf16.msrb.mxu3 %v10363_v19  ;;  %v10381_v22 = vor.u32 %v7132_v9, %v6162_v1 }
 0x7ca   :  { %11613 = vst [vmem:[#allocation148_spill] sm:$0xff] %v10372_v12  ;;  %v6418_v33 = vld [vmem:[#allocation2 + $0x370] sm:$0xf0] }
 0x7cb   :  { %v7244_v37 = vld [vmem:[#allocation2 + $0x4d4] sm:$0xf]  ;;  %11614 = vst [vmem:[#allocation149_spill] sm:$0xff] %v10377_v17  ;;  %4488 = vmatpush.bf16.msrb.mxu0 %v10367_v27  ;;  %v10383_v61 = vor.u32 %v7196_v58, %v6418_v33  ;;  %4516 = vmatpush.bf16.msrb.mxu2 %v10372_v12 }
 0x7cc   :  { %v6610_v51 = vld [vmem:[#allocation2 + $0x4f0] sm:$0xf0]  ;;  %11615 = vst [vmem:[#allocation150_spill] sm:$0xff] %v10381_v22 }
 0x7cd   :  { %4501 = vmatpush.bf16.msrb.mxu1 %v10369_v5  ;;  %11616 = vst [vmem:[#allocation151_spill] sm:$0xff] %v10383_v61  ;;  %v7308_v14 = vld [vmem:[#allocation2 + $0x6d4] sm:$0xf]  ;;  %v10386_v60 = vor.u32 %v7244_v37, %v6610_v51  ;;  %4529 = vmatpush.bf16.msrb.mxu3 %v10377_v17 }
 0x7ce   :  { %v6866_v57 = vld [vmem:[#allocation2 + $0x6f0] sm:$0xf0] }
 0x7cf   :  { %v7124_v20 = vld [vmem:[#allocation2 + $0x114] sm:$0xf]  ;;  %11617 = vst [vmem:[#allocation152_spill] sm:$0xff] %v10386_v60  ;;  %v10389_v27 = vor.u32 %v7308_v14, %v6866_v57  ;;  %4489 = vmatpush.bf16.msrb.mxu0 %v10381_v22  ;;  %4517 = vmatpush.bf16.msrb.mxu2 %v10386_v60 }
 0x7d0   :  { %v6130_v36 = vld [vmem:[#allocation2 + $0x130] sm:$0xf0] }
 0x7d1   :  { %v7188_v13 = vld [vmem:[#allocation2 + $0x314] sm:$0xf]  ;;  %11618 = vst [vmem:[#allocation153_spill] sm:$0xff] %v10389_v27  ;;  %4502 = vmatpush.bf16.msrb.mxu1 %v10383_v61  ;;  %v10393_v58 = vor.u32 %v7124_v20, %v6130_v36  ;;  %4530 = vmatpush.bf16.msrb.mxu3 %v10389_v27 }
 0x7d2   :  { %v6386_v19 = vld [vmem:[#allocation2 + $0x330] sm:$0xf0] }
 0x7d3   :  { %v7236_v48 = vld [vmem:[#allocation2 + $0x494] sm:$0xf]  ;;  %11619 = vst [vmem:[#allocation154_spill] sm:$0xff] %v10393_v58  ;;  %v10395_v33 = vor.u32 %v7188_v13, %v6386_v19  ;;  %4490 = vmatpush.bf16.msrb.mxu0 %v10393_v58 }
 0x7d4   :  { %v6578_v53 = vld [vmem:[#allocation2 + $0x4b0] sm:$0xf0] }
 0x7d5   :  { %11620 = vst [vmem:[#allocation155_spill] sm:$0xff] %v10395_v33  ;;  %v7300_v9 = vld [vmem:[#allocation2 + $0x694] sm:$0xf]  ;;  %v10398_v51 = vor.u32 %v7236_v48, %v6578_v53  ;;  %4503 = vmatpush.bf16.msrb.mxu1 %v10395_v33  ;;  %v7000_v33 = vld [vmem:[#allocation2 + $0x7d8] sm:$0xf] }
 0x7d6   :  { %v6834_v1 = vld [vmem:[#allocation2 + $0x6b0] sm:$0xf0] }
 0x7d7   :  { %v7116_v37 = vld [vmem:[#allocation2 + $0xd4] sm:$0xf]  ;;  %11621 = vst [vmem:[#allocation156_spill] sm:$0xff] %v10398_v51  ;;  %v10401_v22 = vor.u32 %v7300_v9, %v6834_v1  ;;  %4518 = vmatpush.bf16.msrb.mxu2 %v10398_v51 }
 0x7d8   :  { %v6098_v12 = vld [vmem:[#allocation2 + $0xf0] sm:$0xf0] }
 0x7d9   :  { %v7180_v5 = vld [vmem:[#allocation2 + $0x2d4] sm:$0xf]  ;;  %11622 = vst [vmem:[#allocation157_spill] sm:$0xff] %v10401_v22  ;;  %v10405_v36 = vor.u32 %v7116_v37, %v6098_v12  ;;  %4531 = vmatpush.bf16.msrb.mxu3 %v10401_v22  ;;  %v6744_v12 = vld [vmem:[#allocation2 + $0x5d8] sm:$0xf] }
 0x7da   :  { %v6354_v17 = vld [vmem:[#allocation2 + $0x2f0] sm:$0xf0]  ;;  %v7281_v37 = vld [vmem:[#allocation2 + $0x5f4] sm:$0xf0] }
 0x7db   :  { %v7228_v14 = vld [vmem:[#allocation2 + $0x454] sm:$0xf]  ;;  %11623 = vst [vmem:[#allocation158_spill] sm:$0xff] %v10405_v36  ;;  %v10407_v13 = vor.u32 %v7180_v5, %v6354_v17  ;;  %4491 = vmatpush.bf16.msrb.mxu0 %v10405_v36  ;;  %v7345_v22 = vld [vmem:[#allocation2 + $0x7f4] sm:$0xf0] }
 0x7dc   :  { %v6546_v57 = vld [vmem:[#allocation2 + $0x470] sm:$0xf0] }
 0x7dd   :  { %11624 = vst [vmem:[#allocation159_spill] sm:$0xff] %v10407_v13  ;;  %v7292_v19 = vld [vmem:[#allocation2 + $0x654] sm:$0xf]  ;;  %v10410_v53 = vor.u32 %v7228_v14, %v6546_v57  ;;  %4504 = vmatpush.bf16.msrb.mxu1 %v10407_v13  ;;  %v6232_v13 = vld [vmem:[#allocation2 + $0x1d8] sm:$0xf] }
 0x7de   :  { %v6802_v20 = vld [vmem:[#allocation2 + $0x670] sm:$0xf0] }
 0x7df   :  { %v7108_v48 = vld [vmem:[#allocation2 + $0x94] sm:$0xf]  ;;  %11625 = vst [vmem:[#allocation160_spill] sm:$0xff] %v10410_v53  ;;  %v10413_v58 = vor.u32 %v7292_v19, %v6802_v20  ;;  %4519 = vmatpush.bf16.msrb.mxu2 %v10410_v53  ;;  %v10424_v20 = vor.u32 %v7281_v37, %v6744_v12  ;;  %v7337_v37 = vld [vmem:[#allocation2 + $0x7b4] sm:$0xf0] }
 0x7e0   :  { %v6066_v60 = vld [vmem:[#allocation2 + $0xb0] sm:$0xf0] }
 0x7e1   :  { %v7172_v61 = vld [vmem:[#allocation2 + $0x294] sm:$0xf]  ;;  %11626 = vst [vmem:[#allocation161_spill] sm:$0xff] %v10413_v58  ;;  %v10417_v5 = vor.u32 %v7108_v48, %v6066_v60  ;;  %4532 = vmatpush.bf16.msrb.mxu3 %v10413_v58  ;;  %v10431_v48 = vor.u32 %v7345_v22, %v7000_v33  ;;  %v7153_v22 = vld [vmem:[#allocation2 + $0x1f4] sm:$0xf0] }
 0x7e2   :  { %v6322_v27 = vld [vmem:[#allocation2 + $0x2b0] sm:$0xf0]  ;;  %11630 = vst [vmem:[#allocation165_spill] sm:$0xff] %v10424_v20  ;;  %v6488_v33 = vld [vmem:[#allocation2 + $0x3d8] sm:$0xf] }
 0x7e3   :  { %v7220_v9 = vld [vmem:[#allocation2 + $0x414] sm:$0xf]  ;;  %11627 = vst [vmem:[#allocation162_spill] sm:$0xff] %v10417_v5  ;;  %v10419_v17 = vor.u32 %v7172_v61, %v6322_v27  ;;  %v6712_v27 = vld [vmem:[#allocation2 + $0x598] sm:$0xf]  ;;  %4492 = vmatpush.bf16.msrb.mxu0 %v10417_v5 }
 0x7e4   :  { %v6514_v1 = vld [vmem:[#allocation2 + $0x430] sm:$0xf0]  ;;  %v7273_v61 = vld [vmem:[#allocation2 + $0x5b4] sm:$0xf0]  ;;  %11632 = vst [vmem:[#allocation167_spill] sm:$0xff] %v10431_v48 }
 0x7e5   :  { %11628 = vst [vmem:[#allocation163_spill] sm:$0xff] %v10419_v17  ;;  %v7284_v14 = vld [vmem:[#allocation2 + $0x614] sm:$0xf]  ;;  %v10422_v51 = vor.u32 %v7220_v9, %v6514_v1  ;;  %4505 = vmatpush.bf16.msrb.mxu1 %v10419_v17  ;;  %v6968_v9 = vld [vmem:[#allocation2 + $0x798] sm:$0xf] }
 0x7e6   :  { %v6770_v57 = vld [vmem:[#allocation2 + $0x630] sm:$0xf0]  ;;  %v7217_v17 = vld [vmem:[#allocation2 + $0x3f4] sm:$0xf0] }
 0x7e7   :  { %11629 = vst [vmem:[#allocation164_spill] sm:$0xff] %v10422_v51  ;;  %v7100_v19 = vld [vmem:[#allocation2 + $0x54] sm:$0xf]  ;;  %v10427_v60 = vor.u32 %v7284_v14, %v6770_v57  ;;  %4520 = vmatpush.bf16.msrb.mxu2 %v10422_v51  ;;  %v10439_v14 = vor.u32 %v7273_v61, %v6712_v27  ;;  %v10452_v61 = vpop.f32.mrf.mxu2  ;;  %v10466_v51 = vpop.f32.mrf.mxu3 }
 0x7e8   :  { %v6034_v28 = vld [vmem:[#allocation2 + $0x70] sm:$0xf0] }
 0x7e9   :  { %v7164_v41 = vld [vmem:[#allocation2 + $0x254] sm:$0xf]  ;;  %11631 = vst [vmem:[#allocation166_spill] sm:$0xff] %v10427_v60  ;;  %v10434_v1 = vor.u32 %v7100_v19, %v6034_v28  ;;  %4533 = vmatpush.bf16.msrb.mxu3 %v10427_v60  ;;  %v6680_v28 = vld [vmem:[#allocation2 + $0x558] sm:$0xf]  ;;  %v10456_v60 = vor.u32 %v7153_v22, %v6232_v13 }
 0x7ea   :  { %v6290_v36 = vld [vmem:[#allocation2 + $0x270] sm:$0xf0]  ;;  %11635 = vst [vmem:[#allocation170_spill] sm:$0xff] %v10439_v14  ;;  %4521 = vmatmul.bf16.vlgmr.msrb.gmra.mxu2 %v10031_v8  ;;  %v6648_v13 = vld [vmem:[#allocation2 + $0x518] sm:$0xf] }
 0x7eb   :  { %11633 = vst [vmem:[#allocation168_spill] sm:$0xff] %v10434_v1  ;;  %v10436_v12 = vor.u32 %v7164_v41, %v6290_v36  ;;  %v7092_v53 = vld [vmem:[#allocation2 + $0x14] sm:$0xf]  ;;  %4565 = vmatpush.bf16.msra.mxu2 %v10424_v20  ;;  %v10444_v41 = vor.u32 %v7337_v37, %v6968_v9  ;;  %v7265_v36 = vld [vmem:[#allocation2 + $0x574] sm:$0xf0]  ;;  %4493 = vmatpush.bf16.msrb.mxu0 %v10434_v1  ;;  %v10460_v1 = vpop.f32.mrf.mxu0 }
 0x7ec   :  { %v6002_v58 = vld [vmem:[#allocation2 + $0x30] sm:$0xf0]  ;;  %4534 = vmatmul.bf16.vlgmr.msrb.gmra.mxu3 %v10035_v4  ;;  %11639 = vst [vmem:[#allocation174_spill] sm:$0xff] %v10456_v60  ;;  %v10458_v9 = vor.u32 %v7217_v17, %v6488_v33  ;;  %v6936_v37 = vld [vmem:[#allocation2 + $0x758] sm:$0xf] }
 0x7ed   :  { %11634 = vst [vmem:[#allocation169_spill] sm:$0xff] %v10436_v12  ;;  %v7156_v57 = vld [vmem:[#allocation2 + $0x214] sm:$0xf]  ;;  %4578 = vmatpush.bf16.msra.mxu3 %v10431_v48  ;;  %4506 = vmatpush.bf16.msrb.mxu1 %v10436_v12  ;;  %v10448_v19 = vor.u32 %v7092_v53, %v6002_v58  ;;  %v7329_v48 = vld [vmem:[#allocation2 + $0x774] sm:$0xf0]  ;;  %v10462_v12 = vor.u32 %v7265_v36, %v6680_v28 }
 0x7ee   :  { %v6258_v5 = vld [vmem:[#allocation2 + $0x230] sm:$0xf0]  ;;  %11636 = vst [vmem:[#allocation171_spill] sm:$0xff] %v10444_v41  ;;  %v6200_v20 = vld [vmem:[#allocation2 + $0x198] sm:$0xf]  ;;  %v10471_v17 = vor.u32 %v7329_v48, %v6936_v37 }
 0x7ef   :  { %11637 = vst [vmem:[#allocation172_spill] sm:$0xff] %v10448_v19  ;;  %v10450_v27 = vor.u32 %v7156_v57, %v6258_v5  ;;  %4566 = vmatpush.bf16.msra.mxu2 %v10439_v14  ;;  %v7145_v58 = vld [vmem:[#allocation2 + $0x1b4] sm:$0xf0]  ;;  %v10464_v57 = vpop.f32.mrf.mxu1  ;;  %4494 = vmatpush.bf16.msrb.mxu0 %v10448_v19 }
 0x7f0   :  { %11640 = vst [vmem:[#allocation175_spill] sm:$0xff] %v10458_v9  ;;  %v6456_v53 = vld [vmem:[#allocation2 + $0x398] sm:$0xf]  ;;  %v10475_v33 = vor.u32 %v7145_v58, %v6200_v20  ;;  %v4262_v58 = vpop.f32.mrf.mxu2 }
 0x7f1   :  { %11638 = vst [vmem:[#allocation173_spill] sm:$0xff] %v10450_v27  ;;  %v7209_v5 = vld [vmem:[#allocation2 + $0x3b4] sm:$0xf0]  ;;  %4579 = vmatpush.bf16.msra.mxu3 %v10444_v41  ;;  %4507 = vmatpush.bf16.msrb.mxu1 %v10450_v27 }
 0x7f2   :  { %11641 = vst [vmem:[#allocation176_spill] sm:$0xff] %v10460_v1  ;;  %v7257_v22 = vld [vmem:[#allocation2 + $0x534] sm:$0xf0]  ;;  %v10477_v28 = vor.u32 %v7209_v5, %v6456_v53  ;;  %4495 = vmatmul.bf16.vlgmr.msrb.gmra.mxu0 %v10050_v56 }
 0x7f3   :  { %11642 = vst [vmem:[#allocation177_spill] sm:$0xff] %v10462_v12  ;;  %4539 = vmatpush.bf16.msra.mxu0 %v10456_v60  ;;  %v6904_v36 = vld [vmem:[#allocation2 + $0x718] sm:$0xf]  ;;  %4567 = vmatpush.bf16.msra.mxu2 %v10462_v12  ;;  %v10480_v41 = vor.u32 %v7257_v22, %v6648_v13  ;;  %v4236_v60 = vpop.f32.mrf.mxu0 }
 0x7f4   :  { %11643 = vst [vmem:[#allocation178_spill] sm:$0xff] %v10464_v57  ;;  %v7321_v14 = vld [vmem:[#allocation2 + $0x734] sm:$0xf0]  ;;  %4508 = vmatmul.bf16.vlgmr.msrb.gmra.mxu1 %v10056_v42 }
 0x7f5   :  { %11644 = vst [vmem:[#allocation179_spill] sm:$0xff] %v10471_v17  ;;  %4552 = vmatpush.bf16.msra.mxu1 %v10458_v9  ;;  %v7137_v19 = vld [vmem:[#allocation2 + $0x174] sm:$0xf0]  ;;  %4580 = vmatpush.bf16.msra.mxu3 %v10471_v17  ;;  %v10485_v20 = vor.u32 %v7321_v14, %v6904_v36 }
 0x7f6   :  { %11645 = vst [vmem:[#allocation180_spill] sm:$0xff] %v10475_v33  ;;  %v6424_v57 = vld [vmem:[#allocation2 + $0x358] sm:$0xf]  ;;  %v10489_v53 = vor.u32 %v7137_v19, %v6168_v45 }
 0x7f7   :  { %11646 = vst [vmem:[#allocation181_spill] sm:$0xff] %v10477_v28  ;;  %v7201_v27 = vld [vmem:[#allocation2 + $0x374] sm:$0xf0]  ;;  %4540 = vmatpush.bf16.msra.mxu0 %v10475_v33  ;;  %4568 = vmatpush.bf16.msra.mxu2 %v10480_v41  ;;  %v4249_v1 = vpop.f32.mrf.mxu1  ;;  %v4275_v33 = vpop.f32.mrf.mxu3 }
 0x7f8   :  { %11647 = vst [vmem:[#allocation182_spill] sm:$0xff] %v10480_v41  ;;  %v6616_v48 = vld [vmem:[#allocation2 + $0x4d8] sm:$0xf]  ;;  %v10491_v5 = vor.u32 %v7201_v27, %v6424_v57  ;;  %v4250_v45 = vadd.f32 %v4249_v1, %v4236_v60 }
 0x7f9   :  { %v7249_v37 = vld [vmem:[#allocation2 + $0x4f4] sm:$0xf0]  ;;  %11648 = vst [vmem:[#allocation183_spill] sm:$0xff] %v10485_v20  ;;  %4553 = vmatpush.bf16.msra.mxu1 %v10477_v28  ;;  %4581 = vmatpush.bf16.msra.mxu3 %v10485_v20 }
 0x7fa   :  { %11649 = vst [vmem:[#allocation184_spill] sm:$0xff] %v10489_v53  ;;  %v6872_v13 = vld [vmem:[#allocation2 + $0x6d8] sm:$0xf]  ;;  %v10494_v9 = vor.u32 %v7249_v37, %v6616_v48  ;;  %v4263_v50 = vadd.f32 %v4262_v58, %v4250_v45 }
 0x7fb   :  { %11650 = vst [vmem:[#allocation185_spill] sm:$0xff] %v10491_v5  ;;  %v7313_v22 = vld [vmem:[#allocation2 + $0x6f4] sm:$0xf0]  ;;  %4541 = vmatpush.bf16.msra.mxu0 %v10489_v53 }
 0x7fc   :  { %v6136_v12 = vld [vmem:[#allocation2 + $0x118] sm:$0xf]  ;;  %11651 = vst [vmem:[#allocation186_spill] sm:$0xff] %v10494_v9  ;;  %v10497_v19 = vor.u32 %v7313_v22, %v6872_v13  ;;  %4569 = vmatpush.bf16.msra.mxu2 %v10494_v9  ;;  %v10508_v53 = vadd.f32 %v4275_v33, %v4263_v50  ;;  %v4238_v33 = vpop.f32.mrf.mxu0 }
 0x7fd   :  { %v7129_v17 = vld [vmem:[#allocation2 + $0x134] sm:$0xf0]  ;;  %4554 = vmatpush.bf16.msra.mxu1 %v10491_v5 }
 0x7fe   :  { %v6392_v14 = vld [vmem:[#allocation2 + $0x318] sm:$0xf]  ;;  %11652 = vst [vmem:[#allocation187_spill] sm:$0xff] %v10497_v19  ;;  %v10501_v27 = vor.u32 %v7129_v17, %v6136_v12  ;;  %4582 = vmatpush.bf16.msra.mxu3 %v10497_v19  ;;  %5183 = vrot.lane.b32.xlu1 %v10508_v53, %s7572_s29 }
 0x7ff   :  { %v7193_v36 = vld [vmem:[#allocation2 + $0x334] sm:$0xf0]  ;;  %11656 = vst [vmem:[#allocation191_spill] sm:$0xff] %v10508_v53 }
 0x800   :  { %v7241_v28 = vld [vmem:[#allocation2 + $0x4b4] sm:$0xf0]  ;;  %11653 = vst [vmem:[#allocation188_spill] sm:$0xff] %v10501_v27  ;;  %v10503_v57 = vor.u32 %v7193_v36, %v6392_v14  ;;  %4542 = vmatpush.bf16.msra.mxu0 %v10501_v27  ;;  %v4264_v14 = vpop.f32.mrf.mxu2 }
 0x801   :  { %v6840_v48 = vld [vmem:[#allocation2 + $0x698] sm:$0xf]  ;;  %v10506_v62 = vor.u32 %v7241_v28, %v6584_v44  ;;  %v4251_v14 = vpop.f32.mrf.mxu1 }
 0x802   :  { %11654 = vst [vmem:[#allocation189_spill] sm:$0xff] %v10503_v57  ;;  %v7305_v37 = vld [vmem:[#allocation2 + $0x6b4] sm:$0xf0]  ;;  %4555 = vmatpush.bf16.msra.mxu1 %v10503_v57 }
 0x803   :  { %v6104_v41 = vld [vmem:[#allocation2 + $0xd8] sm:$0xf]  ;;  %11655 = vst [vmem:[#allocation190_spill] sm:$0xff] %v10506_v62  ;;  %v10511_v12 = vor.u32 %v7305_v37, %v6840_v48  ;;  %4570 = vmatpush.bf16.msra.mxu2 %v10506_v62  ;;  %v5263_v48 = vrot.slane %v10508_v53, 4  ;;  %v6682_v53 = vld [vmem:[#allocation2 + $0x578] sm:$0xf0] }
 0x804   :  { %v7121_v20 = vld [vmem:[#allocation2 + $0xf4] sm:$0xf0] }
 0x805   :  { %v6360_v60 = vld [vmem:[#allocation2 + $0x2d8] sm:$0xf]  ;;  %11657 = vst [vmem:[#allocation192_spill] sm:$0xff] %v10511_v12  ;;  %v10515_v58 = vor.u32 %v7121_v20, %v6104_v41  ;;  %v4277_v41 = vpop.f32.mrf.mxu3  ;;  %4583 = vmatpush.bf16.msra.mxu3 %v10511_v12  ;;  %5295 = vrot.lane.b32.xlu2 %v5263_v48, %s7571_s28 }
 0x806   :  { %v7185_v1 = vld [vmem:[#allocation2 + $0x2f4] sm:$0xf0] }
 0x807   :  { %v6552_v13 = vld [vmem:[#allocation2 + $0x458] sm:$0xf]  ;;  %11658 = vst [vmem:[#allocation193_spill] sm:$0xff] %v10515_v58  ;;  %v10517_v44 = vor.u32 %v7185_v1, %v6360_v60  ;;  %4543 = vmatpush.bf16.msra.mxu0 %v10515_v58 }
 0x808   :  { %v7233_v22 = vld [vmem:[#allocation2 + $0x474] sm:$0xf0] }
 0x809   :  { %v6808_v17 = vld [vmem:[#allocation2 + $0x658] sm:$0xf]  ;;  %11659 = vst [vmem:[#allocation194_spill] sm:$0xff] %v10517_v44  ;;  %v10520_v50 = vor.u32 %v7233_v22, %v6552_v13  ;;  %v7277_v13 = vld [vmem:[#allocation2 + $0x5dc] sm:$0xf]  ;;  %4556 = vmatpush.bf16.msra.mxu1 %v10517_v44  ;;  %v4301_v44 = vpop.f32.mrf.mxu1 }
 0x80a   :  { %v7297_v28 = vld [vmem:[#allocation2 + $0x674] sm:$0xf0]  ;;  %v6746_v22 = vld [vmem:[#allocation2 + $0x5f8] sm:$0xf0] }
 0x80b   :  { %v6072_v36 = vld [vmem:[#allocation2 + $0x98] sm:$0xf]  ;;  %11660 = vst [vmem:[#allocation195_spill] sm:$0xff] %v10520_v50  ;;  %v10526_v1 = vor.u32 %v7297_v28, %v6808_v17  ;;  %4571 = vmatpush.bf16.msra.mxu2 %v10520_v50  ;;  %v7341_v17 = vld [vmem:[#allocation2 + $0x7dc] sm:$0xf]  ;;  %v10538_v48 = vor.u32 %v7277_v13, %v6746_v22  ;;  %v4288_v50 = vpop.f32.mrf.mxu0 }
 0x80c   :  { %v7113_v45 = vld [vmem:[#allocation2 + $0xb4] sm:$0xf0]  ;;  %v7002_v28 = vld [vmem:[#allocation2 + $0x7f8] sm:$0xf0] }
 0x80d   :  { %v6328_v37 = vld [vmem:[#allocation2 + $0x298] sm:$0xf]  ;;  %11661 = vst [vmem:[#allocation196_spill] sm:$0xff] %v10526_v1  ;;  %v10531_v33 = vor.u32 %v7113_v45, %v6072_v36  ;;  %4584 = vmatpush.bf16.msra.mxu3 %v10526_v1  ;;  %v6714_v45 = vld [vmem:[#allocation2 + $0x5b8] sm:$0xf0] }
 0x80e   :  { %v7177_v57 = vld [vmem:[#allocation2 + $0x2b4] sm:$0xf0]  ;;  %11665 = vst [vmem:[#allocation200_spill] sm:$0xff] %v10538_v48  ;;  %v6970_v1 = vld [vmem:[#allocation2 + $0x7b8] sm:$0xf0] }
 0x80f   :  { %v6520_v20 = vld [vmem:[#allocation2 + $0x418] sm:$0xf]  ;;  %11662 = vst [vmem:[#allocation197_spill] sm:$0xff] %v10531_v33  ;;  %v10533_v62 = vor.u32 %v7177_v57, %v6328_v37  ;;  %v7269_v57 = vld [vmem:[#allocation2 + $0x59c] sm:$0xf]  ;;  %4544 = vmatpush.bf16.msra.mxu0 %v10531_v33  ;;  %v4314_v37 = vpop.f32.mrf.mxu2  ;;  %v4327_v33 = vpop.f32.mrf.mxu3 }
 0x810   :  { %v7225_v60 = vld [vmem:[#allocation2 + $0x434] sm:$0xf0]  ;;  %v10553_v5 = vor.u32 %v7269_v57, %v6714_v45 }
 0x811   :  { %11663 = vst [vmem:[#allocation198_spill] sm:$0xff] %v10533_v62  ;;  %v6776_v14 = vld [vmem:[#allocation2 + $0x618] sm:$0xf]  ;;  %v10536_v27 = vor.u32 %v7225_v60, %v6520_v20  ;;  %4557 = vmatpush.bf16.msra.mxu1 %v10533_v62  ;;  %v10545_v20 = vor.u32 %v7341_v17, %v7002_v28  ;;  %v7333_v60 = vld [vmem:[#allocation2 + $0x79c] sm:$0xf] }
 0x812   :  { %v7289_v41 = vld [vmem:[#allocation2 + $0x634] sm:$0xf0]  ;;  %11670 = vst [vmem:[#allocation205_spill] sm:$0xff] %v10553_v5  ;;  %v7149_v28 = vld [vmem:[#allocation2 + $0x1dc] sm:$0xf] }
 0x813   :  { %11664 = vst [vmem:[#allocation199_spill] sm:$0xff] %v10536_v27  ;;  %v6040_v12 = vld [vmem:[#allocation2 + $0x58] sm:$0xf]  ;;  %v10541_v36 = vor.u32 %v7289_v41, %v6776_v14  ;;  %4572 = vmatpush.bf16.msra.mxu2 %v10536_v27  ;;  %v4302_v27 = vadd.f32 %v4301_v44, %v4288_v50 }
 0x814   :  { %v7105_v19 = vld [vmem:[#allocation2 + $0x74] sm:$0xf0]  ;;  %11667 = vst [vmem:[#allocation202_spill] sm:$0xff] %v10545_v20 }
 0x815   :  { %v6296_v9 = vld [vmem:[#allocation2 + $0x258] sm:$0xf]  ;;  %11666 = vst [vmem:[#allocation201_spill] sm:$0xff] %v10541_v36  ;;  %v10548_v13 = vor.u32 %v7105_v19, %v6040_v12  ;;  %4585 = vmatpush.bf16.msra.mxu3 %v10541_v36  ;;  %v6234_v19 = vld [vmem:[#allocation2 + $0x1f8] sm:$0xf0]  ;;  %v4315_v57 = vadd.f32 %v4314_v37, %v4302_v27 }
 0x816   :  { %v7169_v58 = vld [vmem:[#allocation2 + $0x274] sm:$0xf0]  ;;  %v7213_v12 = vld [vmem:[#allocation2 + $0x3dc] sm:$0xf]  ;;  %4573 = vmatmul.bf16.vlgmr.msra.gmra.mxu2 %v10031_v8  ;;  %v10568_v44 = vor.u32 %v7149_v28, %v6234_v19  ;;  %v4290_v19 = vpop.f32.mrf.mxu0 }
 0x817   :  { %11668 = vst [vmem:[#allocation203_spill] sm:$0xff] %v10548_v13  ;;  %v10550_v22 = vor.u32 %v7169_v58, %v6296_v9  ;;  %v6008_v14 = vld [vmem:[#allocation2 + $0x18] sm:$0xf]  ;;  %4617 = vmatpush.bf16.msrb.mxu2 %v10538_v48  ;;  %v6490_v9 = vld [vmem:[#allocation2 + $0x3f8] sm:$0xf0]  ;;  %v10558_v58 = vor.u32 %v7333_v60, %v6970_v1  ;;  %4545 = vmatpush.bf16.msra.mxu0 %v10548_v13 }
 0x818   :  { %v7097_v41 = vld [vmem:[#allocation2 + $0x34] sm:$0xf0]  ;;  %v7261_v48 = vld [vmem:[#allocation2 + $0x55c] sm:$0xf]  ;;  %4586 = vmatmul.bf16.vlgmr.msra.gmra.mxu3 %v10035_v4  ;;  %11674 = vst [vmem:[#allocation209_spill] sm:$0xff] %v10568_v44  ;;  %v10570_v50 = vor.u32 %v7213_v12, %v6490_v9  ;;  %v10572_v23 = vadd.f32 %v4327_v33, %v4315_v57 }
 0x819   :  { %11669 = vst [vmem:[#allocation204_spill] sm:$0xff] %v10550_v22  ;;  %v6264_v62 = vld [vmem:[#allocation2 + $0x218] sm:$0xf]  ;;  %4630 = vmatpush.bf16.msrb.mxu3 %v10545_v20  ;;  %4558 = vmatpush.bf16.msra.mxu1 %v10550_v22  ;;  %v10562_v45 = vor.u32 %v7097_v41, %v6008_v14  ;;  %v7325_v1 = vld [vmem:[#allocation2 + $0x75c] sm:$0xf]  ;;  %v10574_v13 = vor.u32 %v7261_v48, %v6682_v53  ;;  %v4303_v53 = vpop.f32.mrf.mxu1  ;;  %v4329_v48 = vpop.f32.mrf.mxu3 }
 0x81a   :  { %v7161_v17 = vld [vmem:[#allocation2 + $0x234] sm:$0xf0]  ;;  %11671 = vst [vmem:[#allocation206_spill] sm:$0xff] %v10558_v58  ;;  %v6938_v60 = vld [vmem:[#allocation2 + $0x778] sm:$0xf0]  ;;  %v5264_v33 = vrot.slane %v10572_v23, 4  ;;  %5185 = vrot.lane.b32.xlu2 %v10572_v23, %s7572_s29 }
 0x81b   :  { %11672 = vst [vmem:[#allocation207_spill] sm:$0xff] %v10562_v45  ;;  %v10564_v36 = vor.u32 %v7161_v17, %v6264_v62  ;;  %4618 = vmatpush.bf16.msrb.mxu2 %v10553_v5  ;;  %v7141_v20 = vld [vmem:[#allocation2 + $0x19c] sm:$0xf]  ;;  %v4316_v62 = vpop.f32.mrf.mxu2  ;;  %4546 = vmatpush.bf16.msra.mxu0 %v10562_v45  ;;  %v10579_v28 = vor.u32 %v7325_v1, %v6938_v60 }
 0x81c   :  { %11675 = vst [vmem:[#allocation210_spill] sm:$0xff] %v10570_v50  ;;  %v6202_v27 = vld [vmem:[#allocation2 + $0x1b8] sm:$0xf0]  ;;  %5297 = vrot.lane.b32.xlu0 %v5264_v33, %s7571_s28 }
 0x81d   :  { %11673 = vst [vmem:[#allocation208_spill] sm:$0xff] %v10564_v36  ;;  %v7205_v37 = vld [vmem:[#allocation2 + $0x39c] sm:$0xf]  ;;  %4631 = vmatpush.bf16.msrb.mxu3 %v10558_v58  ;;  %4559 = vmatpush.bf16.msra.mxu1 %v10564_v36  ;;  %v10584_v12 = vor.u32 %v7141_v20, %v6202_v27 }
 0x81e   :  { %11676 = vst [vmem:[#allocation211_spill] sm:$0xff] %v10574_v13  ;;  %v6458_v14 = vld [vmem:[#allocation2 + $0x3b8] sm:$0xf0]  ;;  %4547 = vmatmul.bf16.vlgmr.msra.gmra.mxu0 %v10050_v56 }
 0x81f   :  { %v7253_v41 = vld [vmem:[#allocation2 + $0x51c] sm:$0xf]  ;;  %11677 = vst [vmem:[#allocation212_spill] sm:$0xff] %v10579_v28  ;;  %4591 = vmatpush.bf16.msrb.mxu0 %v10568_v44  ;;  %v10586_v9 = vor.u32 %v7205_v37, %v6458_v14  ;;  %4619 = vmatpush.bf16.msrb.mxu2 %v10574_v13 }
 0x820   :  { %v6650_v17 = vld [vmem:[#allocation2 + $0x538] sm:$0xf0]  ;;  %11678 = vst [vmem:[#allocation213_spill] sm:$0xff] %v10584_v12  ;;  %4560 = vmatmul.bf16.vlgmr.msra.gmra.mxu1 %v10056_v42 }
 0x821   :  { %4604 = vmatpush.bf16.msrb.mxu1 %v10570_v50  ;;  %11679 = vst [vmem:[#allocation214_spill] sm:$0xff] %v10586_v9  ;;  %v7317_v57 = vld [vmem:[#allocation2 + $0x71c] sm:$0xf]  ;;  %v10591_v1 = vor.u32 %v7253_v41, %v6650_v17  ;;  %4632 = vmatpush.bf16.msrb.mxu3 %v10579_v28 }
 0x822   :  { %v6906_v62 = vld [vmem:[#allocation2 + $0x738] sm:$0xf0] }
 0x823   :  { %v7133_v45 = vld [vmem:[#allocation2 + $0x15c] sm:$0xf]  ;;  %11680 = vst [vmem:[#allocation215_spill] sm:$0xff] %v10591_v1  ;;  %v10597_v37 = vor.u32 %v7317_v57, %v6906_v62  ;;  %4592 = vmatpush.bf16.msrb.mxu0 %v10584_v12  ;;  %4620 = vmatpush.bf16.msrb.mxu2 %v10591_v1  ;;  %v4366_v12 = vpop.f32.mrf.mxu2 }
 0x824   :  { %v6170_v60 = vld [vmem:[#allocation2 + $0x178] sm:$0xf0] }
 0x825   :  { %v7197_v19 = vld [vmem:[#allocation2 + $0x35c] sm:$0xf]  ;;  %11681 = vst [vmem:[#allocation216_spill] sm:$0xff] %v10597_v37  ;;  %4605 = vmatpush.bf16.msrb.mxu1 %v10586_v9  ;;  %v10601_v14 = vor.u32 %v7133_v45, %v6170_v60  ;;  %4633 = vmatpush.bf16.msrb.mxu3 %v10597_v37  ;;  %v4340_v45 = vpop.f32.mrf.mxu0  ;;  %v4379_v60 = vpop.f32.mrf.mxu3 }
 0x826   :  { %v6426_v44 = vld [vmem:[#allocation2 + $0x378] sm:$0xf0] }
 0x827   :  { %v7245_v20 = vld [vmem:[#allocation2 + $0x4dc] sm:$0xf]  ;;  %11682 = vst [vmem:[#allocation217_spill] sm:$0xff] %v10601_v14  ;;  %v10603_v41 = vor.u32 %v7197_v19, %v6426_v44  ;;  %4593 = vmatpush.bf16.msrb.mxu0 %v10601_v14  ;;  %v4353_v44 = vpop.f32.mrf.mxu1 }
 0x828   :  { %v6618_v27 = vld [vmem:[#allocation2 + $0x4f8] sm:$0xf0]  ;;  %v4354_v37 = vadd.f32 %v4353_v44, %v4340_v45 }
 0x829   :  { %11683 = vst [vmem:[#allocation218_spill] sm:$0xff] %v10603_v41  ;;  %v7309_v17 = vld [vmem:[#allocation2 + $0x6dc] sm:$0xf]  ;;  %v10606_v13 = vor.u32 %v7245_v20, %v6618_v27  ;;  %4606 = vmatpush.bf16.msrb.mxu1 %v10603_v41 }
 0x82a   :  { %v6874_v53 = vld [vmem:[#allocation2 + $0x6f8] sm:$0xf0]  ;;  %v4367_v41 = vadd.f32 %v4366_v12, %v4354_v37 }
 0x82b   :  { %v7125_v48 = vld [vmem:[#allocation2 + $0x11c] sm:$0xf]  ;;  %v10609_v9 = vor.u32 %v7309_v17, %v6874_v53  ;;  %4621 = vmatpush.bf16.msrb.mxu2 %v10606_v13 }
 0x82c   :  { %v6138_v28 = vld [vmem:[#allocation2 + $0x138] sm:$0xf0]  ;;  %v10629_v45 = vadd.f32 %v4379_v60, %v4367_v41 }
 0x82d   :  { %v7189_v50 = vld [vmem:[#allocation2 + $0x31c] sm:$0xf]  ;;  %v10613_v19 = vor.u32 %v7125_v48, %v6138_v28  ;;  %4634 = vmatpush.bf16.msrb.mxu3 %v10609_v9 }
 0x82e   :  { %v6394_v33 = vld [vmem:[#allocation2 + $0x338] sm:$0xf0]  ;;  %5187 = vrot.lane.b32.xlu0 %v10629_v45, %s7572_s29  ;;  %v5265_v41 = vrot.slane %v10629_v45, 4 }
 0x82f   :  { %v7237_v57 = vld [vmem:[#allocation2 + $0x49c] sm:$0xf]  ;;  %11684 = vst [vmem:[#allocation219_spill] sm:$0xff] %v10613_v19  ;;  %v10615_v20 = vor.u32 %v7189_v50, %v6394_v33  ;;  %4594 = vmatpush.bf16.msrb.mxu0 %v10613_v19 }
 0x830   :  { %v6586_v62 = vld [vmem:[#allocation2 + $0x4b8] sm:$0xf0]  ;;  %5299 = vrot.lane.b32.xlu1 %v5265_v41, %s7571_s28 }
 0x831   :  { %v7301_v27 = vld [vmem:[#allocation2 + $0x69c] sm:$0xf]  ;;  %v10618_v58 = vor.u32 %v7237_v57, %v6586_v62  ;;  %4607 = vmatpush.bf16.msrb.mxu1 %v10615_v20 }
 0x832   :  { %v6842_v1 = vld [vmem:[#allocation2 + $0x6b8] sm:$0xf0] }
 0x833   :  { %v7117_v36 = vld [vmem:[#allocation2 + $0xdc] sm:$0xf]  ;;  %11685 = vst [vmem:[#allocation220_spill] sm:$0xff] %v10618_v58  ;;  %v10621_v28 = vor.u32 %v7301_v27, %v6842_v1  ;;  %4622 = vmatpush.bf16.msrb.mxu2 %v10618_v58 }
 0x834   :  { %v6106_v17 = vld [vmem:[#allocation2 + $0xf8] sm:$0xf0] }
 0x835   :  { %v7181_v53 = vld [vmem:[#allocation2 + $0x2dc] sm:$0xf]  ;;  %11686 = vst [vmem:[#allocation221_spill] sm:$0xff] %v10621_v28  ;;  %v10625_v50 = vor.u32 %v7117_v36, %v6106_v17  ;;  %4635 = vmatpush.bf16.msrb.mxu3 %v10621_v28  ;;  %v4368_v36 = vpop.f32.mrf.mxu2 }
 0x836   :  { %v6362_v5 = vld [vmem:[#allocation2 + $0x2f8] sm:$0xf0] }
 0x837   :  { %v7229_v14 = vld [vmem:[#allocation2 + $0x45c] sm:$0xf]  ;;  %11687 = vst [vmem:[#allocation222_spill] sm:$0xff] %v10625_v50  ;;  %v10627_v48 = vor.u32 %v7181_v53, %v6362_v5  ;;  %v4342_v5 = vpop.f32.mrf.mxu0  ;;  %4595 = vmatpush.bf16.msrb.mxu0 %v10625_v50 }
 0x838   :  { %v6554_v22 = vld [vmem:[#allocation2 + $0x478] sm:$0xf0] }
 0x839   :  { %v7293_v33 = vld [vmem:[#allocation2 + $0x65c] sm:$0xf]  ;;  %v10632_v44 = vor.u32 %v7229_v14, %v6554_v22  ;;  %4608 = vmatpush.bf16.msrb.mxu1 %v10627_v48  ;;  %v4355_v22 = vpop.f32.mrf.mxu1  ;;  %v4381_v14 = vpop.f32.mrf.mxu3 }
 0x83a   :  { %v6810_v57 = vld [vmem:[#allocation2 + $0x678] sm:$0xf0] }
 0x83b   :  { %v7109_v62 = vld [vmem:[#allocation2 + $0x9c] sm:$0xf]  ;;  %v10635_v17 = vor.u32 %v7293_v33, %v6810_v57  ;;  %4623 = vmatpush.bf16.msrb.mxu2 %v10632_v44 }
 0x83c   :  { %v6074_v12 = vld [vmem:[#allocation2 + $0xb8] sm:$0xf0] }
 0x83d   :  { %v7173_v1 = vld [vmem:[#allocation2 + $0x29c] sm:$0xf]  ;;  %v10642_v60 = vor.u32 %v7109_v62, %v6074_v12  ;;  %4636 = vmatpush.bf16.msrb.mxu3 %v10635_v17 }
 0x83e   :  { %v6330_v37 = vld [vmem:[#allocation2 + $0x2b8] sm:$0xf0] }
 0x83f   :  { %v7221_v27 = vld [vmem:[#allocation2 + $0x41c] sm:$0xf]  ;;  %v10644_v53 = vor.u32 %v7173_v1, %v6330_v37  ;;  %4596 = vmatpush.bf16.msrb.mxu0 %v10642_v60 }
 0x840   :  { %v6522_v19 = vld [vmem:[#allocation2 + $0x438] sm:$0xf0] }
 0x841   :  { %v7285_v28 = vld [vmem:[#allocation2 + $0x61c] sm:$0xf]  ;;  %v10647_v33 = vor.u32 %v7221_v27, %v6522_v19  ;;  %4609 = vmatpush.bf16.msrb.mxu1 %v10644_v53 }
 0x842   :  { %v6778_v36 = vld [vmem:[#allocation2 + $0x638] sm:$0xf0] }
 0x843   :  { %v7101_v57 = vld [vmem:[#allocation2 + $0x5c] sm:$0xf]  ;;  %v10651_v22 = vor.u32 %v7285_v28, %v6778_v36  ;;  %4624 = vmatpush.bf16.msrb.mxu2 %v10647_v33  ;;  %v11706_v36 = vld [vmem:[#allocation29_spill] sm:$0xff] }
 0x844   :  { %v6042_v5 = vld [vmem:[#allocation2 + $0x78] sm:$0xf0] }
 0x845   :  { %v7165_v58 = vld [vmem:[#allocation2 + $0x25c] sm:$0xf]  ;;  %v10656_v62 = vor.u32 %v7101_v57, %v6042_v5  ;;  %4637 = vmatpush.bf16.msrb.mxu3 %v10651_v22  ;;  %v11707_v57 = vld [vmem:[#allocation30_spill] sm:$0xff]  ;;  %v11708_v5 = vld [vmem:[#allocation24_spill] sm:$0xff] }
 0x846   :  { %v6298_v50 = vld [vmem:[#allocation2 + $0x278] sm:$0xf0]  ;;  %4625 = vmatmul.bf16.vlgmr.msrb.gmra.mxu2 %v10031_v8  ;;  %v11703_v8 = vld [vmem:[#allocation26_spill] sm:$0xff] }
 0x847   :  { %v10658_v19 = vor.u32 %v7165_v58, %v6298_v50  ;;  %v7093_v12 = vld [vmem:[#allocation2 + $0x1c] sm:$0xf]  ;;  %4673 = vmatpush.bf16.msra.mxu2 %v9817_v46  ;;  %4597 = vmatpush.bf16.msrb.mxu0 %v10656_v62  ;;  %v4418_v46 = vpop.f32.mrf.mxu2 }
 0x848   :  { %v6010_v1 = vld [vmem:[#allocation2 + $0x38] sm:$0xf0]  ;;  %4638 = vmatmul.bf16.vlgmr.msrb.gmra.mxu3 %v10035_v4  ;;  %v11702_v4 = vld [vmem:[#allocation25_spill] sm:$0xff] }
 0x849   :  { %v7157_v37 = vld [vmem:[#allocation2 + $0x21c] sm:$0xf]  ;;  %4686 = vmatpush.bf16.msra.mxu3 %v9820_v59  ;;  %4610 = vmatpush.bf16.msrb.mxu1 %v10658_v19  ;;  %v10666_v28 = vor.u32 %v7093_v12, %v6010_v1  ;;  %v4392_v59 = vpop.f32.mrf.mxu0 }
 0x84a   :  { %v6266_v27 = vld [vmem:[#allocation2 + $0x238] sm:$0xf0] }
 0x84b   :  { %v10668_v58 = vor.u32 %v7157_v37, %v6266_v27  ;;  %4674 = vmatpush.bf16.msra.mxu2 %v9825_v0  ;;  %4598 = vmatpush.bf16.msrb.mxu0 %v10666_v28  ;;  %v4405_v0 = vpop.f32.mrf.mxu1  ;;  %v11705_v41 = vld [vmem:[#allocation23_spill] sm:$0xff] }
 0x84c   :  { %v11709_v37 = vld [vmem:[#allocation27_spill] sm:$0xff] }
 0x84d   :  { %4687 = vmatpush.bf16.msra.mxu3 %v9830_v38  ;;  %4611 = vmatpush.bf16.msrb.mxu1 %v10668_v58  ;;  %v4406_v38 = vadd.f32 %v4405_v0, %v4392_v59  ;;  %v11710_v59 = vld [vmem:[#allocation33_spill] sm:$0xff]  ;;  %v11711_v0 = vld [vmem:[#allocation34_spill] sm:$0xff] }
 0x84e   :  { %4599 = vmatmul.bf16.vlgmr.msrb.gmra.mxu0 %v10050_v56 }
 0x84f   :  { %4647 = vmatpush.bf16.msra.mxu0 %v9854_v15  ;;  %4675 = vmatpush.bf16.msra.mxu2 %v9838_v3  ;;  %v4431_v3 = vpop.f32.mrf.mxu3 }
 0x850   :  { %4612 = vmatmul.bf16.vlgmr.msrb.gmra.mxu1 %v10056_v42 }
 0x851   :  { %4660 = vmatpush.bf16.msra.mxu1 %v9856_v18  ;;  %4688 = vmatpush.bf16.msra.mxu3 %v9845_v39  ;;  %v4419_v39 = vadd.f32 %v4418_v46, %v4406_v38 }
 0x853   :  { %4648 = vmatpush.bf16.msra.mxu0 %v9865_v54  ;;  %4676 = vmatpush.bf16.msra.mxu2 %v9850_v35  ;;  %v10689_v15 = vadd.f32 %v4431_v3, %v4419_v39  ;;  %v4420_v35 = vpop.f32.mrf.mxu2  ;;  %v11712_v3 = vld [vmem:[#allocation28_spill] sm:$0xff]  ;;  %v11713_v39 = vld [vmem:[#allocation31_spill] sm:$0xff] }
 0x854   :  { %v11714_v35 = vld [vmem:[#allocation36_spill] sm:$0xff] }
 0x855   :  { %4661 = vmatpush.bf16.msra.mxu1 %v9868_v21  ;;  %4689 = vmatpush.bf16.msra.mxu3 %v9859_v30  ;;  %v5266_v18 = vrot.slane %v10689_v15, 4  ;;  %v4394_v30 = vpop.f32.mrf.mxu0  ;;  %v10708_v21 = vpack.c.bf16 %v10452_v61, %v10452_v61  ;;  %v11704_v61 = vld [vmem:[#allocation21_spill] sm:$0xff] }
 0x856   :  { %5189 = vrot.lane.b32.xlu1 %v10689_v15, %s7572_s29  ;;  %v11716_v30 = vld [vmem:[#allocation32_spill] sm:$0xff] }
 0x857   :  { %4649 = vmatpush.bf16.msra.mxu0 %v9881_v29  ;;  %4677 = vmatpush.bf16.msra.mxu2 %v9862_v16  ;;  %v4407_v16 = vpop.f32.mrf.mxu1  ;;  %v4433_v54 = vpop.f32.mrf.mxu3  ;;  %v11689_v29 = vld [vmem:[#allocation12_spill] sm:$0xff] }
 0x858   :  { %5301 = vrot.lane.b32.xlu2 %v5266_v18, %s7571_s28  ;;  %v11715_v18 = vld [vmem:[#allocation37_spill] sm:$0xff]  ;;  %v11718_v54 = vld [vmem:[#allocation35_spill] sm:$0xff] }
 0x859   :  { %4662 = vmatpush.bf16.msra.mxu1 %v9884_v6  ;;  %4690 = vmatpush.bf16.msra.mxu3 %v9871_v32  ;;  %v10714_v32 = vpack.c.bf16 %v10466_v51, %v10466_v51  ;;  %v11690_v6 = vld [vmem:[#allocation15_spill] sm:$0xff]  ;;  %v11717_v16 = vld [vmem:[#allocation41_spill] sm:$0xff] }
 0x85b   :  { %4650 = vmatpush.bf16.msra.mxu0 %v9893_v63  ;;  %4678 = vmatpush.bf16.msra.mxu2 %v9878_v34  ;;  %v11688_v34 = vld [vmem:[#allocation11_spill] sm:$0xff] }
 0x85d   :  { %4663 = vmatpush.bf16.msra.mxu1 %v9896_v25  ;;  %4691 = vmatpush.bf16.msra.mxu3 %v9887_v24  ;;  %v11691_v24 = vld [vmem:[#allocation17_spill] sm:$0xff]  ;;  %v11693_v25 = vld [vmem:[#allocation178_spill] sm:$0xff] }
 0x85f   :  { %4651 = vmatpush.bf16.msra.mxu0 %v9905_v40  ;;  %4679 = vmatpush.bf16.msra.mxu2 %v9890_v10  ;;  %v11692_v10 = vld [vmem:[#allocation176_spill] sm:$0xff]  ;;  %v11695_v40 = vld [vmem:[#allocation19_spill] sm:$0xff]  ;;  %v4457_v42 = vpop.f32.mrf.mxu1  ;;  %v4483_v51 = vpop.f32.mrf.mxu3 }
 0x860   :  { %v10727_v63 = vpack.c.bf16 %v11692_v10, %v11692_v10  ;;  %v10772_v10 = vpop.permute.xlu2 %5295 }
 0x861   :  { %4664 = vmatpush.bf16.msra.mxu1 %v9910_v55  ;;  %4692 = vmatpush.bf16.msra.mxu3 %v9899_v11  ;;  %v10731_v11 = vpack.c.bf16 %v11693_v25, %v11693_v25  ;;  %v11697_v55 = vld [vmem:[#allocation14_spill] sm:$0xff]  ;;  %v11723_v25 = vld [vmem:[#allocation45_spill] sm:$0xff] }
 0x863   :  { %4652 = vmatpush.bf16.msra.mxu0 %v9919_v26  ;;  %4680 = vmatpush.bf16.msra.mxu2 %v9902_v47  ;;  %v11694_v47 = vld [vmem:[#allocation18_spill] sm:$0xff]  ;;  %v11700_v26 = vld [vmem:[#allocation16_spill] sm:$0xff] }
 0x865   :  { %4665 = vmatpush.bf16.msra.mxu1 %v9925_v2  ;;  %4693 = vmatpush.bf16.msra.mxu3 %v9913_v52  ;;  %v11698_v52 = vld [vmem:[#allocation22_spill] sm:$0xff]  ;;  %v4470_v2 = vpop.f32.mrf.mxu2 }
 0x866   :  { %4681 = vmatmul.bf16.vlgmr.msra.gmra.mxu2 %v10708_v21 }
 0x867   :  { %4725 = vmatpush.bf16.msrb.mxu2 %v9907_v43  ;;  %4653 = vmatpush.bf16.msra.mxu0 %v9932_v7  ;;  %v11696_v43 = vld [vmem:[#allocation13_spill] sm:$0xff]  ;;  %v11701_v7 = vld [vmem:[#allocation20_spill] sm:$0xff]  ;;  %v4459_v46 = vpop.f32.mrf.mxu1  ;;  %v4485_v38 = vpop.f32.mrf.mxu3 }
 0x868   :  { %4694 = vmatmul.bf16.vlgmr.msra.gmra.mxu3 %v10714_v32  ;;  %v11740_v38 = vld [vmem:[#allocation58_spill] sm:$0xff] }
 0x869   :  { %4738 = vmatpush.bf16.msrb.mxu3 %v9915_v49  ;;  %4666 = vmatpush.bf16.msra.mxu1 %v9938_v31  ;;  %v11699_v49 = vld [vmem:[#allocation9_spill] sm:$0xff]  ;;  %v4444_v31 = vpop.f32.mrf.mxu0 }
 0x86a   :  { %v4458_v56 = vadd.f32 %v4457_v42, %v4444_v31 }
 0x86b   :  { %4726 = vmatpush.bf16.msrb.mxu2 %v11688_v34  ;;  %4654 = vmatpush.bf16.msra.mxu0 %v11690_v6  ;;  %v11719_v34 = vld [vmem:[#allocation43_spill] sm:$0xff] }
 0x86c   :  { %v4471_v50 = vadd.f32 %v4470_v2, %v4458_v56  ;;  %v11721_v6 = vld [vmem:[#allocation39_spill] sm:$0xff] }
 0x86d   :  { %4739 = vmatpush.bf16.msrb.mxu3 %v11689_v29  ;;  %4667 = vmatpush.bf16.msra.mxu1 %v11691_v24  ;;  %v4472_v12 = vpop.f32.mrf.mxu2  ;;  %v11720_v29 = vld [vmem:[#allocation38_spill] sm:$0xff]  ;;  %v11722_v24 = vld [vmem:[#allocation44_spill] sm:$0xff]  ;;  %v11731_v2 = vld [vmem:[#allocation51_spill] sm:$0xff] }
 0x86e   :  { %4655 = vmatmul.bf16.vlgmr.msra.gmra.mxu0 %v10727_v63  ;;  %v10747_v14 = vadd.f32 %v4483_v51, %v4471_v50  ;;  %v11734_v51 = vld [vmem:[#allocation54_spill] sm:$0xff]  ;;  %v11737_v12 = vld [vmem:[#allocation56_spill] sm:$0xff] }
 0x86f   :  { %4699 = vmatpush.bf16.msrb.mxu0 %v11694_v47  ;;  %4727 = vmatpush.bf16.msrb.mxu2 %v11696_v43  ;;  %v11724_v47 = vld [vmem:[#allocation40_spill] sm:$0xff]  ;;  %v11726_v43 = vld [vmem:[#allocation46_spill] sm:$0xff] }
 0x870   :  { %4668 = vmatmul.bf16.vlgmr.msra.gmra.mxu1 %v10731_v11  ;;  %5191 = vrot.lane.b32.xlu2 %v10747_v14, %s7572_s29  ;;  %v5267_v1 = vrot.slane %v10747_v14, 4 }
 0x871   :  { %4712 = vmatpush.bf16.msrb.mxu1 %v11695_v40  ;;  %4740 = vmatpush.bf16.msrb.mxu3 %v11697_v55  ;;  %v4446_v27 = vpop.f32.mrf.mxu0  ;;  %v11725_v40 = vld [vmem:[#allocation42_spill] sm:$0xff]  ;;  %v11727_v55 = vld [vmem:[#allocation47_spill] sm:$0xff]  ;;  %v4509_v56 = vpop.f32.mrf.mxu1 }
 0x872   :  { %5303 = vrot.lane.b32.xlu0 %v5267_v1, %s7571_s28  ;;  %v11738_v1 = vld [vmem:[#allocation8_spill] sm:$0xff] }
 0x873   :  { %4700 = vmatpush.bf16.msrb.mxu0 %v11698_v52  ;;  %4728 = vmatpush.bf16.msrb.mxu2 %v11700_v26  ;;  %v11728_v52 = vld [vmem:[#allocation48_spill] sm:$0xff]  ;;  %v11730_v26 = vld [vmem:[#allocation50_spill] sm:$0xff] }
 0x874   :  { %v10786_v42 = vpop.permute.xlu2 %5185 }
 0x875   :  { %4713 = vmatpush.bf16.msrb.mxu1 %v11699_v49  ;;  %4741 = vmatpush.bf16.msrb.mxu3 %v11701_v7  ;;  %v11729_v49 = vld [vmem:[#allocation49_spill] sm:$0xff]  ;;  %v11732_v7 = vld [vmem:[#allocation52_spill] sm:$0xff]  ;;  %v4522_v31 = vpop.f32.mrf.mxu2 }
 0x877   :  { %4701 = vmatpush.bf16.msrb.mxu0 %v11702_v4  ;;  %4729 = vmatpush.bf16.msrb.mxu2 %v11704_v61  ;;  %v11733_v4 = vld [vmem:[#allocation53_spill] sm:$0xff]  ;;  %v11735_v61 = vld [vmem:[#allocation55_spill] sm:$0xff] }
 0x879   :  { %4714 = vmatpush.bf16.msrb.mxu1 %v11703_v8  ;;  %4742 = vmatpush.bf16.msrb.mxu3 %v11705_v41  ;;  %v4496_v8 = vpop.f32.mrf.mxu0  ;;  %v4535_v41 = vpop.f32.mrf.mxu3 }
 0x87a   :  { %v4510_v50 = vadd.f32 %v4509_v56, %v4496_v8  ;;  %v11759_v8 = vld [vmem:[#allocation77_spill] sm:$0xff]  ;;  %v11760_v56 = vld [vmem:[#allocation78_spill] sm:$0xff] }
 0x87b   :  { %4702 = vmatpush.bf16.msrb.mxu0 %v11706_v36  ;;  %4730 = vmatpush.bf16.msrb.mxu2 %v11708_v5  ;;  %v10791_v36 = vpop.permute.xlu1 %5183 }
 0x87c   :  { %v4523_v27 = vadd.f32 %v4522_v31, %v4510_v50  ;;  %v11757_v31 = vld [vmem:[#allocation75_spill] sm:$0xff] }
 0x87d   :  { %4715 = vmatpush.bf16.msrb.mxu1 %v11707_v57  ;;  %4743 = vmatpush.bf16.msrb.mxu3 %v11709_v37  ;;  %v11736_v57 = vld [vmem:[#allocation191_spill] sm:$0xff]  ;;  %v5229_v37 = vsel %vm74_vm4, %v10791_v36, %v10786_v42 }
 0x87e   :  { %v5359_v5 = vrot.slane %v11736_v57, 2  ;;  %v11764_v57 = vld [vmem:[#allocation82_spill] sm:$0xff] }
 0x87f   :  { %4703 = vmatpush.bf16.msrb.mxu0 %v11710_v59  ;;  %4731 = vmatpush.bf16.msrb.mxu2 %v11712_v3  ;;  %v11739_v59 = vld [vmem:[#allocation57_spill] sm:$0xff]  ;;  %v11741_v3 = vld [vmem:[#allocation59_spill] sm:$0xff] }
 0x880   :  { %v10799_v46 = vadd.f32 %v5359_v5, %v5229_v37  ;;  %v11765_v5 = vld [vmem:[#allocation83_spill] sm:$0xff] }
 0x881   :  { %4716 = vmatpush.bf16.msrb.mxu1 %v11711_v0  ;;  %4744 = vmatpush.bf16.msrb.mxu3 %v11713_v39  ;;  %v10802_v0 = vadd.f32 %v4535_v41, %v4523_v27  ;;  %v11742_v39 = vld [vmem:[#allocation60_spill] sm:$0xff]  ;;  %v11763_v41 = vld [vmem:[#allocation81_spill] sm:$0xff] }
 0x882   :  { %v11767_v27 = vld [vmem:[#allocation85_spill] sm:$0xff] }
 0x883   :  { %4704 = vmatpush.bf16.msrb.mxu0 %v11714_v35  ;;  %4732 = vmatpush.bf16.msrb.mxu2 %v11716_v30  ;;  %v4524_v35 = vpop.f32.mrf.mxu2  ;;  %v11743_v30 = vld [vmem:[#allocation61_spill] sm:$0xff] }
 0x884   :  { %5193 = vrot.lane.b32.xlu0 %v10802_v0, %s7572_s29 }
 0x885   :  { %4717 = vmatpush.bf16.msrb.mxu1 %v11715_v18  ;;  %4745 = vmatpush.bf16.msrb.mxu3 %v11718_v54  ;;  %v5268_v18 = vrot.slane %v10802_v0, 4  ;;  %v4511_v54 = vpop.f32.mrf.mxu1 }
 0x886   :  { %4733 = vmatmul.bf16.vlgmr.msrb.gmra.mxu2 %v10708_v21 }
 0x887   :  { %4777 = vmatpush.bf16.msra.mxu2 %v11717_v16  ;;  %4705 = vmatpush.bf16.msrb.mxu0 %v11720_v29  ;;  %v4498_v16 = vpop.f32.mrf.mxu0  ;;  %v11745_v29 = vld [vmem:[#allocation63_spill] sm:$0xff] }
 0x888   :  { %4746 = vmatmul.bf16.vlgmr.msrb.gmra.mxu3 %v10714_v32  ;;  %5305 = vrot.lane.b32.xlu1 %v5268_v18, %s7571_s28  ;;  %v5360_v16 = vrot.slane %v10572_v23, 2 }
 0x889   :  { %4790 = vmatpush.bf16.msra.mxu3 %v11719_v34  ;;  %4718 = vmatpush.bf16.msrb.mxu1 %v11721_v6  ;;  %v11744_v34 = vld [vmem:[#allocation62_spill] sm:$0xff]  ;;  %v4537_v6 = vpop.f32.mrf.mxu3 }
 0x88a   :  { %v11771_v6 = vld [vmem:[#allocation89_spill] sm:$0xff] }
 0x88b   :  { %4778 = vmatpush.bf16.msra.mxu2 %v11722_v24  ;;  %4706 = vmatpush.bf16.msrb.mxu0 %v11724_v47  ;;  %v11746_v24 = vld [vmem:[#allocation64_spill] sm:$0xff]  ;;  %v11748_v47 = vld [vmem:[#allocation66_spill] sm:$0xff] }
 0x88d   :  { %4791 = vmatpush.bf16.msra.mxu3 %v11723_v25  ;;  %4719 = vmatpush.bf16.msrb.mxu1 %v11725_v40  ;;  %v11747_v25 = vld [vmem:[#allocation65_spill] sm:$0xff]  ;;  %v11749_v40 = vld [vmem:[#allocation67_spill] sm:$0xff] }
 0x88e   :  { %4707 = vmatmul.bf16.vlgmr.msrb.gmra.mxu0 %v10727_v63  ;;  %v5298_v50 = vpop.permute.xlu0 %5297 }
 0x88f   :  { %4751 = vmatpush.bf16.msra.mxu0 %v11726_v43  ;;  %4779 = vmatpush.bf16.msra.mxu2 %v11728_v52  ;;  %v11750_v43 = vld [vmem:[#allocation68_spill] sm:$0xff]  ;;  %v11752_v52 = vld [vmem:[#allocation70_spill] sm:$0xff] }
 0x890   :  { %4720 = vmatmul.bf16.vlgmr.msrb.gmra.mxu1 %v10731_v11 }
 0x891   :  { %4764 = vmatpush.bf16.msra.mxu1 %v11727_v55  ;;  %4792 = vmatpush.bf16.msra.mxu3 %v11729_v49  ;;  %v11751_v55 = vld [vmem:[#allocation69_spill] sm:$0xff]  ;;  %v11753_v49 = vld [vmem:[#allocation71_spill] sm:$0xff] }
 0x893   :  { %4752 = vmatpush.bf16.msra.mxu0 %v11730_v26  ;;  %4780 = vmatpush.bf16.msra.mxu2 %v11732_v7  ;;  %v11754_v26 = vld [vmem:[#allocation72_spill] sm:$0xff]  ;;  %v11756_v7 = vld [vmem:[#allocation74_spill] sm:$0xff] }
 0x895   :  { %4765 = vmatpush.bf16.msra.mxu1 %v11731_v2  ;;  %4793 = vmatpush.bf16.msra.mxu3 %v11733_v4  ;;  %v11755_v2 = vld [vmem:[#allocation73_spill] sm:$0xff]  ;;  %v11758_v4 = vld [vmem:[#allocation76_spill] sm:$0xff] }
 0x897   :  { %4753 = vmatpush.bf16.msra.mxu0 %v11734_v51  ;;  %4781 = vmatpush.bf16.msra.mxu2 %v11737_v12  ;;  %v11761_v51 = vld [vmem:[#allocation79_spill] sm:$0xff]  ;;  %v11766_v12 = vld [vmem:[#allocation84_spill] sm:$0xff] }
 0x899   :  { %4766 = vmatpush.bf16.msra.mxu1 %v11735_v61  ;;  %4794 = vmatpush.bf16.msra.mxu3 %v11739_v59  ;;  %v11762_v61 = vld [vmem:[#allocation80_spill] sm:$0xff]  ;;  %v4574_v37 = vpop.f32.mrf.mxu2 }
 0x89b   :  { %4754 = vmatpush.bf16.msra.mxu0 %v11740_v38  ;;  %4782 = vmatpush.bf16.msra.mxu2 %v11742_v39  ;;  %v4548_v59 = vpop.f32.mrf.mxu0  ;;  %v11769_v39 = vld [vmem:[#allocation87_spill] sm:$0xff]  ;;  %v4587_v18 = vpop.f32.mrf.mxu3 }
 0x89d   :  { %4767 = vmatpush.bf16.msra.mxu1 %v11741_v3  ;;  %4795 = vmatpush.bf16.msra.mxu3 %v11743_v30  ;;  %v4561_v38 = vpop.f32.mrf.mxu1  ;;  %v11768_v3 = vld [vmem:[#allocation86_spill] sm:$0xff]  ;;  %v11770_v30 = vld [vmem:[#allocation88_spill] sm:$0xff] }
 0x89e   :  { %v4562_v35 = vadd.f32 %v4561_v38, %v4548_v59  ;;  %v11785_v59 = vld [vmem:[#allocation103_spill] sm:$0xff]  ;;  %v11786_v38 = vld [vmem:[#allocation104_spill] sm:$0xff] }
 0x89f   :  { %4755 = vmatpush.bf16.msra.mxu0 %v11744_v34  ;;  %4783 = vmatpush.bf16.msra.mxu2 %v11746_v24 }
 0x8a0   :  { %v5188_v54 = vpop.permute.xlu0 %5187  ;;  %v4575_v34 = vadd.f32 %v4574_v37, %v4562_v35  ;;  %v11783_v37 = vld [vmem:[#allocation101_spill] sm:$0xff]  ;;  %v11789_v35 = vld [vmem:[#allocation107_spill] sm:$0xff] }
 0x8a1   :  { %4768 = vmatpush.bf16.msra.mxu1 %v11745_v29  ;;  %4796 = vmatpush.bf16.msra.mxu3 %v11747_v25  ;;  %v5228_v29 = vsel %vm74_vm4, %v10786_v42, %v5188_v54  ;;  %v4576_v42 = vpop.f32.mrf.mxu2 }
 0x8a2   :  { %v5392_v24 = vadd.f32 %v5360_v16, %v5228_v29  ;;  %v5300_v25 = vpop.permute.xlu1 %5299  ;;  %v11792_v16 = vld [vmem:[#allocation110_spill] sm:$0xff]  ;;  %v11794_v29 = vld [vmem:[#allocation112_spill] sm:$0xff] }
 0x8a3   :  { %4756 = vmatpush.bf16.msra.mxu0 %v11748_v47  ;;  %4784 = vmatpush.bf16.msra.mxu2 %v11750_v43  ;;  %v5341_v47 = vsel %vm65_vm5, %v10772_v10, %v5298_v50  ;;  %v11772_v43 = vld [vmem:[#allocation90_spill] sm:$0xff]  ;;  %v5340_v23 = vsel %vm65_vm5, %v5298_v50, %v5300_v25 }
 0x8a5   :  { %4769 = vmatpush.bf16.msra.mxu1 %v11749_v40  ;;  %4797 = vmatpush.bf16.msra.mxu3 %v11752_v52  ;;  %v10851_v40 = vadd.f32 %v4587_v18, %v4575_v34  ;;  %v11774_v52 = vld [vmem:[#allocation92_spill] sm:$0xff]  ;;  %v11793_v34 = vld [vmem:[#allocation111_spill] sm:$0xff] }
 0x8a6   :  { %4785 = vmatmul.bf16.vlgmr.msra.gmra.mxu2 %v10708_v21  ;;  %v11790_v18 = vld [vmem:[#allocation108_spill] sm:$0xff] }
 0x8a7   :  { %4829 = vmatpush.bf16.msrb.mxu2 %v11751_v55  ;;  %4757 = vmatpush.bf16.msra.mxu0 %v11754_v26  ;;  %v11773_v55 = vld [vmem:[#allocation91_spill] sm:$0xff]  ;;  %v5269_v26 = vrot.slane %v10851_v40, 4 }
 0x8a8   :  { %4798 = vmatmul.bf16.vlgmr.msra.gmra.mxu3 %v10714_v32  ;;  %5195 = vrot.lane.b32.xlu1 %v10851_v40, %s7572_s29 }
 0x8a9   :  { %4842 = vmatpush.bf16.msrb.mxu3 %v11753_v49  ;;  %4770 = vmatpush.bf16.msra.mxu1 %v11755_v2  ;;  %v10858_v49 = vadd.f32 %v5392_v24, %v5341_v47  ;;  %v11775_v2 = vld [vmem:[#allocation93_spill] sm:$0xff]  ;;  %v11796_v24 = vld [vmem:[#allocation114_spill] sm:$0xff]  ;;  %v11798_v47 = vld [vmem:[#allocation116_spill] sm:$0xff] }
 0x8aa   :  { %5307 = vrot.lane.b32.xlu2 %v5269_v26, %s7571_s28  ;;  %v11800_v26 = vld [vmem:[#allocation118_spill] sm:$0xff] }
 0x8ab   :  { %4830 = vmatpush.bf16.msrb.mxu2 %v11756_v7  ;;  %4758 = vmatpush.bf16.msra.mxu0 %v11758_v4  ;;  %v4550_v7 = vpop.f32.mrf.mxu0  ;;  %v11776_v4 = vld [vmem:[#allocation94_spill] sm:$0xff] }
 0x8ad   :  { %4843 = vmatpush.bf16.msrb.mxu3 %v11757_v31  ;;  %4771 = vmatpush.bf16.msra.mxu1 %v11759_v8  ;;  %v4563_v31 = vpop.f32.mrf.mxu1  ;;  %v11777_v8 = vld [vmem:[#allocation95_spill] sm:$0xff] }
 0x8ae   :  { %4759 = vmatmul.bf16.vlgmr.msra.gmra.mxu0 %v10727_v63 }
 0x8af   :  { %4803 = vmatpush.bf16.msrb.mxu0 %v11760_v56  ;;  %4831 = vmatpush.bf16.msrb.mxu2 %v11762_v61  ;;  %v4589_v56 = vpop.f32.mrf.mxu3 }
 0x8b0   :  { %4772 = vmatmul.bf16.vlgmr.msra.gmra.mxu1 %v10731_v11  ;;  %v11802_v56 = vld [vmem:[#allocation120_spill] sm:$0xff] }
 0x8b1   :  { %4816 = vmatpush.bf16.msrb.mxu1 %v11761_v51  ;;  %4844 = vmatpush.bf16.msrb.mxu3 %v11763_v41  ;;  %v11778_v51 = vld [vmem:[#allocation96_spill] sm:$0xff]  ;;  %v11779_v41 = vld [vmem:[#allocation97_spill] sm:$0xff] }
 0x8b2   :  { %v10868_v61 = vpop.permute.xlu2 %5301 }
 0x8b3   :  { %4804 = vmatpush.bf16.msrb.mxu0 %v11764_v57  ;;  %4832 = vmatpush.bf16.msrb.mxu2 %v11766_v12  ;;  %v5339_v50 = vsel %vm65_vm5, %v5300_v25, %v10868_v61  ;;  %v11780_v57 = vld [vmem:[#allocation98_spill] sm:$0xff]  ;;  %v11782_v12 = vld [vmem:[#allocation100_spill] sm:$0xff]  ;;  %v11797_v25 = vld [vmem:[#allocation115_spill] sm:$0xff] }
 0x8b5   :  { %4817 = vmatpush.bf16.msrb.mxu1 %v11765_v5  ;;  %4845 = vmatpush.bf16.msrb.mxu3 %v11767_v27  ;;  %v11781_v5 = vld [vmem:[#allocation99_spill] sm:$0xff]  ;;  %v11784_v27 = vld [vmem:[#allocation102_spill] sm:$0xff] }
 0x8b7   :  { %4805 = vmatpush.bf16.msrb.mxu0 %v11768_v3  ;;  %4833 = vmatpush.bf16.msrb.mxu2 %v11770_v30  ;;  %v11787_v3 = vld [vmem:[#allocation105_spill] sm:$0xff] }
 0x8b8   :  { %v11791_v30 = vld [vmem:[#allocation109_spill] sm:$0xff] }
 0x8b9   :  { %4818 = vmatpush.bf16.msrb.mxu1 %v11769_v39  ;;  %4846 = vmatpush.bf16.msrb.mxu3 %v11771_v6  ;;  %v11788_v39 = vld [vmem:[#allocation106_spill] sm:$0xff]  ;;  %v11795_v6 = vld [vmem:[#allocation113_spill] sm:$0xff] }
 0x8bb   :  { %4806 = vmatpush.bf16.msrb.mxu0 %v11772_v43  ;;  %4834 = vmatpush.bf16.msrb.mxu2 %v11774_v52 }
 0x8bd   :  { %4819 = vmatpush.bf16.msrb.mxu1 %v11773_v55  ;;  %4847 = vmatpush.bf16.msrb.mxu3 %v11775_v2  ;;  %v11799_v55 = vld [vmem:[#allocation117_spill] sm:$0xff]  ;;  %v11801_v2 = vld [vmem:[#allocation119_spill] sm:$0xff] }
 0x8bf   :  { %4807 = vmatpush.bf16.msrb.mxu0 %v11776_v4  ;;  %4835 = vmatpush.bf16.msrb.mxu2 %v11778_v51  ;;  %v5361_v4 = vrot.slane %v10629_v45, 2 }
 0x8c1   :  { %4820 = vmatpush.bf16.msrb.mxu1 %v11777_v8  ;;  %4848 = vmatpush.bf16.msrb.mxu3 %v11779_v41 }
 0x8c3   :  { %4808 = vmatpush.bf16.msrb.mxu0 %v11780_v57  ;;  %4836 = vmatpush.bf16.msrb.mxu2 %v11782_v12 }
 0x8c5   :  { %4821 = vmatpush.bf16.msrb.mxu1 %v11781_v5  ;;  %4849 = vmatpush.bf16.msrb.mxu3 %v11784_v27  ;;  %v11803_v5 = vld [vmem:[#allocation121_spill] sm:$0xff]  ;;  %v11805_v27 = vld [vmem:[#allocation123_spill] sm:$0xff] }
 0x8c6   :  { %4837 = vmatmul.bf16.vlgmr.msrb.gmra.mxu2 %v10708_v21 }
 0x8c7   :  { %4881 = vmatpush.bf16.msra.mxu2 %v11783_v37  ;;  %4809 = vmatpush.bf16.msrb.mxu0 %v11786_v38  ;;  %v11804_v37 = vld [vmem:[#allocation122_spill] sm:$0xff]  ;;  %v11806_v38 = vld [vmem:[#allocation124_spill] sm:$0xff] }
 0x8c8   :  { %4850 = vmatmul.bf16.vlgmr.msrb.gmra.mxu3 %v10714_v32  ;;  %v5190_v8 = vpop.permute.xlu1 %5189 }
 0x8c9   :  { %4894 = vmatpush.bf16.msra.mxu3 %v11785_v59  ;;  %4822 = vmatpush.bf16.msrb.mxu1 %v11787_v3  ;;  %v4626_v43 = vpop.f32.mrf.mxu2  ;;  %v5227_v51 = vsel %vm74_vm4, %v5188_v54, %v5190_v8  ;;  %v5362_v54 = vrot.slane %v10689_v15, 2 }
 0x8ca   :  { %v5393_v57 = vadd.f32 %v5361_v4, %v5227_v51  ;;  %v11820_v51 = vld [vmem:[#allocation138_spill] sm:$0xff] }
 0x8cb   :  { %4882 = vmatpush.bf16.msra.mxu2 %v11788_v39  ;;  %4810 = vmatpush.bf16.msrb.mxu0 %v11790_v18  ;;  %v4600_v52 = vpop.f32.mrf.mxu0  ;;  %v4639_v31 = vpop.f32.mrf.mxu3 }
 0x8cc   :  { %v5409_v59 = vadd.f32 %v5393_v57, %v5340_v23  ;;  %v10914_v39 = vpop.permute.xlu2 %5191  ;;  %v11822_v57 = vld [vmem:[#allocation140_spill] sm:$0xff] }
 0x8cd   :  { %4895 = vmatpush.bf16.msra.mxu3 %v11789_v35  ;;  %4823 = vmatpush.bf16.msrb.mxu1 %v11791_v30  ;;  %v4613_v42 = vpop.f32.mrf.mxu1  ;;  %v11807_v35 = vld [vmem:[#allocation125_spill] sm:$0xff]  ;;  %v5226_v23 = vsel %vm74_vm4, %v5190_v8, %v10914_v39  ;;  %v11818_v8 = vld [vmem:[#allocation136_spill] sm:$0xff] }
 0x8ce   :  { %4811 = vmatmul.bf16.vlgmr.msrb.gmra.mxu0 %v10727_v63  ;;  %v4614_v7 = vadd.f32 %v4613_v42, %v4600_v52  ;;  %v5425_v15 = vmax.f32 %v5409_v59, 0.0  ;;  %v11814_v42 = vld [vmem:[#allocation132_spill] sm:$0xff] }
 0x8cf   :  { %4855 = vmatpush.bf16.msra.mxu0 %v11792_v16  ;;  %4883 = vmatpush.bf16.msra.mxu2 %v11794_v29  ;;  %v11808_v16 = vld [vmem:[#allocation126_spill] sm:$0xff]  ;;  %v11826_v59 = vld [vmem:[#allocation144_spill] sm:$0xff] }
 0x8d0   :  { %4824 = vmatmul.bf16.vlgmr.msrb.gmra.mxu1 %v10731_v11  ;;  %v4627_v41 = vadd.f32 %v4626_v43, %v4614_v7  ;;  %v11812_v43 = vld [vmem:[#allocation130_spill] sm:$0xff] }
 0x8d1   :  { %4868 = vmatpush.bf16.msra.mxu1 %v11793_v34  ;;  %4896 = vmatpush.bf16.msra.mxu3 %v11795_v6  ;;  %v4628_v45 = vpop.f32.mrf.mxu2  ;;  %v11809_v34 = vld [vmem:[#allocation127_spill] sm:$0xff]  ;;  %v5394_v6 = vadd.f32 %v5362_v54, %v5226_v23  ;;  %v11830_v54 = vld [vmem:[#allocation148_spill] sm:$0xff] }
 0x8d2   :  { %v10905_v12 = vadd.f32 %v4639_v31, %v4627_v41  ;;  %v11816_v31 = vld [vmem:[#allocation134_spill] sm:$0xff]  ;;  %v11821_v41 = vld [vmem:[#allocation139_spill] sm:$0xff] }
 0x8d3   :  { %4856 = vmatpush.bf16.msra.mxu0 %v11796_v24  ;;  %4884 = vmatpush.bf16.msra.mxu2 %v11798_v47  ;;  %v4602_v18 = vpop.f32.mrf.mxu0  ;;  %v4641_v29 = vpop.f32.mrf.mxu3  ;;  %v11810_v24 = vld [vmem:[#allocation128_spill] sm:$0xff]  ;;  %v11811_v47 = vld [vmem:[#allocation129_spill] sm:$0xff]  ;;  %v11828_v45 = vld [vmem:[#allocation146_spill] sm:$0xff] }
 0x8d4   :  { %5197 = vrot.lane.b32.xlu2 %v10905_v12, %s7572_s29  ;;  %v5270_v3 = vrot.slane %v10905_v12, 4  ;;  %v11831_v18 = vld [vmem:[#allocation149_spill] sm:$0xff] }
 0x8d5   :  { %4869 = vmatpush.bf16.msra.mxu1 %v11797_v25  ;;  %4897 = vmatpush.bf16.msra.mxu3 %v11799_v55  ;;  %v4615_v30 = vpop.f32.mrf.mxu1  ;;  %v5410_v25 = vadd.f32 %v5394_v6, %v5339_v50  ;;  %v11813_v55 = vld [vmem:[#allocation131_spill] sm:$0xff] }
 0x8d6   :  { %5309 = vrot.lane.b32.xlu0 %v5270_v3, %s7571_s28  ;;  %v11817_v50 = vld [vmem:[#allocation135_spill] sm:$0xff] }
 0x8d7   :  { %4857 = vmatpush.bf16.msra.mxu0 %v11800_v26  ;;  %4885 = vmatpush.bf16.msra.mxu2 %v11802_v56  ;;  %v5426_v52 = vmax.f32 %v5410_v25, 0.0  ;;  %v5448_v26 = vrot.slane %v5425_v15, 4  ;;  %v11819_v56 = vld [vmem:[#allocation137_spill] sm:$0xff]  ;;  %v11829_v3 = vld [vmem:[#allocation147_spill] sm:$0xff] }
 0x8d8   :  { %v11835_v25 = vld [vmem:[#allocation153_spill] sm:$0xff] }
 0x8d9   :  { %4870 = vmatpush.bf16.msra.mxu1 %v11801_v2  ;;  %4898 = vmatpush.bf16.msra.mxu3 %v11803_v5  ;;  %v11815_v2 = vld [vmem:[#allocation133_spill] sm:$0xff]  ;;  %v5449_v7 = vrot.slane %v5426_v52, 2  ;;  %v11838_v52 = vld [vmem:[#allocation156_spill] sm:$0xff] }
 0x8da   :  { %v11823_v5 = vld [vmem:[#allocation141_spill] sm:$0xff] }
 0x8db   :  { %4858 = vmatpush.bf16.msra.mxu0 %v11804_v37  ;;  %4886 = vmatpush.bf16.msra.mxu2 %v11806_v38  ;;  %v10931_v4 = vsel %vm5455_vm3, %v5448_v26, %v5449_v7  ;;  %v11824_v37 = vld [vmem:[#allocation142_spill] sm:$0xff]  ;;  %v11827_v38 = vld [vmem:[#allocation145_spill] sm:$0xff] }
 0x8dd   :  { %4871 = vmatpush.bf16.msra.mxu1 %v11805_v27  ;;  %4899 = vmatpush.bf16.msra.mxu3 %v11807_v35  ;;  %v11825_v27 = vld [vmem:[#allocation143_spill] sm:$0xff] }
 0x8df   :  { %4859 = vmatpush.bf16.msra.mxu0 %v11808_v16  ;;  %4887 = vmatpush.bf16.msra.mxu2 %v11810_v24  ;;  %v11832_v16 = vld [vmem:[#allocation150_spill] sm:$0xff]  ;;  %v11834_v24 = vld [vmem:[#allocation152_spill] sm:$0xff] }
 0x8e1   :  { %4872 = vmatpush.bf16.msra.mxu1 %v11809_v34  ;;  %4900 = vmatpush.bf16.msra.mxu3 %v11811_v47  ;;  %v11833_v34 = vld [vmem:[#allocation151_spill] sm:$0xff] }
 0x8e3   :  { %4860 = vmatpush.bf16.msra.mxu0 %v11812_v43  ;;  %4888 = vmatpush.bf16.msra.mxu2 %v11814_v42  ;;  %v11836_v43 = vld [vmem:[#allocation154_spill] sm:$0xff] }
 0x8e5   :  { %4873 = vmatpush.bf16.msra.mxu1 %v11813_v55  ;;  %4901 = vmatpush.bf16.msra.mxu3 %v11816_v31  ;;  %v11837_v55 = vld [vmem:[#allocation155_spill] sm:$0xff] }
 0x8e6   :  { %4889 = vmatmul.bf16.vlgmr.msra.gmra.mxu2 %v10708_v21 }
 0x8e7   :  { %4933 = vmatpush.bf16.msrb.mxu2 %v11815_v2  ;;  %4861 = vmatpush.bf16.msra.mxu0 %v11818_v8  ;;  %v11839_v2 = vld [vmem:[#allocation157_spill] sm:$0xff]  ;;  %v11841_v8 = vld [vmem:[#allocation159_spill] sm:$0xff] }
 0x8e8   :  { %4902 = vmatmul.bf16.vlgmr.msra.gmra.mxu3 %v10714_v32 }
 0x8e9   :  { %4946 = vmatpush.bf16.msrb.mxu3 %v11817_v50  ;;  %4874 = vmatpush.bf16.msra.mxu1 %v11819_v56  ;;  %v4682_v35 = vpop.f32.mrf.mxu2  ;;  %v11840_v50 = vld [vmem:[#allocation158_spill] sm:$0xff] }
 0x8eb   :  { %4934 = vmatpush.bf16.msrb.mxu2 %v11820_v51  ;;  %4862 = vmatpush.bf16.msra.mxu0 %v11822_v57  ;;  %v4656_v30 = vpop.f32.mrf.mxu0  ;;  %v4695_v6 = vpop.f32.mrf.mxu3  ;;  %v11842_v51 = vld [vmem:[#allocation160_spill] sm:$0xff]  ;;  %v11844_v57 = vld [vmem:[#allocation162_spill] sm:$0xff] }
 0x8ed   :  { %4947 = vmatpush.bf16.msrb.mxu3 %v11821_v41  ;;  %4875 = vmatpush.bf16.msra.mxu1 %v11823_v5  ;;  %v4669_v23 = vpop.f32.mrf.mxu1  ;;  %v11843_v41 = vld [vmem:[#allocation161_spill] sm:$0xff]  ;;  %v11845_v5 = vld [vmem:[#allocation163_spill] sm:$0xff] }
 0x8ee   :  { %4863 = vmatmul.bf16.vlgmr.msra.gmra.mxu0 %v10727_v63  ;;  %v4670_v29 = vadd.f32 %v4669_v23, %v4656_v30  ;;  %v11855_v30 = vld [vmem:[#allocation173_spill] sm:$0xff]  ;;  %v11856_v23 = vld [vmem:[#allocation174_spill] sm:$0xff] }
 0x8ef   :  { %4907 = vmatpush.bf16.msrb.mxu0 %v11824_v37  ;;  %4935 = vmatpush.bf16.msrb.mxu2 %v11826_v59  ;;  %v11846_v37 = vld [vmem:[#allocation164_spill] sm:$0xff]  ;;  %v11848_v59 = vld [vmem:[#allocation166_spill] sm:$0xff] }
 0x8f0   :  { %4876 = vmatmul.bf16.vlgmr.msra.gmra.mxu1 %v10731_v11  ;;  %v4683_v15 = vadd.f32 %v4682_v35, %v4670_v29  ;;  %v11853_v35 = vld [vmem:[#allocation171_spill] sm:$0xff] }
 0x8f1   :  { %4920 = vmatpush.bf16.msrb.mxu1 %v11825_v27  ;;  %4948 = vmatpush.bf16.msrb.mxu3 %v11827_v38  ;;  %v4684_v42 = vpop.f32.mrf.mxu2  ;;  %v11847_v27 = vld [vmem:[#allocation165_spill] sm:$0xff]  ;;  %v11849_v38 = vld [vmem:[#allocation167_spill] sm:$0xff] }
 0x8f2   :  { %v10956_v47 = vadd.f32 %v4695_v6, %v4683_v15  ;;  %v11859_v29 = vld [vmem:[#allocation179_spill] sm:$0xff]  ;;  %v11860_v6 = vld [vmem:[#allocation180_spill] sm:$0xff]  ;;  %v11862_v15 = vld [vmem:[#allocation182_spill] sm:$0xff] }
 0x8f3   :  { %4908 = vmatpush.bf16.msrb.mxu0 %v11828_v45  ;;  %4936 = vmatpush.bf16.msrb.mxu2 %v11830_v54  ;;  %v4658_v7 = vpop.f32.mrf.mxu0  ;;  %v4697_v56 = vpop.f32.mrf.mxu3  ;;  %v11850_v45 = vld [vmem:[#allocation168_spill] sm:$0xff]  ;;  %v11852_v54 = vld [vmem:[#allocation170_spill] sm:$0xff] }
 0x8f4   :  { %5199 = vrot.lane.b32.xlu0 %v10956_v47, %s7572_s29  ;;  %v5271_v26 = vrot.slane %v10956_v47, 4  ;;  %v11864_v42 = vld [vmem:[#allocation184_spill] sm:$0xff] }
 0x8f5   :  { %4921 = vmatpush.bf16.msrb.mxu1 %v11829_v3  ;;  %4949 = vmatpush.bf16.msrb.mxu3 %v11831_v18  ;;  %v4671_v31 = vpop.f32.mrf.mxu1  ;;  %v11851_v3 = vld [vmem:[#allocation169_spill] sm:$0xff]  ;;  %v11854_v18 = vld [vmem:[#allocation172_spill] sm:$0xff] }
 0x8f6   :  { %5311 = vrot.lane.b32.xlu1 %v5271_v26, %s7571_s28  ;;  %v11865_v26 = vld [vmem:[#allocation185_spill] sm:$0xff]  ;;  %v11866_v31 = vld [vmem:[#allocation186_spill] sm:$0xff] }
 0x8f7   :  { %4909 = vmatpush.bf16.msrb.mxu0 %v11832_v16  ;;  %4937 = vmatpush.bf16.msrb.mxu2 %v11834_v24  ;;  %v11857_v16 = vld [vmem:[#allocation175_spill] sm:$0xff]  ;;  %v11861_v24 = vld [vmem:[#allocation181_spill] sm:$0xff] }
 0x8f9   :  { %4922 = vmatpush.bf16.msrb.mxu1 %v11833_v34  ;;  %4950 = vmatpush.bf16.msrb.mxu3 %v11835_v25  ;;  %v11858_v34 = vld [vmem:[#allocation177_spill] sm:$0xff] }
 0x8fb   :  { %4910 = vmatpush.bf16.msrb.mxu0 %v11836_v43  ;;  %4938 = vmatpush.bf16.msrb.mxu2 %v11838_v52  ;;  %v11863_v43 = vld [vmem:[#allocation183_spill] sm:$0xff] }
 0x8fd   :  { %4923 = vmatpush.bf16.msrb.mxu1 %v11837_v55  ;;  %4951 = vmatpush.bf16.msrb.mxu3 %v11839_v2 }
 0x8ff   :  { %4911 = vmatpush.bf16.msrb.mxu0 %v11840_v50  ;;  %4939 = vmatpush.bf16.msrb.mxu2 %v11842_v51  ;;  %v11868_v51 = vld [vmem:[#allocation188_spill] sm:$0xff] }
 0x901   :  { %4924 = vmatpush.bf16.msrb.mxu1 %v11841_v8  ;;  %4952 = vmatpush.bf16.msrb.mxu3 %v11843_v41  ;;  %v11867_v8 = vld [vmem:[#allocation187_spill] sm:$0xff]  ;;  %v11869_v41 = vld [vmem:[#allocation189_spill] sm:$0xff] }
 0x903   :  { %4912 = vmatpush.bf16.msrb.mxu0 %v11844_v57  ;;  %4940 = vmatpush.bf16.msrb.mxu2 %v11846_v37  ;;  %v11870_v57 = vld [vmem:[#allocation190_spill] sm:$0xff] }
 0x905   :  { %4925 = vmatpush.bf16.msrb.mxu1 %v11845_v5  ;;  %4953 = vmatpush.bf16.msrb.mxu3 %v11848_v59 }
 0x906   :  { %4941 = vmatmul.bf16.vlgmr.msrb.gmra.mxu2 %v10708_v21 }
 0x907   :  { %4985 = vmatpush.bf16.msra.mxu2 %v11847_v27  ;;  %4913 = vmatpush.bf16.msrb.mxu0 %v11850_v45  ;;  %v11871_v27 = vld [vmem:[#allocation192_spill] sm:$0xff]  ;;  %v11872_v45 = vld [vmem:[#allocation193_spill] sm:$0xff] }
 0x908   :  { %4954 = vmatmul.bf16.vlgmr.msrb.gmra.mxu3 %v10714_v32 }
 0x909   :  { %4998 = vmatpush.bf16.msra.mxu3 %v11849_v38  ;;  %4926 = vmatpush.bf16.msrb.mxu1 %v11851_v3  ;;  %v4734_v25 = vpop.f32.mrf.mxu2  ;;  %v11873_v3 = vld [vmem:[#allocation194_spill] sm:$0xff] }
 0x90b   :  { %4986 = vmatpush.bf16.msra.mxu2 %v11852_v54  ;;  %4914 = vmatpush.bf16.msrb.mxu0 %v11854_v18  ;;  %v4708_v55 = vpop.f32.mrf.mxu0  ;;  %v4747_v7 = vpop.f32.mrf.mxu3  ;;  %v11875_v18 = vld [vmem:[#allocation196_spill] sm:$0xff] }
 0x90d   :  { %4999 = vmatpush.bf16.msra.mxu3 %v11853_v35  ;;  %4927 = vmatpush.bf16.msrb.mxu1 %v11855_v30  ;;  %v4721_v52 = vpop.f32.mrf.mxu1  ;;  %v11874_v35 = vld [vmem:[#allocation195_spill] sm:$0xff]  ;;  %v11876_v30 = vld [vmem:[#allocation197_spill] sm:$0xff] }
 0x90e   :  { %4915 = vmatmul.bf16.vlgmr.msrb.gmra.mxu0 %v10727_v63  ;;  %v4722_v2 = vadd.f32 %v4721_v52, %v4708_v55  ;;  %v11885_v55 = vld [vmem:[#allocation206_spill] sm:$0xff]  ;;  %v11886_v52 = vld [vmem:[#allocation207_spill] sm:$0xff] }
 0x90f   :  { %4959 = vmatpush.bf16.msra.mxu0 %v11856_v23  ;;  %4987 = vmatpush.bf16.msra.mxu2 %v11858_v34  ;;  %v11877_v23 = vld [vmem:[#allocation198_spill] sm:$0xff]  ;;  %v11879_v34 = vld [vmem:[#allocation200_spill] sm:$0xff] }
 0x910   :  { %4928 = vmatmul.bf16.vlgmr.msrb.gmra.mxu1 %v10731_v11  ;;  %v4735_v50 = vadd.f32 %v4734_v25, %v4722_v2  ;;  %v11883_v25 = vld [vmem:[#allocation204_spill] sm:$0xff]  ;;  %v11888_v2 = vld [vmem:[#allocation209_spill] sm:$0xff] }
 0x911   :  { %4972 = vmatpush.bf16.msra.mxu1 %v11857_v16  ;;  %5000 = vmatpush.bf16.msra.mxu3 %v11859_v29  ;;  %v4736_v5 = vpop.f32.mrf.mxu2  ;;  %v11878_v16 = vld [vmem:[#allocation199_spill] sm:$0xff]  ;;  %v11880_v29 = vld [vmem:[#allocation201_spill] sm:$0xff] }
 0x912   :  { %v10998_v56 = vadd.f32 %v4747_v7, %v4735_v50  ;;  %v11889_v7 = vld [vmem:[#allocation210_spill] sm:$0xff]  ;;  %v11894_v5 = vld [vmem:[#allocation215_spill] sm:$0xff] }
 0x913   :  { %4960 = vmatpush.bf16.msra.mxu0 %v11860_v6  ;;  %4988 = vmatpush.bf16.msra.mxu2 %v11862_v15  ;;  %v4710_v59 = vpop.f32.mrf.mxu0  ;;  %v4749_v54 = vpop.f32.mrf.mxu3  ;;  %v11882_v15 = vld [vmem:[#allocation203_spill] sm:$0xff] }
 0x914   :  { %5201 = vrot.lane.b32.xlu1 %v10998_v56, %s7572_s29  ;;  %v5272_v37 = vrot.slane %v10998_v56, 4  ;;  %v5304_v6 = vpop.permute.xlu0 %5303  ;;  %v11895_v59 = vld [vmem:[#allocation216_spill] sm:$0xff]  ;;  %v11896_v54 = vld [vmem:[#allocation217_spill] sm:$0xff] }
 0x915   :  { %4973 = vmatpush.bf16.msra.mxu1 %v11861_v24  ;;  %5001 = vmatpush.bf16.msra.mxu3 %v11863_v43  ;;  %v4723_v38 = vpop.f32.mrf.mxu1  ;;  %v11881_v24 = vld [vmem:[#allocation202_spill] sm:$0xff]  ;;  %v11884_v43 = vld [vmem:[#allocation205_spill] sm:$0xff] }
 0x916   :  { %5313 = vrot.lane.b32.xlu2 %v5272_v37, %s7571_s28 }
 0x917   :  { %4961 = vmatpush.bf16.msra.mxu0 %v11864_v42  ;;  %4989 = vmatpush.bf16.msra.mxu2 %v11866_v31  ;;  %v11887_v42 = vld [vmem:[#allocation208_spill] sm:$0xff]  ;;  %v11890_v31 = vld [vmem:[#allocation211_spill] sm:$0xff] }
 0x919   :  { %4974 = vmatpush.bf16.msra.mxu1 %v11865_v26  ;;  %5002 = vmatpush.bf16.msra.mxu3 %v11867_v8  ;;  %v11026_v26 = vpop.permute.xlu1 %5305  ;;  %v11891_v8 = vld [vmem:[#allocation212_spill] sm:$0xff] }
 0x91b   :  { %4962 = vmatpush.bf16.msra.mxu0 %v11868_v51  ;;  %4990 = vmatpush.bf16.msra.mxu2 %v11870_v57  ;;  %v11892_v51 = vld [vmem:[#allocation213_spill] sm:$0xff] }
 0x91c   :  { %v5194_v50 = vpop.permute.xlu0 %5193 }
 0x91d   :  { %4975 = vmatpush.bf16.msra.mxu1 %v11869_v41  ;;  %5003 = vmatpush.bf16.msra.mxu3 %v11871_v27  ;;  %v11893_v41 = vld [vmem:[#allocation214_spill] sm:$0xff]  ;;  %v5225_v57 = vsel %vm74_vm4, %v10914_v39, %v5194_v50  ;;  %v5363_v27 = vrot.slane %v10747_v14, 2 }
 0x91f   :  { %4963 = vmatpush.bf16.msra.mxu0 %v11872_v45  ;;  %4991 = vmatpush.bf16.msra.mxu2 %v11874_v35  ;;  %v11897_v35 = vld [vmem:[#allocation218_spill] sm:$0xff] }
 0x921   :  { %4976 = vmatpush.bf16.msra.mxu1 %v11873_v3  ;;  %5004 = vmatpush.bf16.msra.mxu3 %v11875_v18  ;;  %v5395_v3 = vadd.f32 %v5363_v27, %v5225_v57  ;;  %v5365_v57 = vrot.slane %v10851_v40, 2 }
 0x923   :  { %4964 = vmatpush.bf16.msra.mxu0 %v11876_v30  ;;  %4992 = vmatpush.bf16.msra.mxu2 %v11878_v16  ;;  %v5196_v16 = vpop.permute.xlu1 %5195 }
 0x924   :  { %v5224_v39 = vsel %vm74_vm4, %v5194_v50, %v5196_v16 }
 0x925   :  { %4977 = vmatpush.bf16.msra.mxu1 %v11877_v23  ;;  %5005 = vmatpush.bf16.msra.mxu3 %v11880_v29  ;;  %v5364_v23 = vrot.slane %v10802_v0, 2  ;;  %v5338_v29 = vsel %vm65_vm5, %v10868_v61, %v5304_v6 }
 0x926   :  { %4993 = vmatmul.bf16.vlgmr.msra.gmra.mxu2 %v10708_v21 }
 0x927   :  { %5037 = vmatpush.bf16.msrb.mxu2 %v11879_v34  ;;  %4965 = vmatpush.bf16.msra.mxu0 %v11882_v15  ;;  %v5396_v34 = vadd.f32 %v5364_v23, %v5224_v39  ;;  %v5411_v15 = vadd.f32 %v5395_v3, %v5338_v29  ;;  %v5366_v23 = vrot.slane %v10905_v12, 2 }
 0x928   :  { %5006 = vmatmul.bf16.vlgmr.msra.gmra.mxu3 %v10714_v32 }
 0x929   :  { %5050 = vmatpush.bf16.msrb.mxu3 %v11881_v24  ;;  %4978 = vmatpush.bf16.msra.mxu1 %v11883_v25  ;;  %v4786_v37 = vpop.f32.mrf.mxu2  ;;  %v5337_v24 = vsel %vm65_vm5, %v5304_v6, %v11026_v26  ;;  %v11898_v25 = vld [vmem:[#allocation219_spill] sm:$0xff]  ;;  %v11900_v6 = vld [vmem:[#allocation221_spill] sm:$0xff] }
 0x92b   :  { %5038 = vmatpush.bf16.msrb.mxu2 %v11884_v43  ;;  %4966 = vmatpush.bf16.msra.mxu0 %v11886_v52  ;;  %v4760_v38 = vpop.f32.mrf.mxu0  ;;  %v4799_v30 = vpop.f32.mrf.mxu3  ;;  %v11899_v43 = vld [vmem:[#allocation220_spill] sm:$0xff] }
 0x92d   :  { %5051 = vmatpush.bf16.msrb.mxu3 %v11885_v55  ;;  %4979 = vmatpush.bf16.msra.mxu1 %v11887_v42  ;;  %v4773_v45 = vpop.f32.mrf.mxu1 }
 0x92e   :  { %4967 = vmatmul.bf16.vlgmr.msra.gmra.mxu0 %v10727_v63  ;;  %v4774_v18 = vadd.f32 %v4773_v45, %v4760_v38  ;;  %v11903_v38 = vmov 0.0  }
 0x92f   :  { %5011 = vmatpush.bf16.msrb.mxu0 %v11888_v2  ;;  %5039 = vmatpush.bf16.msrb.mxu2 %v11890_v31  ;;  %v5427_v2 = vmax.f32 %v5411_v15, 0.0 }
 0x930   :  { %4980 = vmatmul.bf16.vlgmr.msra.gmra.mxu1 %v10731_v11  ;;  %v4787_v14 = vadd.f32 %v4786_v37, %v4774_v18 }
 0x931   :  { %5024 = vmatpush.bf16.msrb.mxu1 %v11889_v7  ;;  %5052 = vmatpush.bf16.msrb.mxu3 %v11891_v8  ;;  %v4788_v55 = vpop.f32.mrf.mxu2  ;;  %v11901_v7 = vld [vmem:[#allocation222_spill] sm:$0xff] }
 0x932   :  { %v11055_v0 = vadd.f32 %v4799_v30, %v4787_v14  ;;  %v11902_v8 = vld [vmem:[#allocation10_spill] sm:$0xff] }
 0x933   :  { %5012 = vmatpush.bf16.msrb.mxu0 %v11892_v51  ;;  %5040 = vmatpush.bf16.msrb.mxu2 %v11894_v5  ;;  %v4801_v31 = vpop.f32.mrf.mxu3  ;;  %v5078_v51 = vand.u32 1023, %v11902_v8 }
 0x934   :  { %5203 = vrot.lane.b32.xlu2 %v11055_v0, %s7572_s29  ;;  %v5273_v61 = vrot.slane %v11055_v0, 4 }
 0x935   :  { %5025 = vmatpush.bf16.msrb.mxu1 %v11893_v41  ;;  %5053 = vmatpush.bf16.msrb.mxu3 %v11895_v59  ;;  %v4775_v42 = vpop.f32.mrf.mxu1  ;;  %vm5142_vm7 = vcmp.ne.s32.totalorder %v5078_v51, 1023 }
 0x936   :  { %5315 = vrot.lane.b32.xlu0 %v5273_v61, %s7571_s28  ;;  %v7008_v45 = vsel %vm5142_vm7, 1.0, %v11903_v38  ;;  %v5063_v42 = vadd.s32 1024, %v11738_v1 }
 0x937   :  { %5013 = vmatpush.bf16.msrb.mxu0 %v11896_v54  ;;  %5041 = vmatpush.bf16.msrb.mxu2 %v10606_v13  ;;  %v5412_v13 = vadd.f32 %v5396_v34, %v5337_v24 }
 0x939   :  { %5026 = vmatpush.bf16.msrb.mxu1 %v11897_v35  ;;  %5054 = vmatpush.bf16.msrb.mxu3 %v10609_v9  ;;  %v5428_v52 = vmax.f32 %v5412_v13, 0.0  ;;  %v4762_v9 = vpop.f32.mrf.mxu0 }
 0x93b   :  { %5014 = vmatpush.bf16.msrb.mxu0 %v11898_v25  ;;  %5042 = vmatpush.bf16.msrb.mxu2 %v11899_v43 }
 0x93d   :  { %5027 = vmatpush.bf16.msrb.mxu1 %v10615_v20  ;;  %5055 = vmatpush.bf16.msrb.mxu3 %v11900_v6  ;;  %v5450_v20 = vrot.slane %v5428_v52, 6 }
 0x93f   :  { %5015 = vmatpush.bf16.msrb.mxu0 %v11901_v7  ;;  %5043 = vmatpush.bf16.msrb.mxu2 %v10632_v44  ;;  %v11069_v50 = vsel %vm5453_vm6, %v5427_v2, %v5450_v20  ;;  %v5079_v2 = vand.u32 1023, %v5063_v42 }
 0x941   :  { %5028 = vmatpush.bf16.msrb.mxu1 %v10627_v48  ;;  %5056 = vmatpush.bf16.msrb.mxu3 %v10635_v17  ;;  %vm5095_vm9 = vcmp.ne.s32.totalorder %v5079_v2, 0 }
 0x943   :  { %5016 = vmatpush.bf16.msrb.mxu0 %v10642_v60  ;;  %5044 = vmatpush.bf16.msrb.mxu2 %v10647_v33 }
 0x945   :  { %5029 = vmatpush.bf16.msrb.mxu1 %v10644_v53  ;;  %5057 = vmatpush.bf16.msrb.mxu3 %v10651_v22 }
 0x946   :  { %5045 = vmatmul.bf16.vlgmr.msrb.gmra.mxu2 %v10708_v21 }
 0x947   :  { %5017 = vmatpush.bf16.msrb.mxu0 %v10656_v62 }
 0x948   :  { %5058 = vmatmul.bf16.vlgmr.msrb.gmra.mxu3 %v10714_v32  ;;  %v5308_v32 = vpop.permute.xlu2 %5307 }
 0x949   :  { %5030 = vmatpush.bf16.msrb.mxu1 %v10658_v19  ;;  %v4838_v48 = vpop.f32.mrf.mxu2  ;;  %v5336_v18 = vsel %vm65_vm5, %v11026_v26, %v5308_v32 }
 0x94b   :  { %5018 = vmatpush.bf16.msrb.mxu0 %v10666_v28  ;;  %v4812_v44 = vpop.f32.mrf.mxu0  ;;  %v4851_v53 = vpop.f32.mrf.mxu3 }
 0x94d   :  { %5031 = vmatpush.bf16.msrb.mxu1 %v10668_v58  ;;  %v4825_v17 = vpop.f32.mrf.mxu1 }
 0x94e   :  { %5019 = vmatmul.bf16.vlgmr.msrb.gmra.mxu0 %v10727_v63  ;;  %v4826_v60 = vadd.f32 %v4825_v17, %v4812_v44 }
 0x950   :  { %5032 = vmatmul.bf16.vlgmr.msrb.gmra.mxu1 %v10731_v11  ;;  %v4839_v33 = vadd.f32 %v4838_v48, %v4826_v60  ;;  %v5198_v63 = vpop.permute.xlu2 %5197  ;;  %v5310_v11 = vpop.permute.xlu0 %5309  ;;  %v7007_v48 = vsel %vm5095_vm9, 1.0, %v11903_v38 }
 0x951   :  { %v4840_v62 = vpop.f32.mrf.mxu2  ;;  %v5223_v41 = vsel %vm74_vm4, %v5196_v16, %v5198_v63  ;;  %v5335_v29 = vsel %vm65_vm5, %v5308_v32, %v5310_v11 }
 0x952   :  { %v11084_v22 = vadd.f32 %v4851_v53, %v4839_v33  ;;  %v5397_v37 = vadd.f32 %v5365_v57, %v5223_v41 }
 0x953   :  { %v4814_v28 = vpop.f32.mrf.mxu0  ;;  %v4853_v21 = vpop.f32.mrf.mxu3 }
 0x954   :  { %v5274_v19 = vrot.slane %v11084_v22, 4  ;;  %5205 = vrot.lane.b32.xlu0 %v11084_v22, %s7572_s29  ;;  %v5413_v40 = vadd.f32 %v5397_v37, %v5336_v18 }
 0x955   :  { %v4827_v58 = vpop.f32.mrf.mxu1 }
 0x956   :  { %5317 = vrot.lane.b32.xlu1 %v5274_v19, %s7571_s28  ;;  %v5429_v15 = vmax.f32 %v5413_v40, 0.0 }
 0x958   :  { %v5451_v52 = vrot.slane %v5429_v15, 4 }
 0x966   :  { %v5200_v35 = vpop.permute.xlu0 %5199 }
 0x967   :  { %v5222_v30 = vsel %vm74_vm4, %v5198_v63, %v5200_v35 }
 0x968   :  { %v5238_v39 = vmul.f32 %v7008_v45, %v5222_v30  ;;  %v5312_v7 = vpop.permute.xlu1 %5311 }
 0x969   :  { %v4890_v5 = vpop.f32.mrf.mxu2  ;;  %v5334_v44 = vsel %vm65_vm5, %v5310_v11, %v5312_v7  ;;  %v5368_v11 = vrot.slane %v10998_v56, 2 }
 0x96a   :  { %v5398_v34 = vadd.f32 %v5366_v23, %v5238_v39  ;;  %v5351_v28 = vmul.f32 %v7007_v48, %v5334_v44 }
 0x96b   :  { %v4864_v27 = vpop.f32.mrf.mxu0  ;;  %v4903_v54 = vpop.f32.mrf.mxu3 }
 0x96c   :  { %v5414_v13 = vadd.f32 %v5398_v34, %v5335_v29 }
 0x96d   :  { %v4877_v59 = vpop.f32.mrf.mxu1 }
 0x96e   :  { %v4878_v3 = vadd.f32 %v4877_v59, %v4864_v27  ;;  %v5430_v12 = vmax.f32 %v5414_v13, 0.0 }
 0x970   :  { %v4891_v16 = vadd.f32 %v4890_v5, %v4878_v3  ;;  %v5452_v61 = vrot.slane %v5430_v12, 2  ;;  %v11113_v31 = vpop.permute.xlu2 %5313 }
 0x971   :  { %v4892_v24 = vpop.f32.mrf.mxu2  ;;  %v5333_v27 = vsel %vm65_vm5, %v5312_v7, %v11113_v31 }
 0x972   :  { %v11101_v14 = vadd.f32 %v4903_v54, %v4891_v16  ;;  %v5460_v6 = vsel %vm5455_vm3, %v5451_v52, %v5452_v61 }
 0x973   :  { %v4866_v26 = vpop.f32.mrf.mxu0  ;;  %v4905_v55 = vpop.f32.mrf.mxu3  ;;  %v5461_v9 = vsel %vm5457_vm8, %v11069_v50, %v5460_v6  ;;  %v5367_v50 = vrot.slane %v10956_v47, 2 }
 0x974   :  { %v5275_v25 = vrot.slane %v11101_v14, 4  ;;  %5207 = vrot.lane.b32.xlu1 %v11101_v14, %s7572_s29  ;;  %5465 = vst [vmem:[#allocation5 + $0x8] sm:$0xff] %v5461_v9 }
 0x975   :  { %v4879_v43 = vpop.f32.mrf.mxu1 }
 0x976   :  { %5319 = vrot.lane.b32.xlu2 %v5275_v25, %s7571_s28 }
 0x986   :  { %v5202_v62 = vpop.permute.xlu1 %5201 }
 0x987   :  { %v5221_v19 = vsel %vm74_vm4, %v5200_v35, %v5202_v62 }
 0x988   :  { %v5399_v21 = vadd.f32 %v5367_v50, %v5221_v19 }
 0x989   :  { %v4942_v20 = vpop.f32.mrf.mxu2 }
 0x98a   :  { %v5415_v63 = vadd.f32 %v5399_v21, %v5351_v28  ;;  %v5370_v28 = vrot.slane %v11084_v22, 2 }
 0x98b   :  { %v4916_v17 = vpop.f32.mrf.mxu0  ;;  %v4955_v33 = vpop.f32.mrf.mxu3 }
 0x98c   :  { %v5431_v3 = vmax.f32 %v5415_v63, 0.0 }
 0x98d   :  { %v4929_v60 = vpop.f32.mrf.mxu1 }
 0x98e   :  { %v4930_v53 = vadd.f32 %v4929_v60, %v4916_v17  ;;  %v5204_v51 = vpop.permute.xlu2 %5203 }
 0x98f   :  { %v5220_v47 = vsel %vm74_vm4, %v5202_v62, %v5204_v51 }
 0x990   :  { %v4943_v58 = vadd.f32 %v4942_v20, %v4930_v53  ;;  %v5400_v37 = vadd.f32 %v5368_v11, %v5220_v47  ;;  %v5369_v53 = vrot.slane %v11055_v0, 2 }
 0x991   :  { %v4944_v8 = vpop.f32.mrf.mxu2 }
 0x992   :  { %v11121_v32 = vadd.f32 %v4955_v33, %v4943_v58  ;;  %v5416_v59 = vadd.f32 %v5400_v37, %v5333_v27 }
 0x993   :  { %v4918_v41 = vpop.f32.mrf.mxu0  ;;  %v4957_v5 = vpop.f32.mrf.mxu3 }
 0x994   :  { %5209 = vrot.lane.b32.xlu2 %v11121_v32, %s7572_s29  ;;  %v5432_v45 = vmax.f32 %v5416_v59, 0.0  ;;  %v5276_v25 = vrot.slane %v11121_v32, 4  ;;  %v5371_v41 = vrot.slane %v11101_v14, 2 }
 0x995   :  { %v4931_v57 = vpop.f32.mrf.mxu1 }
 0x996   :  { %v5474_v54 = vrot.slane %v5432_v45, 6 }
 0x998   :  { %v5480_v35 = vsel %vm5453_vm6, %v5431_v3, %v5474_v54  ;;  %v5071_v54 = vand.u32 1023, %v11738_v1 }
 0x99a   :  { %vm5087_vm10 = vcmp.ne.s32.totalorder %v5071_v54, 0 }
 0x9a8   :  { %v5316_v48 = vpop.permute.xlu0 %5315 }
 0x9a9   :  { %v4994_v18 = vpop.f32.mrf.mxu2  ;;  %v5332_v62 = vsel %vm65_vm5, %v11113_v31, %v5316_v48 }
 0x9ab   :  { %v4968_v56 = vpop.f32.mrf.mxu0  ;;  %v5007_v40 = vpop.f32.mrf.mxu3 }
 0x9ad   :  { %v4981_v30 = vpop.f32.mrf.mxu1 }
 0x9ae   :  { %v4982_v23 = vadd.f32 %v4981_v30, %v4968_v56  ;;  %v7006_v56 = vsel %vm5087_vm10, 1.0, %v11903_v38 }
 0x9b0   :  { %v4995_v16 = vadd.f32 %v4994_v18, %v4982_v23  ;;  %v5372_v18 = vrot.slane %v11121_v32, 2 }
 0x9b1   :  { %v4996_v34 = vpop.f32.mrf.mxu2 }
 0x9b2   :  { %v11132_v39 = vadd.f32 %v5007_v40, %v4995_v16  ;;  %v5424_v34 = vmax.f32 %v10858_v49, 0.0 }
 0x9b3   :  { %v4970_v29 = vpop.f32.mrf.mxu0  ;;  %v5009_v15 = vpop.f32.mrf.mxu3 }
 0x9b4   :  { %5211 = vrot.lane.b32.xlu0 %v11132_v39, %s7572_s29  ;;  %v5277_v20 = vrot.slane %v11132_v39, 4  ;;  %v5447_v32 = vrot.slane %v5424_v34, 6 }
 0x9b5   :  { %v4983_v24 = vpop.f32.mrf.mxu1 }
 0x9bc   :  { %5321 = vrot.lane.b32.xlu0 %v5276_v25, %s7571_s28 }
 0x9c6   :  { %v5206_v44 = vpop.permute.xlu0 %5205 }
 0x9c7   :  { %v5219_v60 = vsel %vm74_vm4, %v5204_v51, %v5206_v44 }
 0x9c8   :  { %v5318_v17 = vpop.permute.xlu1 %5317  ;;  %v5401_v33 = vadd.f32 %v5369_v53, %v5219_v60 }
 0x9c9   :  { %v5046_v13 = vpop.f32.mrf.mxu2  ;;  %v5331_v8 = vsel %vm65_vm5, %v5316_v48, %v5318_v17 }
 0x9ca   :  { %v5417_v19 = vadd.f32 %v5401_v33, %v5332_v62 }
 0x9cb   :  { %v5020_v26 = vpop.f32.mrf.mxu0  ;;  %v5059_v12 = vpop.f32.mrf.mxu3 }
 0x9cc   :  { %v5433_v11 = vmax.f32 %v5417_v19, 0.0 }
 0x9cd   :  { %v5033_v43 = vpop.f32.mrf.mxu1 }
 0x9ce   :  { %v5034_v55 = vadd.f32 %v5033_v43, %v5020_v26  ;;  %v5475_v47 = vrot.slane %v5433_v11, 4 }
 0x9d0   :  { %v5047_v52 = vadd.f32 %v5046_v13, %v5034_v55  ;;  %v5320_v50 = vpop.permute.xlu2 %5319 }
 0x9d1   :  { %v5048_v6 = vpop.f32.mrf.mxu2  ;;  %v5330_v37 = vsel %vm65_vm5, %v5318_v17, %v5320_v50 }
 0x9d2   :  { %v11138_v61 = vadd.f32 %v5059_v12, %v5047_v52  ;;  %v5070_v52 = vadd.s32 1920, %v11738_v1 }
 0x9d3   :  { %v5022_v42 = vpop.f32.mrf.mxu0  ;;  %v5061_v7 = vpop.f32.mrf.mxu3 }
 0x9d4   :  { %v5278_v9 = vrot.slane %v11138_v61, 4  ;;  %5213 = vrot.lane.b32.xlu1 %v11138_v61, %s7572_s29  ;;  %v5086_v49 = vand.u32 1023, %v5070_v52  ;;  %v5374_v7 = vrot.slane %v11138_v61, 2 }
 0x9d5   :  { %v5035_v2 = vpop.f32.mrf.mxu1 }
 0x9d6   :  { %5325 = vrot.lane.b32.xlu2 %v5278_v9, %s7571_s28  ;;  %vm5150_vm11 = vcmp.ne.s32.totalorder %v5086_v49, 1023 }
 0x9dc   :  { %5323 = vrot.lane.b32.xlu1 %v5277_v20, %s7571_s28  ;;  %s5495_s28 = sshll.u32 %s7585_s1, 4  ;;  %s5496_s28 = int_to_ptr.vmem [resolvable:$true] %s5495_s28 }
 0x9e6   :  { %v5208_v58 = vpop.permute.xlu1 %5207 }
 0x9e7   :  { %v5218_v21 = vsel %vm74_vm4, %v5206_v44, %v5208_v58 }
 0x9e8   :  { %v5402_v63 = vadd.f32 %v5370_v28, %v5218_v21 }
 0x9ea   :  { %v5418_v51 = vadd.f32 %v5402_v63, %v5331_v8 }
 0x9ec   :  { %v5434_v0 = vmax.f32 %v5418_v51, 0.0 }
 0x9ee   :  { %v5210_v57 = vpop.permute.xlu2 %5209  ;;  %v5476_v5 = vrot.slane %v5434_v0, 2 }
 0x9ef   :  { %v5217_v31 = vsel %vm74_vm4, %v5208_v58, %v5210_v57 }
 0x9f0   :  { %v5403_v22 = vadd.f32 %v5371_v41, %v5217_v31  ;;  %v5481_v27 = vsel %vm5455_vm3, %v5475_v47, %v5476_v5 }
 0x9f1   :  { %v5482_v45 = vsel %vm5457_vm8, %v5480_v35, %v5481_v27 }
 0x9f2   :  { %v5419_v59 = vadd.f32 %v5403_v22, %v5330_v37  ;;  %5489 = vst [vmem:[#allocation5 + $0x10] sm:$0xff] %v5482_v45 }
 0x9f4   :  { %v5435_v13 = vmax.f32 %v5419_v59, 0.0 }
 0xa26   :  { %v5212_v3 = vpop.permute.xlu0 %5211 }
 0xa27   :  { %v5216_v14 = vsel %vm74_vm4, %v5210_v57, %v5212_v3 }
 0xa28   :  { %v5404_v30 = vadd.f32 %v5372_v18, %v5216_v14 }
 0xa2e   :  { %v5322_v40 = vpop.permute.xlu0 %5321 }
 0xa2f   :  { %v5329_v35 = vsel %vm65_vm5, %v5320_v50, %v5322_v40 }
 0xa30   :  { %v5326_v23 = vpop.permute.xlu2 %5325  ;;  %v5420_v24 = vadd.f32 %v5404_v30, %v5329_v35 }
 0xa31   :  { %v5342_v16 = vsel %vm65_vm5, %v5326_v23, %v10772_v10 }
 0xa32   :  { %v5343_v29 = vmul.f32 %v7006_v56, %v5342_v16  ;;  %v5436_v25 = vmax.f32 %v5420_v24, 0.0 }
 0xa34   :  { %v5407_v15 = vadd.f32 %v10799_v46, %v5343_v29  ;;  %v5477_v43 = vrot.slane %v5436_v25, 6  ;;  %v7009_v46 = vsel %vm5150_vm11, 1.0, %v11903_v38 }
 0xa36   :  { %v5423_v26 = vmax.f32 %v5407_v15, 0.0  ;;  %v5483_v55 = vsel %vm5453_vm6, %v5435_v13, %v5477_v43 }
 0xa38   :  { %v5454_v12 = vsel %vm5453_vm6, %v5423_v26, %v5447_v32 }
 0xa39   :  { %v5458_v10 = vsel %vm5457_vm8, %v5454_v12, %v10931_v4  ;;  %v5373_v4 = vrot.slane %v11132_v39, 2 }
 0xa3a   :  { %5464 = vst [vmem:[#allocation5] sm:$0xff] %v5458_v10 }
 0xa46   :  { %v5214_v6 = vpop.permute.xlu1 %5213 }
 0xa47   :  { %v5230_v9 = vsel %vm74_vm4, %v5214_v6, %v10791_v36  ;;  %v5215_v2 = vsel %vm74_vm4, %v5212_v3, %v5214_v6 }
 0xa48   :  { %v5246_v42 = vmul.f32 %v7009_v46, %v5230_v9  ;;  %v5405_v20 = vadd.f32 %v5373_v4, %v5215_v2 }
 0xa4a   :  { %v5406_v48 = vadd.f32 %v5374_v7, %v5246_v42 }
 0xa4e   :  { %v5324_v44 = vpop.permute.xlu1 %5323 }
 0xa4f   :  { %v5327_v17 = vsel %vm65_vm5, %v5324_v44, %v5326_v23  ;;  %v5328_v38 = vsel %vm65_vm5, %v5322_v40, %v5324_v44 }
 0xa50   :  { %v5421_v60 = vadd.f32 %v5405_v20, %v5328_v38  ;;  %v5422_v53 = vadd.f32 %v5406_v48, %v5327_v17 }
 0xa52   :  { %v5437_v36 = vmax.f32 %v5421_v60, 0.0  ;;  %v5438_v33 = vmax.f32 %v5422_v53, 0.0 }
 0xa54   :  { %v5478_v39 = vrot.slane %v5437_v36, 4  ;;  %v5479_v61 = vrot.slane %v5438_v33, 2 }
 0xa56   :  { %v5484_v50 = vsel %vm5455_vm3, %v5478_v39, %v5479_v61 }
 0xa57   :  { %v5485_v62 = vsel %vm5457_vm8, %v5483_v55, %v5484_v50 }
 0xa58   :  { %5490 = vst [vmem:[#allocation5 + $0x18] sm:$0xff] %v5485_v62 }
 0xa59   :  { %5503 = dma.vmem_to_hbm [thread:$0]  %s5496_s28, 512, %s5498_s3, [#allocation4], %s7586_s2, %s7586_s2, %s7587_s22  }
 0xa5a   :  { %7563 = dma.done.wait [#allocation4], 512  }
 0xa5b   :  { %7564 = vsyncadd [#allocation4], 4294966784 }
 0xa5c   :  { %5508 = vsyncpa [#allocation3], 1 }
 0xa5d   :  { %5509 = vsyncpa [#allocation4], 1 }

</bundles_post_ra>
